<compile_context>
chip_gen: v5e
topology: v5e:2x2
jax: 0.10.0
libtpu: 0.0.40
codegen_flags: <defaults>
</compile_context>

<pallas_src>
import functools
import re

import numpy as np
import jax
import jax.numpy as jnp
from jax.experimental import pallas as pl
from jax.experimental.pallas import tpu as pltpu


VMEM_LIMIT = 32 * 1024 * 1024   # safe on v5e/v6e (128 MiB phys) and v7x (64 MiB)


def _round_up(x, m):
    return ((x + m - 1) // m) * m


def _tpu_generation():
    try:
        kind = jax.devices()[0].device_kind.lower()
        m = re.search(r"v(\d+)", kind)
        return int(m.group(1)) if m else 6
    except Exception:
        return 6


_GEN = _tpu_generation()
_MXU_K = 256 if _GEN >= 6 else 128   # MXU contraction depth (2x256^2 vs 4x128^2)
_TWO_CORES = _GEN >= 7               # v7x: 2 TensorCores per chip


def _compiler_params():
    return pltpu.CompilerParams(dimension_semantics=("parallel",),
                                vmem_limit_bytes=VMEM_LIMIT)


def _pick_row_tile(n_rows, target=1024):
    """Largest row tile up to `target`; only force >=2 grid steps on 2-TC chips."""
    if n_rows >= 2 * target:
        return target
    if _TWO_CORES and n_rows >= 16:
        return max(8, _round_up((n_rows + 1) // 2, 8))
    return max(8, min(_round_up(n_rows, 8), target))


# ----------------------------------------------------------------------------
# Pointwise channel-mix kernel (fc0 and the 1x1 Conv1d layers, fused add/ReLU)
# ----------------------------------------------------------------------------
def _make_pointwise_kernel(relu, has_add):
    def kern(x_ref, w_ref, b_ref, *rest):
        if has_add:
            a_ref, o_ref = rest
        else:
            (o_ref,) = rest
        y = jnp.dot(x_ref[...], w_ref[...], preferred_element_type=jnp.float32)
        y = y + b_ref[...]
        if has_add:
            y = y + a_ref[...].astype(jnp.float32)
        if relu:
            y = jnp.maximum(y, 0.0)
        o_ref[...] = y.astype(o_ref.dtype)
    return kern


def pointwise(x, wk, bt, p, cout, add=None, relu=False,
              out_dtype=jnp.bfloat16, tile_rows=1024):
    """y = [relu](x @ w + b [+ add]) with p consecutive rows packed per output
    row (block-diagonal weight `wk` built at init), so loads/stores are
    lane-dense and the MXU contraction is p*Cin.  x/add: bf16, wk: bf16,
    bt: f32 tiled bias."""
    N, cin = x.shape
    if p > 1:
        xp = x.reshape(N // p, p * cin)
        ap = None if add is None else add.reshape(N // p, p * cout)
    else:
        xp, ap = x, add

    Np, Ci = xp.shape
    Co = wk.shape[1]
    tile = _pick_row_tile(Np, tile_rows)
    grid_n = pl.cdiv(Np, tile)
    Npad = grid_n * tile
    if Npad != Np:
        xp = jnp.pad(xp, ((0, Npad - Np), (0, 0)))
        if ap is not None:
            ap = jnp.pad(ap, ((0, Npad - Np), (0, 0)))

    in_specs = [pl.BlockSpec((tile, Ci), lambda i: (i, 0)),
                pl.BlockSpec((Ci, Co), lambda i: (0, 0)),
                pl.BlockSpec((1, Co), lambda i: (0, 0))]
    args = [xp, wk, bt]
    if ap is not None:
        in_specs.append(pl.BlockSpec((tile, Co), lambda i: (i, 0)))
        args.append(ap)

    out = pl.pallas_call(
        _make_pointwise_kernel(relu, ap is not None),
        out_shape=jax.ShapeDtypeStruct((Npad, Co), out_dtype),
        grid=(grid_n,),
        in_specs=in_specs,
        out_specs=pl.BlockSpec((tile, Co), lambda i: (i, 0)),
        compiler_params=_compiler_params(),
    )(*args)

    out = out[:Np]
    if p > 1:
        out = out.reshape(N, cout)
    return out


# ----------------------------------------------------------------------------
# Fused projection head: fc1 + ReLU + fc2 in one pallas_call.
# fc2 result is produced as (2, tile) so stores are lane-dense.
# ----------------------------------------------------------------------------
def _head_kernel(x_ref, w1_ref, b1_ref, w2t_ref, b2t_ref, o_ref):
    h = jnp.dot(x_ref[...], w1_ref[...], preferred_element_type=jnp.float32)
    h = jnp.maximum(h + b1_ref[...], 0.0).astype(jnp.bfloat16)
    # (2, 128) x (tile, 128)^T -> (2, tile): dense-lane output block.
    y = jax.lax.dot_general(w2t_ref[...], h, (((1,), (1,)), ((), ())),
                            preferred_element_type=jnp.float32)
    o_ref[...] = y + b2t_ref[...]


def head(x, w1, b1, w2t, b2t, tile_rows=1024):
    """relu(x @ w1 + b1) @ w2 + b2; the (N,128) activation never hits HBM."""
    N, C0 = x.shape
    C1 = w1.shape[1]
    C2 = w2t.shape[0]

    tile = _pick_row_tile(N, tile_rows)
    grid_n = pl.cdiv(N, tile)
    Npad = grid_n * tile
    xb = x
    if Npad != N:
        xb = jnp.pad(xb, ((0, Npad - N), (0, 0)))

    out = pl.pallas_call(
        _head_kernel,
        out_shape=jax.ShapeDtypeStruct((C2, Npad), jnp.float32),
        grid=(grid_n,),
        in_specs=[pl.BlockSpec((tile, C0), lambda i: (i, 0)),
                  pl.BlockSpec((C0, C1), lambda i: (0, 0)),
                  pl.BlockSpec((1, C1), lambda i: (0, 0)),
                  pl.BlockSpec((C2, C1), lambda i: (0, 0)),
                  pl.BlockSpec((C2, 1), lambda i: (0, 0))],
        out_specs=pl.BlockSpec((C2, tile), lambda i: (0, i)),
        compiler_params=_compiler_params(),
    )(xb, w1, b1, w2t, b2t)
    return out[:, :N].T          # cheap XLA transpose of a (2, N) array


# ----------------------------------------------------------------------------
# SpectralConv2d via truncated real-DFT matmuls (no FFT, no complex dtypes)
# ----------------------------------------------------------------------------
def _dft_fwd_kernel(x_ref, kw_ref, fh_ref, o_ref, *, m_rows, m2c):
    # x: (H, W*C); kw: (W*C, 2*m2*C) = [cos | -sin] kron I_C; fh: (2M, H) = [cos; sin]
    x = x_ref[0].astype(jnp.float32)
    s = jnp.dot(x, kw_ref[...], preferred_element_type=jnp.float32)     # (H, 2*m2C) [SR|SI]
    q = jnp.dot(fh_ref[...], s, preferred_element_type=jnp.float32)     # (2M, 2*m2C)
    xfr = q[:m_rows, :m2c] + q[m_rows:, m2c:]                           # (M, m2C)
    xfi = q[:m_rows, m2c:] - q[m_rows:, :m2c]
    o_ref[0] = jnp.concatenate([xfr, xfi], axis=0)                      # (2M, m2C)


def _modemix_kernel(x_ref, w_ref, o_ref):
    # Per mode-pair: [Re|Im] complex channel mix as one real matmul,
    # 2 modes packed per 128-lane block (block-diagonal weights).
    o_ref[...] = jnp.einsum("nbk,nko->nbo", x_ref[...], w_ref[...],
                            preferred_element_type=jnp.float32)


def _dft_inv_kernel(y_ref, gi_ref, kg_ref, o_ref, *, h_rows):
    # y: (2M, m2C) = [YR; YI]; gi: (2H, 2M); kg: (2*m2C, W*C)
    y = y_ref[0]
    d = jnp.dot(gi_ref[...], y, preferred_element_type=jnp.float32)      # (2H, m2C) [DR; DI]
    dcat = jnp.concatenate([d[:h_rows], d[h_rows:]], axis=1)             # (H, 2*m2C)
    out = jnp.dot(dcat, kg_ref[...], preferred_element_type=jnp.float32) # (H, W*C)
    o_ref[0] = out.astype(o_ref.dtype)


@functools.lru_cache(maxsize=None)
def _dft_operators(H, W, C, m1, m2):
    """Real truncated-DFT factor matrices (numpy constants, baked at trace)."""
    kx = np.concatenate([np.arange(m1), np.arange(H - m1, H)])           # retained kx
    hh = np.arange(H)
    ww = np.arange(W)
    ky = np.arange(m2)

    ang_h = 2.0 * np.pi * ((kx[:, None] * hh[None, :]) % H) / H          # (M, H)
    cos_h, sin_h = np.cos(ang_h), np.sin(ang_h)
    fh = np.concatenate([cos_h, sin_h], axis=0).astype(np.float32)       # (2M, H)

    ang_w = 2.0 * np.pi * ((ww[:, None] * ky[None, :]) % W) / W          # (W, m2)
    cos_w, sin_w = np.cos(ang_w), np.sin(ang_w)
    eye_c = np.eye(C, dtype=np.float32)
    kw = np.concatenate([np.kron(cos_w, eye_c), np.kron(-sin_w, eye_c)],
                        axis=1).astype(np.float32)                       # (W*C, 2*m2*C)

    cos_ht = cos_h.T / H                                                 # (H, M)
    sin_ht = sin_h.T / H
    gi = np.concatenate(
        [np.concatenate([cos_ht, -sin_ht], axis=1),
         np.concatenate([sin_ht, cos_ht], axis=1)], axis=0).astype(np.float32)   # (2H, 2M)

    # irfft weighting: DC (and Nyquist) bins counted once, interior bins twice.
    g = np.where((ky == 0) | (2 * ky == W), 1.0, 2.0) / W                # (m2,)
    gyr = g[:, None] * cos_w.T                                           # (m2, W)
    gyi = g[:, None] * sin_w.T
    kg = np.concatenate([np.kron(gyr, eye_c), np.kron(-gyi, eye_c)],
                        axis=0).astype(np.float32)                       # (2*m2*C, W*C)

    return {"fh": jnp.asarray(fh), "kw": jnp.asarray(kw),
            "gi": jnp.asarray(gi), "kg": jnp.asarray(kg)}


def spectral_conv2d(h, wpair, ops, m1, m2):
    """h: (B, H, W, C) bf16 -> (B, H, W, C) bf16 (spectral residual branch)."""
    B, H, W, C = h.shape
    M = 2 * m1
    m2c = m2 * C
    n_modes = M * m2
    n_pairs = n_modes // 2

    # --- forward truncated DFT (per batch element) -------------------------
    x2 = h.reshape(B, H, W * C)
    coef = pl.pallas_call(
        functools.partial(_dft_fwd_kernel, m_rows=M, m2c=m2c),
        out_shape=jax.ShapeDtypeStruct((B, 2 * M, m2c), jnp.float32),
        grid=(B,),
        in_specs=[pl.BlockSpec((1, H, W * C), lambda b: (b, 0, 0)),
                  pl.BlockSpec((W * C, 2 * m2c), lambda b: (0, 0)),
                  pl.BlockSpec((2 * M, H), lambda b: (0, 0))],
        out_specs=pl.BlockSpec((1, 2 * M, m2c), lambda b: (b, 0, 0)),
        compiler_params=_compiler_params(),
    )(x2, ops["kw"], ops["fh"])

    # --- tiny relayout to mode-major, paired layout (plain JAX, few KB) ----
    cr = coef[:, :M, :].reshape(B, M, m2, C)
    ci = coef[:, M:, :].reshape(B, M, m2, C)
    xri = jnp.concatenate([cr, ci], axis=-1).reshape(B, n_modes, 2 * C)
    xri = xri.transpose(1, 0, 2)                                        # (n_modes, B, 2C)
    xpair = xri.reshape(n_pairs, 2, B, 2 * C).transpose(0, 2, 1, 3)
    xpair = xpair.reshape(n_pairs, B, 4 * C)                            # (n_pairs, B, 4C)

    # --- mode mixing (f32, dense 128-wide lanes) ----------------------------
    nblk = 2 if (_TWO_CORES and n_pairs % 2 == 0) else 1
    ypair = pl.pallas_call(
        _modemix_kernel,
        out_shape=jax.ShapeDtypeStruct((n_pairs, B, 4 * C), jnp.float32),
        grid=(nblk,),
        in_specs=[pl.BlockSpec((n_pairs // nblk, B, 4 * C), lambda i: (i, 0, 0)),
                  pl.BlockSpec((n_pairs // nblk, 4 * C, 4 * C), lambda i: (i, 0, 0))],
        out_specs=pl.BlockSpec((n_pairs // nblk, B, 4 * C), lambda i: (i, 0, 0)),
        compiler_params=_compiler_params(),
    )(xpair, wpair)

    yri = ypair.reshape(n_pairs, B, 2, 2 * C).transpose(0, 2, 1, 3)
    yri = yri.reshape(n_modes, B, 2 * C).transpose(1, 0, 2)             # (B, n_modes, 2C)
    yri = yri.reshape(B, M, m2, 2 * C)
    yr = yri[..., :C].reshape(B, M, m2c)
    yi = yri[..., C:].reshape(B, M, m2c)
    ycoef = jnp.concatenate([yr, yi], axis=1)                           # (B, 2M, m2C)

    # --- inverse truncated DFT (per batch element), bf16 residual out ------
    y = pl.pallas_call(
        functools.partial(_dft_inv_kernel, h_rows=H),
        out_shape=jax.ShapeDtypeStruct((B, H, W * C), jnp.bfloat16),
        grid=(B,),
        in_specs=[pl.BlockSpec((1, 2 * M, m2c), lambda b: (b, 0, 0)),
                  pl.BlockSpec((2 * H, 2 * M), lambda b: (0, 0)),
                  pl.BlockSpec((2 * m2c, W * C), lambda b: (0, 0))],
        out_specs=pl.BlockSpec((1, H, W * C), lambda b: (b, 0, 0)),
        compiler_params=_compiler_params(),
    )(ycoef, ops["gi"], ops["kg"])
    return y.reshape(B, H, W, C)


# ----------------------------------------------------------------------------
# Parameters
# ----------------------------------------------------------------------------
def _spectral_weights(key, C, m1, m2):
    # Complex weights ~ scale * U[0,1) (like torch.rand(cfloat)); first m1 kx
    # rows correspond to weights1, last m1 rows to weights2.
    scale = 1.0 / (C * C)
    kr, ki = jax.random.split(key)
    wr = scale * jax.random.uniform(kr, (2 * m1, m2, C, C), jnp.float32)
    wi = scale * jax.random.uniform(ki, (2 * m1, m2, C, C), jnp.float32)
    return wr, wi


def _pack_mode_weights(wr, wi):
    """Per-mode real 2x2-block form, 2 modes packed block-diagonally (f32)."""
    n_modes = wr.shape[0] * wr.shape[1]
    C = wr.shape[-1]
    wr2 = wr.reshape(n_modes, C, C)
    wi2 = wi.reshape(n_modes, C, C)
    blk = jnp.concatenate(
        [jnp.concatenate([wr2, wi2], axis=-1),
         jnp.concatenate([-wi2, wr2], axis=-1)], axis=-2)               # (n_modes, 2C, 2C)
    n_pairs = n_modes // 2
    pair = jnp.zeros((n_pairs, 4 * C, 4 * C), jnp.float32)
    pair = pair.at[:, :2 * C, :2 * C].set(blk[0::2])
    pair = pair.at[:, 2 * C:, 2 * C:].set(blk[1::2])
    return pair


def init_params(key, width, modes1, modes2):
    ks = jax.random.split(key, 11)

    def lin(k, cin, cout):
        kw_, kb = jax.random.split(k)
        s = float(1.0 / np.sqrt(cin))
        return (jax.random.uniform(kw_, (cin, cout), jnp.float32, -s, s),
                jax.random.uniform(kb, (1, cout), jnp.float32, -s, s))

    return {
        "width": width, "modes1": modes1, "modes2": modes2,
        "fc0": lin(ks[0], 3, width),
        "conv": [_spectral_weights(ks[1 + i], width, modes1, modes2) for i in range(4)],
        "w": [lin(ks[5 + i], width, width) for i in range(4)],   # 1x1 Conv1d == Linear
        "fc1": lin(ks[9], width, 128),
        "fc2": lin(ks[10], 128, 2),
    }


def prepare_params(params, n_rows=None):
    """Build all kernel-ready (packed / bf16) weights once, outside the forward."""
    width = params["width"]
    p = _MXU_K // width if (width < _MXU_K and _MXU_K % width == 0) else 1
    if n_rows is not None:
        while p > 1 and n_rows % p:      # avoid the silent p=1 perf cliff
            p //= 2

    def pack_pw(w, b):
        wk = jnp.kron(jnp.eye(p, dtype=w.dtype), w).astype(jnp.bfloat16)
        return wk, jnp.tile(b, (1, p))

    return {
        "width": width, "modes1": params["modes1"], "modes2": params["modes2"], "p": p,
        "fc0": pack_pw(*params["fc0"]),
        "w": [pack_pw(*params["w"][i]) for i in range(4)],
        "conv": [_pack_mode_weights(*params["conv"][i]) for i in range(4)],
        "fc1": (params["fc1"][0].astype(jnp.bfloat16), params["fc1"][1]),
        "fc2t": (params["fc2"][0].T.astype(jnp.bfloat16),        # (2, 128)
                 params["fc2"][1].reshape(-1, 1)),               # (2, 1)
    }


# ----------------------------------------------------------------------------
# FNO2d forward (Pallas)
# ----------------------------------------------------------------------------
def fno2d_forward(prep, x):
    """x: (B, H, W, 3) -> (B, H, W, 2)."""
    B, H, W, _ = x.shape
    width, m1, m2, p = prep["width"], prep["modes1"], prep["modes2"], prep["p"]
    N = B * H * W
    assert N % max(p, 1) == 0, "row count must be divisible by the packing factor"

    ops = _dft_operators(H, W, width, m1, m2)

    xb = x.reshape(N, 3).astype(jnp.bfloat16)
    h = pointwise(xb, *prep["fc0"], p=p, cout=width)                     # lift -> (N, width)

    for i in range(4):
        x1 = spectral_conv2d(h.reshape(B, H, W, width), prep["conv"][i], ops, m1, m2)
        # W(u) + K(u) (+ ReLU for the first 3 blocks), fused in one kernel.
        h = pointwise(h, *prep["w"][i], p=p, cout=width,
                      add=x1.reshape(N, width), relu=(i < 3))

    out = head(h, prep["fc1"][0], prep["fc1"][1], prep["fc2t"][0], prep["fc2t"][1])
    return out.reshape(B, H, W, 2)


# ----------------------------------------------------------------------------
# Pure-JAX f32 reference (mirrors the PyTorch module, uses jnp.fft)
# ----------------------------------------------------------------------------
def fno2d_reference(params, x):
    B, H, W, _ = x.shape
    C = params["width"]
    m1, m2 = params["modes1"], params["modes2"]

    def lin(h, wb):
        w, b = wb
        return h @ w + b

    def spec(h, wr, wi):
        wc = (wr + 1j * wi).astype(jnp.complex64)                        # (2m1, m2, C, C)
        hf = jnp.fft.rfft2(h, axes=(1, 2))
        out_ft = jnp.zeros((B, H, W // 2 + 1, C), jnp.complex64)
        out_ft = out_ft.at[:, :m1, :m2, :].set(
            jnp.einsum("bxyi,xyio->bxyo", hf[:, :m1, :m2, :], wc[:m1]))
        out_ft = out_ft.at[:, H - m1:, :m2, :].set(
            jnp.einsum("bxyi,xyio->bxyo", hf[:, H - m1:, :m2, :], wc[m1:]))
        return jnp.fft.irfft2(out_ft, s=(H, W), axes=(1, 2)).astype(jnp.float32)

    h = lin(x, params["fc0"])
    for i in range(4):
        x1 = spec(h, *params["conv"][i])
        x2 = lin(h, params["w"][i])
        h = x1 + x2
        if i < 3:
            h = jnp.maximum(h, 0.0)
    h = jnp.maximum(lin(h, params["fc1"]), 0.0)
    return lin(h, params["fc2"])


# ----------------------------------------------------------------------------
if __name__ == "__main__":
    modes1, modes2, width = 4, 4, 32
    B, S = 2, 16

    key = jax.random.PRNGKey(0)
    k_in, k_par = jax.random.split(key)
    x = jax.random.normal(k_in, (B, S, S, 3), jnp.float32)
    params = init_params(k_par, width, modes1, modes2)
    prep = prepare_params(params, n_rows=B * S * S)

    fwd = jax.jit(functools.partial(fno2d_forward, prep))
    out = jax.block_until_ready(fwd(x))
    assert out.shape == (B, S, S, 2), out.shape

    ref = jax.block_until_ready(fno2d_reference(params, x))
    max_err = float(jnp.max(jnp.abs(out - ref)))
    scale = float(jnp.max(jnp.abs(ref)))
    # bf16 activations / matmul inputs through 4 residual blocks + head leave
    # some rounding headroom; 5% of the output scale is a meaningful check.
    assert max_err <= 5e-2 * (1.0 + scale), f"mismatch vs reference: {max_err} (scale {scale})"

    print("KERNEL_OK")
</pallas_src>

<mosaic_0001>
module attributes {stable_mosaic.version = 11 : i64} {
  func.func @kern(%arg0: i32, %arg1: memref<64x24xbf16, #tpu.memory_space<vmem>>, %arg2: memref<24x256xbf16, #tpu.memory_space<vmem>>, %arg3: memref<1x256xf32, #tpu.memory_space<vmem>>, %arg4: memref<64x256xbf16, #tpu.memory_space<vmem>>) attributes {dimension_semantics = [#tpu.dimension_semantics<parallel>], iteration_bounds = array<i64: 1>, scalar_prefetch = 0 : i64, scratch_operands = 0 : i64, tpu.core_type = #tpu.core_type<tc>, window_params = [{transform_indices = @transform_0, window_bounds = array<i64: 64, 24>}, {pipeline_mode = #tpu.pipeline_mode<synchronous>, transform_indices = @transform_1, window_bounds = array<i64: 24, 256>}, {pipeline_mode = #tpu.pipeline_mode<synchronous>, transform_indices = @transform_2, window_bounds = array<i64: 1, 256>}, {transform_indices = @transform_3, window_bounds = array<i64: 64, 256>}]} {
    %c0 = arith.constant 0 : index
    %c0_0 = arith.constant 0 : index
    %0 = vector.load %arg1[%c0, %c0_0] : memref<64x24xbf16, #tpu.memory_space<vmem>>, vector<64x24xbf16>
    %c0_1 = arith.constant 0 : index
    %c0_2 = arith.constant 0 : index
    %1 = vector.load %arg2[%c0_1, %c0_2] : memref<24x256xbf16, #tpu.memory_space<vmem>>, vector<24x256xbf16>
    %cst = arith.constant dense<0.000000e+00> : vector<64x256xf32>
    %2 = tpu.matmul %0, %1, %cst {dimension_numbers = #tpu.dot_dimension_numbers<[1], [0], [0], [1], [0, 0, 1, 1], [], []>} : vector<64x24xbf16>, vector<24x256xbf16>, vector<64x256xf32> -> vector<64x256xf32>
    %c0_3 = arith.constant 0 : index
    %c0_4 = arith.constant 0 : index
    %3 = vector.load %arg3[%c0_3, %c0_4] : memref<1x256xf32, #tpu.memory_space<vmem>>, vector<1x256xf32>
    %4 = vector.broadcast %3 : vector<1x256xf32> to vector<64x256xf32>
    %5 = arith.addf %2, %4 : vector<64x256xf32>
    %6 = arith.truncf %5 : vector<64x256xf32> to vector<64x256xbf16>
    %c0_5 = arith.constant 0 : index
    %c0_6 = arith.constant 0 : index
    %7 = vector.load %arg4[%c0_5, %c0_6] : memref<64x256xbf16, #tpu.memory_space<vmem>>, vector<64x256xbf16>
    tpu.vector_store %arg4[%c0_5, %c0_6], %6 {strides = array<i32>} : memref<64x256xbf16, #tpu.memory_space<vmem>>, vector<64x256xbf16>,
    return
  }
  func.func @transform_0(%arg0: i32) -> (i32, i32) {
    %c0_i32 = arith.constant 0 : i32
    %c0_i32_0 = arith.constant 0 : i32
    return %arg0, %c0_i32 : i32, i32
  }
  func.func @transform_1(%arg0: i32) -> (i32, i32) {
    %c0_i32 = arith.constant 0 : i32
    %c0_i32_0 = arith.constant 0 : i32
    %c0_i32_1 = arith.constant 0 : i32
    return %c0_i32, %c0_i32_0 : i32, i32
  }
  func.func @transform_2(%arg0: i32) -> (i32, i32) {
    %c0_i32 = arith.constant 0 : i32
    %c0_i32_0 = arith.constant 0 : i32
    %c0_i32_1 = arith.constant 0 : i32
    return %c0_i32, %c0_i32_0 : i32, i32
  }
  func.func @transform_3(%arg0: i32) -> (i32, i32) {
    %c0_i32 = arith.constant 0 : i32
    %c0_i32_0 = arith.constant 0 : i32
    return %arg0, %c0_i32 : i32, i32
  }
}

module attributes {stable_mosaic.version = 11 : i64} {
  func.func @_dft_fwd_kernel(%arg0: i32, %arg1: memref<1x16x512xbf16, #tpu.memory_space<vmem>>, %arg2: memref<512x256xf32, #tpu.memory_space<vmem>>, %arg3: memref<16x16xf32, #tpu.memory_space<vmem>>, %arg4: memref<1x16x128xf32, #tpu.memory_space<vmem>>) attributes {dimension_semantics = [#tpu.dimension_semantics<parallel>], iteration_bounds = array<i64: 2>, scalar_prefetch = 0 : i64, scratch_operands = 0 : i64, tpu.core_type = #tpu.core_type<tc>, window_params = [{transform_indices = @transform_0, window_bounds = array<i64: 1, 16, 512>}, {pipeline_mode = #tpu.pipeline_mode<synchronous>, transform_indices = @transform_1, window_bounds = array<i64: 512, 256>}, {pipeline_mode = #tpu.pipeline_mode<synchronous>, transform_indices = @transform_2, window_bounds = array<i64: 16, 16>}, {transform_indices = @transform_3, window_bounds = array<i64: 1, 16, 128>}]} {
    %c0 = arith.constant 0 : index
    %c0_0 = arith.constant 0 : index
    %c0_1 = arith.constant 0 : index
    %0 = vector.load %arg1[%c0, %c0_0, %c0_1] : memref<1x16x512xbf16, #tpu.memory_space<vmem>>, vector<1x16x512xbf16>
    %1 = vector.shape_cast %0 : vector<1x16x512xbf16> to vector<16x512xbf16>
    %2 = arith.extf %1 : vector<16x512xbf16> to vector<16x512xf32>
    %c0_2 = arith.constant 0 : index
    %c0_3 = arith.constant 0 : index
    %3 = vector.load %arg2[%c0_2, %c0_3] : memref<512x256xf32, #tpu.memory_space<vmem>>, vector<512x256xf32>
    %cst = arith.constant dense<0.000000e+00> : vector<16x256xf32>
    %4 = tpu.matmul %2, %3, %cst {dimension_numbers = #tpu.dot_dimension_numbers<[1], [0], [0], [1], [0, 0, 1, 1], [], []>} : vector<16x512xf32>, vector<512x256xf32>, vector<16x256xf32> -> vector<16x256xf32>
    %c0_4 = arith.constant 0 : index
    %c0_5 = arith.constant 0 : index
    %5 = vector.load %arg3[%c0_4, %c0_5] : memref<16x16xf32, #tpu.memory_space<vmem>>, vector<16x16xf32>
    %cst_6 = arith.constant dense<0.000000e+00> : vector<16x256xf32>
    %6 = tpu.matmul %5, %4, %cst_6 {dimension_numbers = #tpu.dot_dimension_numbers<[1], [0], [0], [1], [0, 0, 1, 1], [], []>} : vector<16x16xf32>, vector<16x256xf32>, vector<16x256xf32> -> vector<16x256xf32>
    %7 = vector.extract_strided_slice %6 {offsets = [0, 0], sizes = [8, 128], strides = [1, 1]} : vector<16x256xf32> to vector<8x128xf32>
    %8 = vector.extract_strided_slice %6 {offsets = [8, 128], sizes = [8, 128], strides = [1, 1]} : vector<16x256xf32> to vector<8x128xf32>
    %9 = arith.addf %7, %8 : vector<8x128xf32>
    %10 = vector.extract_strided_slice %6 {offsets = [0, 128], sizes = [8, 128], strides = [1, 1]} : vector<16x256xf32> to vector<8x128xf32>
    %11 = vector.extract_strided_slice %6 {offsets = [8, 0], sizes = [8, 128], strides = [1, 1]} : vector<16x256xf32> to vector<8x128xf32>
    %12 = arith.subf %10, %11 : vector<8x128xf32>
    %13 = tpu.concatenate %9, %12 in 0 : vector<8x128xf32>, vector<8x128xf32> -> vector<16x128xf32>
    %c0_7 = arith.constant 0 : index
    %c0_8 = arith.constant 0 : index
    %c0_9 = arith.constant 0 : index
    %14 = vector.load %arg4[%c0_7, %c0_8, %c0_9] : memref<1x16x128xf32, #tpu.memory_space<vmem>>, vector<1x16x128xf32>
    %15 = vector.shape_cast %14 : vector<1x16x128xf32> to vector<16x128xf32>
    %16 = vector.shape_cast %13 : vector<16x128xf32> to vector<1x16x128xf32>
    tpu.vector_store %arg4[%c0_7, %c0_8, %c0_9], %16 {strides = array<i32>} : memref<1x16x128xf32, #tpu.memory_space<vmem>>, vector<1x16x128xf32>,
    return
  }
  func.func @transform_0(%arg0: i32) -> (i32, i32, i32) {
    %c0_i32 = arith.constant 0 : i32
    %c0_i32_0 = arith.constant 0 : i32
    %c0_i32_1 = arith.constant 0 : i32
    return %arg0, %c0_i32, %c0_i32_0 : i32, i32, i32
  }
  func.func @transform_1(%arg0: i32) -> (i32, i32) {
    %c0_i32 = arith.constant 0 : i32
    %c0_i32_0 = arith.constant 0 : i32
    %c0_i32_1 = arith.constant 0 : i32
    return %c0_i32, %c0_i32_0 : i32, i32
  }
  func.func @transform_2(%arg0: i32) -> (i32, i32) {
    %c0_i32 = arith.constant 0 : i32
    %c0_i32_0 = arith.constant 0 : i32
    %c0_i32_1 = arith.constant 0 : i32
    return %c0_i32, %c0_i32_0 : i32, i32
  }
  func.func @transform_3(%arg0: i32) -> (i32, i32, i32) {
    %c0_i32 = arith.constant 0 : i32
    %c0_i32_0 = arith.constant 0 : i32
    %c0_i32_1 = arith.constant 0 : i32
    return %arg0, %c0_i32, %c0_i32_0 : i32, i32, i32
  }
}

module attributes {stable_mosaic.version = 11 : i64} {
  func.func @_modemix_kernel(%arg0: i32, %arg1: memref<16x2x128xf32, #tpu.memory_space<vmem>>, %arg2: memref<16x128x128xf32, #tpu.memory_space<vmem>>, %arg3: memref<16x2x128xf32, #tpu.memory_space<vmem>>) attributes {dimension_semantics = [#tpu.dimension_semantics<parallel>], iteration_bounds = array<i64: 1>, scalar_prefetch = 0 : i64, scratch_operands = 0 : i64, tpu.core_type = #tpu.core_type<tc>, window_params = [{transform_indices = @transform_0, window_bounds = array<i64: 16, 2, 128>}, {transform_indices = @transform_1, window_bounds = array<i64: 16, 128, 128>}, {transform_indices = @transform_2, window_bounds = array<i64: 16, 2, 128>}]} {
    %c0 = arith.constant 0 : index
    %c0_0 = arith.constant 0 : index
    %c0_1 = arith.constant 0 : index
    %0 = vector.load %arg1[%c0, %c0_0, %c0_1] : memref<16x2x128xf32, #tpu.memory_space<vmem>>, vector<16x2x128xf32>
    %c0_2 = arith.constant 0 : index
    %c0_3 = arith.constant 0 : index
    %c0_4 = arith.constant 0 : index
    %1 = vector.load %arg2[%c0_2, %c0_3, %c0_4] : memref<16x128x128xf32, #tpu.memory_space<vmem>>, vector<16x128x128xf32>
    "tpu.trace_start"() <{level = 10 : i32, message = "nbk,nko->nbo"}> : () -> ()
    %cst = arith.constant dense<0.000000e+00> : vector<16x2x128xf32>
    %2 = tpu.matmul %0, %1, %cst {dimension_numbers = #tpu.dot_dimension_numbers<[2], [1], [1], [2], [0, 0, 0, 1, 1, 2], [0], [0]>} : vector<16x2x128xf32>, vector<16x128x128xf32>, vector<16x2x128xf32> -> vector<16x2x128xf32>
    "tpu.trace_stop"() : () -> ()
    %c0_5 = arith.constant 0 : index
    %c0_6 = arith.constant 0 : index
    %c0_7 = arith.constant 0 : index
    %3 = vector.load %arg3[%c0_5, %c0_6, %c0_7] : memref<16x2x128xf32, #tpu.memory_space<vmem>>, vector<16x2x128xf32>
    tpu.vector_store %arg3[%c0_5, %c0_6, %c0_7], %2 {strides = array<i32>} : memref<16x2x128xf32, #tpu.memory_space<vmem>>, vector<16x2x128xf32>,
    return
  }
  func.func @transform_0(%arg0: i32) -> (i32, i32, i32) {
    %c0_i32 = arith.constant 0 : i32
    %c0_i32_0 = arith.constant 0 : i32
    %c0_i32_1 = arith.constant 0 : i32
    return %arg0, %c0_i32, %c0_i32_0 : i32, i32, i32
  }
  func.func @transform_1(%arg0: i32) -> (i32, i32, i32) {
    %c0_i32 = arith.constant 0 : i32
    %c0_i32_0 = arith.constant 0 : i32
    %c0_i32_1 = arith.constant 0 : i32
    return %arg0, %c0_i32, %c0_i32_0 : i32, i32, i32
  }
  func.func @transform_2(%arg0: i32) -> (i32, i32, i32) {
    %c0_i32 = arith.constant 0 : i32
    %c0_i32_0 = arith.constant 0 : i32
    %c0_i32_1 = arith.constant 0 : i32
    return %arg0, %c0_i32, %c0_i32_0 : i32, i32, i32
  }
}

module attributes {stable_mosaic.version = 11 : i64} {
  func.func @_dft_inv_kernel(%arg0: i32, %arg1: memref<1x16x128xf32, #tpu.memory_space<vmem>>, %arg2: memref<32x16xf32, #tpu.memory_space<vmem>>, %arg3: memref<256x512xf32, #tpu.memory_space<vmem>>, %arg4: memref<1x16x512xbf16, #tpu.memory_space<vmem>>) attributes {dimension_semantics = [#tpu.dimension_semantics<parallel>], iteration_bounds = array<i64: 2>, scalar_prefetch = 0 : i64, scratch_operands = 0 : i64, tpu.core_type = #tpu.core_type<tc>, window_params = [{transform_indices = @transform_0, window_bounds = array<i64: 1, 16, 128>}, {pipeline_mode = #tpu.pipeline_mode<synchronous>, transform_indices = @transform_1, window_bounds = array<i64: 32, 16>}, {pipeline_mode = #tpu.pipeline_mode<synchronous>, transform_indices = @transform_2, window_bounds = array<i64: 256, 512>}, {transform_indices = @transform_3, window_bounds = array<i64: 1, 16, 512>}]} {
    %c0 = arith.constant 0 : index
    %c0_0 = arith.constant 0 : index
    %c0_1 = arith.constant 0 : index
    %0 = vector.load %arg1[%c0, %c0_0, %c0_1] : memref<1x16x128xf32, #tpu.memory_space<vmem>>, vector<1x16x128xf32>
    %1 = vector.shape_cast %0 : vector<1x16x128xf32> to vector<16x128xf32>
    %c0_2 = arith.constant 0 : index
    %c0_3 = arith.constant 0 : index
    %2 = vector.load %arg2[%c0_2, %c0_3] : memref<32x16xf32, #tpu.memory_space<vmem>>, vector<32x16xf32>
    %cst = arith.constant dense<0.000000e+00> : vector<32x128xf32>
    %3 = tpu.matmul %2, %1, %cst {dimension_numbers = #tpu.dot_dimension_numbers<[1], [0], [0], [1], [0, 0, 1, 1], [], []>} : vector<32x16xf32>, vector<16x128xf32>, vector<32x128xf32> -> vector<32x128xf32>
    %4 = vector.extract_strided_slice %3 {offsets = [0, 0], sizes = [16, 128], strides = [1, 1]} : vector<32x128xf32> to vector<16x128xf32>
    %5 = vector.extract_strided_slice %3 {offsets = [16, 0], sizes = [16, 128], strides = [1, 1]} : vector<32x128xf32> to vector<16x128xf32>
    %6 = tpu.concatenate %4, %5 in 1 : vector<16x128xf32>, vector<16x128xf32> -> vector<16x256xf32>
    %c0_4 = arith.constant 0 : index
    %c0_5 = arith.constant 0 : index
    %7 = vector.load %arg3[%c0_4, %c0_5] : memref<256x512xf32, #tpu.memory_space<vmem>>, vector<256x512xf32>
    %cst_6 = arith.constant dense<0.000000e+00> : vector<16x512xf32>
    %8 = tpu.matmul %6, %7, %cst_6 {dimension_numbers = #tpu.dot_dimension_numbers<[1], [0], [0], [1], [0, 0, 1, 1], [], []>} : vector<16x256xf32>, vector<256x512xf32>, vector<16x512xf32> -> vector<16x512xf32>
    %9 = arith.truncf %8 : vector<16x512xf32> to vector<16x512xbf16>
    %c0_7 = arith.constant 0 : index
    %c0_8 = arith.constant 0 : index
    %c0_9 = arith.constant 0 : index
    %10 = vector.load %arg4[%c0_7, %c0_8, %c0_9] : memref<1x16x512xbf16, #tpu.memory_space<vmem>>, vector<1x16x512xbf16>
    %11 = vector.shape_cast %10 : vector<1x16x512xbf16> to vector<16x512xbf16>
    %12 = vector.shape_cast %9 : vector<16x512xbf16> to vector<1x16x512xbf16>
    tpu.vector_store %arg4[%c0_7, %c0_8, %c0_9], %12 {strides = array<i32>} : memref<1x16x512xbf16, #tpu.memory_space<vmem>>, vector<1x16x512xbf16>,
    return
  }
  func.func @transform_0(%arg0: i32) -> (i32, i32, i32) {
    %c0_i32 = arith.constant 0 : i32
    %c0_i32_0 = arith.constant 0 : i32
    %c0_i32_1 = arith.constant 0 : i32
    return %arg0, %c0_i32, %c0_i32_0 : i32, i32, i32
  }
  func.func @transform_1(%arg0: i32) -> (i32, i32) {
    %c0_i32 = arith.constant 0 : i32
    %c0_i32_0 = arith.constant 0 : i32
    %c0_i32_1 = arith.constant 0 : i32
    return %c0_i32, %c0_i32_0 : i32, i32
  }
  func.func @transform_2(%arg0: i32) -> (i32, i32) {
    %c0_i32 = arith.constant 0 : i32
    %c0_i32_0 = arith.constant 0 : i32
    %c0_i32_1 = arith.constant 0 : i32
    return %c0_i32, %c0_i32_0 : i32, i32
  }
  func.func @transform_3(%arg0: i32) -> (i32, i32, i32) {
    %c0_i32 = arith.constant 0 : i32
    %c0_i32_0 = arith.constant 0 : i32
    %c0_i32_1 = arith.constant 0 : i32
    return %arg0, %c0_i32, %c0_i32_0 : i32, i32, i32
  }
}

module attributes {stable_mosaic.version = 11 : i64} {
  func.func @kern(%arg0: i32, %arg1: memref<64x256xbf16, #tpu.memory_space<vmem>>, %arg2: memref<256x256xbf16, #tpu.memory_space<vmem>>, %arg3: memref<1x256xf32, #tpu.memory_space<vmem>>, %arg4: memref<64x256xbf16, #tpu.memory_space<vmem>>, %arg5: memref<64x256xbf16, #tpu.memory_space<vmem>>) attributes {dimension_semantics = [#tpu.dimension_semantics<parallel>], iteration_bounds = array<i64: 1>, scalar_prefetch = 0 : i64, scratch_operands = 0 : i64, tpu.core_type = #tpu.core_type<tc>, window_params = [{transform_indices = @transform_0, window_bounds = array<i64: 64, 256>}, {pipeline_mode = #tpu.pipeline_mode<synchronous>, transform_indices = @transform_1, window_bounds = array<i64: 256, 256>}, {pipeline_mode = #tpu.pipeline_mode<synchronous>, transform_indices = @transform_2, window_bounds = array<i64: 1, 256>}, {transform_indices = @transform_3, window_bounds = array<i64: 64, 256>}, {transform_indices = @transform_4, window_bounds = array<i64: 64, 256>}]} {
    %c0 = arith.constant 0 : index
    %c0_0 = arith.constant 0 : index
    %0 = vector.load %arg1[%c0, %c0_0] : memref<64x256xbf16, #tpu.memory_space<vmem>>, vector<64x256xbf16>
    %c0_1 = arith.constant 0 : index
    %c0_2 = arith.constant 0 : index
    %1 = vector.load %arg2[%c0_1, %c0_2] : memref<256x256xbf16, #tpu.memory_space<vmem>>, vector<256x256xbf16>
    %cst = arith.constant dense<0.000000e+00> : vector<64x256xf32>
    %2 = tpu.matmul %0, %1, %cst {dimension_numbers = #tpu.dot_dimension_numbers<[1], [0], [0], [1], [0, 0, 1, 1], [], []>} : vector<64x256xbf16>, vector<256x256xbf16>, vector<64x256xf32> -> vector<64x256xf32>
    %c0_3 = arith.constant 0 : index
    %c0_4 = arith.constant 0 : index
    %3 = vector.load %arg3[%c0_3, %c0_4] : memref<1x256xf32, #tpu.memory_space<vmem>>, vector<1x256xf32>
    %4 = vector.broadcast %3 : vector<1x256xf32> to vector<64x256xf32>
    %5 = arith.addf %2, %4 : vector<64x256xf32>
    %c0_5 = arith.constant 0 : index
    %c0_6 = arith.constant 0 : index
    %6 = vector.load %arg4[%c0_5, %c0_6] : memref<64x256xbf16, #tpu.memory_space<vmem>>, vector<64x256xbf16>
    %7 = arith.extf %6 : vector<64x256xbf16> to vector<64x256xf32>
    %8 = arith.addf %5, %7 : vector<64x256xf32>
    %cst_7 = arith.constant 0.000000e+00 : f32
    %9 = vector.broadcast %cst_7 : f32 to vector<64x256xf32>
    %10 = arith.maximumf %8, %9 : vector<64x256xf32>
    %11 = arith.truncf %10 : vector<64x256xf32> to vector<64x256xbf16>
    %c0_8 = arith.constant 0 : index
    %c0_9 = arith.constant 0 : index
    %12 = vector.load %arg5[%c0_8, %c0_9] : memref<64x256xbf16, #tpu.memory_space<vmem>>, vector<64x256xbf16>
    tpu.vector_store %arg5[%c0_8, %c0_9], %11 {strides = array<i32>} : memref<64x256xbf16, #tpu.memory_space<vmem>>, vector<64x256xbf16>,
    return
  }
  func.func @transform_0(%arg0: i32) -> (i32, i32) {
    %c0_i32 = arith.constant 0 : i32
    %c0_i32_0 = arith.constant 0 : i32
    return %arg0, %c0_i32 : i32, i32
  }
  func.func @transform_1(%arg0: i32) -> (i32, i32) {
    %c0_i32 = arith.constant 0 : i32
    %c0_i32_0 = arith.constant 0 : i32
    %c0_i32_1 = arith.constant 0 : i32
    return %c0_i32, %c0_i32_0 : i32, i32
  }
  func.func @transform_2(%arg0: i32) -> (i32, i32) {
    %c0_i32 = arith.constant 0 : i32
    %c0_i32_0 = arith.constant 0 : i32
    %c0_i32_1 = arith.constant 0 : i32
    return %c0_i32, %c0_i32_0 : i32, i32
  }
  func.func @transform_3(%arg0: i32) -> (i32, i32) {
    %c0_i32 = arith.constant 0 : i32
    %c0_i32_0 = arith.constant 0 : i32
    return %arg0, %c0_i32 : i32, i32
  }
  func.func @transform_4(%arg0: i32) -> (i32, i32) {
    %c0_i32 = arith.constant 0 : i32
    %c0_i32_0 = arith.constant 0 : i32
    return %arg0, %c0_i32 : i32, i32
  }
}

module attributes {stable_mosaic.version = 11 : i64} {
  func.func @_dft_fwd_kernel(%arg0: i32, %arg1: memref<1x16x512xbf16, #tpu.memory_space<vmem>>, %arg2: memref<512x256xf32, #tpu.memory_space<vmem>>, %arg3: memref<16x16xf32, #tpu.memory_space<vmem>>, %arg4: memref<1x16x128xf32, #tpu.memory_space<vmem>>) attributes {dimension_semantics = [#tpu.dimension_semantics<parallel>], iteration_bounds = array<i64: 2>, scalar_prefetch = 0 : i64, scratch_operands = 0 : i64, tpu.core_type = #tpu.core_type<tc>, window_params = [{transform_indices = @transform_0, window_bounds = array<i64: 1, 16, 512>}, {pipeline_mode = #tpu.pipeline_mode<synchronous>, transform_indices = @transform_1, window_bounds = array<i64: 512, 256>}, {pipeline_mode = #tpu.pipeline_mode<synchronous>, transform_indices = @transform_2, window_bounds = array<i64: 16, 16>}, {transform_indices = @transform_3, window_bounds = array<i64: 1, 16, 128>}]} {
    %c0 = arith.constant 0 : index
    %c0_0 = arith.constant 0 : index
    %c0_1 = arith.constant 0 : index
    %0 = vector.load %arg1[%c0, %c0_0, %c0_1] : memref<1x16x512xbf16, #tpu.memory_space<vmem>>, vector<1x16x512xbf16>
    %1 = vector.shape_cast %0 : vector<1x16x512xbf16> to vector<16x512xbf16>
    %2 = arith.extf %1 : vector<16x512xbf16> to vector<16x512xf32>
    %c0_2 = arith.constant 0 : index
    %c0_3 = arith.constant 0 : index
    %3 = vector.load %arg2[%c0_2, %c0_3] : memref<512x256xf32, #tpu.memory_space<vmem>>, vector<512x256xf32>
    %cst = arith.constant dense<0.000000e+00> : vector<16x256xf32>
    %4 = tpu.matmul %2, %3, %cst {dimension_numbers = #tpu.dot_dimension_numbers<[1], [0], [0], [1], [0, 0, 1, 1], [], []>} : vector<16x512xf32>, vector<512x256xf32>, vector<16x256xf32> -> vector<16x256xf32>
    %c0_4 = arith.constant 0 : index
    %c0_5 = arith.constant 0 : index
    %5 = vector.load %arg3[%c0_4, %c0_5] : memref<16x16xf32, #tpu.memory_space<vmem>>, vector<16x16xf32>
    %cst_6 = arith.constant dense<0.000000e+00> : vector<16x256xf32>
    %6 = tpu.matmul %5, %4, %cst_6 {dimension_numbers = #tpu.dot_dimension_numbers<[1], [0], [0], [1], [0, 0, 1, 1], [], []>} : vector<16x16xf32>, vector<16x256xf32>, vector<16x256xf32> -> vector<16x256xf32>
    %7 = vector.extract_strided_slice %6 {offsets = [0, 0], sizes = [8, 128], strides = [1, 1]} : vector<16x256xf32> to vector<8x128xf32>
    %8 = vector.extract_strided_slice %6 {offsets = [8, 128], sizes = [8, 128], strides = [1, 1]} : vector<16x256xf32> to vector<8x128xf32>
    %9 = arith.addf %7, %8 : vector<8x128xf32>
    %10 = vector.extract_strided_slice %6 {offsets = [0, 128], sizes = [8, 128], strides = [1, 1]} : vector<16x256xf32> to vector<8x128xf32>
    %11 = vector.extract_strided_slice %6 {offsets = [8, 0], sizes = [8, 128], strides = [1, 1]} : vector<16x256xf32> to vector<8x128xf32>
    %12 = arith.subf %10, %11 : vector<8x128xf32>
    %13 = tpu.concatenate %9, %12 in 0 : vector<8x128xf32>, vector<8x128xf32> -> vector<16x128xf32>
    %c0_7 = arith.constant 0 : index
    %c0_8 = arith.constant 0 : index
    %c0_9 = arith.constant 0 : index
    %14 = vector.load %arg4[%c0_7, %c0_8, %c0_9] : memref<1x16x128xf32, #tpu.memory_space<vmem>>, vector<1x16x128xf32>
    %15 = vector.shape_cast %14 : vector<1x16x128xf32> to vector<16x128xf32>
    %16 = vector.shape_cast %13 : vector<16x128xf32> to vector<1x16x128xf32>
    tpu.vector_store %arg4[%c0_7, %c0_8, %c0_9], %16 {strides = array<i32>} : memref<1x16x128xf32, #tpu.memory_space<vmem>>, vector<1x16x128xf32>,
    return
  }
  func.func @transform_0(%arg0: i32) -> (i32, i32, i32) {
    %c0_i32 = arith.constant 0 : i32
    %c0_i32_0 = arith.constant 0 : i32
    %c0_i32_1 = arith.constant 0 : i32
    return %arg0, %c0_i32, %c0_i32_0 : i32, i32, i32
  }
  func.func @transform_1(%arg0: i32) -> (i32, i32) {
    %c0_i32 = arith.constant 0 : i32
    %c0_i32_0 = arith.constant 0 : i32
    %c0_i32_1 = arith.constant 0 : i32
    return %c0_i32, %c0_i32_0 : i32, i32
  }
  func.func @transform_2(%arg0: i32) -> (i32, i32) {
    %c0_i32 = arith.constant 0 : i32
    %c0_i32_0 = arith.constant 0 : i32
    %c0_i32_1 = arith.constant 0 : i32
    return %c0_i32, %c0_i32_0 : i32, i32
  }
  func.func @transform_3(%arg0: i32) -> (i32, i32, i32) {
    %c0_i32 = arith.constant 0 : i32
    %c0_i32_0 = arith.constant 0 : i32
    %c0_i32_1 = arith.constant 0 : i32
    return %arg0, %c0_i32, %c0_i32_0 : i32, i32, i32
  }
}

module attributes {stable_mosaic.version = 11 : i64} {
  func.func @_modemix_kernel(%arg0: i32, %arg1: memref<16x2x128xf32, #tpu.memory_space<vmem>>, %arg2: memref<16x128x128xf32, #tpu.memory_space<vmem>>, %arg3: memref<16x2x128xf32, #tpu.memory_space<vmem>>) attributes {dimension_semantics = [#tpu.dimension_semantics<parallel>], iteration_bounds = array<i64: 1>, scalar_prefetch = 0 : i64, scratch_operands = 0 : i64, tpu.core_type = #tpu.core_type<tc>, window_params = [{transform_indices = @transform_0, window_bounds = array<i64: 16, 2, 128>}, {transform_indices = @transform_1, window_bounds = array<i64: 16, 128, 128>}, {transform_indices = @transform_2, window_bounds = array<i64: 16, 2, 128>}]} {
    %c0 = arith.constant 0 : index
    %c0_0 = arith.constant 0 : index
    %c0_1 = arith.constant 0 : index
    %0 = vector.load %arg1[%c0, %c0_0, %c0_1] : memref<16x2x128xf32, #tpu.memory_space<vmem>>, vector<16x2x128xf32>
    %c0_2 = arith.constant 0 : index
    %c0_3 = arith.constant 0 : index
    %c0_4 = arith.constant 0 : index
    %1 = vector.load %arg2[%c0_2, %c0_3, %c0_4] : memref<16x128x128xf32, #tpu.memory_space<vmem>>, vector<16x128x128xf32>
    "tpu.trace_start"() <{level = 10 : i32, message = "nbk,nko->nbo"}> : () -> ()
    %cst = arith.constant dense<0.000000e+00> : vector<16x2x128xf32>
    %2 = tpu.matmul %0, %1, %cst {dimension_numbers = #tpu.dot_dimension_numbers<[2], [1], [1], [2], [0, 0, 0, 1, 1, 2], [0], [0]>} : vector<16x2x128xf32>, vector<16x128x128xf32>, vector<16x2x128xf32> -> vector<16x2x128xf32>
    "tpu.trace_stop"() : () -> ()
    %c0_5 = arith.constant 0 : index
    %c0_6 = arith.constant 0 : index
    %c0_7 = arith.constant 0 : index
    %3 = vector.load %arg3[%c0_5, %c0_6, %c0_7] : memref<16x2x128xf32, #tpu.memory_space<vmem>>, vector<16x2x128xf32>
    tpu.vector_store %arg3[%c0_5, %c0_6, %c0_7], %2 {strides = array<i32>} : memref<16x2x128xf32, #tpu.memory_space<vmem>>, vector<16x2x128xf32>,
    return
  }
  func.func @transform_0(%arg0: i32) -> (i32, i32, i32) {
    %c0_i32 = arith.constant 0 : i32
    %c0_i32_0 = arith.constant 0 : i32
    %c0_i32_1 = arith.constant 0 : i32
    return %arg0, %c0_i32, %c0_i32_0 : i32, i32, i32
  }
  func.func @transform_1(%arg0: i32) -> (i32, i32, i32) {
    %c0_i32 = arith.constant 0 : i32
    %c0_i32_0 = arith.constant 0 : i32
    %c0_i32_1 = arith.constant 0 : i32
    return %arg0, %c0_i32, %c0_i32_0 : i32, i32, i32
  }
  func.func @transform_2(%arg0: i32) -> (i32, i32, i32) {
    %c0_i32 = arith.constant 0 : i32
    %c0_i32_0 = arith.constant 0 : i32
    %c0_i32_1 = arith.constant 0 : i32
    return %arg0, %c0_i32, %c0_i32_0 : i32, i32, i32
  }
}

module attributes {stable_mosaic.version = 11 : i64} {
  func.func @_dft_inv_kernel(%arg0: i32, %arg1: memref<1x16x128xf32, #tpu.memory_space<vmem>>, %arg2: memref<32x16xf32, #tpu.memory_space<vmem>>, %arg3: memref<256x512xf32, #tpu.memory_space<vmem>>, %arg4: memref<1x16x512xbf16, #tpu.memory_space<vmem>>) attributes {dimension_semantics = [#tpu.dimension_semantics<parallel>], iteration_bounds = array<i64: 2>, scalar_prefetch = 0 : i64, scratch_operands = 0 : i64, tpu.core_type = #tpu.core_type<tc>, window_params = [{transform_indices = @transform_0, window_bounds = array<i64: 1, 16, 128>}, {pipeline_mode = #tpu.pipeline_mode<synchronous>, transform_indices = @transform_1, window_bounds = array<i64: 32, 16>}, {pipeline_mode = #tpu.pipeline_mode<synchronous>, transform_indices = @transform_2, window_bounds = array<i64: 256, 512>}, {transform_indices = @transform_3, window_bounds = array<i64: 1, 16, 512>}]} {
    %c0 = arith.constant 0 : index
    %c0_0 = arith.constant 0 : index
    %c0_1 = arith.constant 0 : index
    %0 = vector.load %arg1[%c0, %c0_0, %c0_1] : memref<1x16x128xf32, #tpu.memory_space<vmem>>, vector<1x16x128xf32>
    %1 = vector.shape_cast %0 : vector<1x16x128xf32> to vector<16x128xf32>
    %c0_2 = arith.constant 0 : index
    %c0_3 = arith.constant 0 : index
    %2 = vector.load %arg2[%c0_2, %c0_3] : memref<32x16xf32, #tpu.memory_space<vmem>>, vector<32x16xf32>
    %cst = arith.constant dense<0.000000e+00> : vector<32x128xf32>
    %3 = tpu.matmul %2, %1, %cst {dimension_numbers = #tpu.dot_dimension_numbers<[1], [0], [0], [1], [0, 0, 1, 1], [], []>} : vector<32x16xf32>, vector<16x128xf32>, vector<32x128xf32> -> vector<32x128xf32>
    %4 = vector.extract_strided_slice %3 {offsets = [0, 0], sizes = [16, 128], strides = [1, 1]} : vector<32x128xf32> to vector<16x128xf32>
    %5 = vector.extract_strided_slice %3 {offsets = [16, 0], sizes = [16, 128], strides = [1, 1]} : vector<32x128xf32> to vector<16x128xf32>
    %6 = tpu.concatenate %4, %5 in 1 : vector<16x128xf32>, vector<16x128xf32> -> vector<16x256xf32>
    %c0_4 = arith.constant 0 : index
    %c0_5 = arith.constant 0 : index
    %7 = vector.load %arg3[%c0_4, %c0_5] : memref<256x512xf32, #tpu.memory_space<vmem>>, vector<256x512xf32>
    %cst_6 = arith.constant dense<0.000000e+00> : vector<16x512xf32>
    %8 = tpu.matmul %6, %7, %cst_6 {dimension_numbers = #tpu.dot_dimension_numbers<[1], [0], [0], [1], [0, 0, 1, 1], [], []>} : vector<16x256xf32>, vector<256x512xf32>, vector<16x512xf32> -> vector<16x512xf32>
    %9 = arith.truncf %8 : vector<16x512xf32> to vector<16x512xbf16>
    %c0_7 = arith.constant 0 : index
    %c0_8 = arith.constant 0 : index
    %c0_9 = arith.constant 0 : index
    %10 = vector.load %arg4[%c0_7, %c0_8, %c0_9] : memref<1x16x512xbf16, #tpu.memory_space<vmem>>, vector<1x16x512xbf16>
    %11 = vector.shape_cast %10 : vector<1x16x512xbf16> to vector<16x512xbf16>
    %12 = vector.shape_cast %9 : vector<16x512xbf16> to vector<1x16x512xbf16>
    tpu.vector_store %arg4[%c0_7, %c0_8, %c0_9], %12 {strides = array<i32>} : memref<1x16x512xbf16, #tpu.memory_space<vmem>>, vector<1x16x512xbf16>,
    return
  }
  func.func @transform_0(%arg0: i32) -> (i32, i32, i32) {
    %c0_i32 = arith.constant 0 : i32
    %c0_i32_0 = arith.constant 0 : i32
    %c0_i32_1 = arith.constant 0 : i32
    return %arg0, %c0_i32, %c0_i32_0 : i32, i32, i32
  }
  func.func @transform_1(%arg0: i32) -> (i32, i32) {
    %c0_i32 = arith.constant 0 : i32
    %c0_i32_0 = arith.constant 0 : i32
    %c0_i32_1 = arith.constant 0 : i32
    return %c0_i32, %c0_i32_0 : i32, i32
  }
  func.func @transform_2(%arg0: i32) -> (i32, i32) {
    %c0_i32 = arith.constant 0 : i32
    %c0_i32_0 = arith.constant 0 : i32
    %c0_i32_1 = arith.constant 0 : i32
    return %c0_i32, %c0_i32_0 : i32, i32
  }
  func.func @transform_3(%arg0: i32) -> (i32, i32, i32) {
    %c0_i32 = arith.constant 0 : i32
    %c0_i32_0 = arith.constant 0 : i32
    %c0_i32_1 = arith.constant 0 : i32
    return %arg0, %c0_i32, %c0_i32_0 : i32, i32, i32
  }
}

module attributes {stable_mosaic.version = 11 : i64} {
  func.func @kern(%arg0: i32, %arg1: memref<64x256xbf16, #tpu.memory_space<vmem>>, %arg2: memref<256x256xbf16, #tpu.memory_space<vmem>>, %arg3: memref<1x256xf32, #tpu.memory_space<vmem>>, %arg4: memref<64x256xbf16, #tpu.memory_space<vmem>>, %arg5: memref<64x256xbf16, #tpu.memory_space<vmem>>) attributes {dimension_semantics = [#tpu.dimension_semantics<parallel>], iteration_bounds = array<i64: 1>, scalar_prefetch = 0 : i64, scratch_operands = 0 : i64, tpu.core_type = #tpu.core_type<tc>, window_params = [{transform_indices = @transform_0, window_bounds = array<i64: 64, 256>}, {pipeline_mode = #tpu.pipeline_mode<synchronous>, transform_indices = @transform_1, window_bounds = array<i64: 256, 256>}, {pipeline_mode = #tpu.pipeline_mode<synchronous>, transform_indices = @transform_2, window_bounds = array<i64: 1, 256>}, {transform_indices = @transform_3, window_bounds = array<i64: 64, 256>}, {transform_indices = @transform_4, window_bounds = array<i64: 64, 256>}]} {
    %c0 = arith.constant 0 : index
    %c0_0 = arith.constant 0 : index
    %0 = vector.load %arg1[%c0, %c0_0] : memref<64x256xbf16, #tpu.memory_space<vmem>>, vector<64x256xbf16>
    %c0_1 = arith.constant 0 : index
    %c0_2 = arith.constant 0 : index
    %1 = vector.load %arg2[%c0_1, %c0_2] : memref<256x256xbf16, #tpu.memory_space<vmem>>, vector<256x256xbf16>
    %cst = arith.constant dense<0.000000e+00> : vector<64x256xf32>
    %2 = tpu.matmul %0, %1, %cst {dimension_numbers = #tpu.dot_dimension_numbers<[1], [0], [0], [1], [0, 0, 1, 1], [], []>} : vector<64x256xbf16>, vector<256x256xbf16>, vector<64x256xf32> -> vector<64x256xf32>
    %c0_3 = arith.constant 0 : index
    %c0_4 = arith.constant 0 : index
    %3 = vector.load %arg3[%c0_3, %c0_4] : memref<1x256xf32, #tpu.memory_space<vmem>>, vector<1x256xf32>
    %4 = vector.broadcast %3 : vector<1x256xf32> to vector<64x256xf32>
    %5 = arith.addf %2, %4 : vector<64x256xf32>
    %c0_5 = arith.constant 0 : index
    %c0_6 = arith.constant 0 : index
    %6 = vector.load %arg4[%c0_5, %c0_6] : memref<64x256xbf16, #tpu.memory_space<vmem>>, vector<64x256xbf16>
    %7 = arith.extf %6 : vector<64x256xbf16> to vector<64x256xf32>
    %8 = arith.addf %5, %7 : vector<64x256xf32>
    %9 = arith.truncf %8 : vector<64x256xf32> to vector<64x256xbf16>
    %c0_7 = arith.constant 0 : index
    %c0_8 = arith.constant 0 : index
    %10 = vector.load %arg5[%c0_7, %c0_8] : memref<64x256xbf16, #tpu.memory_space<vmem>>, vector<64x256xbf16>
    tpu.vector_store %arg5[%c0_7, %c0_8], %9 {strides = array<i32>} : memref<64x256xbf16, #tpu.memory_space<vmem>>, vector<64x256xbf16>,
    return
  }
  func.func @transform_0(%arg0: i32) -> (i32, i32) {
    %c0_i32 = arith.constant 0 : i32
    %c0_i32_0 = arith.constant 0 : i32
    return %arg0, %c0_i32 : i32, i32
  }
  func.func @transform_1(%arg0: i32) -> (i32, i32) {
    %c0_i32 = arith.constant 0 : i32
    %c0_i32_0 = arith.constant 0 : i32
    %c0_i32_1 = arith.constant 0 : i32
    return %c0_i32, %c0_i32_0 : i32, i32
  }
  func.func @transform_2(%arg0: i32) -> (i32, i32) {
    %c0_i32 = arith.constant 0 : i32
    %c0_i32_0 = arith.constant 0 : i32
    %c0_i32_1 = arith.constant 0 : i32
    return %c0_i32, %c0_i32_0 : i32, i32
  }
  func.func @transform_3(%arg0: i32) -> (i32, i32) {
    %c0_i32 = arith.constant 0 : i32
    %c0_i32_0 = arith.constant 0 : i32
    return %arg0, %c0_i32 : i32, i32
  }
  func.func @transform_4(%arg0: i32) -> (i32, i32) {
    %c0_i32 = arith.constant 0 : i32
    %c0_i32_0 = arith.constant 0 : i32
    return %arg0, %c0_i32 : i32, i32
  }
}

module attributes {stable_mosaic.version = 11 : i64} {
  func.func @_head_kernel(%arg0: i32, %arg1: memref<512x32xbf16, #tpu.memory_space<vmem>>, %arg2: memref<32x128xbf16, #tpu.memory_space<vmem>>, %arg3: memref<1x128xf32, #tpu.memory_space<vmem>>, %arg4: memref<2x128xbf16, #tpu.memory_space<vmem>>, %arg5: memref<2x1xf32, #tpu.memory_space<vmem>>, %arg6: memref<2x512xf32, #tpu.memory_space<vmem>>) attributes {dimension_semantics = [#tpu.dimension_semantics<parallel>], iteration_bounds = array<i64: 1>, scalar_prefetch = 0 : i64, scratch_operands = 0 : i64, tpu.core_type = #tpu.core_type<tc>, window_params = [{transform_indices = @transform_0, window_bounds = array<i64: 512, 32>}, {pipeline_mode = #tpu.pipeline_mode<synchronous>, transform_indices = @transform_1, window_bounds = array<i64: 32, 128>}, {pipeline_mode = #tpu.pipeline_mode<synchronous>, transform_indices = @transform_2, window_bounds = array<i64: 1, 128>}, {pipeline_mode = #tpu.pipeline_mode<synchronous>, transform_indices = @transform_3, window_bounds = array<i64: 2, 128>}, {pipeline_mode = #tpu.pipeline_mode<synchronous>, transform_indices = @transform_4, window_bounds = array<i64: 2, 1>}, {transform_indices = @transform_5, window_bounds = array<i64: 2, 512>}]} {
    %c0 = arith.constant 0 : index
    %c0_0 = arith.constant 0 : index
    %0 = vector.load %arg1[%c0, %c0_0] : memref<512x32xbf16, #tpu.memory_space<vmem>>, vector<512x32xbf16>
    %c0_1 = arith.constant 0 : index
    %c0_2 = arith.constant 0 : index
    %1 = vector.load %arg2[%c0_1, %c0_2] : memref<32x128xbf16, #tpu.memory_space<vmem>>, vector<32x128xbf16>
    %cst = arith.constant dense<0.000000e+00> : vector<512x128xf32>
    %2 = tpu.matmul %0, %1, %cst {dimension_numbers = #tpu.dot_dimension_numbers<[1], [0], [0], [1], [0, 0, 1, 1], [], []>} : vector<512x32xbf16>, vector<32x128xbf16>, vector<512x128xf32> -> vector<512x128xf32>
    %c0_3 = arith.constant 0 : index
    %c0_4 = arith.constant 0 : index
    %3 = vector.load %arg3[%c0_3, %c0_4] : memref<1x128xf32, #tpu.memory_space<vmem>>, vector<1x128xf32>
    %4 = vector.broadcast %3 : vector<1x128xf32> to vector<512x128xf32>
    %5 = arith.addf %2, %4 : vector<512x128xf32>
    %cst_5 = arith.constant 0.000000e+00 : f32
    %6 = vector.broadcast %cst_5 : f32 to vector<512x128xf32>
    %7 = arith.maximumf %5, %6 : vector<512x128xf32>
    %8 = arith.truncf %7 : vector<512x128xf32> to vector<512x128xbf16>
    %c0_6 = arith.constant 0 : index
    %c0_7 = arith.constant 0 : index
    %9 = vector.load %arg4[%c0_6, %c0_7] : memref<2x128xbf16, #tpu.memory_space<vmem>>, vector<2x128xbf16>
    %cst_8 = arith.constant dense<0.000000e+00> : vector<2x512xf32>
    %10 = tpu.matmul %9, %8, %cst_8 {dimension_numbers = #tpu.dot_dimension_numbers<[1], [1], [0], [0], [0, 0, 1, 0], [], []>} : vector<2x128xbf16>, vector<512x128xbf16>, vector<2x512xf32> -> vector<2x512xf32>
    %c0_9 = arith.constant 0 : index
    %c0_10 = arith.constant 0 : index
    %11 = vector.load %arg5[%c0_9, %c0_10] : memref<2x1xf32, #tpu.memory_space<vmem>>, vector<2x1xf32>
    %12 = vector.broadcast %11 : vector<2x1xf32> to vector<2x512xf32>
    %13 = arith.addf %10, %12 : vector<2x512xf32>
    %c0_11 = arith.constant 0 : index
    %c0_12 = arith.constant 0 : index
    %14 = vector.load %arg6[%c0_11, %c0_12] : memref<2x512xf32, #tpu.memory_space<vmem>>, vector<2x512xf32>
    tpu.vector_store %arg6[%c0_11, %c0_12], %13 {strides = array<i32>} : memref<2x512xf32, #tpu.memory_space<vmem>>, vector<2x512xf32>,
    return
  }
  func.func @transform_0(%arg0: i32) -> (i32, i32) {
    %c0_i32 = arith.constant 0 : i32
    %c0_i32_0 = arith.constant 0 : i32
    return %arg0, %c0_i32 : i32, i32
  }
  func.func @transform_1(%arg0: i32) -> (i32, i32) {
    %c0_i32 = arith.constant 0 : i32
    %c0_i32_0 = arith.constant 0 : i32
    %c0_i32_1 = arith.constant 0 : i32
    return %c0_i32, %c0_i32_0 : i32, i32
  }
  func.func @transform_2(%arg0: i32) -> (i32, i32) {
    %c0_i32 = arith.constant 0 : i32
    %c0_i32_0 = arith.constant 0 : i32
    %c0_i32_1 = arith.constant 0 : i32
    return %c0_i32, %c0_i32_0 : i32, i32
  }
  func.func @transform_3(%arg0: i32) -> (i32, i32) {
    %c0_i32 = arith.constant 0 : i32
    %c0_i32_0 = arith.constant 0 : i32
    %c0_i32_1 = arith.constant 0 : i32
    return %c0_i32, %c0_i32_0 : i32, i32
  }
  func.func @transform_4(%arg0: i32) -> (i32, i32) {
    %c0_i32 = arith.constant 0 : i32
    %c0_i32_0 = arith.constant 0 : i32
    %c0_i32_1 = arith.constant 0 : i32
    return %c0_i32, %c0_i32_0 : i32, i32
  }
  func.func @transform_5(%arg0: i32) -> (i32, i32) {
    %c0_i32 = arith.constant 0 : i32
    %c0_i32_0 = arith.constant 0 : i32
    return %c0_i32, %arg0 : i32, i32
  }
}

</mosaic_0001>

<bundles_post_ra>
// kernel: fno2d_forward.18
= control target key start
LH: loop header
LB: loop body
LE: loop exit
PB: predicated region body
PF: predicated region fallthrough
CT: control target
= control target key end

     0   :  { %vm80_vm0 = vcmask 1043456   ;;  %vm67_vm1 = vcmask 195584   ;;  %s281_s1 = inlined_call_operand.vmem [shape: bf16[24,256], index: 1, kind: input, shape index: {}]   ;;  %s282_s0 = inlined_call_operand.vmem [shape: bf16[64,24], index: 0, kind: input, shape index: {}]   ;;  %s283_s2 = inlined_call_operand.vmem [shape: f32[1,256], index: 2, kind: input, shape index: {}]   ;;  %s284_s3 = inlined_call_operand.vmem [shape: bf16[64,256], index: 3, kind: output, shape index: {}]  }
   0x1   :  { %v25_v0 = vld [vmem:[%s281_s1 + $0x10] sm:$0xff]  ;;  %v183_v5 = vld [vmem:[%s281_s1] sm:$0xf]  ;;  %v202_v6 = vld [vmem:[%s281_s1 + $0x4] sm:$0xf0] }
   0x2   :  { %v59_v1 = vunpack.c.l.b16 %v25_v0  ;;  %v60_v2 = vunpack.c.h.b16 %v25_v0  ;;  %v201_v7 = vld [vmem:[%s281_s1 + $0x4] sm:$0xf]  ;;  %v185_v8 = vld [vmem:[%s281_s1 + $0x8] sm:$0xf0]  ;;  %v184_v11 = vor.u32 %v202_v6, %v183_v5  ;;  %v199_v14 = vld [vmem:[%s282_s0 + $0x10] sm:$0xff] }
   0x3   :  { %v188_v12 = vor.u32 %v201_v7, %v185_v8  ;;  %v197_v13 = vld [vmem:[%s282_s0] sm:$0xff]  ;;  %v198_v15 = vld [vmem:[%s282_s0 + $0x8] sm:$0xff]  ;;  %v200_v16 = vld [vmem:[%s282_s0 + $0x18] sm:$0xff] }
   0x4   :  { %v63_v3 = vpack.c.b16 %v59_v1, %v59_v1  ;;  %v64_v4 = vpack.c.b16 %v60_v2, %v60_v2  ;;  %v26_v17 = vld [vmem:[%s283_s2] sm:$0x3] }
   0x5   :  { %v28_v18 = vperm.slane %v26_v17, 0  ;;  %v29_v19 = vperm.slane %v26_v17, 1 }
   0x6   :  { %v82_v9 = vsel %vm80_vm0, %v63_v3, 0  ;;  %v85_v10 = vsel %vm80_vm0, %v64_v4, 0 }
   0x7   :  { %93 = vmatpush.bf16.msra.mxu0 %v82_v9  ;;  %203 = vmatpush.bf16.msra.mxu2 %v82_v9 }
   0x8   :  { %122 = vmatpush.bf16.msra.mxu1 %v85_v10  ;;  %205 = vmatpush.bf16.msra.mxu3 %v85_v10 }
   0xb   :  { %94 = vmatpush.bf16.msra.mxu0 %v184_v11  ;;  %204 = vmatpush.bf16.msra.mxu2 %v184_v11 }
   0xc   :  { %123 = vmatpush.bf16.msra.mxu1 %v188_v12  ;;  %206 = vmatpush.bf16.msra.mxu3 %v188_v12 }
   0xe   :  { %189 = vmatmul.msk.bf16.vlgmr.msra.gmra.mxu0 %vm67_vm1, %v197_v13  ;;  %191 = vmatmul.msk.bf16.vlgmr.msra.gmra.mxu2 %vm67_vm1, %v199_v14 }
   0xf   :  { %193 = vmatmul.msk.bf16.vlgmr.msra.gmra.mxu1 %vm67_vm1, %v197_v13  ;;  %195 = vmatmul.msk.bf16.vlgmr.msra.gmra.mxu3 %vm67_vm1, %v199_v14 }
  0x1e   :  { %190 = vmatmul.msk.bf16.gmra.mxu0 %vm67_vm1, %v198_v15  ;;  %192 = vmatmul.msk.bf16.gmra.mxu2 %vm67_vm1, %v200_v16 }
  0x1f   :  { %194 = vmatmul.msk.bf16.gmra.mxu1 %vm67_vm1, %v198_v15  ;;  %196 = vmatmul.msk.bf16.gmra.mxu3 %vm67_vm1, %v200_v16 }
  0x8b   :  { %v96_v20 = vpop.f32.mrf.mxu0 }
  0x8c   :  { %v97_v21 = vadd.f32 %v96_v20, %v28_v18  ;;  %v125_v22 = vpop.f32.mrf.mxu1 }
  0x8d   :  { %v126_v23 = vadd.f32 %v125_v22, %v29_v19 }
  0x8f   :  { %v145_v24 = vpack.c.bf16 %v126_v23, %v97_v21 }
  0x91   :  { %153 = vst [vmem:[%s284_s3] sm:$0xff] %v145_v24  ;;  %v106_v25 = vpop.f32.mrf.mxu2 }
  0x92   :  { %v107_v26 = vadd.f32 %v106_v25, %v28_v18  ;;  %v135_v27 = vpop.f32.mrf.mxu3 }
  0x93   :  { %v136_v28 = vadd.f32 %v135_v27, %v29_v19  ;;  %v98_v29 = vpop.f32.mrf.mxu0 }
  0x94   :  { %v99_v30 = vadd.f32 %v98_v29, %v28_v18  ;;  %v127_v31 = vpop.f32.mrf.mxu1 }
  0x95   :  { %v149_v32 = vpack.c.bf16 %v136_v28, %v107_v26  ;;  %v128_v33 = vadd.f32 %v127_v31, %v29_v19 }
  0x97   :  { %157 = vst [vmem:[%s284_s3 + $0x20] sm:$0xff] %v149_v32  ;;  %v146_v34 = vpack.c.bf16 %v128_v33, %v99_v30 }
  0x99   :  { %154 = vst [vmem:[%s284_s3 + $0x8] sm:$0xff] %v146_v34  ;;  %v108_v35 = vpop.f32.mrf.mxu2 }
  0x9a   :  { %v109_v36 = vadd.f32 %v108_v35, %v28_v18  ;;  %v137_v37 = vpop.f32.mrf.mxu3 }
  0x9b   :  { %v138_v38 = vadd.f32 %v137_v37, %v29_v19  ;;  %v101_v39 = vpop.f32.mrf.mxu0 }
  0x9c   :  { %v102_v40 = vadd.f32 %v101_v39, %v28_v18  ;;  %v130_v41 = vpop.f32.mrf.mxu1 }
  0x9d   :  { %v150_v42 = vpack.c.bf16 %v138_v38, %v109_v36  ;;  %v131_v43 = vadd.f32 %v130_v41, %v29_v19 }
  0x9f   :  { %158 = vst [vmem:[%s284_s3 + $0x28] sm:$0xff] %v150_v42  ;;  %v147_v44 = vpack.c.bf16 %v131_v43, %v102_v40 }
  0xa1   :  { %155 = vst [vmem:[%s284_s3 + $0x10] sm:$0xff] %v147_v44  ;;  %v111_v45 = vpop.f32.mrf.mxu2 }
  0xa2   :  { %v112_v46 = vadd.f32 %v111_v45, %v28_v18  ;;  %v140_v47 = vpop.f32.mrf.mxu3 }
  0xa3   :  { %v141_v48 = vadd.f32 %v140_v47, %v29_v19  ;;  %v103_v49 = vpop.f32.mrf.mxu0 }
  0xa4   :  { %v104_v50 = vadd.f32 %v103_v49, %v28_v18  ;;  %v132_v51 = vpop.f32.mrf.mxu1 }
  0xa5   :  { %v151_v52 = vpack.c.bf16 %v141_v48, %v112_v46  ;;  %v133_v53 = vadd.f32 %v132_v51, %v29_v19 }
  0xa7   :  { %159 = vst [vmem:[%s284_s3 + $0x30] sm:$0xff] %v151_v52  ;;  %v148_v54 = vpack.c.bf16 %v133_v53, %v104_v50 }
  0xa9   :  { %156 = vst [vmem:[%s284_s3 + $0x18] sm:$0xff] %v148_v54  ;;  %v113_v55 = vpop.f32.mrf.mxu2 }
  0xaa   :  { %v114_v56 = vadd.f32 %v113_v55, %v28_v18  ;;  %v142_v57 = vpop.f32.mrf.mxu3 }
  0xab   :  { %v143_v58 = vadd.f32 %v142_v57, %v29_v19 }
  0xad   :  { %v152_v59 = vpack.c.bf16 %v143_v58, %v114_v56 }
  0xaf   :  { %160 = vst [vmem:[%s284_s3 + $0x38] sm:$0xff] %v152_v59 }

// kernel: fno2d_forward.19
= control target key start
LH: loop header
LB: loop body
LE: loop exit
PB: predicated region body
PF: predicated region fallthrough
CT: control target
= control target key end

     0   :  { %8 = vsyncpa [#allocation3], 0  ;;  %s935_s0 = inlined_call_operand.vmem [shape: bf16[2,16,512], index: 0, kind: input, shape index: {}]   ;;  %s936_s1 = inlined_call_operand.hbm [shape: f32[512,256], index: 1, kind: input, shape index: {}]   ;;  %s937_s2 = inlined_call_operand.hbm [shape: f32[16,16], index: 2, kind: input, shape index: {}]   ;;  %s938_s3 = inlined_call_operand.vmem [shape: f32[2,16,128], index: 3, kind: output, shape index: {}]  }
   0x1   :  { %9 = vsyncpa [#allocation5], 0  ;;  %s825_s12 = smov 0  }
   0x2 LB: > { %s125_s15 = sshll.u32 %s936_s1, 4  ;;  %s834_s16 = sadd.s32 4294967295, %s797_s12   ;;  %s797_s12 = sphi %s825_s12, %s15_s12   ;;  %s126_s15 = int_to_ptr.hbm [resolvable:$true] %s125_s15 }
   0x3   : > { %p667_p0 = scmp.ge.s32.totalorder %s797_s12, 1  ;;  %p114_p1 = scmp.lt.s32.totalorder %s797_s12, 3 }
   0x4   : > { %p705_p2 = scmp.eq.s32.totalorder %s834_s16, 0  ;;  %s799_s18 = smov [#allocation2]  }
   0x5   : > { %p839_p3 = pnand %p667_p0, %p114_p1  ;;  %s127_s19 = sshll.u32 %s799_s18, 4  ;;  %s128_s19 = int_to_ptr.vmem [resolvable:$true] %s127_s19 }
   0x6   : > { %s139_s22 = sshll.u32 %s937_s2, 4  ;;  %s800_s23 = smov [#allocation4]   ;;  %s140_s22 = int_to_ptr.hbm [resolvable:$true] %s139_s22 }
   0x7   : > { %p698_p4 = pneg %p839_p3  ;;  %s141_s24 = sshll.u32 %s800_s23, 4  ;;  %s142_s24 = int_to_ptr.vmem [resolvable:$true] %s141_s24 }
   0x8   : > { %s801_s25 = smov 256   ;;  %s802_s26 = smov 16  }
   0x9   : > { %p699_p5 = pnand %p705_p2, %p698_p4  ;;  %s803_s27 = smov 128  }
   0xa   : > { %s804_s28 = smov 8   ;;  %165 = sbr.rel (%p839_p3) target bundleno = 368 (0x170), region = 32 }
   0xb   : > { %701 = dma.hbm_to_vmem [thread:$0]  (!%p699_p5), %s126_s15, 16384, %s128_s19, [#allocation3], %s801_s25, %s801_s25, %s802_s26  }
   0xc   : > { %704 = dma.hbm_to_vmem [thread:$0]  (!%p699_p5), %s140_s22, 256, %s142_s24, [#allocation5], %s803_s27, %s803_s27, %s804_s28  }
   0xf   : > { %788 = dma.done.wait (%p705_p2), [#allocation3], 16384  }
  0x10   : > { %790 = vsyncadd (%p705_p2), [#allocation3], 4294950912 }
  0x11   : > { %792 = dma.done.wait (%p705_p2), [#allocation5], 256  }
  0x12   : > { %794 = vsyncadd (%p705_p2), [#allocation5], 4294967040  ;;  %v311_v0 = vld [vmem:[#allocation2 + $0x2f0] sm:$0xff]  ;;  %v309_v1 = vld [vmem:[#allocation2 + $0x2e0] sm:$0xff]  ;;  %p195_p6 = scmp.lt.s32.totalorder %s834_s16, 1  ;;  %vm531_vm0 = vcmask 130048  }
  0x13   : > { %v343_v2 = vld [vmem:[#allocation2 + $0x3f0] sm:$0xff]  ;;  %391 = vmatpush.msra.mxu2 %v311_v0  ;;  %v341_v6 = vld [vmem:[#allocation2 + $0x3e0] sm:$0xff]  ;;  %v312_v62 = vld [vmem:[#allocation2 + $0x2f8] sm:$0xff] }
  0x14   : > { %414 = vmatpush.msra.mxu3 %v343_v2  ;;  %v247_v3 = vld [vmem:[#allocation2 + $0xf0] sm:$0xff]  ;;  %v245_v7 = vld [vmem:[#allocation2 + $0xe0] sm:$0xff]  ;;  %s941_s16 = smov (!%p195_p6, %s834_s16), 1  ;;  %v344_v63 = vld [vmem:[#allocation2 + $0x3f8] sm:$0xff] }
  0x15   : > { %v279_v4 = vld [vmem:[#allocation2 + $0x1f0] sm:$0xff]  ;;  %345 = vmatpush.msra.mxu0 %v247_v3  ;;  %v277_v8 = vld [vmem:[#allocation2 + $0x1e0] sm:$0xff]  ;;  %392 = vmatpush.msra.mxu2 %v309_v1  ;;  %s684_s29 = sshll.u32 %s941_s16, 5  ;;  %v310_v3 = vld [vmem:[#allocation2 + $0x2e8] sm:$0xff]  ;;  %s685_s6 = sshll.u32 %s941_s16, 4 }
  0x16   : > { %v307_v5 = vld [vmem:[#allocation2 + $0x2d0] sm:$0xff]  ;;  %368 = vmatpush.msra.mxu1 %v279_v4  ;;  %415 = vmatpush.msra.mxu3 %v341_v6  ;;  %v305_v11 = vld [vmem:[#allocation2 + $0x2c0] sm:$0xff]  ;;  %s870_s5 = scalar_lea.vmem %s935_s0, %s684_s29  ;;  %v248_v4 = vld [vmem:[#allocation2 + $0xf8] sm:$0xff]  ;;  %s204_s9 = scalar_lea.vmem %s938_s3, %s685_s6 }
  0x17   : > { %v339_v9 = vld [vmem:[#allocation2 + $0x3d0] sm:$0xff]  ;;  %346 = vmatpush.msra.mxu0 %v245_v7  ;;  %v337_v13 = vld [vmem:[#allocation2 + $0x3c0] sm:$0xff]  ;;  %393 = vmatpush.msra.mxu2 %v307_v5  ;;  %v873_v2 = vld [vmem:[%s870_s5 + $0x8] sm:$0xff] }
  0x18   : > { %v243_v10 = vld [vmem:[#allocation2 + $0xd0] sm:$0xff]  ;;  %369 = vmatpush.msra.mxu1 %v277_v8  ;;  %416 = vmatpush.msra.mxu3 %v339_v9  ;;  %v241_v14 = vld [vmem:[#allocation2 + $0xc0] sm:$0xff]  ;;  %v280_v5 = vld [vmem:[#allocation2 + $0x1f8] sm:$0xff]  ;;  %v211_v8 = vunpack.c.l.bf16 %v873_v2 }
  0x19   : > { %v275_v12 = vld [vmem:[#allocation2 + $0x1d0] sm:$0xff]  ;;  %v273_v15 = vld [vmem:[#allocation2 + $0x1c0] sm:$0xff]  ;;  %347 = vmatpush.msra.mxu0 %v243_v10  ;;  %394 = vmatpush.msra.mxu2 %v305_v11  ;;  %v342_v6 = vld [vmem:[#allocation2 + $0x3e8] sm:$0xff] }
  0x1a   : > { %370 = vmatpush.msra.mxu1 %v275_v12  ;;  %v303_v16 = vld [vmem:[#allocation2 + $0x2b0] sm:$0xff]  ;;  %417 = vmatpush.msra.mxu3 %v337_v13  ;;  %v301_v20 = vld [vmem:[#allocation2 + $0x2a0] sm:$0xff]  ;;  %v308_v7 = vld [vmem:[#allocation2 + $0x2d8] sm:$0xff] }
  0x1b   : > { %v335_v17 = vld [vmem:[#allocation2 + $0x3b0] sm:$0xff]  ;;  %348 = vmatpush.msra.mxu0 %v241_v14  ;;  %v333_v21 = vld [vmem:[#allocation2 + $0x3a0] sm:$0xff]  ;;  %395 = vmatpush.msra.mxu2 %v303_v16  ;;  %v246_v9 = vld [vmem:[#allocation2 + $0xe8] sm:$0xff]  ;;  %v212_v14 = vunpack.c.h.bf16 %v873_v2 }
  0x1c   : > { %v239_v18 = vld [vmem:[#allocation2 + $0xb0] sm:$0xff]  ;;  %371 = vmatpush.msra.mxu1 %v273_v15  ;;  %418 = vmatpush.msra.mxu3 %v335_v17  ;;  %v237_v22 = vld [vmem:[#allocation2 + $0xa0] sm:$0xff]  ;;  %v278_v10 = vld [vmem:[#allocation2 + $0x1e8] sm:$0xff] }
  0x1d   : > { %v271_v19 = vld [vmem:[#allocation2 + $0x1b0] sm:$0xff]  ;;  %v269_v23 = vld [vmem:[#allocation2 + $0x1a0] sm:$0xff]  ;;  %349 = vmatpush.msra.mxu0 %v239_v18  ;;  %396 = vmatpush.msra.mxu2 %v301_v20  ;;  %v306_v12 = vld [vmem:[#allocation2 + $0x2c8] sm:$0xff] }
  0x1e   : > { %372 = vmatpush.msra.mxu1 %v271_v19  ;;  %v299_v24 = vld [vmem:[#allocation2 + $0x290] sm:$0xff]  ;;  %419 = vmatpush.msra.mxu3 %v333_v21  ;;  %v297_v28 = vld [vmem:[#allocation2 + $0x280] sm:$0xff]  ;;  %v340_v13 = vld [vmem:[#allocation2 + $0x3d8] sm:$0xff] }
  0x1f   : > { %v331_v25 = vld [vmem:[#allocation2 + $0x390] sm:$0xff]  ;;  %350 = vmatpush.msra.mxu0 %v237_v22  ;;  %v329_v29 = vld [vmem:[#allocation2 + $0x380] sm:$0xff]  ;;  %397 = vmatpush.msra.mxu2 %v299_v24  ;;  %v244_v15 = vld [vmem:[#allocation2 + $0xd8] sm:$0xff] }
  0x20   : > { %v235_v26 = vld [vmem:[#allocation2 + $0x90] sm:$0xff]  ;;  %373 = vmatpush.msra.mxu1 %v269_v23  ;;  %420 = vmatpush.msra.mxu3 %v331_v25  ;;  %v233_v30 = vld [vmem:[#allocation2 + $0x80] sm:$0xff]  ;;  %v276_v16 = vld [vmem:[#allocation2 + $0x1d8] sm:$0xff] }
  0x21   : > { %v267_v27 = vld [vmem:[#allocation2 + $0x190] sm:$0xff]  ;;  %v265_v31 = vld [vmem:[#allocation2 + $0x180] sm:$0xff]  ;;  %351 = vmatpush.msra.mxu0 %v235_v26  ;;  %398 = vmatpush.msra.mxu2 %v297_v28  ;;  %v304_v17 = vld [vmem:[#allocation2 + $0x2b8] sm:$0xff] }
  0x22   : > { %374 = vmatpush.msra.mxu1 %v267_v27  ;;  %v295_v32 = vld [vmem:[#allocation2 + $0x270] sm:$0xff]  ;;  %421 = vmatpush.msra.mxu3 %v329_v29  ;;  %v293_v36 = vld [vmem:[#allocation2 + $0x260] sm:$0xff]  ;;  %v338_v19 = vld [vmem:[#allocation2 + $0x3c8] sm:$0xff] }
  0x23   : > { %v327_v33 = vld [vmem:[#allocation2 + $0x370] sm:$0xff]  ;;  %352 = vmatpush.msra.mxu0 %v233_v30  ;;  %v325_v37 = vld [vmem:[#allocation2 + $0x360] sm:$0xff]  ;;  %399 = vmatpush.msra.mxu2 %v295_v32  ;;  %v242_v21 = vld [vmem:[#allocation2 + $0xc8] sm:$0xff] }
  0x24   : > { %v231_v34 = vld [vmem:[#allocation2 + $0x70] sm:$0xff]  ;;  %375 = vmatpush.msra.mxu1 %v265_v31  ;;  %422 = vmatpush.msra.mxu3 %v327_v33  ;;  %v229_v38 = vld [vmem:[#allocation2 + $0x60] sm:$0xff]  ;;  %v887_v22 = vld [vmem:[%s870_s5 + $0x18] sm:$0xff] }
  0x25   : > { %v263_v35 = vld [vmem:[#allocation2 + $0x170] sm:$0xff]  ;;  %v261_v39 = vld [vmem:[#allocation2 + $0x160] sm:$0xff]  ;;  %353 = vmatpush.msra.mxu0 %v231_v34  ;;  %400 = vmatpush.msra.mxu2 %v293_v36  ;;  %v274_v23 = vld [vmem:[#allocation2 + $0x1c8] sm:$0xff]  ;;  %v215_v29 = vunpack.c.l.bf16 %v887_v22  ;;  %v216_v36 = vunpack.c.h.bf16 %v887_v22 }
  0x26   : > { %376 = vmatpush.msra.mxu1 %v263_v35  ;;  %v291_v40 = vld [vmem:[#allocation2 + $0x250] sm:$0xff]  ;;  %423 = vmatpush.msra.mxu3 %v325_v37  ;;  %v289_v44 = vld [vmem:[#allocation2 + $0x240] sm:$0xff]  ;;  %v302_v24 = vld [vmem:[#allocation2 + $0x2a8] sm:$0xff] }
  0x27   : > { %v323_v41 = vld [vmem:[#allocation2 + $0x350] sm:$0xff]  ;;  %354 = vmatpush.msra.mxu0 %v229_v38  ;;  %v321_v45 = vld [vmem:[#allocation2 + $0x340] sm:$0xff]  ;;  %401 = vmatpush.msra.mxu2 %v291_v40  ;;  %v336_v25 = vld [vmem:[#allocation2 + $0x3b8] sm:$0xff] }
  0x28   : > { %v227_v42 = vld [vmem:[#allocation2 + $0x50] sm:$0xff]  ;;  %377 = vmatpush.msra.mxu1 %v261_v39  ;;  %424 = vmatpush.msra.mxu3 %v323_v41  ;;  %v225_v46 = vld [vmem:[#allocation2 + $0x40] sm:$0xff]  ;;  %v240_v26 = vld [vmem:[#allocation2 + $0xb8] sm:$0xff] }
  0x29   : > { %v259_v43 = vld [vmem:[#allocation2 + $0x150] sm:$0xff]  ;;  %v257_v47 = vld [vmem:[#allocation2 + $0x140] sm:$0xff]  ;;  %355 = vmatpush.msra.mxu0 %v227_v42  ;;  %402 = vmatpush.msra.mxu2 %v289_v44  ;;  %v272_v27 = vld [vmem:[#allocation2 + $0x1b8] sm:$0xff] }
  0x2a   : > { %378 = vmatpush.msra.mxu1 %v259_v43  ;;  %v287_v48 = vld [vmem:[#allocation2 + $0x230] sm:$0xff]  ;;  %425 = vmatpush.msra.mxu3 %v321_v45  ;;  %v285_v52 = vld [vmem:[#allocation2 + $0x220] sm:$0xff]  ;;  %v300_v28 = vld [vmem:[#allocation2 + $0x298] sm:$0xff] }
  0x2b   : > { %v319_v49 = vld [vmem:[#allocation2 + $0x330] sm:$0xff]  ;;  %356 = vmatpush.msra.mxu0 %v225_v46  ;;  %v317_v53 = vld [vmem:[#allocation2 + $0x320] sm:$0xff]  ;;  %403 = vmatpush.msra.mxu2 %v287_v48  ;;  %v334_v30 = vld [vmem:[#allocation2 + $0x3a8] sm:$0xff] }
  0x2c   : > { %v223_v50 = vld [vmem:[#allocation2 + $0x30] sm:$0xff]  ;;  %379 = vmatpush.msra.mxu1 %v257_v47  ;;  %426 = vmatpush.msra.mxu3 %v319_v49  ;;  %v221_v54 = vld [vmem:[#allocation2 + $0x20] sm:$0xff]  ;;  %v238_v31 = vld [vmem:[#allocation2 + $0xa8] sm:$0xff] }
  0x2d   : > { %v255_v51 = vld [vmem:[#allocation2 + $0x130] sm:$0xff]  ;;  %v253_v55 = vld [vmem:[#allocation2 + $0x120] sm:$0xff]  ;;  %357 = vmatpush.msra.mxu0 %v223_v50  ;;  %404 = vmatpush.msra.mxu2 %v285_v52  ;;  %v270_v32 = vld [vmem:[#allocation2 + $0x1a8] sm:$0xff] }
  0x2e   : > { %380 = vmatpush.msra.mxu1 %v255_v51  ;;  %v283_v56 = vld [vmem:[#allocation2 + $0x210] sm:$0xff]  ;;  %427 = vmatpush.msra.mxu3 %v317_v53  ;;  %v281_v60 = vld [vmem:[#allocation2 + $0x200] sm:$0xff]  ;;  %v298_v34 = vld [vmem:[#allocation2 + $0x288] sm:$0xff] }
  0x2f   : > { %v315_v57 = vld [vmem:[#allocation2 + $0x310] sm:$0xff]  ;;  %358 = vmatpush.msra.mxu0 %v221_v54  ;;  %v313_v61 = vld [vmem:[#allocation2 + $0x300] sm:$0xff]  ;;  %405 = vmatpush.msra.mxu2 %v283_v56  ;;  %v332_v35 = vld [vmem:[#allocation2 + $0x398] sm:$0xff] }
  0x30   : > { %v219_v58 = vld [vmem:[#allocation2 + $0x10] sm:$0xff]  ;;  %381 = vmatpush.msra.mxu1 %v253_v55  ;;  %428 = vmatpush.msra.mxu3 %v315_v57  ;;  %v217_v0 = vld [vmem:[#allocation2] sm:$0xff]  ;;  %v236_v37 = vld [vmem:[#allocation2 + $0x98] sm:$0xff] }
  0x31   : > { %v251_v59 = vld [vmem:[#allocation2 + $0x110] sm:$0xff]  ;;  %359 = vmatpush.msra.mxu0 %v219_v58  ;;  %v249_v1 = vld [vmem:[#allocation2 + $0x100] sm:$0xff]  ;;  %406 = vmatpush.msra.mxu2 %v281_v60  ;;  %v268_v38 = vld [vmem:[#allocation2 + $0x198] sm:$0xff] }
  0x32   : > { %382 = vmatpush.msra.mxu1 %v251_v59  ;;  %429 = vmatpush.msra.mxu3 %v313_v61  ;;  %v877_v11 = vld [vmem:[%s870_s5] sm:$0xff]  ;;  %v895_v33 = vld [vmem:[%s870_s5 + $0x10] sm:$0xff]  ;;  %v296_v39 = vld [vmem:[#allocation2 + $0x278] sm:$0xff] }
  0x33   : > { %483 = vmatpush.msrb.mxu2 %v312_v62  ;;  %360 = vmatpush.msra.mxu0 %v217_v0  ;;  %v209_v18 = vunpack.c.l.bf16 %v877_v11  ;;  %v210_v20 = vunpack.c.h.bf16 %v877_v11  ;;  %v213_v40 = vunpack.c.l.bf16 %v895_v33  ;;  %v330_v41 = vld [vmem:[#allocation2 + $0x388] sm:$0xff]  ;;  %v214_v42 = vunpack.c.h.bf16 %v895_v33  ;;  %v328_v46 = vld [vmem:[#allocation2 + $0x378] sm:$0xff] }
  0x34   : > { %506 = vmatpush.msrb.mxu3 %v344_v63  ;;  %383 = vmatpush.msra.mxu1 %v249_v1  ;;  %v234_v43 = vld [vmem:[#allocation2 + $0x88] sm:$0xff]  ;;  %v232_v47 = vld [vmem:[#allocation2 + $0x78] sm:$0xff] }
  0x35   : > { %484 = vmatpush.msrb.mxu2 %v310_v3  ;;  %437 = vmatpush.msrb.mxu0 %v248_v4  ;;  %v266_v44 = vld [vmem:[#allocation2 + $0x188] sm:$0xff]  ;;  %v264_v48 = vld [vmem:[#allocation2 + $0x178] sm:$0xff] }
  0x36   : > { %460 = vmatpush.msrb.mxu1 %v280_v5  ;;  %507 = vmatpush.msrb.mxu3 %v342_v6  ;;  %v294_v45 = vld [vmem:[#allocation2 + $0x268] sm:$0xff]  ;;  %v292_v49 = vld [vmem:[#allocation2 + $0x258] sm:$0xff] }
  0x37   : > { %485 = vmatpush.msrb.mxu2 %v308_v7  ;;  %438 = vmatpush.msrb.mxu0 %v246_v9  ;;  %v326_v50 = vld [vmem:[#allocation2 + $0x368] sm:$0xff]  ;;  %v324_v54 = vld [vmem:[#allocation2 + $0x358] sm:$0xff] }
  0x38   : > { %407 = vmatmul.f32.vlgmr.msra.gmra.mxu2 %v211_v8  ;;  %461 = vmatpush.msrb.mxu1 %v278_v10  ;;  %v230_v51 = vld [vmem:[#allocation2 + $0x68] sm:$0xff]  ;;  %v228_v55 = vld [vmem:[#allocation2 + $0x58] sm:$0xff] }
  0x39   : > { %486 = vmatpush.msrb.mxu2 %v306_v12  ;;  %508 = vmatpush.msrb.mxu3 %v340_v13  ;;  %v262_v52 = vld [vmem:[#allocation2 + $0x168] sm:$0xff]  ;;  %v260_v56 = vld [vmem:[#allocation2 + $0x158] sm:$0xff] }
  0x3a   : > { %430 = vmatmul.f32.vlgmr.msra.gmra.mxu3 %v212_v14  ;;  %439 = vmatpush.msrb.mxu0 %v244_v15  ;;  %v290_v53 = vld [vmem:[#allocation2 + $0x248] sm:$0xff]  ;;  %v288_v57 = vld [vmem:[#allocation2 + $0x238] sm:$0xff] }
  0x3b   : > { %462 = vmatpush.msrb.mxu1 %v276_v16  ;;  %487 = vmatpush.msrb.mxu2 %v304_v17  ;;  %v322_v58 = vld [vmem:[#allocation2 + $0x348] sm:$0xff]  ;;  %v320_v62 = vld [vmem:[#allocation2 + $0x338] sm:$0xff] }
  0x3c   : > { %509 = vmatpush.msrb.mxu3 %v338_v19  ;;  %361 = vmatmul.f32.vlgmr.msra.gmra.mxu0 %v209_v18  ;;  %v226_v59 = vld [vmem:[#allocation2 + $0x48] sm:$0xff]  ;;  %v224_v63 = vld [vmem:[#allocation2 + $0x38] sm:$0xff] }
  0x3d   : > { %384 = vmatmul.f32.vlgmr.msra.gmra.mxu1 %v210_v20  ;;  %440 = vmatpush.msrb.mxu0 %v242_v21  ;;  %v258_v60 = vld [vmem:[#allocation2 + $0x148] sm:$0xff]  ;;  %v256_v0 = vld [vmem:[#allocation2 + $0x138] sm:$0xff] }
  0x3e   : > { %463 = vmatpush.msrb.mxu1 %v274_v23  ;;  %488 = vmatpush.msrb.mxu2 %v302_v24  ;;  %v286_v61 = vld [vmem:[#allocation2 + $0x228] sm:$0xff]  ;;  %v284_v1 = vld [vmem:[#allocation2 + $0x218] sm:$0xff] }
  0x3f   : > { %510 = vmatpush.msrb.mxu3 %v336_v25  ;;  %441 = vmatpush.msrb.mxu0 %v240_v26  ;;  %v318_v3 = vld [vmem:[#allocation2 + $0x328] sm:$0xff]  ;;  %v316_v7 = vld [vmem:[#allocation2 + $0x318] sm:$0xff] }
  0x40   : > { %464 = vmatpush.msrb.mxu1 %v272_v27  ;;  %489 = vmatpush.msrb.mxu2 %v300_v28  ;;  %v222_v4 = vld [vmem:[#allocation2 + $0x28] sm:$0xff]  ;;  %v220_v9 = vld [vmem:[#allocation2 + $0x18] sm:$0xff]  ;;  %v529_v27 = vld [vmem:[#allocation4] sm:$0xff] }
  0x41   : > { %511 = vmatpush.msrb.mxu3 %v334_v30  ;;  %410 = vmatmul.f32.gmra.mxu2 %v215_v29  ;;  %v254_v5 = vld [vmem:[#allocation2 + $0x128] sm:$0xff]  ;;  %v252_v10 = vld [vmem:[#allocation2 + $0x118] sm:$0xff] }
  0x42   : > { %442 = vmatpush.msrb.mxu0 %v238_v31  ;;  %465 = vmatpush.msrb.mxu1 %v270_v32  ;;  %v282_v6 = vld [vmem:[#allocation2 + $0x208] sm:$0xff] }
  0x43   : > { %490 = vmatpush.msrb.mxu2 %v298_v34  ;;  %512 = vmatpush.msrb.mxu3 %v332_v35  ;;  %v314_v12 = vld [vmem:[#allocation2 + $0x308] sm:$0xff] }
  0x44   : > { %433 = vmatmul.f32.gmra.mxu3 %v216_v36  ;;  %443 = vmatpush.msrb.mxu0 %v236_v37  ;;  %v218_v13 = vld [vmem:[#allocation2 + $0x8] sm:$0xff] }
  0x45   : > { %466 = vmatpush.msrb.mxu1 %v268_v38  ;;  %491 = vmatpush.msrb.mxu2 %v296_v39  ;;  %v250_v15 = vld [vmem:[#allocation2 + $0x108] sm:$0xff] }
  0x46   : > { %513 = vmatpush.msrb.mxu3 %v330_v41  ;;  %364 = vmatmul.f32.gmra.mxu0 %v213_v40  ;;  %v530_v26 = vld [vmem:[#allocation4 + $0x8] sm:$0xff] }
  0x47   : > { %387 = vmatmul.f32.gmra.mxu1 %v214_v42  ;;  %444 = vmatpush.msrb.mxu0 %v234_v43 }
  0x48   : > { %467 = vmatpush.msrb.mxu1 %v266_v44  ;;  %492 = vmatpush.msrb.mxu2 %v294_v45 }
  0x49   : > { %514 = vmatpush.msrb.mxu3 %v328_v46  ;;  %445 = vmatpush.msrb.mxu0 %v232_v47 }
  0x4a   : > { %468 = vmatpush.msrb.mxu1 %v264_v48  ;;  %493 = vmatpush.msrb.mxu2 %v292_v49 }
  0x4b   : > { %515 = vmatpush.msrb.mxu3 %v326_v50  ;;  %446 = vmatpush.msrb.mxu0 %v230_v51 }
  0x4c   : > { %469 = vmatpush.msrb.mxu1 %v262_v52  ;;  %494 = vmatpush.msrb.mxu2 %v290_v53 }
  0x4d   : > { %516 = vmatpush.msrb.mxu3 %v324_v54  ;;  %447 = vmatpush.msrb.mxu0 %v228_v55 }
  0x4e   : > { %470 = vmatpush.msrb.mxu1 %v260_v56  ;;  %495 = vmatpush.msrb.mxu2 %v288_v57 }
  0x4f   : > { %517 = vmatpush.msrb.mxu3 %v322_v58  ;;  %448 = vmatpush.msrb.mxu0 %v226_v59 }
  0x50   : > { %471 = vmatpush.msrb.mxu1 %v258_v60  ;;  %496 = vmatpush.msrb.mxu2 %v286_v61 }
  0x51   : > { %518 = vmatpush.msrb.mxu3 %v320_v62  ;;  %449 = vmatpush.msrb.mxu0 %v224_v63 }
  0x52   : > { %472 = vmatpush.msrb.mxu1 %v256_v0  ;;  %497 = vmatpush.msrb.mxu2 %v284_v1 }
  0x53   : > { %519 = vmatpush.msrb.mxu3 %v318_v3  ;;  %450 = vmatpush.msrb.mxu0 %v222_v4 }
  0x54   : > { %473 = vmatpush.msrb.mxu1 %v254_v5  ;;  %498 = vmatpush.msrb.mxu2 %v282_v6 }
  0x55   : > { %520 = vmatpush.msrb.mxu3 %v316_v7  ;;  %499 = vmatmul.f32.vlgmr.msrb.gmra.mxu2 %v211_v8 }
  0x56   : > { %451 = vmatpush.msrb.mxu0 %v220_v9  ;;  %474 = vmatpush.msrb.mxu1 %v252_v10 }
  0x57   : > { %521 = vmatpush.msrb.mxu3 %v314_v12 }
  0x58   : > { %522 = vmatmul.f32.vlgmr.msrb.gmra.mxu3 %v212_v14  ;;  %452 = vmatpush.msrb.mxu0 %v218_v13 }
  0x59   : > { %475 = vmatpush.msrb.mxu1 %v250_v15  ;;  %453 = vmatmul.f32.vlgmr.msrb.gmra.mxu0 %v209_v18 }
  0x5a   : > { %476 = vmatmul.f32.vlgmr.msrb.gmra.mxu1 %v210_v20 }
  0x5d   : > { %502 = vmatmul.f32.gmra.mxu2 %v215_v29 }
  0x60   : > { %525 = vmatmul.f32.gmra.mxu3 %v216_v36 }
  0x61   : > { %456 = vmatmul.f32.gmra.mxu0 %v213_v40 }
  0x62   : > { %479 = vmatmul.f32.gmra.mxu1 %v214_v42 }
  0xb9   : > { %v362_v2 = vpop.f32.mrf.mxu0 }
  0xba   : > { %v385_v8 = vpop.f32.mrf.mxu1 }
  0xbb   : > { %v408_v14 = vpop.f32.mrf.mxu2  ;;  %v386_v17 = vadd.f32 %v385_v8, %v362_v2 }
  0xbd   : > { %v431_v16 = vpop.f32.mrf.mxu3  ;;  %v409_v20 = vadd.f32 %v408_v14, %v386_v17 }
  0xbf   : > { %v432_v22 = vadd.f32 %v431_v16, %v409_v20 }
  0xc3   : > { %v365_v18 = vpop.f32.mrf.mxu0 }
  0xc4   : > { %v388_v11 = vpop.f32.mrf.mxu1  ;;  %v411_v19 = vpop.f32.mrf.mxu2 }
  0xc5   : > { %v389_v21 = vadd.f32 %v388_v11, %v365_v18 }
  0xc7   : > { %v412_v23 = vadd.f32 %v411_v19, %v389_v21  ;;  %v434_v24 = vpop.f32.mrf.mxu3 }
  0xc9   : > { %v435_v25 = vadd.f32 %v434_v24, %v412_v23 }
  0xcb   : > { %552 = vmatpush.msra.mxu0 %v435_v25  ;;  %686 = vmatpush.msra.mxu2 %v435_v25 }
  0xcd   : > { %553 = vmatpush.msra.mxu0 %v432_v22  ;;  %687 = vmatpush.msra.mxu2 %v432_v22 }
  0xce   : > { %679 = vmatmul.msk.f32.vlgmr.msra.gmra.mxu2 %vm531_vm0, %v530_v26  ;;  %678 = vmatmul.msk.f32.vlgmr.msra.gmra.mxu0 %vm531_vm0, %v529_v27 }
  0xd6   : > { %v454_v28 = vpop.f32.mrf.mxu0 }
  0xd7   : > { %v477_v29 = vpop.f32.mrf.mxu1 }
  0xd8   : > { %v500_v30 = vpop.f32.mrf.mxu2  ;;  %v478_v32 = vadd.f32 %v477_v29, %v454_v28 }
  0xda   : > { %v501_v37 = vadd.f32 %v500_v30, %v478_v32 }
  0xdb   : > { %v523_v31 = vpop.f32.mrf.mxu3 }
  0xdc   : > { %v524_v41 = vadd.f32 %v523_v31, %v501_v37 }
  0xde   : > { %v457_v33 = vpop.f32.mrf.mxu0 }
  0xdf   : > { %v480_v34 = vpop.f32.mrf.mxu1 }
  0xe0   : > { %v481_v35 = vadd.f32 %v480_v34, %v457_v33  ;;  %v503_v36 = vpop.f32.mrf.mxu2 }
  0xe2   : > { %v504_v38 = vadd.f32 %v503_v36, %v481_v35 }
  0xe3   : > { %v526_v39 = vpop.f32.mrf.mxu3 }
  0xe4   : > { %v527_v40 = vadd.f32 %v526_v39, %v504_v38 }
  0xe6   : > { %575 = vmatpush.msra.mxu1 %v527_v40  ;;  %688 = vmatpush.msra.mxu3 %v527_v40 }
  0xe8   : > { %576 = vmatpush.msra.mxu1 %v524_v41  ;;  %689 = vmatpush.msra.mxu3 %v524_v41 }
  0xe9   : > { %681 = vmatmul.msk.f32.vlgmr.msra.gmra.mxu3 %vm531_vm0, %v530_v26  ;;  %680 = vmatmul.msk.f32.vlgmr.msra.gmra.mxu1 %vm531_vm0, %v529_v27 }
 0x14b   : > { %v555_v45 = vpop.f32.mrf.mxu0 }
 0x151   : > { %v558_v42 = vpop.f32.mrf.mxu2 }
 0x166   : > { %v578_v43 = vpop.f32.mrf.mxu1 }
 0x167   : > { %v585_v44 = vsub.f32 %v578_v43, %v558_v42 }
 0x169   : > { %587 = vst [vmem:[%s204_s9 + $0x8] sm:$0xff] %v585_v44 }
 0x16c   : > { %v581_v46 = vpop.f32.mrf.mxu3 }
 0x16d   : > { %v584_v47 = vadd.f32 %v581_v46, %v555_v45 }
 0x16f   : > { %586 = vst [vmem:[%s204_s9] sm:$0xff] %v584_v47 }
 0x170 PF: > { %s15_s12 = sadd.s32 1, %s797_s12  }
 0x171   : > { %p12_p7 = scmp.ge.s32.totalorder %s15_s12, 4  }
 0x173   :  { %14 = sbr.rel (!%p12_p7) target bundleno = 2 (0x2), region = 71 }
 0x178   :  { %609 = vsyncpa [#allocation3], 1 }
 0x179   :  { %611 = vsyncpa [#allocation3 + $0x1], 1 }
 0x17a   :  { %612 = vsyncpa [#allocation5], 1 }

// kernel: fno2d_forward.20
= control target key start
LH: loop header
LB: loop body
LE: loop exit
PB: predicated region body
PF: predicated region fallthrough
CT: control target
= control target key end

     0   :  { %7 = vsyncpa [#allocation3], 0  ;;  %s669_s12 = smov [#allocation2]   ;;  %s670_s14 = smov 128   ;;  %s786_s0 = inlined_call_operand.vmem [shape: f32[16,2,128], index: 0, kind: input, shape index: {}]   ;;  %s787_s1 = inlined_call_operand.hbm [shape: f32[16,128,128], index: 1, kind: input, shape index: {}]   ;;  %s788_s2 = inlined_call_operand.vmem [shape: f32[16,2,128], index: 2, kind: output, shape index: {}]  }
   0x1   :  { %s14_s11 = sshll.u32 %s787_s1, 4  ;;  %s16_s13 = sshll.u32 %s669_s12, 4  ;;  %s15_s11 = int_to_ptr.hbm [resolvable:$true] %s14_s11  ;;  %s17_s13 = int_to_ptr.vmem [resolvable:$true] %s16_s13 }
   0x2   :  { %s671_s15 = smov 8  }
   0x3   :  { %22 = dma.hbm_to_vmem [thread:$0]  %s15_s11, 32768, %s17_s13, [#allocation3], %s670_s14, %s670_s14, %s671_s15  }
   0x4   :  { %667 = dma.done.wait [#allocation3], 32768  }
   0x5   :  { %668 = vsyncadd [#allocation3], 4294934528  ;;  %v90_v0 = vld [vmem:[#allocation2 + $0x178] sm:$0xff]  ;;  %v89_v2 = vld [vmem:[#allocation2 + $0x170] sm:$0xff] }
   0x6   :  { %v106_v1 = vld [vmem:[#allocation2 + $0x1f8] sm:$0xff]  ;;  %339 = vmatpush.msra.mxu2 %v90_v0  ;;  %v105_v3 = vld [vmem:[#allocation2 + $0x1f0] sm:$0xff]  ;;  %v88_v4 = vld [vmem:[#allocation2 + $0x168] sm:$0xff] }
   0x7   :  { %359 = vmatpush.msra.mxu3 %v106_v1  ;;  %v104_v5 = vld [vmem:[#allocation2 + $0x1e8] sm:$0xff]  ;;  %v58_v6 = vld [vmem:[#allocation2 + $0x78] sm:$0xff]  ;;  %v57_v8 = vld [vmem:[#allocation2 + $0x70] sm:$0xff] }
   0x8   :  { %v74_v7 = vld [vmem:[#allocation2 + $0xf8] sm:$0xff]  ;;  %340 = vmatpush.msra.mxu2 %v89_v2  ;;  %v73_v9 = vld [vmem:[#allocation2 + $0xf0] sm:$0xff]  ;;  %299 = vmatpush.msra.mxu0 %v58_v6  ;;  %v87_v10 = vld [vmem:[#allocation2 + $0x160] sm:$0xff] }
   0x9   :  { %360 = vmatpush.msra.mxu3 %v105_v3  ;;  %319 = vmatpush.msra.mxu1 %v74_v7  ;;  %v103_v11 = vld [vmem:[#allocation2 + $0x1e0] sm:$0xff]  ;;  %v56_v12 = vld [vmem:[#allocation2 + $0x68] sm:$0xff]  ;;  %v86_v14 = vld [vmem:[#allocation2 + $0x158] sm:$0xff] }
   0xa   :  { %341 = vmatpush.msra.mxu2 %v88_v4  ;;  %v72_v13 = vld [vmem:[#allocation2 + $0xe8] sm:$0xff]  ;;  %300 = vmatpush.msra.mxu0 %v57_v8  ;;  %v102_v15 = vld [vmem:[#allocation2 + $0x1d8] sm:$0xff]  ;;  %v55_v16 = vld [vmem:[#allocation2 + $0x60] sm:$0xff] }
   0xb   :  { %361 = vmatpush.msra.mxu3 %v104_v5  ;;  %320 = vmatpush.msra.mxu1 %v73_v9  ;;  %v71_v17 = vld [vmem:[#allocation2 + $0xe0] sm:$0xff]  ;;  %v85_v18 = vld [vmem:[#allocation2 + $0x150] sm:$0xff]  ;;  %v54_v20 = vld [vmem:[#allocation2 + $0x58] sm:$0xff] }
   0xc   :  { %342 = vmatpush.msra.mxu2 %v87_v10  ;;  %301 = vmatpush.msra.mxu0 %v56_v12  ;;  %v101_v19 = vld [vmem:[#allocation2 + $0x1d0] sm:$0xff]  ;;  %v70_v21 = vld [vmem:[#allocation2 + $0xd8] sm:$0xff]  ;;  %v84_v22 = vld [vmem:[#allocation2 + $0x148] sm:$0xff] }
   0xd   :  { %362 = vmatpush.msra.mxu3 %v103_v11  ;;  %321 = vmatpush.msra.mxu1 %v72_v13  ;;  %v100_v23 = vld [vmem:[#allocation2 + $0x1c8] sm:$0xff]  ;;  %v53_v24 = vld [vmem:[#allocation2 + $0x50] sm:$0xff]  ;;  %v83_v26 = vld [vmem:[#allocation2 + $0x140] sm:$0xff] }
   0xe   :  { %343 = vmatpush.msra.mxu2 %v86_v14  ;;  %302 = vmatpush.msra.mxu0 %v55_v16  ;;  %v69_v25 = vld [vmem:[#allocation2 + $0xd0] sm:$0xff]  ;;  %v99_v27 = vld [vmem:[#allocation2 + $0x1c0] sm:$0xff]  ;;  %v52_v28 = vld [vmem:[#allocation2 + $0x48] sm:$0xff] }
   0xf   :  { %363 = vmatpush.msra.mxu3 %v102_v15  ;;  %322 = vmatpush.msra.mxu1 %v71_v17  ;;  %v68_v29 = vld [vmem:[#allocation2 + $0xc8] sm:$0xff]  ;;  %v82_v30 = vld [vmem:[#allocation2 + $0x138] sm:$0xff]  ;;  %v51_v32 = vld [vmem:[#allocation2 + $0x40] sm:$0xff] }
  0x10   :  { %344 = vmatpush.msra.mxu2 %v85_v18  ;;  %303 = vmatpush.msra.mxu0 %v54_v20  ;;  %v98_v31 = vld [vmem:[#allocation2 + $0x1b8] sm:$0xff]  ;;  %v67_v33 = vld [vmem:[#allocation2 + $0xc0] sm:$0xff]  ;;  %v81_v34 = vld [vmem:[#allocation2 + $0x130] sm:$0xff] }
  0x11   :  { %364 = vmatpush.msra.mxu3 %v101_v19  ;;  %323 = vmatpush.msra.mxu1 %v70_v21  ;;  %v97_v35 = vld [vmem:[#allocation2 + $0x1b0] sm:$0xff]  ;;  %v50_v36 = vld [vmem:[#allocation2 + $0x38] sm:$0xff]  ;;  %v80_v38 = vld [vmem:[#allocation2 + $0x128] sm:$0xff] }
  0x12   :  { %345 = vmatpush.msra.mxu2 %v84_v22  ;;  %304 = vmatpush.msra.mxu0 %v53_v24  ;;  %v66_v37 = vld [vmem:[#allocation2 + $0xb8] sm:$0xff]  ;;  %v96_v39 = vld [vmem:[#allocation2 + $0x1a8] sm:$0xff]  ;;  %v49_v40 = vld [vmem:[#allocation2 + $0x30] sm:$0xff] }
  0x13   :  { %365 = vmatpush.msra.mxu3 %v100_v23  ;;  %324 = vmatpush.msra.mxu1 %v69_v25  ;;  %v65_v41 = vld [vmem:[#allocation2 + $0xb0] sm:$0xff]  ;;  %v79_v42 = vld [vmem:[#allocation2 + $0x120] sm:$0xff]  ;;  %v48_v44 = vld [vmem:[#allocation2 + $0x28] sm:$0xff] }
  0x14   :  { %346 = vmatpush.msra.mxu2 %v83_v26  ;;  %305 = vmatpush.msra.mxu0 %v52_v28  ;;  %v95_v43 = vld [vmem:[#allocation2 + $0x1a0] sm:$0xff]  ;;  %v64_v45 = vld [vmem:[#allocation2 + $0xa8] sm:$0xff]  ;;  %v78_v46 = vld [vmem:[#allocation2 + $0x118] sm:$0xff] }
  0x15   :  { %366 = vmatpush.msra.mxu3 %v99_v27  ;;  %325 = vmatpush.msra.mxu1 %v68_v29  ;;  %v94_v47 = vld [vmem:[#allocation2 + $0x198] sm:$0xff]  ;;  %v47_v48 = vld [vmem:[#allocation2 + $0x20] sm:$0xff]  ;;  %v77_v50 = vld [vmem:[#allocation2 + $0x110] sm:$0xff] }
  0x16   :  { %347 = vmatpush.msra.mxu2 %v82_v30  ;;  %306 = vmatpush.msra.mxu0 %v51_v32  ;;  %v63_v49 = vld [vmem:[#allocation2 + $0xa0] sm:$0xff]  ;;  %v93_v51 = vld [vmem:[#allocation2 + $0x190] sm:$0xff]  ;;  %v46_v52 = vld [vmem:[#allocation2 + $0x18] sm:$0xff] }
  0x17   :  { %367 = vmatpush.msra.mxu3 %v98_v31  ;;  %326 = vmatpush.msra.mxu1 %v67_v33  ;;  %v62_v53 = vld [vmem:[#allocation2 + $0x98] sm:$0xff]  ;;  %v76_v54 = vld [vmem:[#allocation2 + $0x108] sm:$0xff]  ;;  %v45_v56 = vld [vmem:[#allocation2 + $0x10] sm:$0xff] }
  0x18   :  { %348 = vmatpush.msra.mxu2 %v81_v34  ;;  %307 = vmatpush.msra.mxu0 %v50_v36  ;;  %v92_v55 = vld [vmem:[#allocation2 + $0x188] sm:$0xff]  ;;  %v61_v57 = vld [vmem:[#allocation2 + $0x90] sm:$0xff]  ;;  %v75_v58 = vld [vmem:[#allocation2 + $0x100] sm:$0xff] }
  0x19   :  { %368 = vmatpush.msra.mxu3 %v97_v35  ;;  %327 = vmatpush.msra.mxu1 %v66_v37  ;;  %v91_v59 = vld [vmem:[#allocation2 + $0x180] sm:$0xff]  ;;  %v154_v60 = vld [vmem:[#allocation2 + $0x378] sm:$0xff]  ;;  %v44_v62 = vld [vmem:[#allocation2 + $0x8] sm:$0xff] }
  0x1a   :  { %349 = vmatpush.msra.mxu2 %v80_v38  ;;  %308 = vmatpush.msra.mxu0 %v49_v40  ;;  %v170_v61 = vld [vmem:[#allocation2 + $0x3f8] sm:$0xff]  ;;  %v60_v63 = vld [vmem:[#allocation2 + $0x88] sm:$0xff]  ;;  %v153_v0 = vld [vmem:[#allocation2 + $0x370] sm:$0xff] }
  0x1b   :  { %369 = vmatpush.msra.mxu3 %v96_v39  ;;  %328 = vmatpush.msra.mxu1 %v65_v41  ;;  %v169_v1 = vld [vmem:[#allocation2 + $0x3f0] sm:$0xff]  ;;  %v43_v2 = vld [vmem:[#allocation2] sm:$0xff]  ;;  %v152_v4 = vld [vmem:[#allocation2 + $0x368] sm:$0xff] }
  0x1c   :  { %350 = vmatpush.msra.mxu2 %v79_v42  ;;  %309 = vmatpush.msra.mxu0 %v48_v44  ;;  %v59_v3 = vld [vmem:[#allocation2 + $0x80] sm:$0xff]  ;;  %v168_v5 = vld [vmem:[#allocation2 + $0x3e8] sm:$0xff]  ;;  %v122_v6 = vld [vmem:[#allocation2 + $0x278] sm:$0xff] }
  0x1d   :  { %370 = vmatpush.msra.mxu3 %v95_v43  ;;  %329 = vmatpush.msra.mxu1 %v64_v45  ;;  %v138_v7 = vld [vmem:[#allocation2 + $0x2f8] sm:$0xff]  ;;  %v151_v8 = vld [vmem:[#allocation2 + $0x360] sm:$0xff]  ;;  %v121_v10 = vld [vmem:[#allocation2 + $0x270] sm:$0xff] }
  0x1e   :  { %351 = vmatpush.msra.mxu2 %v78_v46  ;;  %310 = vmatpush.msra.mxu0 %v47_v48  ;;  %v167_v9 = vld [vmem:[#allocation2 + $0x3e0] sm:$0xff]  ;;  %v137_v11 = vld [vmem:[#allocation2 + $0x2f0] sm:$0xff]  ;;  %v150_v12 = vld [vmem:[#allocation2 + $0x358] sm:$0xff] }
  0x1f   :  { %371 = vmatpush.msra.mxu3 %v94_v47  ;;  %330 = vmatpush.msra.mxu1 %v63_v49  ;;  %v166_v13 = vld [vmem:[#allocation2 + $0x3d8] sm:$0xff]  ;;  %v120_v14 = vld [vmem:[#allocation2 + $0x268] sm:$0xff]  ;;  %v149_v16 = vld [vmem:[#allocation2 + $0x350] sm:$0xff] }
  0x20   :  { %352 = vmatpush.msra.mxu2 %v77_v50  ;;  %311 = vmatpush.msra.mxu0 %v46_v52  ;;  %v136_v15 = vld [vmem:[#allocation2 + $0x2e8] sm:$0xff]  ;;  %v165_v17 = vld [vmem:[#allocation2 + $0x3d0] sm:$0xff]  ;;  %v119_v18 = vld [vmem:[#allocation2 + $0x260] sm:$0xff] }
  0x21   :  { %372 = vmatpush.msra.mxu3 %v93_v51  ;;  %331 = vmatpush.msra.mxu1 %v62_v53  ;;  %v135_v19 = vld [vmem:[#allocation2 + $0x2e0] sm:$0xff]  ;;  %v148_v20 = vld [vmem:[#allocation2 + $0x348] sm:$0xff]  ;;  %v118_v22 = vld [vmem:[#allocation2 + $0x258] sm:$0xff] }
  0x22   :  { %353 = vmatpush.msra.mxu2 %v76_v54  ;;  %312 = vmatpush.msra.mxu0 %v45_v56  ;;  %v164_v21 = vld [vmem:[#allocation2 + $0x3c8] sm:$0xff]  ;;  %v134_v23 = vld [vmem:[#allocation2 + $0x2d8] sm:$0xff]  ;;  %v147_v24 = vld [vmem:[#allocation2 + $0x340] sm:$0xff] }
  0x23   :  { %373 = vmatpush.msra.mxu3 %v92_v55  ;;  %332 = vmatpush.msra.mxu1 %v61_v57  ;;  %v163_v25 = vld [vmem:[#allocation2 + $0x3c0] sm:$0xff]  ;;  %v117_v26 = vld [vmem:[#allocation2 + $0x250] sm:$0xff]  ;;  %v146_v28 = vld [vmem:[#allocation2 + $0x338] sm:$0xff] }
  0x24   :  { %354 = vmatpush.msra.mxu2 %v75_v58  ;;  %313 = vmatpush.msra.mxu0 %v44_v62  ;;  %v133_v27 = vld [vmem:[#allocation2 + $0x2d0] sm:$0xff]  ;;  %v162_v29 = vld [vmem:[#allocation2 + $0x3b8] sm:$0xff]  ;;  %v116_v30 = vld [vmem:[#allocation2 + $0x248] sm:$0xff] }
  0x25   :  { %374 = vmatpush.msra.mxu3 %v91_v59  ;;  %333 = vmatpush.msra.mxu1 %v60_v63  ;;  %v132_v31 = vld [vmem:[#allocation2 + $0x2c8] sm:$0xff]  ;;  %v145_v32 = vld [vmem:[#allocation2 + $0x330] sm:$0xff]  ;;  %v115_v34 = vld [vmem:[#allocation2 + $0x240] sm:$0xff] }
  0x26   :  { %419 = vmatpush.msrb.mxu2 %v154_v60  ;;  %314 = vmatpush.msra.mxu0 %v43_v2  ;;  %v161_v33 = vld [vmem:[#allocation2 + $0x3b0] sm:$0xff]  ;;  %v131_v35 = vld [vmem:[#allocation2 + $0x2c0] sm:$0xff]  ;;  %v144_v36 = vld [vmem:[#allocation2 + $0x328] sm:$0xff] }
  0x27   :  { %439 = vmatpush.msrb.mxu3 %v170_v61  ;;  %334 = vmatpush.msra.mxu1 %v59_v3  ;;  %v160_v37 = vld [vmem:[#allocation2 + $0x3a8] sm:$0xff]  ;;  %v114_v38 = vld [vmem:[#allocation2 + $0x238] sm:$0xff]  ;;  %v143_v40 = vld [vmem:[#allocation2 + $0x320] sm:$0xff] }
  0x28   :  { %420 = vmatpush.msrb.mxu2 %v153_v0  ;;  %379 = vmatpush.msrb.mxu0 %v122_v6  ;;  %v130_v39 = vld [vmem:[#allocation2 + $0x2b8] sm:$0xff]  ;;  %v159_v41 = vld [vmem:[#allocation2 + $0x3a0] sm:$0xff]  ;;  %v113_v42 = vld [vmem:[#allocation2 + $0x230] sm:$0xff] }
  0x29   :  { %440 = vmatpush.msrb.mxu3 %v169_v1  ;;  %399 = vmatpush.msrb.mxu1 %v138_v7  ;;  %v129_v43 = vld [vmem:[#allocation2 + $0x2b0] sm:$0xff]  ;;  %v142_v44 = vld [vmem:[#allocation2 + $0x318] sm:$0xff]  ;;  %v112_v46 = vld [vmem:[#allocation2 + $0x228] sm:$0xff] }
  0x2a   :  { %421 = vmatpush.msrb.mxu2 %v152_v4  ;;  %380 = vmatpush.msrb.mxu0 %v121_v10  ;;  %v158_v45 = vld [vmem:[#allocation2 + $0x398] sm:$0xff]  ;;  %v128_v47 = vld [vmem:[#allocation2 + $0x2a8] sm:$0xff]  ;;  %v141_v48 = vld [vmem:[#allocation2 + $0x310] sm:$0xff] }
  0x2b   :  { %441 = vmatpush.msrb.mxu3 %v168_v5  ;;  %400 = vmatpush.msrb.mxu1 %v137_v11  ;;  %v157_v49 = vld [vmem:[#allocation2 + $0x390] sm:$0xff]  ;;  %v111_v50 = vld [vmem:[#allocation2 + $0x220] sm:$0xff]  ;;  %v140_v52 = vld [vmem:[#allocation2 + $0x308] sm:$0xff] }
  0x2c   :  { %422 = vmatpush.msrb.mxu2 %v151_v8  ;;  %381 = vmatpush.msrb.mxu0 %v120_v14  ;;  %v127_v51 = vld [vmem:[#allocation2 + $0x2a0] sm:$0xff]  ;;  %v156_v53 = vld [vmem:[#allocation2 + $0x388] sm:$0xff]  ;;  %v110_v54 = vld [vmem:[#allocation2 + $0x218] sm:$0xff] }
  0x2d   :  { %442 = vmatpush.msrb.mxu3 %v167_v9  ;;  %401 = vmatpush.msrb.mxu1 %v136_v15  ;;  %v126_v55 = vld [vmem:[#allocation2 + $0x298] sm:$0xff]  ;;  %v139_v56 = vld [vmem:[#allocation2 + $0x300] sm:$0xff]  ;;  %v109_v62 = vld [vmem:[#allocation2 + $0x210] sm:$0xff] }
  0x2e   :  { %423 = vmatpush.msrb.mxu2 %v150_v12  ;;  %382 = vmatpush.msrb.mxu0 %v119_v18  ;;  %v155_v57 = vld [vmem:[#allocation2 + $0x380] sm:$0xff]  ;;  %v218_v60 = vld [vmem:[#allocation2 + $0x578] sm:$0xff]  ;;  %v125_v63 = vld [vmem:[#allocation2 + $0x290] sm:$0xff] }
  0x2f   :  { %443 = vmatpush.msrb.mxu3 %v166_v13  ;;  %402 = vmatpush.msrb.mxu1 %v135_v19  ;;  %v29_v58 = vld [vmem:[%s786_s0 + $0x4] sm:$0x3]  ;;  %v30_v59 = vld [vmem:[%s786_s0 + $0x6] sm:$0x3]  ;;  %v234_v61 = vld [vmem:[#allocation2 + $0x5f8] sm:$0xff] }
  0x30   :  { %424 = vmatpush.msrb.mxu2 %v149_v16  ;;  %383 = vmatpush.msrb.mxu0 %v118_v22  ;;  %v217_v0 = vld [vmem:[#allocation2 + $0x570] sm:$0xff]  ;;  %v108_v2 = vld [vmem:[#allocation2 + $0x208] sm:$0xff]  ;;  %v107_v6 = vld [vmem:[#allocation2 + $0x200] sm:$0xff] }
  0x31   :  { %444 = vmatpush.msrb.mxu3 %v165_v17  ;;  %403 = vmatpush.msrb.mxu1 %v134_v23  ;;  %v233_v1 = vld [vmem:[#allocation2 + $0x5f0] sm:$0xff]  ;;  %v124_v3 = vld [vmem:[#allocation2 + $0x288] sm:$0xff]  ;;  %v123_v7 = vld [vmem:[#allocation2 + $0x280] sm:$0xff] }
  0x32   :  { %425 = vmatpush.msrb.mxu2 %v148_v20  ;;  %384 = vmatpush.msrb.mxu0 %v117_v26  ;;  %v216_v4 = vld [vmem:[#allocation2 + $0x568] sm:$0xff]  ;;  %v27_v8 = vld [vmem:[%s786_s0] sm:$0x3]  ;;  %v28_v9 = vld [vmem:[%s786_s0 + $0x2] sm:$0x3] }
  0x33   :  { %445 = vmatpush.msrb.mxu3 %v164_v21  ;;  %404 = vmatpush.msrb.mxu1 %v133_v27  ;;  %v232_v5 = vld [vmem:[#allocation2 + $0x5e8] sm:$0xff]  ;;  %v186_v10 = vld [vmem:[#allocation2 + $0x478] sm:$0xff]  ;;  %v215_v12 = vld [vmem:[#allocation2 + $0x560] sm:$0xff] }
  0x34   :  { %426 = vmatpush.msrb.mxu2 %v147_v24  ;;  %385 = vmatpush.msrb.mxu0 %v116_v30  ;;  %v202_v11 = vld [vmem:[#allocation2 + $0x4f8] sm:$0xff]  ;;  %v231_v13 = vld [vmem:[#allocation2 + $0x5e0] sm:$0xff]  ;;  %v185_v14 = vld [vmem:[#allocation2 + $0x470] sm:$0xff] }
  0x35   :  { %446 = vmatpush.msrb.mxu3 %v163_v25  ;;  %405 = vmatpush.msrb.mxu1 %v132_v31  ;;  %v201_v15 = vld [vmem:[#allocation2 + $0x4f0] sm:$0xff]  ;;  %v214_v16 = vld [vmem:[#allocation2 + $0x558] sm:$0xff]  ;;  %v184_v18 = vld [vmem:[#allocation2 + $0x468] sm:$0xff] }
  0x36   :  { %427 = vmatpush.msrb.mxu2 %v146_v28  ;;  %386 = vmatpush.msrb.mxu0 %v115_v34  ;;  %v230_v17 = vld [vmem:[#allocation2 + $0x5d8] sm:$0xff]  ;;  %v200_v19 = vld [vmem:[#allocation2 + $0x4e8] sm:$0xff]  ;;  %v213_v20 = vld [vmem:[#allocation2 + $0x550] sm:$0xff] }
  0x37   :  { %447 = vmatpush.msrb.mxu3 %v162_v29  ;;  %406 = vmatpush.msrb.mxu1 %v131_v35  ;;  %v229_v21 = vld [vmem:[#allocation2 + $0x5d0] sm:$0xff]  ;;  %v183_v22 = vld [vmem:[#allocation2 + $0x460] sm:$0xff]  ;;  %v212_v24 = vld [vmem:[#allocation2 + $0x548] sm:$0xff] }
  0x38   :  { %428 = vmatpush.msrb.mxu2 %v145_v32  ;;  %387 = vmatpush.msrb.mxu0 %v114_v38  ;;  %v199_v23 = vld [vmem:[#allocation2 + $0x4e0] sm:$0xff]  ;;  %v228_v25 = vld [vmem:[#allocation2 + $0x5c8] sm:$0xff]  ;;  %v182_v26 = vld [vmem:[#allocation2 + $0x458] sm:$0xff] }
  0x39   :  { %448 = vmatpush.msrb.mxu3 %v161_v33  ;;  %407 = vmatpush.msrb.mxu1 %v130_v39  ;;  %v198_v27 = vld [vmem:[#allocation2 + $0x4d8] sm:$0xff]  ;;  %v211_v28 = vld [vmem:[#allocation2 + $0x540] sm:$0xff]  ;;  %v181_v30 = vld [vmem:[#allocation2 + $0x450] sm:$0xff] }
  0x3a   :  { %429 = vmatpush.msrb.mxu2 %v144_v36  ;;  %388 = vmatpush.msrb.mxu0 %v113_v42  ;;  %v227_v29 = vld [vmem:[#allocation2 + $0x5c0] sm:$0xff]  ;;  %v197_v31 = vld [vmem:[#allocation2 + $0x4d0] sm:$0xff]  ;;  %v210_v32 = vld [vmem:[#allocation2 + $0x538] sm:$0xff] }
  0x3b   :  { %449 = vmatpush.msrb.mxu3 %v160_v37  ;;  %408 = vmatpush.msrb.mxu1 %v129_v43  ;;  %v226_v33 = vld [vmem:[#allocation2 + $0x5b8] sm:$0xff]  ;;  %v180_v34 = vld [vmem:[#allocation2 + $0x448] sm:$0xff]  ;;  %v209_v36 = vld [vmem:[#allocation2 + $0x530] sm:$0xff] }
  0x3c   :  { %430 = vmatpush.msrb.mxu2 %v143_v40  ;;  %389 = vmatpush.msrb.mxu0 %v112_v46  ;;  %v196_v35 = vld [vmem:[#allocation2 + $0x4c8] sm:$0xff]  ;;  %v225_v37 = vld [vmem:[#allocation2 + $0x5b0] sm:$0xff]  ;;  %v179_v38 = vld [vmem:[#allocation2 + $0x440] sm:$0xff] }
  0x3d   :  { %450 = vmatpush.msrb.mxu3 %v159_v41  ;;  %409 = vmatpush.msrb.mxu1 %v128_v47  ;;  %v195_v39 = vld [vmem:[#allocation2 + $0x4c0] sm:$0xff]  ;;  %v208_v40 = vld [vmem:[#allocation2 + $0x528] sm:$0xff]  ;;  %v178_v42 = vld [vmem:[#allocation2 + $0x438] sm:$0xff] }
  0x3e   :  { %431 = vmatpush.msrb.mxu2 %v142_v44  ;;  %390 = vmatpush.msrb.mxu0 %v111_v50  ;;  %v224_v41 = vld [vmem:[#allocation2 + $0x5a8] sm:$0xff]  ;;  %v194_v43 = vld [vmem:[#allocation2 + $0x4b8] sm:$0xff]  ;;  %v207_v44 = vld [vmem:[#allocation2 + $0x520] sm:$0xff] }
  0x3f   :  { %451 = vmatpush.msrb.mxu3 %v158_v45  ;;  %410 = vmatpush.msrb.mxu1 %v127_v51  ;;  %v223_v45 = vld [vmem:[#allocation2 + $0x5a0] sm:$0xff]  ;;  %v177_v46 = vld [vmem:[#allocation2 + $0x430] sm:$0xff]  ;;  %v176_v50 = vld [vmem:[#allocation2 + $0x428] sm:$0xff] }
  0x40   :  { %432 = vmatpush.msrb.mxu2 %v141_v48  ;;  %391 = vmatpush.msrb.mxu0 %v110_v54  ;;  %v193_v47 = vld [vmem:[#allocation2 + $0x4b0] sm:$0xff]  ;;  %v206_v48 = vld [vmem:[#allocation2 + $0x518] sm:$0xff]  ;;  %v192_v51 = vld [vmem:[#allocation2 + $0x4a8] sm:$0xff] }
  0x41   :  { %452 = vmatpush.msrb.mxu3 %v157_v49  ;;  %411 = vmatpush.msrb.mxu1 %v126_v55  ;;  %v222_v49 = vld [vmem:[#allocation2 + $0x598] sm:$0xff]  ;;  %v175_v54 = vld [vmem:[#allocation2 + $0x420] sm:$0xff] }
  0x42   :  { %433 = vmatpush.msrb.mxu2 %v140_v52  ;;  %375 = vmatmul.f32.vlgmr.msra.gmra.mxu3 %v30_v59  ;;  %v205_v52 = vld [vmem:[#allocation2 + $0x510] sm:$0xff]  ;;  %v191_v55 = vld [vmem:[#allocation2 + $0x4a0] sm:$0xff]  ;;  %v190_v59 = vld [vmem:[#allocation2 + $0x498] sm:$0xff] }
  0x43   :  { %453 = vmatpush.msrb.mxu3 %v156_v53  ;;  %355 = vmatmul.f32.vlgmr.msra.gmra.mxu2 %v29_v58  ;;  %v221_v53 = vld [vmem:[#allocation2 + $0x590] sm:$0xff]  ;;  %v174_v58 = vld [vmem:[#allocation2 + $0x418] sm:$0xff] }
  0x44   :  { %434 = vmatpush.msrb.mxu2 %v139_v56  ;;  %392 = vmatpush.msrb.mxu0 %v109_v62  ;;  %v204_v56 = vld [vmem:[#allocation2 + $0x508] sm:$0xff] }
  0x45   :  { %454 = vmatpush.msrb.mxu3 %v155_v57  ;;  %412 = vmatpush.msrb.mxu1 %v125_v63  ;;  %v220_v57 = vld [vmem:[#allocation2 + $0x588] sm:$0xff] }
  0x46   :  { %499 = vmatpush.msra.mxu2 %v218_v60  ;;  %393 = vmatpush.msrb.mxu0 %v108_v2  ;;  %v203_v60 = vld [vmem:[#allocation2 + $0x500] sm:$0xff]  ;;  %v33_v62 = vld [vmem:[%s786_s0 + $0xc] sm:$0x3]  ;;  %v34_v63 = vld [vmem:[%s786_s0 + $0xe] sm:$0x3] }
  0x47   :  { %519 = vmatpush.msra.mxu3 %v234_v61  ;;  %413 = vmatpush.msrb.mxu1 %v124_v3  ;;  %v219_v61 = vld [vmem:[#allocation2 + $0x580] sm:$0xff]  ;;  %v173_v2 = vld [vmem:[#allocation2 + $0x410] sm:$0xff] }
  0x48   :  { %500 = vmatpush.msra.mxu2 %v217_v0  ;;  %394 = vmatpush.msrb.mxu0 %v107_v6  ;;  %v282_v0 = vld [vmem:[#allocation2 + $0x778] sm:$0xff]  ;;  %v189_v3 = vld [vmem:[#allocation2 + $0x490] sm:$0xff]  ;;  %v172_v6 = vld [vmem:[#allocation2 + $0x408] sm:$0xff] }
  0x49   :  { %520 = vmatpush.msra.mxu3 %v233_v1  ;;  %414 = vmatpush.msrb.mxu1 %v123_v7  ;;  %v298_v1 = vld [vmem:[#allocation2 + $0x7f8] sm:$0xff]  ;;  %v188_v7 = vld [vmem:[#allocation2 + $0x488] sm:$0xff] }
  0x4a   :  { %501 = vmatpush.msra.mxu2 %v216_v4  ;;  %315 = vmatmul.f32.vlgmr.msra.gmra.mxu0 %v27_v8  ;;  %v281_v4 = vld [vmem:[#allocation2 + $0x770] sm:$0xff]  ;;  %v280_v8 = vld [vmem:[#allocation2 + $0x768] sm:$0xff] }
  0x4b   :  { %521 = vmatpush.msra.mxu3 %v232_v5  ;;  %335 = vmatmul.f32.vlgmr.msra.gmra.mxu1 %v28_v9  ;;  %v297_v5 = vld [vmem:[#allocation2 + $0x7f0] sm:$0xff]  ;;  %v296_v9 = vld [vmem:[#allocation2 + $0x7e8] sm:$0xff] }
  0x4c   :  { %459 = vmatpush.msra.mxu0 %v186_v10  ;;  %479 = vmatpush.msra.mxu1 %v202_v11  ;;  %v171_v10 = vld [vmem:[#allocation2 + $0x400] sm:$0xff] }
  0x4d   :  { %502 = vmatpush.msra.mxu2 %v215_v12  ;;  %522 = vmatpush.msra.mxu3 %v231_v13  ;;  %v187_v11 = vld [vmem:[#allocation2 + $0x480] sm:$0xff]  ;;  %v31_v12 = vld [vmem:[%s786_s0 + $0x8] sm:$0x3]  ;;  %v32_v13 = vld [vmem:[%s786_s0 + $0xa] sm:$0x3] }
  0x4e   :  { %460 = vmatpush.msra.mxu0 %v185_v14  ;;  %480 = vmatpush.msra.mxu1 %v201_v15  ;;  %v250_v14 = vld [vmem:[#allocation2 + $0x678] sm:$0xff] }
  0x4f   :  { %503 = vmatpush.msra.mxu2 %v214_v16  ;;  %523 = vmatpush.msra.mxu3 %v230_v17  ;;  %v266_v15 = vld [vmem:[#allocation2 + $0x6f8] sm:$0xff]  ;;  %v279_v16 = vld [vmem:[#allocation2 + $0x760] sm:$0xff] }
  0x50   :  { %461 = vmatpush.msra.mxu0 %v184_v18  ;;  %481 = vmatpush.msra.mxu1 %v200_v19  ;;  %v295_v17 = vld [vmem:[#allocation2 + $0x7e0] sm:$0xff]  ;;  %v249_v18 = vld [vmem:[#allocation2 + $0x670] sm:$0xff] }
  0x51   :  { %504 = vmatpush.msra.mxu2 %v213_v20  ;;  %524 = vmatpush.msra.mxu3 %v229_v21  ;;  %v265_v19 = vld [vmem:[#allocation2 + $0x6f0] sm:$0xff]  ;;  %v278_v20 = vld [vmem:[#allocation2 + $0x758] sm:$0xff] }
  0x52   :  { %462 = vmatpush.msra.mxu0 %v183_v22  ;;  %482 = vmatpush.msra.mxu1 %v199_v23  ;;  %v294_v21 = vld [vmem:[#allocation2 + $0x7d8] sm:$0xff]  ;;  %v248_v22 = vld [vmem:[#allocation2 + $0x668] sm:$0xff] }
  0x53   :  { %505 = vmatpush.msra.mxu2 %v212_v24  ;;  %525 = vmatpush.msra.mxu3 %v228_v25  ;;  %v264_v23 = vld [vmem:[#allocation2 + $0x6e8] sm:$0xff]  ;;  %v277_v24 = vld [vmem:[#allocation2 + $0x750] sm:$0xff] }
  0x54   :  { %463 = vmatpush.msra.mxu0 %v182_v26  ;;  %483 = vmatpush.msra.mxu1 %v198_v27  ;;  %v293_v25 = vld [vmem:[#allocation2 + $0x7d0] sm:$0xff]  ;;  %v247_v26 = vld [vmem:[#allocation2 + $0x660] sm:$0xff] }
  0x55   :  { %506 = vmatpush.msra.mxu2 %v211_v28  ;;  %526 = vmatpush.msra.mxu3 %v227_v29  ;;  %v263_v27 = vld [vmem:[#allocation2 + $0x6e0] sm:$0xff]  ;;  %v276_v28 = vld [vmem:[#allocation2 + $0x748] sm:$0xff] }
  0x56   :  { %464 = vmatpush.msra.mxu0 %v181_v30  ;;  %484 = vmatpush.msra.mxu1 %v197_v31  ;;  %v292_v29 = vld [vmem:[#allocation2 + $0x7c8] sm:$0xff]  ;;  %v246_v30 = vld [vmem:[#allocation2 + $0x658] sm:$0xff] }
  0x57   :  { %507 = vmatpush.msra.mxu2 %v210_v32  ;;  %527 = vmatpush.msra.mxu3 %v226_v33  ;;  %v262_v31 = vld [vmem:[#allocation2 + $0x6d8] sm:$0xff]  ;;  %v275_v32 = vld [vmem:[#allocation2 + $0x740] sm:$0xff] }
  0x58   :  { %465 = vmatpush.msra.mxu0 %v180_v34  ;;  %485 = vmatpush.msra.mxu1 %v196_v35  ;;  %v291_v33 = vld [vmem:[#allocation2 + $0x7c0] sm:$0xff]  ;;  %v245_v34 = vld [vmem:[#allocation2 + $0x650] sm:$0xff] }
  0x59   :  { %508 = vmatpush.msra.mxu2 %v209_v36  ;;  %528 = vmatpush.msra.mxu3 %v225_v37  ;;  %v261_v35 = vld [vmem:[#allocation2 + $0x6d0] sm:$0xff]  ;;  %v274_v36 = vld [vmem:[#allocation2 + $0x738] sm:$0xff] }
  0x5a   :  { %466 = vmatpush.msra.mxu0 %v179_v38  ;;  %486 = vmatpush.msra.mxu1 %v195_v39  ;;  %v290_v37 = vld [vmem:[#allocation2 + $0x7b8] sm:$0xff]  ;;  %v244_v38 = vld [vmem:[#allocation2 + $0x648] sm:$0xff] }
  0x5b   :  { %509 = vmatpush.msra.mxu2 %v208_v40  ;;  %529 = vmatpush.msra.mxu3 %v224_v41  ;;  %v260_v39 = vld [vmem:[#allocation2 + $0x6c8] sm:$0xff]  ;;  %v273_v40 = vld [vmem:[#allocation2 + $0x730] sm:$0xff] }
  0x5c   :  { %467 = vmatpush.msra.mxu0 %v178_v42  ;;  %487 = vmatpush.msra.mxu1 %v194_v43  ;;  %v289_v41 = vld [vmem:[#allocation2 + $0x7b0] sm:$0xff]  ;;  %v243_v42 = vld [vmem:[#allocation2 + $0x640] sm:$0xff] }
  0x5d   :  { %510 = vmatpush.msra.mxu2 %v207_v44  ;;  %530 = vmatpush.msra.mxu3 %v223_v45  ;;  %v259_v43 = vld [vmem:[#allocation2 + $0x6c0] sm:$0xff]  ;;  %v272_v44 = vld [vmem:[#allocation2 + $0x728] sm:$0xff] }
  0x5e   :  { %468 = vmatpush.msra.mxu0 %v177_v46  ;;  %488 = vmatpush.msra.mxu1 %v193_v47  ;;  %v288_v45 = vld [vmem:[#allocation2 + $0x7a8] sm:$0xff]  ;;  %v242_v46 = vld [vmem:[#allocation2 + $0x638] sm:$0xff] }
  0x5f   :  { %511 = vmatpush.msra.mxu2 %v206_v48  ;;  %531 = vmatpush.msra.mxu3 %v222_v49  ;;  %v258_v47 = vld [vmem:[#allocation2 + $0x6b8] sm:$0xff]  ;;  %v271_v48 = vld [vmem:[#allocation2 + $0x720] sm:$0xff] }
  0x60   :  { %469 = vmatpush.msra.mxu0 %v176_v50  ;;  %489 = vmatpush.msra.mxu1 %v192_v51  ;;  %v287_v49 = vld [vmem:[#allocation2 + $0x7a0] sm:$0xff]  ;;  %v37_v50 = vld [vmem:[%s786_s0 + $0x14] sm:$0x3]  ;;  %v38_v51 = vld [vmem:[%s786_s0 + $0x16] sm:$0x3] }
  0x61   :  { %512 = vmatpush.msra.mxu2 %v205_v52  ;;  %532 = vmatpush.msra.mxu3 %v221_v53  ;;  %v241_v52 = vld [vmem:[#allocation2 + $0x630] sm:$0xff] }
  0x62   :  { %470 = vmatpush.msra.mxu0 %v175_v54  ;;  %490 = vmatpush.msra.mxu1 %v191_v55  ;;  %v257_v53 = vld [vmem:[#allocation2 + $0x6b0] sm:$0xff]  ;;  %v270_v54 = vld [vmem:[#allocation2 + $0x718] sm:$0xff] }
  0x63   :  { %513 = vmatpush.msra.mxu2 %v204_v56  ;;  %533 = vmatpush.msra.mxu3 %v220_v57  ;;  %v286_v55 = vld [vmem:[#allocation2 + $0x798] sm:$0xff]  ;;  %v240_v56 = vld [vmem:[#allocation2 + $0x628] sm:$0xff] }
  0x64   :  { %471 = vmatpush.msra.mxu0 %v174_v58  ;;  %491 = vmatpush.msra.mxu1 %v190_v59  ;;  %v256_v57 = vld [vmem:[#allocation2 + $0x6a8] sm:$0xff]  ;;  %v269_v58 = vld [vmem:[#allocation2 + $0x710] sm:$0xff] }
  0x65   :  { %514 = vmatpush.msra.mxu2 %v203_v60  ;;  %534 = vmatpush.msra.mxu3 %v219_v61  ;;  %v285_v59 = vld [vmem:[#allocation2 + $0x790] sm:$0xff]  ;;  %v239_v60 = vld [vmem:[#allocation2 + $0x620] sm:$0xff] }
  0x66   :  { %435 = vmatmul.f32.vlgmr.msrb.gmra.mxu2 %v33_v62  ;;  %455 = vmatmul.f32.vlgmr.msrb.gmra.mxu3 %v34_v63  ;;  %v255_v61 = vld [vmem:[#allocation2 + $0x6a0] sm:$0xff]  ;;  %v268_v62 = vld [vmem:[#allocation2 + $0x708] sm:$0xff] }
  0x67   :  { %579 = vmatpush.msrb.mxu2 %v282_v0  ;;  %599 = vmatpush.msrb.mxu3 %v298_v1  ;;  %v284_v63 = vld [vmem:[#allocation2 + $0x788] sm:$0xff]  ;;  %v35_v0 = vld [vmem:[%s786_s0 + $0x10] sm:$0x3]  ;;  %v36_v1 = vld [vmem:[%s786_s0 + $0x12] sm:$0x3] }
  0x68   :  { %472 = vmatpush.msra.mxu0 %v173_v2  ;;  %492 = vmatpush.msra.mxu1 %v189_v3  ;;  %v238_v2 = vld [vmem:[#allocation2 + $0x618] sm:$0xff] }
  0x69   :  { %580 = vmatpush.msrb.mxu2 %v281_v4  ;;  %600 = vmatpush.msrb.mxu3 %v297_v5  ;;  %v254_v3 = vld [vmem:[#allocation2 + $0x698] sm:$0xff]  ;;  %v267_v4 = vld [vmem:[#allocation2 + $0x700] sm:$0xff] }
  0x6a   :  { %473 = vmatpush.msra.mxu0 %v172_v6  ;;  %493 = vmatpush.msra.mxu1 %v188_v7  ;;  %v283_v5 = vld [vmem:[#allocation2 + $0x780] sm:$0xff]  ;;  %v41_v6 = vld [vmem:[%s786_s0 + $0x1c] sm:$0x3]  ;;  %v42_v7 = vld [vmem:[%s786_s0 + $0x1e] sm:$0x3] }
  0x6b   :  { %581 = vmatpush.msrb.mxu2 %v280_v8  ;;  %601 = vmatpush.msrb.mxu3 %v296_v9  ;;  %v237_v8 = vld [vmem:[#allocation2 + $0x610] sm:$0xff] }
  0x6c   :  { %474 = vmatpush.msra.mxu0 %v171_v10  ;;  %494 = vmatpush.msra.mxu1 %v187_v11  ;;  %v253_v9 = vld [vmem:[#allocation2 + $0x690] sm:$0xff]  ;;  %v236_v10 = vld [vmem:[#allocation2 + $0x608] sm:$0xff] }
  0x6d   :  { %395 = vmatmul.f32.vlgmr.msrb.gmra.mxu0 %v31_v12  ;;  %415 = vmatmul.f32.vlgmr.msrb.gmra.mxu1 %v32_v13  ;;  %v252_v11 = vld [vmem:[#allocation2 + $0x688] sm:$0xff]  ;;  %v235_v12 = vld [vmem:[#allocation2 + $0x600] sm:$0xff] }
  0x6e   :  { %539 = vmatpush.msrb.mxu0 %v250_v14  ;;  %559 = vmatpush.msrb.mxu1 %v266_v15  ;;  %v251_v13 = vld [vmem:[#allocation2 + $0x680] sm:$0xff]  ;;  %v39_v14 = vld [vmem:[%s786_s0 + $0x18] sm:$0x3]  ;;  %v40_v15 = vld [vmem:[%s786_s0 + $0x1a] sm:$0x3] }
  0x6f   :  { %582 = vmatpush.msrb.mxu2 %v279_v16  ;;  %602 = vmatpush.msrb.mxu3 %v295_v17 }
  0x70   :  { %540 = vmatpush.msrb.mxu0 %v249_v18  ;;  %560 = vmatpush.msrb.mxu1 %v265_v19 }
  0x71   :  { %583 = vmatpush.msrb.mxu2 %v278_v20  ;;  %603 = vmatpush.msrb.mxu3 %v294_v21 }
  0x72   :  { %541 = vmatpush.msrb.mxu0 %v248_v22  ;;  %561 = vmatpush.msrb.mxu1 %v264_v23 }
  0x73   :  { %584 = vmatpush.msrb.mxu2 %v277_v24  ;;  %604 = vmatpush.msrb.mxu3 %v293_v25 }
  0x74   :  { %542 = vmatpush.msrb.mxu0 %v247_v26  ;;  %562 = vmatpush.msrb.mxu1 %v263_v27 }
  0x75   :  { %585 = vmatpush.msrb.mxu2 %v276_v28  ;;  %605 = vmatpush.msrb.mxu3 %v292_v29 }
  0x76   :  { %543 = vmatpush.msrb.mxu0 %v246_v30  ;;  %563 = vmatpush.msrb.mxu1 %v262_v31 }
  0x77   :  { %586 = vmatpush.msrb.mxu2 %v275_v32  ;;  %606 = vmatpush.msrb.mxu3 %v291_v33 }
  0x78   :  { %544 = vmatpush.msrb.mxu0 %v245_v34  ;;  %564 = vmatpush.msrb.mxu1 %v261_v35 }
  0x79   :  { %587 = vmatpush.msrb.mxu2 %v274_v36  ;;  %607 = vmatpush.msrb.mxu3 %v290_v37 }
  0x7a   :  { %545 = vmatpush.msrb.mxu0 %v244_v38  ;;  %565 = vmatpush.msrb.mxu1 %v260_v39 }
  0x7b   :  { %588 = vmatpush.msrb.mxu2 %v273_v40  ;;  %608 = vmatpush.msrb.mxu3 %v289_v41 }
  0x7c   :  { %546 = vmatpush.msrb.mxu0 %v243_v42  ;;  %566 = vmatpush.msrb.mxu1 %v259_v43 }
  0x7d   :  { %589 = vmatpush.msrb.mxu2 %v272_v44  ;;  %609 = vmatpush.msrb.mxu3 %v288_v45 }
  0x7e   :  { %547 = vmatpush.msrb.mxu0 %v242_v46  ;;  %567 = vmatpush.msrb.mxu1 %v258_v47 }
  0x7f   :  { %590 = vmatpush.msrb.mxu2 %v271_v48  ;;  %610 = vmatpush.msrb.mxu3 %v287_v49 }
  0x80   :  { %515 = vmatmul.f32.vlgmr.msra.gmra.mxu2 %v37_v50  ;;  %535 = vmatmul.f32.vlgmr.msra.gmra.mxu3 %v38_v51 }
  0x81   :  { %548 = vmatpush.msrb.mxu0 %v241_v52  ;;  %568 = vmatpush.msrb.mxu1 %v257_v53 }
  0x82   :  { %591 = vmatpush.msrb.mxu2 %v270_v54  ;;  %611 = vmatpush.msrb.mxu3 %v286_v55 }
  0x83   :  { %549 = vmatpush.msrb.mxu0 %v240_v56  ;;  %569 = vmatpush.msrb.mxu1 %v256_v57 }
  0x84   :  { %592 = vmatpush.msrb.mxu2 %v269_v58  ;;  %612 = vmatpush.msrb.mxu3 %v285_v59 }
  0x85   :  { %550 = vmatpush.msrb.mxu0 %v239_v60  ;;  %570 = vmatpush.msrb.mxu1 %v255_v61 }
  0x86   :  { %593 = vmatpush.msrb.mxu2 %v268_v62  ;;  %613 = vmatpush.msrb.mxu3 %v284_v63 }
  0x87   :  { %475 = vmatmul.f32.vlgmr.msra.gmra.mxu0 %v35_v0  ;;  %495 = vmatmul.f32.vlgmr.msra.gmra.mxu1 %v36_v1 }
  0x88   :  { %551 = vmatpush.msrb.mxu0 %v238_v2  ;;  %571 = vmatpush.msrb.mxu1 %v254_v3 }
  0x89   :  { %594 = vmatpush.msrb.mxu2 %v267_v4  ;;  %614 = vmatpush.msrb.mxu3 %v283_v5 }
  0x8a   :  { %595 = vmatmul.f32.vlgmr.msrb.gmra.mxu2 %v41_v6  ;;  %615 = vmatmul.f32.vlgmr.msrb.gmra.mxu3 %v42_v7 }
  0x8b   :  { %552 = vmatpush.msrb.mxu0 %v237_v8  ;;  %572 = vmatpush.msrb.mxu1 %v253_v9 }
  0x8d   :  { %553 = vmatpush.msrb.mxu0 %v236_v10  ;;  %573 = vmatpush.msrb.mxu1 %v252_v11 }
  0x8f   :  { %554 = vmatpush.msrb.mxu0 %v235_v12  ;;  %574 = vmatpush.msrb.mxu1 %v251_v13 }
  0x90   :  { %555 = vmatmul.f32.vlgmr.msrb.gmra.mxu0 %v39_v14  ;;  %575 = vmatmul.f32.vlgmr.msrb.gmra.mxu1 %v40_v15 }
  0xc5   :  { %v376_v17 = vpop.f32.mrf.mxu3 }
  0xc6   :  { %v356_v16 = vpop.f32.mrf.mxu2  ;;  %622 = vst [vmem:[%s788_s2 + $0x6] sm:$0x3] %v376_v17 }
  0xc7   :  { %v316_v18 = vpop.f32.mrf.mxu0  ;;  %621 = vst [vmem:[%s788_s2 + $0x4] sm:$0x3] %v356_v16 }
  0xc8   :  { %v336_v19 = vpop.f32.mrf.mxu1  ;;  %619 = vst [vmem:[%s788_s2] sm:$0x3] %v316_v18 }
  0xc9   :  { %620 = vst [vmem:[%s788_s2 + $0x2] sm:$0x3] %v336_v19 }
  0xe9   :  { %v436_v20 = vpop.f32.mrf.mxu2  ;;  %v456_v21 = vpop.f32.mrf.mxu3 }
  0xea   :  { %v396_v22 = vpop.f32.mrf.mxu0  ;;  %v416_v23 = vpop.f32.mrf.mxu1  ;;  %625 = vst [vmem:[%s788_s2 + $0xc] sm:$0x3] %v436_v20 }
  0xeb   :  { %623 = vst [vmem:[%s788_s2 + $0x8] sm:$0x3] %v396_v22 }
  0xec   :  { %624 = vst [vmem:[%s788_s2 + $0xa] sm:$0x3] %v416_v23 }
  0xed   :  { %626 = vst [vmem:[%s788_s2 + $0xe] sm:$0x3] %v456_v21 }
 0x103   :  { %v516_v24 = vpop.f32.mrf.mxu2  ;;  %v536_v25 = vpop.f32.mrf.mxu3 }
 0x104   :  { %v476_v26 = vpop.f32.mrf.mxu0  ;;  %v496_v27 = vpop.f32.mrf.mxu1  ;;  %629 = vst [vmem:[%s788_s2 + $0x14] sm:$0x3] %v516_v24 }
 0x105   :  { %627 = vst [vmem:[%s788_s2 + $0x10] sm:$0x3] %v476_v26 }
 0x106   :  { %628 = vst [vmem:[%s788_s2 + $0x12] sm:$0x3] %v496_v27 }
 0x107   :  { %630 = vst [vmem:[%s788_s2 + $0x16] sm:$0x3] %v536_v25 }
 0x10d   :  { %v556_v28 = vpop.f32.mrf.mxu0  ;;  %v576_v29 = vpop.f32.mrf.mxu1 }
 0x10e   :  { %631 = vst [vmem:[%s788_s2 + $0x18] sm:$0x3] %v556_v28  ;;  %v596_v30 = vpop.f32.mrf.mxu2  ;;  %v616_v31 = vpop.f32.mrf.mxu3 }
 0x10f   :  { %632 = vst [vmem:[%s788_s2 + $0x1a] sm:$0x3] %v576_v29 }
 0x110   :  { %633 = vst [vmem:[%s788_s2 + $0x1c] sm:$0x3] %v596_v30 }
 0x111   :  { %634 = vst [vmem:[%s788_s2 + $0x1e] sm:$0x3] %v616_v31 }
 0x112   :  { %639 = vsyncpa [#allocation3], 1 }

// kernel: fno2d_forward.21
= control target key start
LH: loop header
LB: loop body
LE: loop exit
PB: predicated region body
PF: predicated region fallthrough
CT: control target
= control target key end

     0   :  { %8 = vsyncpa [#allocation3], 0  ;;  %s728_s12 = smov 0   ;;  %s768_s0 = inlined_call_operand.vmem [shape: f32[2,16,128], index: 0, kind: input, shape index: {}]   ;;  %s769_s1 = inlined_call_operand.vmem [shape: f32[32,16], index: 1, kind: input, shape index: {}]   ;;  %s770_s2 = inlined_call_operand.hbm [shape: f32[256,512], index: 2, kind: input, shape index: {}]   ;;  %s771_s3 = inlined_call_operand.vmem [shape: bf16[2,16,512], index: 3, kind: output, shape index: {}]  }
   0x1 LB: > { %s127_s15 = sshll.u32 %s770_s2, 4  ;;  %s623_s16 = sadd.s32 4294967295, %s703_s12   ;;  %s703_s12 = sphi %s728_s12, %s14_s12   ;;  %s128_s15 = int_to_ptr.hbm [resolvable:$true] %s127_s15 }
   0x2   : > { %p625_p0 = scmp.ge.s32.totalorder %s703_s12, 1  ;;  %p113_p1 = scmp.lt.s32.totalorder %s703_s12, 3 }
   0x3   : > { %p650_p2 = scmp.eq.s32.totalorder %s623_s16, 0  ;;  %s705_s17 = smov [#allocation2]  }
   0x4   : > { %p114_p3 = pnand %p625_p0, %p113_p1  ;;  %s129_s18 = sshll.u32 %s705_s17, 4  ;;  %s130_s18 = int_to_ptr.vmem [resolvable:$true] %s129_s18 }
   0x5   : > { %s706_s19 = smov 512   ;;  %s707_s20 = smov 32  }
   0x6   : > { %p646_p4 = pneg %p114_p3  ;;  %153 = sbr.rel (%p114_p3) target bundleno = 324 (0x144), region = 32 }
   0x8   : > { %p647_p5 = pnand %p650_p2, %p646_p4 }
   0xa   : > { %649 = dma.hbm_to_vmem [thread:$0]  (!%p647_p5), %s128_s15, 16384, %s130_s18, [#allocation3], %s706_s19, %s706_s19, %s707_s20  }
   0xb   : > { %698 = dma.done.wait (%p650_p2), [#allocation3], 16384  }
   0xc   : > { %700 = vsyncadd (%p650_p2), [#allocation3], 4294950912  ;;  %p178_p6 = scmp.lt.s32.totalorder %s623_s16, 1  ;;  %v190_v2 = vld [vmem:[%s769_s1] sm:$0xff]  ;;  %vm194_vm0 = vcmask 130048   ;;  %v297_v4 = vld [vmem:[#allocation2 + $0x1e8] sm:$0xff] }
   0xd   : > { %v296_v3 = vld [vmem:[#allocation2 + $0x1e0] sm:$0xff]  ;;  %v293_v6 = vld [vmem:[#allocation2 + $0x1c8] sm:$0xff]  ;;  %410 = vmatpush.msra.mxu3 %v297_v4  ;;  %v192_v32 = vld [vmem:[%s769_s1 + $0x10] sm:$0xff] }
   0xe   : > { %s773_s16 = smov (!%p178_p6, %s623_s16), 1  ;;  %v292_v5 = vld [vmem:[#allocation2 + $0x1c0] sm:$0xff]  ;;  %364 = vmatpush.msra.mxu1 %v296_v3  ;;  %v289_v8 = vld [vmem:[#allocation2 + $0x1a8] sm:$0xff]  ;;  %v193_v48 = vld [vmem:[%s769_s1 + $0x18] sm:$0xff] }
   0xf   : > { %s640_s21 = sshll.u32 %s773_s16, 4  ;;  %v288_v7 = vld [vmem:[#allocation2 + $0x1a0] sm:$0xff]  ;;  %411 = vmatpush.msra.mxu3 %v293_v6  ;;  %v285_v10 = vld [vmem:[#allocation2 + $0x188] sm:$0xff]  ;;  %v298_v61 = vld [vmem:[#allocation2 + $0x1f0] sm:$0xff]  ;;  %s641_s6 = sshll.u32 %s773_s16, 5 }
  0x10   : > { %s182_s24 = scalar_lea.vmem %s768_s0, %s640_s21  ;;  %365 = vmatpush.msra.mxu1 %v292_v5  ;;  %v284_v9 = vld [vmem:[#allocation2 + $0x180] sm:$0xff]  ;;  %v191_v12 = vld [vmem:[%s769_s1 + $0x8] sm:$0xff]  ;;  %v299_v62 = vld [vmem:[#allocation2 + $0x1f8] sm:$0xff]  ;;  %s187_s9 = scalar_lea.vmem %s771_s3, %s641_s6 }
  0x11   : > { %v189_v0 = vld [vmem:[%s182_s24 + $0x8] sm:$0xff]  ;;  %v188_v1 = vld [vmem:[%s182_s24] sm:$0xff]  ;;  %412 = vmatpush.msra.mxu3 %v289_v8  ;;  %v290_v4 = vld [vmem:[#allocation2 + $0x1b0] sm:$0xff] }
  0x12   : > { %221 = vmatpush.msra.mxu0 %v189_v0  ;;  %366 = vmatpush.msra.mxu1 %v288_v7  ;;  %v360_v11 = vld [vmem:[#allocation2 + $0x3e0] sm:$0xff]  ;;  %v361_v14 = vld [vmem:[#allocation2 + $0x3e8] sm:$0xff]  ;;  %v294_v0 = vld [vmem:[#allocation2 + $0x1d0] sm:$0xff] }
  0x13   : > { %v280_v13 = vld [vmem:[#allocation2 + $0x160] sm:$0xff]  ;;  %387 = vmatpush.msra.mxu2 %v360_v11  ;;  %v281_v15 = vld [vmem:[#allocation2 + $0x168] sm:$0xff]  ;;  %413 = vmatpush.msra.mxu3 %v285_v10  ;;  %v291_v6 = vld [vmem:[#allocation2 + $0x1b8] sm:$0xff] }
  0x14   : > { %222 = vmatpush.msra.mxu0 %v188_v1  ;;  %367 = vmatpush.msra.mxu1 %v284_v9  ;;  %v356_v16 = vld [vmem:[#allocation2 + $0x3c0] sm:$0xff]  ;;  %v357_v17 = vld [vmem:[#allocation2 + $0x3c8] sm:$0xff]  ;;  %v286_v8 = vld [vmem:[#allocation2 + $0x190] sm:$0xff] }
  0x15   : > { %634 = vmatmul.msk.f32.vlgmr.msra.gmra.mxu0 %vm194_vm0, %v190_v2  ;;  %v276_v18 = vld [vmem:[#allocation2 + $0x140] sm:$0xff]  ;;  %388 = vmatpush.msra.mxu2 %v356_v16  ;;  %v277_v20 = vld [vmem:[#allocation2 + $0x148] sm:$0xff]  ;;  %v295_v2 = vld [vmem:[#allocation2 + $0x1d8] sm:$0xff] }
  0x16   : > { %433 = vmatpush.msrb.mxu0 %v361_v14  ;;  %v352_v19 = vld [vmem:[#allocation2 + $0x3a0] sm:$0xff]  ;;  %368 = vmatpush.msra.mxu1 %v280_v13  ;;  %v353_v21 = vld [vmem:[#allocation2 + $0x3a8] sm:$0xff]  ;;  %v287_v10 = vld [vmem:[#allocation2 + $0x198] sm:$0xff] }
  0x17   : > { %414 = vmatpush.msra.mxu3 %v281_v15  ;;  %v272_v22 = vld [vmem:[#allocation2 + $0x120] sm:$0xff]  ;;  %v273_v24 = vld [vmem:[#allocation2 + $0x128] sm:$0xff]  ;;  %389 = vmatpush.msra.mxu2 %v352_v19  ;;  %v283_v13 = vld [vmem:[#allocation2 + $0x178] sm:$0xff] }
  0x18   : > { %434 = vmatpush.msrb.mxu0 %v357_v17  ;;  %v348_v23 = vld [vmem:[#allocation2 + $0x380] sm:$0xff]  ;;  %369 = vmatpush.msra.mxu1 %v276_v18  ;;  %v349_v25 = vld [vmem:[#allocation2 + $0x388] sm:$0xff]  ;;  %v278_v14 = vld [vmem:[#allocation2 + $0x150] sm:$0xff] }
  0x19   : > { %415 = vmatpush.msra.mxu3 %v277_v20  ;;  %v268_v26 = vld [vmem:[#allocation2 + $0x100] sm:$0xff]  ;;  %v269_v28 = vld [vmem:[#allocation2 + $0x108] sm:$0xff]  ;;  %390 = vmatpush.msra.mxu2 %v348_v23  ;;  %v279_v15 = vld [vmem:[#allocation2 + $0x158] sm:$0xff] }
  0x1a   : > { %435 = vmatpush.msrb.mxu0 %v353_v21  ;;  %v344_v27 = vld [vmem:[#allocation2 + $0x360] sm:$0xff]  ;;  %370 = vmatpush.msra.mxu1 %v272_v22  ;;  %v345_v29 = vld [vmem:[#allocation2 + $0x368] sm:$0xff]  ;;  %v274_v16 = vld [vmem:[#allocation2 + $0x130] sm:$0xff] }
  0x1b   : > { %416 = vmatpush.msra.mxu3 %v273_v24  ;;  %v264_v30 = vld [vmem:[#allocation2 + $0xe0] sm:$0xff]  ;;  %v265_v33 = vld [vmem:[#allocation2 + $0xe8] sm:$0xff]  ;;  %391 = vmatpush.msra.mxu2 %v344_v27  ;;  %v275_v17 = vld [vmem:[#allocation2 + $0x138] sm:$0xff] }
  0x1c   : > { %436 = vmatpush.msrb.mxu0 %v349_v25  ;;  %v340_v31 = vld [vmem:[#allocation2 + $0x340] sm:$0xff]  ;;  %371 = vmatpush.msra.mxu1 %v268_v26  ;;  %v341_v35 = vld [vmem:[#allocation2 + $0x348] sm:$0xff]  ;;  %v270_v18 = vld [vmem:[#allocation2 + $0x110] sm:$0xff] }
  0x1d   : > { %635 = vmatmul.msk.f32.gmra.mxu0 %vm194_vm0, %v191_v12  ;;  %417 = vmatpush.msra.mxu3 %v269_v28  ;;  %v260_v34 = vld [vmem:[#allocation2 + $0xc0] sm:$0xff]  ;;  %v261_v36 = vld [vmem:[#allocation2 + $0xc8] sm:$0xff]  ;;  %v282_v12 = vld [vmem:[#allocation2 + $0x170] sm:$0xff] }
  0x1e   : > { %437 = vmatpush.msrb.mxu0 %v345_v29  ;;  %372 = vmatpush.msra.mxu1 %v264_v30  ;;  %v336_v37 = vld [vmem:[#allocation2 + $0x320] sm:$0xff]  ;;  %v337_v39 = vld [vmem:[#allocation2 + $0x328] sm:$0xff]  ;;  %v271_v19 = vld [vmem:[#allocation2 + $0x118] sm:$0xff] }
  0x1f   : > { %392 = vmatpush.msra.mxu2 %v340_v31  ;;  %418 = vmatpush.msra.mxu3 %v265_v33  ;;  %v256_v38 = vld [vmem:[#allocation2 + $0xa0] sm:$0xff]  ;;  %v257_v40 = vld [vmem:[#allocation2 + $0xa8] sm:$0xff]  ;;  %v266_v22 = vld [vmem:[#allocation2 + $0xf0] sm:$0xff] }
  0x20   : > { %373 = vmatpush.msra.mxu1 %v260_v34  ;;  %438 = vmatpush.msrb.mxu0 %v341_v35  ;;  %v332_v41 = vld [vmem:[#allocation2 + $0x300] sm:$0xff]  ;;  %v333_v43 = vld [vmem:[#allocation2 + $0x308] sm:$0xff]  ;;  %v362_v23 = vld [vmem:[#allocation2 + $0x3f0] sm:$0xff] }
  0x21   : > { %419 = vmatpush.msra.mxu3 %v261_v36  ;;  %v252_v42 = vld [vmem:[#allocation2 + $0x80] sm:$0xff]  ;;  %393 = vmatpush.msra.mxu2 %v336_v37  ;;  %v253_v44 = vld [vmem:[#allocation2 + $0x88] sm:$0xff]  ;;  %v267_v24 = vld [vmem:[#allocation2 + $0xf8] sm:$0xff] }
  0x22   : > { %374 = vmatpush.msra.mxu1 %v256_v38  ;;  %439 = vmatpush.msrb.mxu0 %v337_v39  ;;  %v328_v45 = vld [vmem:[#allocation2 + $0x2e0] sm:$0xff]  ;;  %v329_v47 = vld [vmem:[#allocation2 + $0x2e8] sm:$0xff]  ;;  %v363_v25 = vld [vmem:[#allocation2 + $0x3f8] sm:$0xff] }
  0x23   : > { %420 = vmatpush.msra.mxu3 %v257_v40  ;;  %v248_v46 = vld [vmem:[#allocation2 + $0x60] sm:$0xff]  ;;  %394 = vmatpush.msra.mxu2 %v332_v41  ;;  %v249_v49 = vld [vmem:[#allocation2 + $0x68] sm:$0xff]  ;;  %v262_v26 = vld [vmem:[#allocation2 + $0xd0] sm:$0xff] }
  0x24   : > { %375 = vmatpush.msra.mxu1 %v252_v42  ;;  %440 = vmatpush.msrb.mxu0 %v333_v43  ;;  %v244_v50 = vld [vmem:[#allocation2 + $0x40] sm:$0xff]  ;;  %v245_v52 = vld [vmem:[#allocation2 + $0x48] sm:$0xff]  ;;  %v358_v27 = vld [vmem:[#allocation2 + $0x3d0] sm:$0xff] }
  0x25   : > { %636 = vmatmul.msk.f32.gmra.mxu0 %vm194_vm0, %v192_v32  ;;  %421 = vmatpush.msra.mxu3 %v253_v44  ;;  %v324_v51 = vld [vmem:[#allocation2 + $0x2c0] sm:$0xff]  ;;  %v325_v53 = vld [vmem:[#allocation2 + $0x2c8] sm:$0xff]  ;;  %v263_v28 = vld [vmem:[#allocation2 + $0xd8] sm:$0xff] }
  0x26   : > { %395 = vmatpush.msra.mxu2 %v328_v45  ;;  %376 = vmatpush.msra.mxu1 %v248_v46  ;;  %v240_v54 = vld [vmem:[#allocation2 + $0x20] sm:$0xff]  ;;  %v241_v56 = vld [vmem:[#allocation2 + $0x28] sm:$0xff]  ;;  %v359_v29 = vld [vmem:[#allocation2 + $0x3d8] sm:$0xff] }
  0x27   : > { %441 = vmatpush.msrb.mxu0 %v329_v47  ;;  %422 = vmatpush.msra.mxu3 %v249_v49  ;;  %v320_v55 = vld [vmem:[#allocation2 + $0x2a0] sm:$0xff]  ;;  %v321_v57 = vld [vmem:[#allocation2 + $0x2a8] sm:$0xff]  ;;  %v258_v30 = vld [vmem:[#allocation2 + $0xb0] sm:$0xff] }
  0x28   : > { %377 = vmatpush.msra.mxu1 %v244_v50  ;;  %396 = vmatpush.msra.mxu2 %v324_v51  ;;  %v236_v58 = vld [vmem:[#allocation2] sm:$0xff]  ;;  %v237_v60 = vld [vmem:[#allocation2 + $0x8] sm:$0xff]  ;;  %v354_v31 = vld [vmem:[#allocation2 + $0x3b0] sm:$0xff] }
  0x29   : > { %423 = vmatpush.msra.mxu3 %v245_v52  ;;  %442 = vmatpush.msrb.mxu0 %v325_v53  ;;  %v316_v59 = vld [vmem:[#allocation2 + $0x280] sm:$0xff]  ;;  %v317_v63 = vld [vmem:[#allocation2 + $0x288] sm:$0xff]  ;;  %v259_v32 = vld [vmem:[#allocation2 + $0xb8] sm:$0xff] }
  0x2a   : > { %378 = vmatpush.msra.mxu1 %v240_v54  ;;  %397 = vmatpush.msra.mxu2 %v320_v55  ;;  %v312_v1 = vld [vmem:[#allocation2 + $0x260] sm:$0xff]  ;;  %v313_v3 = vld [vmem:[#allocation2 + $0x268] sm:$0xff]  ;;  %v355_v33 = vld [vmem:[#allocation2 + $0x3b8] sm:$0xff] }
  0x2b   : > { %424 = vmatpush.msra.mxu3 %v241_v56  ;;  %443 = vmatpush.msrb.mxu0 %v321_v57  ;;  %v308_v5 = vld [vmem:[#allocation2 + $0x240] sm:$0xff]  ;;  %v309_v7 = vld [vmem:[#allocation2 + $0x248] sm:$0xff]  ;;  %v254_v34 = vld [vmem:[#allocation2 + $0x90] sm:$0xff] }
  0x2c   : > { %379 = vmatpush.msra.mxu1 %v236_v58  ;;  %398 = vmatpush.msra.mxu2 %v316_v59  ;;  %v304_v9 = vld [vmem:[#allocation2 + $0x220] sm:$0xff]  ;;  %v305_v11 = vld [vmem:[#allocation2 + $0x228] sm:$0xff]  ;;  %v350_v35 = vld [vmem:[#allocation2 + $0x390] sm:$0xff] }
  0x2d   : > { %637 = vmatmul.msk.f32.gmra.mxu0 %vm194_vm0, %v193_v48  ;;  %425 = vmatpush.msra.mxu3 %v237_v60  ;;  %v300_v20 = vld [vmem:[#allocation2 + $0x200] sm:$0xff]  ;;  %v301_v21 = vld [vmem:[#allocation2 + $0x208] sm:$0xff]  ;;  %v255_v36 = vld [vmem:[#allocation2 + $0x98] sm:$0xff] }
  0x2e   : > { %456 = vmatpush.msrb.mxu1 %v298_v61  ;;  %444 = vmatpush.msrb.mxu0 %v317_v63  ;;  %v351_v37 = vld [vmem:[#allocation2 + $0x398] sm:$0xff]  ;;  %v250_v38 = vld [vmem:[#allocation2 + $0x70] sm:$0xff] }
  0x2f   : > { %502 = vmatpush.msrb.mxu3 %v299_v62  ;;  %399 = vmatpush.msra.mxu2 %v312_v1  ;;  %v346_v39 = vld [vmem:[#allocation2 + $0x370] sm:$0xff]  ;;  %v251_v40 = vld [vmem:[#allocation2 + $0x78] sm:$0xff] }
  0x30   : > { %457 = vmatpush.msrb.mxu1 %v294_v0  ;;  %445 = vmatpush.msrb.mxu0 %v313_v3  ;;  %v347_v41 = vld [vmem:[#allocation2 + $0x378] sm:$0xff]  ;;  %v246_v42 = vld [vmem:[#allocation2 + $0x50] sm:$0xff] }
  0x31   : > { %503 = vmatpush.msrb.mxu3 %v295_v2  ;;  %400 = vmatpush.msra.mxu2 %v308_v5  ;;  %v342_v43 = vld [vmem:[#allocation2 + $0x350] sm:$0xff]  ;;  %v247_v44 = vld [vmem:[#allocation2 + $0x58] sm:$0xff] }
  0x32   : > { %458 = vmatpush.msrb.mxu1 %v290_v4  ;;  %446 = vmatpush.msrb.mxu0 %v309_v7  ;;  %v343_v45 = vld [vmem:[#allocation2 + $0x358] sm:$0xff]  ;;  %v242_v46 = vld [vmem:[#allocation2 + $0x30] sm:$0xff] }
  0x33   : > { %504 = vmatpush.msrb.mxu3 %v291_v6  ;;  %401 = vmatpush.msra.mxu2 %v304_v9  ;;  %v338_v47 = vld [vmem:[#allocation2 + $0x330] sm:$0xff]  ;;  %v243_v48 = vld [vmem:[#allocation2 + $0x38] sm:$0xff] }
  0x34   : > { %459 = vmatpush.msrb.mxu1 %v286_v8  ;;  %447 = vmatpush.msrb.mxu0 %v305_v11  ;;  %v339_v49 = vld [vmem:[#allocation2 + $0x338] sm:$0xff]  ;;  %v238_v50 = vld [vmem:[#allocation2 + $0x10] sm:$0xff] }
  0x35   : > { %505 = vmatpush.msrb.mxu3 %v287_v10  ;;  %402 = vmatpush.msra.mxu2 %v300_v20  ;;  %v334_v51 = vld [vmem:[#allocation2 + $0x310] sm:$0xff]  ;;  %v239_v52 = vld [vmem:[#allocation2 + $0x18] sm:$0xff] }
  0x36   : > { %460 = vmatpush.msrb.mxu1 %v282_v12  ;;  %448 = vmatpush.msrb.mxu0 %v301_v21  ;;  %v335_v53 = vld [vmem:[#allocation2 + $0x318] sm:$0xff]  ;;  %v330_v54 = vld [vmem:[#allocation2 + $0x2f0] sm:$0xff] }
  0x37   : > { %506 = vmatpush.msrb.mxu3 %v283_v13  ;;  %479 = vmatpush.msrb.mxu2 %v362_v23  ;;  %v331_v55 = vld [vmem:[#allocation2 + $0x2f8] sm:$0xff]  ;;  %v326_v56 = vld [vmem:[#allocation2 + $0x2d0] sm:$0xff] }
  0x38   : > { %461 = vmatpush.msrb.mxu1 %v278_v14  ;;  %525 = vmatpush.msra.mxu0 %v363_v25  ;;  %v327_v57 = vld [vmem:[#allocation2 + $0x2d8] sm:$0xff]  ;;  %v322_v58 = vld [vmem:[#allocation2 + $0x2b0] sm:$0xff] }
  0x39   : > { %507 = vmatpush.msrb.mxu3 %v279_v15  ;;  %480 = vmatpush.msrb.mxu2 %v358_v27  ;;  %v323_v59 = vld [vmem:[#allocation2 + $0x2b8] sm:$0xff]  ;;  %v318_v60 = vld [vmem:[#allocation2 + $0x290] sm:$0xff] }
  0x3a   : > { %462 = vmatpush.msrb.mxu1 %v274_v16  ;;  %526 = vmatpush.msra.mxu0 %v359_v29  ;;  %v319_v61 = vld [vmem:[#allocation2 + $0x298] sm:$0xff]  ;;  %v314_v62 = vld [vmem:[#allocation2 + $0x270] sm:$0xff] }
  0x3b   : > { %508 = vmatpush.msrb.mxu3 %v275_v17  ;;  %481 = vmatpush.msrb.mxu2 %v354_v31  ;;  %v315_v63 = vld [vmem:[#allocation2 + $0x278] sm:$0xff]  ;;  %v310_v0 = vld [vmem:[#allocation2 + $0x250] sm:$0xff] }
  0x3c   : > { %463 = vmatpush.msrb.mxu1 %v270_v18  ;;  %527 = vmatpush.msra.mxu0 %v355_v33  ;;  %v311_v1 = vld [vmem:[#allocation2 + $0x258] sm:$0xff]  ;;  %v306_v2 = vld [vmem:[#allocation2 + $0x230] sm:$0xff] }
  0x3d   : > { %509 = vmatpush.msrb.mxu3 %v271_v19  ;;  %482 = vmatpush.msrb.mxu2 %v350_v35  ;;  %v307_v3 = vld [vmem:[#allocation2 + $0x238] sm:$0xff]  ;;  %v302_v4 = vld [vmem:[#allocation2 + $0x210] sm:$0xff] }
  0x3e   : > { %464 = vmatpush.msrb.mxu1 %v266_v22  ;;  %528 = vmatpush.msra.mxu0 %v351_v37  ;;  %v303_v5 = vld [vmem:[#allocation2 + $0x218] sm:$0xff] }
  0x3f   : > { %510 = vmatpush.msrb.mxu3 %v267_v24  ;;  %483 = vmatpush.msrb.mxu2 %v346_v39 }
  0x40   : > { %465 = vmatpush.msrb.mxu1 %v262_v26  ;;  %529 = vmatpush.msra.mxu0 %v347_v41 }
  0x41   : > { %511 = vmatpush.msrb.mxu3 %v263_v28  ;;  %484 = vmatpush.msrb.mxu2 %v342_v43 }
  0x42   : > { %466 = vmatpush.msrb.mxu1 %v258_v30  ;;  %530 = vmatpush.msra.mxu0 %v343_v45 }
  0x43   : > { %512 = vmatpush.msrb.mxu3 %v259_v32  ;;  %485 = vmatpush.msrb.mxu2 %v338_v47 }
  0x44   : > { %467 = vmatpush.msrb.mxu1 %v254_v34  ;;  %531 = vmatpush.msra.mxu0 %v339_v49 }
  0x45   : > { %513 = vmatpush.msrb.mxu3 %v255_v36  ;;  %486 = vmatpush.msrb.mxu2 %v334_v51 }
  0x46   : > { %468 = vmatpush.msrb.mxu1 %v250_v38  ;;  %532 = vmatpush.msra.mxu0 %v335_v53 }
  0x47   : > { %514 = vmatpush.msrb.mxu3 %v251_v40  ;;  %487 = vmatpush.msrb.mxu2 %v330_v54 }
  0x48   : > { %469 = vmatpush.msrb.mxu1 %v246_v42  ;;  %533 = vmatpush.msra.mxu0 %v331_v55 }
  0x49   : > { %515 = vmatpush.msrb.mxu3 %v247_v44  ;;  %488 = vmatpush.msrb.mxu2 %v326_v56 }
  0x4a   : > { %470 = vmatpush.msrb.mxu1 %v242_v46  ;;  %534 = vmatpush.msra.mxu0 %v327_v57 }
  0x4b   : > { %516 = vmatpush.msrb.mxu3 %v243_v48  ;;  %489 = vmatpush.msrb.mxu2 %v322_v58 }
  0x4c   : > { %471 = vmatpush.msrb.mxu1 %v238_v50  ;;  %535 = vmatpush.msra.mxu0 %v323_v59 }
  0x4d   : > { %517 = vmatpush.msrb.mxu3 %v239_v52  ;;  %490 = vmatpush.msrb.mxu2 %v318_v60 }
  0x4e   : > { %536 = vmatpush.msra.mxu0 %v319_v61 }
  0x4f   : > { %491 = vmatpush.msrb.mxu2 %v314_v62 }
  0x50   : > { %537 = vmatpush.msra.mxu0 %v315_v63 }
  0x51   : > { %492 = vmatpush.msrb.mxu2 %v310_v0 }
  0x52   : > { %538 = vmatpush.msra.mxu0 %v311_v1 }
  0x53   : > { %493 = vmatpush.msrb.mxu2 %v306_v2 }
  0x54   : > { %539 = vmatpush.msra.mxu0 %v307_v3 }
  0x55   : > { %494 = vmatpush.msrb.mxu2 %v302_v4 }
  0x56   : > { %540 = vmatpush.msra.mxu0 %v303_v5 }
  0x92   : > { %v224_v6 = vpop.f32.mrf.mxu0 }
  0x93   : > { %380 = vmatmul.f32.vlgmr.msra.gmra.mxu1 %v224_v6  ;;  %426 = vmatmul.f32.vlgmr.msra.gmra.mxu3 %v224_v6 }
  0x9a   : > { %v227_v7 = vpop.f32.mrf.mxu0 }
  0x9b   : > { %383 = vmatmul.f32.gmra.mxu1 %v227_v7  ;;  %429 = vmatmul.f32.gmra.mxu3 %v227_v7 }
  0xa2   : > { %v230_v8 = vpop.f32.mrf.mxu0 }
  0xa3   : > { %403 = vmatmul.f32.vlgmr.msra.gmra.mxu2 %v230_v8  ;;  %449 = vmatmul.f32.vlgmr.msrb.gmra.mxu0 %v230_v8 }
  0xa4   : > { %472 = vmatmul.f32.vlgmr.msrb.gmra.mxu1 %v224_v6  ;;  %518 = vmatmul.f32.vlgmr.msrb.gmra.mxu3 %v224_v6 }
  0xaa   : > { %v233_v9 = vpop.f32.mrf.mxu0 }
  0xab   : > { %406 = vmatmul.f32.gmra.mxu2 %v233_v9  ;;  %452 = vmatmul.f32.gmra.mxu0 %v233_v9 }
  0xac   : > { %475 = vmatmul.f32.gmra.mxu1 %v227_v7  ;;  %521 = vmatmul.f32.gmra.mxu3 %v227_v7 }
  0xb3   : > { %495 = vmatmul.f32.vlgmr.msrb.gmra.mxu2 %v230_v8  ;;  %541 = vmatmul.f32.vlgmr.msra.gmra.mxu0 %v230_v8 }
  0xbb   : > { %498 = vmatmul.f32.gmra.mxu2 %v233_v9  ;;  %544 = vmatmul.f32.gmra.mxu0 %v233_v9 }
 0x110   : > { %v381_v10 = vpop.f32.mrf.mxu1 }
 0x116   : > { %v427_v11 = vpop.f32.mrf.mxu3 }
 0x118   : > { %v384_v17 = vpop.f32.mrf.mxu1 }
 0x11e   : > { %v430_v19 = vpop.f32.mrf.mxu3 }
 0x120   : > { %v450_v12 = vpop.f32.mrf.mxu0 }
 0x121   : > { %v451_v14 = vadd.f32 %v450_v12, %v427_v11  ;;  %v473_v25 = vpop.f32.mrf.mxu1 }
 0x126   : > { %v404_v13 = vpop.f32.mrf.mxu2 }
 0x127   : > { %v405_v15 = vadd.f32 %v404_v13, %v381_v10  ;;  %v519_v26 = vpop.f32.mrf.mxu3 }
 0x128   : > { %v453_v16 = vpop.f32.mrf.mxu0 }
 0x129   : > { %v548_v18 = vpack.c.bf16 %v451_v14, %v405_v15  ;;  %v454_v21 = vadd.f32 %v453_v16, %v430_v19  ;;  %v476_v32 = vpop.f32.mrf.mxu1 }
 0x12b   : > { %552 = vst [vmem:[%s187_s9] sm:$0xff] %v548_v18 }
 0x12e   : > { %v407_v20 = vpop.f32.mrf.mxu2 }
 0x12f   : > { %v408_v22 = vadd.f32 %v407_v20, %v384_v17  ;;  %v522_v33 = vpop.f32.mrf.mxu3 }
 0x130   : > { %v542_v24 = vpop.f32.mrf.mxu0 }
 0x131   : > { %v550_v23 = vpack.c.bf16 %v454_v21, %v408_v22  ;;  %v543_v28 = vadd.f32 %v542_v24, %v519_v26 }
 0x133   : > { %554 = vst [vmem:[%s187_s9 + $0x10] sm:$0xff] %v550_v23 }
 0x136   : > { %v496_v27 = vpop.f32.mrf.mxu2 }
 0x137   : > { %v497_v29 = vadd.f32 %v496_v27, %v473_v25 }
 0x138   : > { %v545_v31 = vpop.f32.mrf.mxu0 }
 0x139   : > { %v549_v30 = vpack.c.bf16 %v543_v28, %v497_v29  ;;  %v546_v35 = vadd.f32 %v545_v31, %v522_v33 }
 0x13b   : > { %553 = vst [vmem:[%s187_s9 + $0x8] sm:$0xff] %v549_v30 }
 0x13e   : > { %v499_v34 = vpop.f32.mrf.mxu2 }
 0x13f   : > { %v500_v36 = vadd.f32 %v499_v34, %v476_v32 }
 0x141   : > { %v551_v37 = vpack.c.bf16 %v546_v35, %v500_v36 }
 0x143   : > { %555 = vst [vmem:[%s187_s9 + $0x18] sm:$0xff] %v551_v37 }
 0x144 PF: > { %s14_s12 = sadd.s32 1, %s703_s12  }
 0x145   : > { %p11_p7 = scmp.ge.s32.totalorder %s14_s12, 4  }
 0x147   :  { %13 = sbr.rel (!%p11_p7) target bundleno = 1 (0x1), region = 67 }
 0x14c   :  { %577 = vsyncpa [#allocation3], 1 }
 0x14d   :  { %579 = vsyncpa [#allocation3 + $0x1], 1 }

// kernel: fno2d_forward.22
= control target key start
LH: loop header
LB: loop body
LE: loop exit
PB: predicated region body
PF: predicated region fallthrough
CT: control target
= control target key end

     0   :  { %9 = vsyncpa [#allocation3], 0  ;;  %s701_s18 = smov [#allocation2]   ;;  %s702_s20 = smov 128   ;;  %s851_s0 = inlined_call_operand.vmem [shape: bf16[64,256], index: 0, kind: input, shape index: {}]   ;;  %s852_s1 = inlined_call_operand.hbm [shape: bf16[256,256], index: 1, kind: input, shape index: {}]   ;;  %s853_s2 = inlined_call_operand.vmem [shape: f32[1,256], index: 2, kind: input, shape index: {}]   ;;  %s854_s3 = inlined_call_operand.vmem [shape: bf16[64,256], index: 3, kind: input, shape index: {}]   ;;  %s855_s4 = inlined_call_operand.vmem [shape: bf16[64,256], index: 4, kind: output, shape index: {}]  }
   0x1   :  { %s16_s17 = sshll.u32 %s852_s1, 4  ;;  %s18_s19 = sshll.u32 %s701_s18, 4  ;;  %s17_s17 = int_to_ptr.hbm [resolvable:$true] %s16_s17  ;;  %s19_s19 = int_to_ptr.vmem [resolvable:$true] %s18_s19 }
   0x2   :  { %s703_s21 = smov 8  }
   0x3   :  { %24 = dma.hbm_to_vmem [thread:$0]  %s17_s17, 4096, %s19_s19, [#allocation3], %s702_s20, %s702_s20, %s703_s21  }
   0x4   :  { %699 = dma.done.wait [#allocation3], 4096  }
   0x5   :  { %700 = vsyncadd [#allocation3], 4294963200  ;;  %v562_v0 = vld [vmem:[#allocation2 + $0x70] sm:$0xf]  ;;  %v655_v1 = vld [vmem:[#allocation2 + $0x74] sm:$0xf0] }
   0x6   :  { %v626_v2 = vld [vmem:[#allocation2 + $0xf0] sm:$0xf]  ;;  %v563_v3 = vor.u32 %v655_v1, %v562_v0  ;;  %v671_v4 = vld [vmem:[#allocation2 + $0xf4] sm:$0xf0]  ;;  %v654_v5 = vld [vmem:[#allocation2 + $0x74] sm:$0xf] }
   0x7   :  { %v564_v6 = vld [vmem:[#allocation2 + $0x78] sm:$0xf0]  ;;  %v627_v7 = vor.u32 %v671_v4, %v626_v2  ;;  %v670_v9 = vld [vmem:[#allocation2 + $0xf4] sm:$0xf]  ;;  %v554_v11 = vld [vmem:[#allocation2 + $0x60] sm:$0xf] }
   0x8   :  { %v567_v8 = vor.u32 %v654_v5, %v564_v6  ;;  %v628_v10 = vld [vmem:[#allocation2 + $0xf8] sm:$0xf0]  ;;  %279 = vmatpush.bf16.msra.mxu0 %v563_v3  ;;  %v653_v13 = vld [vmem:[#allocation2 + $0x64] sm:$0xf0]  ;;  %v618_v14 = vld [vmem:[#allocation2 + $0xe0] sm:$0xf] }
   0x9   :  { %v631_v12 = vor.u32 %v670_v9, %v628_v10  ;;  %v669_v15 = vld [vmem:[#allocation2 + $0xe4] sm:$0xf0]  ;;  %308 = vmatpush.bf16.msra.mxu1 %v627_v7  ;;  %v555_v16 = vor.u32 %v653_v13, %v554_v11  ;;  %v652_v18 = vld [vmem:[#allocation2 + $0x64] sm:$0xf]  ;;  %v556_v19 = vld [vmem:[#allocation2 + $0x68] sm:$0xf0] }
   0xa   :  { %337 = vmatpush.bf16.msra.mxu2 %v567_v8  ;;  %v619_v17 = vor.u32 %v669_v15, %v618_v14  ;;  %v668_v20 = vld [vmem:[#allocation2 + $0xe4] sm:$0xf]  ;;  %v559_v21 = vor.u32 %v652_v18, %v556_v19  ;;  %v620_v22 = vld [vmem:[#allocation2 + $0xe8] sm:$0xf0]  ;;  %v546_v23 = vld [vmem:[#allocation2 + $0x50] sm:$0xf] }
   0xb   :  { %366 = vmatpush.bf16.msra.mxu3 %v631_v12  ;;  %v651_v24 = vld [vmem:[#allocation2 + $0x54] sm:$0xf0]  ;;  %v623_v25 = vor.u32 %v668_v20, %v620_v22  ;;  %v610_v26 = vld [vmem:[#allocation2 + $0xd0] sm:$0xf]  ;;  %v650_v28 = vld [vmem:[#allocation2 + $0x54] sm:$0xf] }
   0xc   :  { %v667_v27 = vld [vmem:[#allocation2 + $0xd4] sm:$0xf0]  ;;  %280 = vmatpush.bf16.msra.mxu0 %v555_v16  ;;  %v547_v29 = vor.u32 %v651_v24, %v546_v23  ;;  %v548_v30 = vld [vmem:[#allocation2 + $0x58] sm:$0xf0]  ;;  %v666_v31 = vld [vmem:[#allocation2 + $0xd4] sm:$0xf] }
   0xd   :  { %v612_v32 = vld [vmem:[#allocation2 + $0xd8] sm:$0xf0]  ;;  %309 = vmatpush.bf16.msra.mxu1 %v619_v17  ;;  %v611_v33 = vor.u32 %v667_v27, %v610_v26  ;;  %v551_v34 = vor.u32 %v650_v28, %v548_v30  ;;  %v538_v35 = vld [vmem:[#allocation2 + $0x40] sm:$0xf]  ;;  %v649_v36 = vld [vmem:[#allocation2 + $0x44] sm:$0xf0] }
   0xe   :  { %338 = vmatpush.bf16.msra.mxu2 %v559_v21  ;;  %v602_v37 = vld [vmem:[#allocation2 + $0xc0] sm:$0xf]  ;;  %v615_v38 = vor.u32 %v666_v31, %v612_v32  ;;  %v665_v39 = vld [vmem:[#allocation2 + $0xc4] sm:$0xf0]  ;;  %v648_v40 = vld [vmem:[#allocation2 + $0x44] sm:$0xf]  ;;  %v539_v44 = vor.u32 %v649_v36, %v538_v35 }
   0xf   :  { %367 = vmatpush.bf16.msra.mxu3 %v623_v25  ;;  %v540_v41 = vld [vmem:[#allocation2 + $0x48] sm:$0xf0]  ;;  %v664_v42 = vld [vmem:[#allocation2 + $0xc4] sm:$0xf]  ;;  %v603_v45 = vor.u32 %v665_v39, %v602_v37  ;;  %v530_v47 = vld [vmem:[#allocation2 + $0x30] sm:$0xf] }
  0x10   :  { %v604_v43 = vld [vmem:[#allocation2 + $0xc8] sm:$0xf0]  ;;  %281 = vmatpush.bf16.msra.mxu0 %v547_v29  ;;  %v543_v46 = vor.u32 %v648_v40, %v540_v41  ;;  %v647_v48 = vld [vmem:[#allocation2 + $0x34] sm:$0xf0]  ;;  %v594_v49 = vld [vmem:[#allocation2 + $0xb0] sm:$0xf] }
  0x11   :  { %310 = vmatpush.bf16.msra.mxu1 %v611_v33  ;;  %v607_v50 = vor.u32 %v664_v42, %v604_v43  ;;  %v663_v51 = vld [vmem:[#allocation2 + $0xb4] sm:$0xf0]  ;;  %v646_v52 = vld [vmem:[#allocation2 + $0x34] sm:$0xf]  ;;  %v532_v53 = vld [vmem:[#allocation2 + $0x38] sm:$0xf0]  ;;  %v531_v56 = vor.u32 %v647_v48, %v530_v47 }
  0x12   :  { %339 = vmatpush.bf16.msra.mxu2 %v551_v34  ;;  %v662_v54 = vld [vmem:[#allocation2 + $0xb4] sm:$0xf]  ;;  %v596_v55 = vld [vmem:[#allocation2 + $0xb8] sm:$0xf0]  ;;  %v595_v57 = vor.u32 %v663_v51, %v594_v49  ;;  %v535_v58 = vor.u32 %v646_v52, %v532_v53  ;;  %v522_v59 = vld [vmem:[#allocation2 + $0x20] sm:$0xf] }
  0x13   :  { %368 = vmatpush.bf16.msra.mxu3 %v615_v38  ;;  %v645_v60 = vld [vmem:[#allocation2 + $0x24] sm:$0xf0]  ;;  %v586_v61 = vld [vmem:[#allocation2 + $0xa0] sm:$0xf]  ;;  %v599_v62 = vor.u32 %v662_v54, %v596_v55  ;;  %v644_v0 = vld [vmem:[#allocation2 + $0x24] sm:$0xf] }
  0x14   :  { %282 = vmatpush.bf16.msra.mxu0 %v539_v44  ;;  %v661_v63 = vld [vmem:[#allocation2 + $0xa4] sm:$0xf0]  ;;  %v524_v1 = vld [vmem:[#allocation2 + $0x28] sm:$0xf0]  ;;  %v660_v2 = vld [vmem:[#allocation2 + $0xa4] sm:$0xf]  ;;  %v523_v4 = vor.u32 %v645_v60, %v522_v59 }
  0x15   :  { %311 = vmatpush.bf16.msra.mxu1 %v603_v45  ;;  %v588_v3 = vld [vmem:[#allocation2 + $0xa8] sm:$0xf0]  ;;  %v587_v5 = vor.u32 %v661_v63, %v586_v61  ;;  %v527_v6 = vor.u32 %v644_v0, %v524_v1  ;;  %v514_v7 = vld [vmem:[#allocation2 + $0x10] sm:$0xf]  ;;  %v643_v8 = vld [vmem:[#allocation2 + $0x14] sm:$0xf0] }
  0x16   :  { %340 = vmatpush.bf16.msra.mxu2 %v543_v46  ;;  %v578_v9 = vld [vmem:[#allocation2 + $0x90] sm:$0xf]  ;;  %v591_v10 = vor.u32 %v660_v2, %v588_v3  ;;  %v659_v11 = vld [vmem:[#allocation2 + $0x94] sm:$0xf0]  ;;  %v642_v12 = vld [vmem:[#allocation2 + $0x14] sm:$0xf]  ;;  %v515_v16 = vor.u32 %v643_v8, %v514_v7 }
  0x17   :  { %369 = vmatpush.bf16.msra.mxu3 %v607_v50  ;;  %v516_v13 = vld [vmem:[#allocation2 + $0x18] sm:$0xf0]  ;;  %v658_v14 = vld [vmem:[#allocation2 + $0x94] sm:$0xf]  ;;  %v579_v17 = vor.u32 %v659_v11, %v578_v9  ;;  %v506_v19 = vld [vmem:[#allocation2] sm:$0xf] }
  0x18   :  { %283 = vmatpush.bf16.msra.mxu0 %v531_v56  ;;  %v580_v15 = vld [vmem:[#allocation2 + $0x98] sm:$0xf0]  ;;  %v519_v18 = vor.u32 %v642_v12, %v516_v13  ;;  %v641_v20 = vld [vmem:[#allocation2 + $0x4] sm:$0xf0]  ;;  %v570_v21 = vld [vmem:[#allocation2 + $0x80] sm:$0xf] }
  0x19   :  { %312 = vmatpush.bf16.msra.mxu1 %v595_v57  ;;  %v583_v22 = vor.u32 %v658_v14, %v580_v15  ;;  %v657_v23 = vld [vmem:[#allocation2 + $0x84] sm:$0xf0]  ;;  %v640_v24 = vld [vmem:[#allocation2 + $0x4] sm:$0xf]  ;;  %v508_v25 = vld [vmem:[#allocation2 + $0x8] sm:$0xf0]  ;;  %v507_v28 = vor.u32 %v641_v20, %v506_v19 }
  0x1a   :  { %341 = vmatpush.bf16.msra.mxu2 %v535_v58  ;;  %v656_v26 = vld [vmem:[#allocation2 + $0x84] sm:$0xf]  ;;  %v572_v27 = vld [vmem:[#allocation2 + $0x88] sm:$0xf0]  ;;  %v474_v29 = vld [vmem:[%s851_s0] sm:$0xf]  ;;  %v571_v31 = vor.u32 %v657_v23, %v570_v21  ;;  %v511_v32 = vor.u32 %v640_v24, %v508_v25 }
  0x1b   :  { %370 = vmatpush.bf16.msra.mxu3 %v599_v62  ;;  %v633_v30 = vld [vmem:[%s851_s0 + $0x4] sm:$0xf0]  ;;  %v632_v33 = vld [vmem:[%s851_s0 + $0x4] sm:$0xf]  ;;  %v476_v34 = vld [vmem:[%s851_s0 + $0x8] sm:$0xf0]  ;;  %v575_v35 = vor.u32 %v656_v26, %v572_v27 }
  0x1c   :  { %284 = vmatpush.bf16.msra.mxu0 %v523_v4  ;;  %v475_v36 = vor.u32 %v633_v30, %v474_v29  ;;  %v479_v37 = vor.u32 %v632_v33, %v476_v34  ;;  %v482_v38 = vld [vmem:[%s851_s0 + $0x10] sm:$0xf]  ;;  %v635_v39 = vld [vmem:[%s851_s0 + $0x14] sm:$0xf0]  ;;  %v634_v40 = vld [vmem:[%s851_s0 + $0x14] sm:$0xf] }
  0x1d   :  { %313 = vmatpush.bf16.msra.mxu1 %v587_v5  ;;  %v484_v41 = vld [vmem:[%s851_s0 + $0x18] sm:$0xf0]  ;;  %v483_v42 = vor.u32 %v635_v39, %v482_v38  ;;  %v490_v44 = vld [vmem:[%s851_s0 + $0x20] sm:$0xf]  ;;  %v637_v45 = vld [vmem:[%s851_s0 + $0x24] sm:$0xf0] }
  0x1e   :  { %342 = vmatpush.bf16.msra.mxu2 %v527_v6  ;;  %v487_v43 = vor.u32 %v634_v40, %v484_v41  ;;  %v636_v46 = vld [vmem:[%s851_s0 + $0x24] sm:$0xf]  ;;  %v492_v47 = vld [vmem:[%s851_s0 + $0x28] sm:$0xf0]  ;;  %v491_v48 = vor.u32 %v637_v45, %v490_v44  ;;  %v498_v50 = vld [vmem:[%s851_s0 + $0x30] sm:$0xf] }
  0x1f   :  { %371 = vmatpush.bf16.msra.mxu3 %v591_v10  ;;  %v495_v49 = vor.u32 %v636_v46, %v492_v47  ;;  %v639_v51 = vld [vmem:[%s851_s0 + $0x34] sm:$0xf0]  ;;  %v638_v52 = vld [vmem:[%s851_s0 + $0x34] sm:$0xf]  ;;  %v500_v53 = vld [vmem:[%s851_s0 + $0x38] sm:$0xf0] }
  0x20   :  { %285 = vmatpush.bf16.msra.mxu0 %v515_v16  ;;  %v499_v54 = vor.u32 %v639_v51, %v498_v50  ;;  %v503_v55 = vor.u32 %v638_v52, %v500_v53  ;;  %v73_v56 = vld [vmem:[%s853_s2] sm:$0x3]  ;;  %v396_v10 = vld [vmem:[%s854_s3 + $0x8] sm:$0xff]  ;;  %v397_v24 = vld [vmem:[%s854_s3 + $0x10] sm:$0xff] }
  0x21   :  { %314 = vmatpush.bf16.msra.mxu1 %v579_v17  ;;  %v783_v57 = vperm.slane %v73_v56, 0  ;;  %v395_v61 = vld [vmem:[%s854_s3] sm:$0xff]  ;;  %v789_v0 = vperm.slane %v73_v56, 1  ;;  %v405_v15 = vunpack.c.l.bf16 %v396_v10  ;;  %v406_v20 = vunpack.c.h.bf16 %v396_v10 }
  0x22   :  { %343 = vmatpush.bf16.msra.mxu2 %v519_v18  ;;  %v403_v63 = vunpack.c.l.bf16 %v395_v61  ;;  %v404_v5 = vunpack.c.h.bf16 %v395_v61  ;;  %v407_v29 = vunpack.c.l.bf16 %v397_v24  ;;  %v399_v56 = vld [vmem:[%s854_s3 + $0x20] sm:$0xff] }
  0x23   :  { %372 = vmatpush.bf16.msra.mxu3 %v583_v22 }
  0x24   :  { %286 = vmatpush.bf16.msra.mxu0 %v507_v28 }
  0x25   :  { %315 = vmatpush.bf16.msra.mxu1 %v571_v31 }
  0x26   :  { %344 = vmatpush.bf16.msra.mxu2 %v511_v32 }
  0x27   :  { %373 = vmatpush.bf16.msra.mxu3 %v575_v35  ;;  %287 = vmatmul.bf16.vlgmr.msra.gmra.mxu0 %v475_v36 }
  0x28   :  { %316 = vmatmul.bf16.vlgmr.msra.gmra.mxu1 %v479_v37 }
  0x29   :  { %345 = vmatmul.bf16.vlgmr.msra.gmra.mxu2 %v475_v36 }
  0x2a   :  { %374 = vmatmul.bf16.vlgmr.msra.gmra.mxu3 %v479_v37  ;;  %v408_v37 = vunpack.c.h.bf16 %v397_v24 }
  0x37   :  { %292 = vmatmul.bf16.gmra.mxu0 %v483_v42 }
  0x38   :  { %321 = vmatmul.bf16.gmra.mxu1 %v487_v43 }
  0x39   :  { %350 = vmatmul.bf16.gmra.mxu2 %v483_v42  ;;  %v398_v42 = vld [vmem:[%s854_s3 + $0x18] sm:$0xff] }
  0x3a   :  { %379 = vmatmul.bf16.gmra.mxu3 %v487_v43  ;;  %v409_v47 = vunpack.c.l.bf16 %v398_v42  ;;  %v410_v52 = vunpack.c.h.bf16 %v398_v42 }
  0x47   :  { %297 = vmatmul.bf16.gmra.mxu0 %v491_v48 }
  0x48   :  { %326 = vmatmul.bf16.gmra.mxu1 %v495_v49 }
  0x49   :  { %355 = vmatmul.bf16.gmra.mxu2 %v491_v48 }
  0x4a   :  { %384 = vmatmul.bf16.gmra.mxu3 %v495_v49 }
  0x57   :  { %302 = vmatmul.bf16.gmra.mxu0 %v499_v54 }
  0x58   :  { %331 = vmatmul.bf16.gmra.mxu1 %v503_v55 }
  0x59   :  { %360 = vmatmul.bf16.gmra.mxu2 %v499_v54 }
  0x5a   :  { %389 = vmatmul.bf16.gmra.mxu3 %v503_v55 }
  0xa4   :  { %v288_v58 = vpop.f32.mrf.mxu0 }
  0xa5   :  { %v289_v59 = vadd.f32 %v288_v58, %v783_v57  ;;  %v317_v60 = vpop.f32.mrf.mxu1 }
  0xa7   :  { %v318_v62 = vadd.f32 %v317_v60, %v289_v59 }
  0xa9   :  { %v419_v2 = vadd.f32 %v403_v63, %v318_v62  ;;  %v411_v62 = vunpack.c.l.bf16 %v399_v56 }
  0xab   :  { %v435_v11 = vmax.f32 %v419_v2, 0.0 }
  0xac   :  { %v346_v1 = vpop.f32.mrf.mxu2  ;;  %v290_v6 = vpop.f32.mrf.mxu0 }
  0xad   :  { %v347_v3 = vadd.f32 %v346_v1, %v789_v0  ;;  %v375_v4 = vpop.f32.mrf.mxu3  ;;  %v319_v7 = vpop.f32.mrf.mxu1  ;;  %v291_v9 = vadd.f32 %v290_v6, %v783_v57 }
  0xaf   :  { %v376_v8 = vadd.f32 %v375_v4, %v347_v3  ;;  %v320_v14 = vadd.f32 %v319_v7, %v291_v9  ;;  %v412_v7 = vunpack.c.h.bf16 %v399_v56 }
  0xb1   :  { %v420_v12 = vadd.f32 %v404_v5, %v376_v8  ;;  %v421_v25 = vadd.f32 %v405_v15, %v320_v14 }
  0xb3   :  { %v436_v13 = vmax.f32 %v420_v12, 0.0  ;;  %v437_v30 = vmax.f32 %v421_v25, 0.0  ;;  %v400_v12 = vld [vmem:[%s854_s3 + $0x28] sm:$0xff]  ;;  %v401_v25 = vld [vmem:[%s854_s3 + $0x30] sm:$0xff] }
  0xb4   :  { %v348_v16 = vpop.f32.mrf.mxu2  ;;  %v293_v21 = vpop.f32.mrf.mxu0 }
  0xb5   :  { %v451_v17 = vpack.c.bf16 %v436_v13, %v435_v11  ;;  %v349_v18 = vadd.f32 %v348_v16, %v789_v0  ;;  %v377_v19 = vpop.f32.mrf.mxu3  ;;  %v294_v22 = vadd.f32 %v293_v21, %v783_v57  ;;  %v322_v23 = vpop.f32.mrf.mxu1 }
  0xb7   :  { %459 = vst [vmem:[%s855_s4] sm:$0xff] %v451_v17  ;;  %v378_v26 = vadd.f32 %v377_v19, %v349_v18  ;;  %v323_v28 = vadd.f32 %v322_v23, %v294_v22  ;;  %v413_v17 = vunpack.c.l.bf16 %v400_v12  ;;  %v414_v22 = vunpack.c.h.bf16 %v400_v12 }
  0xb9   :  { %v422_v27 = vadd.f32 %v406_v20, %v378_v26  ;;  %v423_v34 = vadd.f32 %v407_v29, %v323_v28 }
  0xbb   :  { %v438_v31 = vmax.f32 %v422_v27, 0.0  ;;  %v439_v43 = vmax.f32 %v423_v34, 0.0 }
  0xbc   :  { %v351_v32 = vpop.f32.mrf.mxu2  ;;  %v295_v38 = vpop.f32.mrf.mxu0 }
  0xbd   :  { %v452_v33 = vpack.c.bf16 %v438_v31, %v437_v30  ;;  %v352_v35 = vadd.f32 %v351_v32, %v789_v0  ;;  %v380_v36 = vpop.f32.mrf.mxu3  ;;  %v324_v39 = vpop.f32.mrf.mxu1  ;;  %v296_v41 = vadd.f32 %v295_v38, %v783_v57  ;;  %v415_v31 = vunpack.c.l.bf16 %v401_v25 }
  0xbf   :  { %460 = vst [vmem:[%s855_s4 + $0x8] sm:$0xff] %v452_v33  ;;  %v381_v40 = vadd.f32 %v380_v36, %v352_v35  ;;  %v325_v46 = vadd.f32 %v324_v39, %v296_v41  ;;  %v416_v39 = vunpack.c.h.bf16 %v401_v25 }
  0xc1   :  { %v424_v44 = vadd.f32 %v408_v37, %v381_v40  ;;  %v425_v58 = vadd.f32 %v409_v47, %v325_v46 }
  0xc3   :  { %v440_v45 = vmax.f32 %v424_v44, 0.0  ;;  %v441_v63 = vmax.f32 %v425_v58, 0.0 }
  0xc4   :  { %v353_v48 = vpop.f32.mrf.mxu2  ;;  %v298_v53 = vpop.f32.mrf.mxu0 }
  0xc5   :  { %v453_v49 = vpack.c.bf16 %v440_v45, %v439_v43  ;;  %v354_v50 = vadd.f32 %v353_v48, %v789_v0  ;;  %v382_v51 = vpop.f32.mrf.mxu3  ;;  %v299_v54 = vadd.f32 %v298_v53, %v783_v57  ;;  %v327_v55 = vpop.f32.mrf.mxu1  ;;  %v402_v43 = vld [vmem:[%s854_s3 + $0x38] sm:$0xff] }
  0xc6   :  { %v418_v53 = vunpack.c.h.bf16 %v402_v43 }
  0xc7   :  { %461 = vst [vmem:[%s855_s4 + $0x10] sm:$0xff] %v453_v49  ;;  %v383_v59 = vadd.f32 %v382_v51, %v354_v50  ;;  %v328_v61 = vadd.f32 %v327_v55, %v299_v54  ;;  %v417_v49 = vunpack.c.l.bf16 %v402_v43 }
  0xc9   :  { %v426_v60 = vadd.f32 %v410_v52, %v383_v59  ;;  %v427_v4 = vadd.f32 %v411_v62, %v328_v61 }
  0xcb   :  { %v442_v1 = vmax.f32 %v426_v60, 0.0  ;;  %v443_v13 = vmax.f32 %v427_v4, 0.0 }
  0xcc   :  { %v356_v2 = vpop.f32.mrf.mxu2  ;;  %v300_v8 = vpop.f32.mrf.mxu0 }
  0xcd   :  { %v454_v3 = vpack.c.bf16 %v442_v1, %v441_v63  ;;  %v357_v5 = vadd.f32 %v356_v2, %v789_v0  ;;  %v385_v6 = vpop.f32.mrf.mxu3  ;;  %v329_v9 = vpop.f32.mrf.mxu1  ;;  %v301_v11 = vadd.f32 %v300_v8, %v783_v57 }
  0xcf   :  { %462 = vst [vmem:[%s855_s4 + $0x18] sm:$0xff] %v454_v3  ;;  %v386_v10 = vadd.f32 %v385_v6, %v357_v5  ;;  %v330_v16 = vadd.f32 %v329_v9, %v301_v11 }
  0xd1   :  { %v428_v14 = vadd.f32 %v412_v7, %v386_v10  ;;  %v429_v26 = vadd.f32 %v413_v17, %v330_v16 }
  0xd3   :  { %v444_v15 = vmax.f32 %v428_v14, 0.0  ;;  %v445_v32 = vmax.f32 %v429_v26, 0.0 }
  0xd4   :  { %v358_v18 = vpop.f32.mrf.mxu2  ;;  %v303_v23 = vpop.f32.mrf.mxu0 }
  0xd5   :  { %v455_v19 = vpack.c.bf16 %v444_v15, %v443_v13  ;;  %v359_v20 = vadd.f32 %v358_v18, %v789_v0  ;;  %v387_v21 = vpop.f32.mrf.mxu3  ;;  %v304_v24 = vadd.f32 %v303_v23, %v783_v57  ;;  %v332_v28 = vpop.f32.mrf.mxu1 }
  0xd7   :  { %463 = vst [vmem:[%s855_s4 + $0x20] sm:$0xff] %v455_v19  ;;  %v388_v27 = vadd.f32 %v387_v21, %v359_v20  ;;  %v333_v30 = vadd.f32 %v332_v28, %v304_v24 }
  0xd9   :  { %v430_v29 = vadd.f32 %v414_v22, %v388_v27  ;;  %v431_v36 = vadd.f32 %v415_v31, %v333_v30 }
  0xdb   :  { %v446_v33 = vmax.f32 %v430_v29, 0.0  ;;  %v447_v44 = vmax.f32 %v431_v36, 0.0 }
  0xdc   :  { %v361_v34 = vpop.f32.mrf.mxu2  ;;  %v305_v40 = vpop.f32.mrf.mxu0 }
  0xdd   :  { %v456_v35 = vpack.c.bf16 %v446_v33, %v445_v32  ;;  %v362_v37 = vadd.f32 %v361_v34, %v789_v0  ;;  %v390_v38 = vpop.f32.mrf.mxu3  ;;  %v306_v42 = vadd.f32 %v305_v40, %v783_v57  ;;  %v334_v46 = vpop.f32.mrf.mxu1 }
  0xdf   :  { %464 = vst [vmem:[%s855_s4 + $0x28] sm:$0xff] %v456_v35  ;;  %v391_v41 = vadd.f32 %v390_v38, %v362_v37  ;;  %v335_v48 = vadd.f32 %v334_v46, %v306_v42 }
  0xe1   :  { %v432_v45 = vadd.f32 %v416_v39, %v391_v41  ;;  %v433_v57 = vadd.f32 %v417_v49, %v335_v48 }
  0xe3   :  { %v448_v47 = vmax.f32 %v432_v45, 0.0  ;;  %v449_v58 = vmax.f32 %v433_v57, 0.0 }
  0xe4   :  { %v363_v50 = vpop.f32.mrf.mxu2 }
  0xe5   :  { %v457_v51 = vpack.c.bf16 %v448_v47, %v447_v44  ;;  %v364_v52 = vadd.f32 %v363_v50, %v789_v0  ;;  %v392_v54 = vpop.f32.mrf.mxu3 }
  0xe7   :  { %465 = vst [vmem:[%s855_s4 + $0x30] sm:$0xff] %v457_v51  ;;  %v393_v55 = vadd.f32 %v392_v54, %v364_v52 }
  0xe9   :  { %v434_v56 = vadd.f32 %v418_v53, %v393_v55 }
  0xeb   :  { %v450_v59 = vmax.f32 %v434_v56, 0.0 }
  0xed   :  { %v458_v60 = vpack.c.bf16 %v450_v59, %v449_v58 }
  0xef   :  { %466 = vst [vmem:[%s855_s4 + $0x38] sm:$0xff] %v458_v60 }
  0xf0   :  { %471 = vsyncpa [#allocation3], 1 }

// kernel: fno2d_forward.23
= control target key start
LH: loop header
LB: loop body
LE: loop exit
PB: predicated region body
PF: predicated region fallthrough
CT: control target
= control target key end

     0   :  { %8 = vsyncpa [#allocation3], 0  ;;  %s747_s12 = smov 0   ;;  %s842_s0 = inlined_call_operand.vmem [shape: bf16[2,16,512], index: 0, kind: input, shape index: {}]   ;;  %s843_s1 = inlined_call_operand.hbm [shape: f32[512,256], index: 1, kind: input, shape index: {}]   ;;  %s844_s2 = inlined_call_operand.vmem [shape: f32[16,16], index: 2, kind: input, shape index: {}]   ;;  %s845_s3 = inlined_call_operand.vmem [shape: f32[2,16,128], index: 3, kind: output, shape index: {}]  }
   0x1 LB: > { %s124_s15 = sshll.u32 %s843_s1, 4  ;;  %s756_s16 = sadd.s32 4294967295, %s722_s12   ;;  %s722_s12 = sphi %s747_s12, %s14_s12   ;;  %s125_s15 = int_to_ptr.hbm [resolvable:$true] %s124_s15 }
   0x2   : > { %p640_p0 = scmp.ge.s32.totalorder %s722_s12, 1  ;;  %p113_p1 = scmp.lt.s32.totalorder %s722_s12, 3 }
   0x3   : > { %p669_p2 = scmp.eq.s32.totalorder %s756_s16, 0  ;;  %s724_s17 = smov [#allocation2]  }
   0x4   : > { %p114_p3 = pnand %p640_p0, %p113_p1  ;;  %s126_s18 = sshll.u32 %s724_s17, 4  ;;  %s127_s18 = int_to_ptr.vmem [resolvable:$true] %s126_s18 }
   0x5   : > { %s725_s19 = smov 256   ;;  %s726_s20 = smov 16  }
   0x6   : > { %p665_p4 = pneg %p114_p3  ;;  %153 = sbr.rel (%p114_p3) target bundleno = 362 (0x16a), region = 32 }
   0x8   : > { %p666_p5 = pnand %p669_p2, %p665_p4 }
   0xa   : > { %668 = dma.hbm_to_vmem [thread:$0]  (!%p666_p5), %s125_s15, 16384, %s127_s18, [#allocation3], %s725_s19, %s725_s19, %s726_s20  }
   0xb   : > { %717 = dma.done.wait (%p669_p2), [#allocation3], 16384  }
   0xc   : > { %719 = vsyncadd (%p669_p2), [#allocation3], 4294950912  ;;  %v294_v0 = vld [vmem:[#allocation2 + $0x2f0] sm:$0xff]  ;;  %v292_v1 = vld [vmem:[#allocation2 + $0x2e0] sm:$0xff]  ;;  %p178_p6 = scmp.lt.s32.totalorder %s756_s16, 1  ;;  %vm514_vm0 = vcmask 130048  }
   0xd   : > { %v326_v2 = vld [vmem:[#allocation2 + $0x3f0] sm:$0xff]  ;;  %374 = vmatpush.msra.mxu2 %v294_v0  ;;  %v324_v6 = vld [vmem:[#allocation2 + $0x3e0] sm:$0xff]  ;;  %v295_v62 = vld [vmem:[#allocation2 + $0x2f8] sm:$0xff] }
   0xe   : > { %397 = vmatpush.msra.mxu3 %v326_v2  ;;  %v230_v3 = vld [vmem:[#allocation2 + $0xf0] sm:$0xff]  ;;  %v228_v7 = vld [vmem:[#allocation2 + $0xe0] sm:$0xff]  ;;  %s847_s16 = smov (!%p178_p6, %s756_s16), 1  ;;  %v327_v63 = vld [vmem:[#allocation2 + $0x3f8] sm:$0xff] }
   0xf   : > { %v262_v4 = vld [vmem:[#allocation2 + $0x1f0] sm:$0xff]  ;;  %328 = vmatpush.msra.mxu0 %v230_v3  ;;  %v260_v8 = vld [vmem:[#allocation2 + $0x1e0] sm:$0xff]  ;;  %375 = vmatpush.msra.mxu2 %v292_v1  ;;  %s655_s21 = sshll.u32 %s847_s16, 5  ;;  %v293_v3 = vld [vmem:[#allocation2 + $0x2e8] sm:$0xff]  ;;  %s656_s29 = sshll.u32 %s847_s16, 4 }
  0x10   : > { %v290_v5 = vld [vmem:[#allocation2 + $0x2d0] sm:$0xff]  ;;  %351 = vmatpush.msra.mxu1 %v262_v4  ;;  %398 = vmatpush.msra.mxu3 %v324_v6  ;;  %v288_v11 = vld [vmem:[#allocation2 + $0x2c0] sm:$0xff]  ;;  %s771_s24 = scalar_lea.vmem %s842_s0, %s655_s21  ;;  %v231_v4 = vld [vmem:[#allocation2 + $0xf8] sm:$0xff]  ;;  %s187_s5 = scalar_lea.vmem %s845_s3, %s656_s29 }
  0x11   : > { %v322_v9 = vld [vmem:[#allocation2 + $0x3d0] sm:$0xff]  ;;  %329 = vmatpush.msra.mxu0 %v228_v7  ;;  %v320_v13 = vld [vmem:[#allocation2 + $0x3c0] sm:$0xff]  ;;  %376 = vmatpush.msra.mxu2 %v290_v5  ;;  %v774_v2 = vld [vmem:[%s771_s24 + $0x8] sm:$0xff] }
  0x12   : > { %v226_v10 = vld [vmem:[#allocation2 + $0xd0] sm:$0xff]  ;;  %352 = vmatpush.msra.mxu1 %v260_v8  ;;  %399 = vmatpush.msra.mxu3 %v322_v9  ;;  %v224_v14 = vld [vmem:[#allocation2 + $0xc0] sm:$0xff]  ;;  %v263_v5 = vld [vmem:[#allocation2 + $0x1f8] sm:$0xff]  ;;  %v194_v8 = vunpack.c.l.bf16 %v774_v2 }
  0x13   : > { %v258_v12 = vld [vmem:[#allocation2 + $0x1d0] sm:$0xff]  ;;  %v256_v15 = vld [vmem:[#allocation2 + $0x1c0] sm:$0xff]  ;;  %330 = vmatpush.msra.mxu0 %v226_v10  ;;  %377 = vmatpush.msra.mxu2 %v288_v11  ;;  %v325_v6 = vld [vmem:[#allocation2 + $0x3e8] sm:$0xff] }
  0x14   : > { %353 = vmatpush.msra.mxu1 %v258_v12  ;;  %v286_v16 = vld [vmem:[#allocation2 + $0x2b0] sm:$0xff]  ;;  %400 = vmatpush.msra.mxu3 %v320_v13  ;;  %v284_v20 = vld [vmem:[#allocation2 + $0x2a0] sm:$0xff]  ;;  %v291_v7 = vld [vmem:[#allocation2 + $0x2d8] sm:$0xff] }
  0x15   : > { %v318_v17 = vld [vmem:[#allocation2 + $0x3b0] sm:$0xff]  ;;  %331 = vmatpush.msra.mxu0 %v224_v14  ;;  %v316_v21 = vld [vmem:[#allocation2 + $0x3a0] sm:$0xff]  ;;  %378 = vmatpush.msra.mxu2 %v286_v16  ;;  %v229_v9 = vld [vmem:[#allocation2 + $0xe8] sm:$0xff]  ;;  %v195_v14 = vunpack.c.h.bf16 %v774_v2 }
  0x16   : > { %v222_v18 = vld [vmem:[#allocation2 + $0xb0] sm:$0xff]  ;;  %354 = vmatpush.msra.mxu1 %v256_v15  ;;  %401 = vmatpush.msra.mxu3 %v318_v17  ;;  %v220_v22 = vld [vmem:[#allocation2 + $0xa0] sm:$0xff]  ;;  %v261_v10 = vld [vmem:[#allocation2 + $0x1e8] sm:$0xff] }
  0x17   : > { %v254_v19 = vld [vmem:[#allocation2 + $0x1b0] sm:$0xff]  ;;  %v252_v23 = vld [vmem:[#allocation2 + $0x1a0] sm:$0xff]  ;;  %332 = vmatpush.msra.mxu0 %v222_v18  ;;  %379 = vmatpush.msra.mxu2 %v284_v20  ;;  %v289_v12 = vld [vmem:[#allocation2 + $0x2c8] sm:$0xff] }
  0x18   : > { %355 = vmatpush.msra.mxu1 %v254_v19  ;;  %v282_v24 = vld [vmem:[#allocation2 + $0x290] sm:$0xff]  ;;  %402 = vmatpush.msra.mxu3 %v316_v21  ;;  %v280_v28 = vld [vmem:[#allocation2 + $0x280] sm:$0xff]  ;;  %v323_v13 = vld [vmem:[#allocation2 + $0x3d8] sm:$0xff] }
  0x19   : > { %v314_v25 = vld [vmem:[#allocation2 + $0x390] sm:$0xff]  ;;  %333 = vmatpush.msra.mxu0 %v220_v22  ;;  %v312_v29 = vld [vmem:[#allocation2 + $0x380] sm:$0xff]  ;;  %380 = vmatpush.msra.mxu2 %v282_v24  ;;  %v227_v15 = vld [vmem:[#allocation2 + $0xd8] sm:$0xff] }
  0x1a   : > { %v218_v26 = vld [vmem:[#allocation2 + $0x90] sm:$0xff]  ;;  %356 = vmatpush.msra.mxu1 %v252_v23  ;;  %403 = vmatpush.msra.mxu3 %v314_v25  ;;  %v216_v30 = vld [vmem:[#allocation2 + $0x80] sm:$0xff]  ;;  %v259_v16 = vld [vmem:[#allocation2 + $0x1d8] sm:$0xff] }
  0x1b   : > { %v250_v27 = vld [vmem:[#allocation2 + $0x190] sm:$0xff]  ;;  %v248_v31 = vld [vmem:[#allocation2 + $0x180] sm:$0xff]  ;;  %334 = vmatpush.msra.mxu0 %v218_v26  ;;  %381 = vmatpush.msra.mxu2 %v280_v28  ;;  %v287_v17 = vld [vmem:[#allocation2 + $0x2b8] sm:$0xff] }
  0x1c   : > { %357 = vmatpush.msra.mxu1 %v250_v27  ;;  %v278_v32 = vld [vmem:[#allocation2 + $0x270] sm:$0xff]  ;;  %404 = vmatpush.msra.mxu3 %v312_v29  ;;  %v276_v36 = vld [vmem:[#allocation2 + $0x260] sm:$0xff]  ;;  %v321_v19 = vld [vmem:[#allocation2 + $0x3c8] sm:$0xff] }
  0x1d   : > { %v310_v33 = vld [vmem:[#allocation2 + $0x370] sm:$0xff]  ;;  %335 = vmatpush.msra.mxu0 %v216_v30  ;;  %v308_v37 = vld [vmem:[#allocation2 + $0x360] sm:$0xff]  ;;  %382 = vmatpush.msra.mxu2 %v278_v32  ;;  %v225_v21 = vld [vmem:[#allocation2 + $0xc8] sm:$0xff] }
  0x1e   : > { %v214_v34 = vld [vmem:[#allocation2 + $0x70] sm:$0xff]  ;;  %358 = vmatpush.msra.mxu1 %v248_v31  ;;  %405 = vmatpush.msra.mxu3 %v310_v33  ;;  %v212_v38 = vld [vmem:[#allocation2 + $0x60] sm:$0xff]  ;;  %v788_v22 = vld [vmem:[%s771_s24 + $0x18] sm:$0xff] }
  0x1f   : > { %v246_v35 = vld [vmem:[#allocation2 + $0x170] sm:$0xff]  ;;  %v244_v39 = vld [vmem:[#allocation2 + $0x160] sm:$0xff]  ;;  %336 = vmatpush.msra.mxu0 %v214_v34  ;;  %383 = vmatpush.msra.mxu2 %v276_v36  ;;  %v257_v23 = vld [vmem:[#allocation2 + $0x1c8] sm:$0xff]  ;;  %v198_v29 = vunpack.c.l.bf16 %v788_v22  ;;  %v199_v36 = vunpack.c.h.bf16 %v788_v22 }
  0x20   : > { %359 = vmatpush.msra.mxu1 %v246_v35  ;;  %v274_v40 = vld [vmem:[#allocation2 + $0x250] sm:$0xff]  ;;  %406 = vmatpush.msra.mxu3 %v308_v37  ;;  %v272_v44 = vld [vmem:[#allocation2 + $0x240] sm:$0xff]  ;;  %v285_v24 = vld [vmem:[#allocation2 + $0x2a8] sm:$0xff] }
  0x21   : > { %v306_v41 = vld [vmem:[#allocation2 + $0x350] sm:$0xff]  ;;  %337 = vmatpush.msra.mxu0 %v212_v38  ;;  %v304_v45 = vld [vmem:[#allocation2 + $0x340] sm:$0xff]  ;;  %384 = vmatpush.msra.mxu2 %v274_v40  ;;  %v319_v25 = vld [vmem:[#allocation2 + $0x3b8] sm:$0xff] }
  0x22   : > { %v210_v42 = vld [vmem:[#allocation2 + $0x50] sm:$0xff]  ;;  %360 = vmatpush.msra.mxu1 %v244_v39  ;;  %407 = vmatpush.msra.mxu3 %v306_v41  ;;  %v208_v46 = vld [vmem:[#allocation2 + $0x40] sm:$0xff]  ;;  %v223_v26 = vld [vmem:[#allocation2 + $0xb8] sm:$0xff] }
  0x23   : > { %v242_v43 = vld [vmem:[#allocation2 + $0x150] sm:$0xff]  ;;  %v240_v47 = vld [vmem:[#allocation2 + $0x140] sm:$0xff]  ;;  %338 = vmatpush.msra.mxu0 %v210_v42  ;;  %385 = vmatpush.msra.mxu2 %v272_v44  ;;  %v255_v27 = vld [vmem:[#allocation2 + $0x1b8] sm:$0xff] }
  0x24   : > { %361 = vmatpush.msra.mxu1 %v242_v43  ;;  %v270_v48 = vld [vmem:[#allocation2 + $0x230] sm:$0xff]  ;;  %408 = vmatpush.msra.mxu3 %v304_v45  ;;  %v268_v52 = vld [vmem:[#allocation2 + $0x220] sm:$0xff]  ;;  %v283_v28 = vld [vmem:[#allocation2 + $0x298] sm:$0xff] }
  0x25   : > { %v302_v49 = vld [vmem:[#allocation2 + $0x330] sm:$0xff]  ;;  %339 = vmatpush.msra.mxu0 %v208_v46  ;;  %v300_v53 = vld [vmem:[#allocation2 + $0x320] sm:$0xff]  ;;  %386 = vmatpush.msra.mxu2 %v270_v48  ;;  %v317_v30 = vld [vmem:[#allocation2 + $0x3a8] sm:$0xff] }
  0x26   : > { %v206_v50 = vld [vmem:[#allocation2 + $0x30] sm:$0xff]  ;;  %362 = vmatpush.msra.mxu1 %v240_v47  ;;  %409 = vmatpush.msra.mxu3 %v302_v49  ;;  %v204_v54 = vld [vmem:[#allocation2 + $0x20] sm:$0xff]  ;;  %v221_v31 = vld [vmem:[#allocation2 + $0xa8] sm:$0xff] }
  0x27   : > { %v238_v51 = vld [vmem:[#allocation2 + $0x130] sm:$0xff]  ;;  %v236_v55 = vld [vmem:[#allocation2 + $0x120] sm:$0xff]  ;;  %340 = vmatpush.msra.mxu0 %v206_v50  ;;  %387 = vmatpush.msra.mxu2 %v268_v52  ;;  %v253_v32 = vld [vmem:[#allocation2 + $0x1a8] sm:$0xff] }
  0x28   : > { %363 = vmatpush.msra.mxu1 %v238_v51  ;;  %v266_v56 = vld [vmem:[#allocation2 + $0x210] sm:$0xff]  ;;  %410 = vmatpush.msra.mxu3 %v300_v53  ;;  %v264_v60 = vld [vmem:[#allocation2 + $0x200] sm:$0xff]  ;;  %v281_v34 = vld [vmem:[#allocation2 + $0x288] sm:$0xff] }
  0x29   : > { %v298_v57 = vld [vmem:[#allocation2 + $0x310] sm:$0xff]  ;;  %341 = vmatpush.msra.mxu0 %v204_v54  ;;  %v296_v61 = vld [vmem:[#allocation2 + $0x300] sm:$0xff]  ;;  %388 = vmatpush.msra.mxu2 %v266_v56  ;;  %v315_v35 = vld [vmem:[#allocation2 + $0x398] sm:$0xff] }
  0x2a   : > { %v202_v58 = vld [vmem:[#allocation2 + $0x10] sm:$0xff]  ;;  %364 = vmatpush.msra.mxu1 %v236_v55  ;;  %411 = vmatpush.msra.mxu3 %v298_v57  ;;  %v200_v0 = vld [vmem:[#allocation2] sm:$0xff]  ;;  %v219_v37 = vld [vmem:[#allocation2 + $0x98] sm:$0xff] }
  0x2b   : > { %v234_v59 = vld [vmem:[#allocation2 + $0x110] sm:$0xff]  ;;  %342 = vmatpush.msra.mxu0 %v202_v58  ;;  %v232_v1 = vld [vmem:[#allocation2 + $0x100] sm:$0xff]  ;;  %389 = vmatpush.msra.mxu2 %v264_v60  ;;  %v251_v38 = vld [vmem:[#allocation2 + $0x198] sm:$0xff] }
  0x2c   : > { %365 = vmatpush.msra.mxu1 %v234_v59  ;;  %412 = vmatpush.msra.mxu3 %v296_v61  ;;  %v778_v11 = vld [vmem:[%s771_s24] sm:$0xff]  ;;  %v796_v33 = vld [vmem:[%s771_s24 + $0x10] sm:$0xff]  ;;  %v279_v39 = vld [vmem:[#allocation2 + $0x278] sm:$0xff] }
  0x2d   : > { %466 = vmatpush.msrb.mxu2 %v295_v62  ;;  %343 = vmatpush.msra.mxu0 %v200_v0  ;;  %v192_v18 = vunpack.c.l.bf16 %v778_v11  ;;  %v193_v20 = vunpack.c.h.bf16 %v778_v11  ;;  %v196_v40 = vunpack.c.l.bf16 %v796_v33  ;;  %v313_v41 = vld [vmem:[#allocation2 + $0x388] sm:$0xff]  ;;  %v197_v42 = vunpack.c.h.bf16 %v796_v33  ;;  %v311_v46 = vld [vmem:[#allocation2 + $0x378] sm:$0xff] }
  0x2e   : > { %489 = vmatpush.msrb.mxu3 %v327_v63  ;;  %366 = vmatpush.msra.mxu1 %v232_v1  ;;  %v217_v43 = vld [vmem:[#allocation2 + $0x88] sm:$0xff]  ;;  %v215_v47 = vld [vmem:[#allocation2 + $0x78] sm:$0xff] }
  0x2f   : > { %467 = vmatpush.msrb.mxu2 %v293_v3  ;;  %420 = vmatpush.msrb.mxu0 %v231_v4  ;;  %v249_v44 = vld [vmem:[#allocation2 + $0x188] sm:$0xff]  ;;  %v247_v48 = vld [vmem:[#allocation2 + $0x178] sm:$0xff] }
  0x30   : > { %443 = vmatpush.msrb.mxu1 %v263_v5  ;;  %490 = vmatpush.msrb.mxu3 %v325_v6  ;;  %v277_v45 = vld [vmem:[#allocation2 + $0x268] sm:$0xff]  ;;  %v275_v49 = vld [vmem:[#allocation2 + $0x258] sm:$0xff] }
  0x31   : > { %468 = vmatpush.msrb.mxu2 %v291_v7  ;;  %421 = vmatpush.msrb.mxu0 %v229_v9  ;;  %v309_v50 = vld [vmem:[#allocation2 + $0x368] sm:$0xff]  ;;  %v307_v54 = vld [vmem:[#allocation2 + $0x358] sm:$0xff] }
  0x32   : > { %390 = vmatmul.f32.vlgmr.msra.gmra.mxu2 %v194_v8  ;;  %444 = vmatpush.msrb.mxu1 %v261_v10  ;;  %v213_v51 = vld [vmem:[#allocation2 + $0x68] sm:$0xff]  ;;  %v211_v55 = vld [vmem:[#allocation2 + $0x58] sm:$0xff] }
  0x33   : > { %469 = vmatpush.msrb.mxu2 %v289_v12  ;;  %491 = vmatpush.msrb.mxu3 %v323_v13  ;;  %v245_v52 = vld [vmem:[#allocation2 + $0x168] sm:$0xff]  ;;  %v243_v56 = vld [vmem:[#allocation2 + $0x158] sm:$0xff] }
  0x34   : > { %413 = vmatmul.f32.vlgmr.msra.gmra.mxu3 %v195_v14  ;;  %422 = vmatpush.msrb.mxu0 %v227_v15  ;;  %v273_v53 = vld [vmem:[#allocation2 + $0x248] sm:$0xff]  ;;  %v271_v57 = vld [vmem:[#allocation2 + $0x238] sm:$0xff] }
  0x35   : > { %445 = vmatpush.msrb.mxu1 %v259_v16  ;;  %470 = vmatpush.msrb.mxu2 %v287_v17  ;;  %v305_v58 = vld [vmem:[#allocation2 + $0x348] sm:$0xff]  ;;  %v303_v62 = vld [vmem:[#allocation2 + $0x338] sm:$0xff] }
  0x36   : > { %492 = vmatpush.msrb.mxu3 %v321_v19  ;;  %344 = vmatmul.f32.vlgmr.msra.gmra.mxu0 %v192_v18  ;;  %v209_v59 = vld [vmem:[#allocation2 + $0x48] sm:$0xff]  ;;  %v207_v63 = vld [vmem:[#allocation2 + $0x38] sm:$0xff] }
  0x37   : > { %367 = vmatmul.f32.vlgmr.msra.gmra.mxu1 %v193_v20  ;;  %423 = vmatpush.msrb.mxu0 %v225_v21  ;;  %v241_v60 = vld [vmem:[#allocation2 + $0x148] sm:$0xff]  ;;  %v239_v0 = vld [vmem:[#allocation2 + $0x138] sm:$0xff] }
  0x38   : > { %446 = vmatpush.msrb.mxu1 %v257_v23  ;;  %471 = vmatpush.msrb.mxu2 %v285_v24  ;;  %v269_v61 = vld [vmem:[#allocation2 + $0x228] sm:$0xff]  ;;  %v267_v1 = vld [vmem:[#allocation2 + $0x218] sm:$0xff] }
  0x39   : > { %493 = vmatpush.msrb.mxu3 %v319_v25  ;;  %424 = vmatpush.msrb.mxu0 %v223_v26  ;;  %v301_v3 = vld [vmem:[#allocation2 + $0x328] sm:$0xff]  ;;  %v299_v7 = vld [vmem:[#allocation2 + $0x318] sm:$0xff] }
  0x3a   : > { %447 = vmatpush.msrb.mxu1 %v255_v27  ;;  %472 = vmatpush.msrb.mxu2 %v283_v28  ;;  %v205_v4 = vld [vmem:[#allocation2 + $0x28] sm:$0xff]  ;;  %v203_v9 = vld [vmem:[#allocation2 + $0x18] sm:$0xff]  ;;  %v512_v27 = vld [vmem:[%s844_s2] sm:$0xff] }
  0x3b   : > { %494 = vmatpush.msrb.mxu3 %v317_v30  ;;  %393 = vmatmul.f32.gmra.mxu2 %v198_v29  ;;  %v237_v5 = vld [vmem:[#allocation2 + $0x128] sm:$0xff]  ;;  %v235_v10 = vld [vmem:[#allocation2 + $0x118] sm:$0xff] }
  0x3c   : > { %425 = vmatpush.msrb.mxu0 %v221_v31  ;;  %448 = vmatpush.msrb.mxu1 %v253_v32  ;;  %v265_v6 = vld [vmem:[#allocation2 + $0x208] sm:$0xff] }
  0x3d   : > { %473 = vmatpush.msrb.mxu2 %v281_v34  ;;  %495 = vmatpush.msrb.mxu3 %v315_v35  ;;  %v297_v12 = vld [vmem:[#allocation2 + $0x308] sm:$0xff] }
  0x3e   : > { %416 = vmatmul.f32.gmra.mxu3 %v199_v36  ;;  %426 = vmatpush.msrb.mxu0 %v219_v37  ;;  %v201_v13 = vld [vmem:[#allocation2 + $0x8] sm:$0xff] }
  0x3f   : > { %449 = vmatpush.msrb.mxu1 %v251_v38  ;;  %474 = vmatpush.msrb.mxu2 %v279_v39  ;;  %v233_v15 = vld [vmem:[#allocation2 + $0x108] sm:$0xff] }
  0x40   : > { %496 = vmatpush.msrb.mxu3 %v313_v41  ;;  %347 = vmatmul.f32.gmra.mxu0 %v196_v40  ;;  %v513_v26 = vld [vmem:[%s844_s2 + $0x8] sm:$0xff] }
  0x41   : > { %370 = vmatmul.f32.gmra.mxu1 %v197_v42  ;;  %427 = vmatpush.msrb.mxu0 %v217_v43 }
  0x42   : > { %450 = vmatpush.msrb.mxu1 %v249_v44  ;;  %475 = vmatpush.msrb.mxu2 %v277_v45 }
  0x43   : > { %497 = vmatpush.msrb.mxu3 %v311_v46  ;;  %428 = vmatpush.msrb.mxu0 %v215_v47 }
  0x44   : > { %451 = vmatpush.msrb.mxu1 %v247_v48  ;;  %476 = vmatpush.msrb.mxu2 %v275_v49 }
  0x45   : > { %498 = vmatpush.msrb.mxu3 %v309_v50  ;;  %429 = vmatpush.msrb.mxu0 %v213_v51 }
  0x46   : > { %452 = vmatpush.msrb.mxu1 %v245_v52  ;;  %477 = vmatpush.msrb.mxu2 %v273_v53 }
  0x47   : > { %499 = vmatpush.msrb.mxu3 %v307_v54  ;;  %430 = vmatpush.msrb.mxu0 %v211_v55 }
  0x48   : > { %453 = vmatpush.msrb.mxu1 %v243_v56  ;;  %478 = vmatpush.msrb.mxu2 %v271_v57 }
  0x49   : > { %500 = vmatpush.msrb.mxu3 %v305_v58  ;;  %431 = vmatpush.msrb.mxu0 %v209_v59 }
  0x4a   : > { %454 = vmatpush.msrb.mxu1 %v241_v60  ;;  %479 = vmatpush.msrb.mxu2 %v269_v61 }
  0x4b   : > { %501 = vmatpush.msrb.mxu3 %v303_v62  ;;  %432 = vmatpush.msrb.mxu0 %v207_v63 }
  0x4c   : > { %455 = vmatpush.msrb.mxu1 %v239_v0  ;;  %480 = vmatpush.msrb.mxu2 %v267_v1 }
  0x4d   : > { %502 = vmatpush.msrb.mxu3 %v301_v3  ;;  %433 = vmatpush.msrb.mxu0 %v205_v4 }
  0x4e   : > { %456 = vmatpush.msrb.mxu1 %v237_v5  ;;  %481 = vmatpush.msrb.mxu2 %v265_v6 }
  0x4f   : > { %503 = vmatpush.msrb.mxu3 %v299_v7  ;;  %482 = vmatmul.f32.vlgmr.msrb.gmra.mxu2 %v194_v8 }
  0x50   : > { %434 = vmatpush.msrb.mxu0 %v203_v9  ;;  %457 = vmatpush.msrb.mxu1 %v235_v10 }
  0x51   : > { %504 = vmatpush.msrb.mxu3 %v297_v12 }
  0x52   : > { %505 = vmatmul.f32.vlgmr.msrb.gmra.mxu3 %v195_v14  ;;  %435 = vmatpush.msrb.mxu0 %v201_v13 }
  0x53   : > { %458 = vmatpush.msrb.mxu1 %v233_v15  ;;  %436 = vmatmul.f32.vlgmr.msrb.gmra.mxu0 %v192_v18 }
  0x54   : > { %459 = vmatmul.f32.vlgmr.msrb.gmra.mxu1 %v193_v20 }
  0x57   : > { %485 = vmatmul.f32.gmra.mxu2 %v198_v29 }
  0x5a   : > { %508 = vmatmul.f32.gmra.mxu3 %v199_v36 }
  0x5b   : > { %439 = vmatmul.f32.gmra.mxu0 %v196_v40 }
  0x5c   : > { %462 = vmatmul.f32.gmra.mxu1 %v197_v42 }
  0xb3   : > { %v345_v2 = vpop.f32.mrf.mxu0 }
  0xb4   : > { %v368_v8 = vpop.f32.mrf.mxu1 }
  0xb5   : > { %v391_v14 = vpop.f32.mrf.mxu2  ;;  %v369_v17 = vadd.f32 %v368_v8, %v345_v2 }
  0xb7   : > { %v414_v16 = vpop.f32.mrf.mxu3  ;;  %v392_v20 = vadd.f32 %v391_v14, %v369_v17 }
  0xb9   : > { %v415_v22 = vadd.f32 %v414_v16, %v392_v20 }
  0xbd   : > { %v348_v18 = vpop.f32.mrf.mxu0 }
  0xbe   : > { %v371_v11 = vpop.f32.mrf.mxu1  ;;  %v394_v19 = vpop.f32.mrf.mxu2 }
  0xbf   : > { %v372_v21 = vadd.f32 %v371_v11, %v348_v18 }
  0xc1   : > { %v395_v23 = vadd.f32 %v394_v19, %v372_v21  ;;  %v417_v24 = vpop.f32.mrf.mxu3 }
  0xc3   : > { %v418_v25 = vadd.f32 %v417_v24, %v395_v23 }
  0xc5   : > { %535 = vmatpush.msra.mxu0 %v418_v25  ;;  %657 = vmatpush.msra.mxu2 %v418_v25 }
  0xc7   : > { %536 = vmatpush.msra.mxu0 %v415_v22  ;;  %658 = vmatpush.msra.mxu2 %v415_v22 }
  0xc8   : > { %650 = vmatmul.msk.f32.vlgmr.msra.gmra.mxu2 %vm514_vm0, %v513_v26  ;;  %649 = vmatmul.msk.f32.vlgmr.msra.gmra.mxu0 %vm514_vm0, %v512_v27 }
  0xd0   : > { %v437_v28 = vpop.f32.mrf.mxu0 }
  0xd1   : > { %v460_v29 = vpop.f32.mrf.mxu1 }
  0xd2   : > { %v483_v30 = vpop.f32.mrf.mxu2  ;;  %v461_v32 = vadd.f32 %v460_v29, %v437_v28 }
  0xd4   : > { %v484_v37 = vadd.f32 %v483_v30, %v461_v32 }
  0xd5   : > { %v506_v31 = vpop.f32.mrf.mxu3 }
  0xd6   : > { %v507_v41 = vadd.f32 %v506_v31, %v484_v37 }
  0xd8   : > { %v440_v33 = vpop.f32.mrf.mxu0 }
  0xd9   : > { %v463_v34 = vpop.f32.mrf.mxu1 }
  0xda   : > { %v464_v35 = vadd.f32 %v463_v34, %v440_v33  ;;  %v486_v36 = vpop.f32.mrf.mxu2 }
  0xdc   : > { %v487_v38 = vadd.f32 %v486_v36, %v464_v35 }
  0xdd   : > { %v509_v39 = vpop.f32.mrf.mxu3 }
  0xde   : > { %v510_v40 = vadd.f32 %v509_v39, %v487_v38 }
  0xe0   : > { %558 = vmatpush.msra.mxu1 %v510_v40  ;;  %659 = vmatpush.msra.mxu3 %v510_v40 }
  0xe2   : > { %559 = vmatpush.msra.mxu1 %v507_v41  ;;  %660 = vmatpush.msra.mxu3 %v507_v41 }
  0xe3   : > { %652 = vmatmul.msk.f32.vlgmr.msra.gmra.mxu3 %vm514_vm0, %v513_v26  ;;  %651 = vmatmul.msk.f32.vlgmr.msra.gmra.mxu1 %vm514_vm0, %v512_v27 }
 0x145   : > { %v538_v45 = vpop.f32.mrf.mxu0 }
 0x14b   : > { %v541_v42 = vpop.f32.mrf.mxu2 }
 0x160   : > { %v561_v43 = vpop.f32.mrf.mxu1 }
 0x161   : > { %v568_v44 = vsub.f32 %v561_v43, %v541_v42 }
 0x163   : > { %570 = vst [vmem:[%s187_s5 + $0x8] sm:$0xff] %v568_v44 }
 0x166   : > { %v564_v46 = vpop.f32.mrf.mxu3 }
 0x167   : > { %v567_v47 = vadd.f32 %v564_v46, %v538_v45 }
 0x169   : > { %569 = vst [vmem:[%s187_s5] sm:$0xff] %v567_v47 }
 0x16a PF: > { %s14_s12 = sadd.s32 1, %s722_s12  }
 0x16b   : > { %p11_p7 = scmp.ge.s32.totalorder %s14_s12, 4  }
 0x16d   :  { %13 = sbr.rel (!%p11_p7) target bundleno = 1 (0x1), region = 67 }
 0x172   :  { %592 = vsyncpa [#allocation3], 1 }
 0x173   :  { %594 = vsyncpa [#allocation3 + $0x1], 1 }

// kernel: fno2d_forward.24
= control target key start
LH: loop header
LB: loop body
LE: loop exit
PB: predicated region body
PF: predicated region fallthrough
CT: control target
= control target key end

     0   :  { %s1502_s1 = inlined_call_operand.vmem [shape: f32[16,128,128], index: 1, kind: input, shape index: {}]   ;;  %s1503_s0 = inlined_call_operand.vmem [shape: f32[16,2,128], index: 0, kind: input, shape index: {}]   ;;  %s1504_s2 = inlined_call_operand.vmem [shape: f32[16,2,128], index: 2, kind: output, shape index: {}]  }
   0x1   :  { %v74_v0 = vld [vmem:[%s1502_s1 + $0x178] sm:$0xff]  ;;  %v73_v2 = vld [vmem:[%s1502_s1 + $0x170] sm:$0xff]  ;;  %v72_v4 = vld [vmem:[%s1502_s1 + $0x168] sm:$0xff] }
   0x2   :  { %v90_v1 = vld [vmem:[%s1502_s1 + $0x1f8] sm:$0xff]  ;;  %323 = vmatpush.msra.mxu2 %v74_v0  ;;  %v89_v3 = vld [vmem:[%s1502_s1 + $0x1f0] sm:$0xff]  ;;  %v88_v5 = vld [vmem:[%s1502_s1 + $0x1e8] sm:$0xff] }
   0x3   :  { %343 = vmatpush.msra.mxu3 %v90_v1  ;;  %v42_v6 = vld [vmem:[%s1502_s1 + $0x78] sm:$0xff]  ;;  %v41_v8 = vld [vmem:[%s1502_s1 + $0x70] sm:$0xff]  ;;  %v71_v10 = vld [vmem:[%s1502_s1 + $0x160] sm:$0xff] }
   0x4   :  { %v58_v7 = vld [vmem:[%s1502_s1 + $0xf8] sm:$0xff]  ;;  %324 = vmatpush.msra.mxu2 %v73_v2  ;;  %v57_v9 = vld [vmem:[%s1502_s1 + $0xf0] sm:$0xff]  ;;  %283 = vmatpush.msra.mxu0 %v42_v6  ;;  %v87_v11 = vld [vmem:[%s1502_s1 + $0x1e0] sm:$0xff] }
   0x5   :  { %344 = vmatpush.msra.mxu3 %v89_v3  ;;  %303 = vmatpush.msra.mxu1 %v58_v7  ;;  %v40_v12 = vld [vmem:[%s1502_s1 + $0x68] sm:$0xff]  ;;  %v70_v14 = vld [vmem:[%s1502_s1 + $0x158] sm:$0xff]  ;;  %v39_v16 = vld [vmem:[%s1502_s1 + $0x60] sm:$0xff] }
   0x6   :  { %325 = vmatpush.msra.mxu2 %v72_v4  ;;  %v56_v13 = vld [vmem:[%s1502_s1 + $0xe8] sm:$0xff]  ;;  %284 = vmatpush.msra.mxu0 %v41_v8  ;;  %v86_v15 = vld [vmem:[%s1502_s1 + $0x1d8] sm:$0xff]  ;;  %v55_v17 = vld [vmem:[%s1502_s1 + $0xe0] sm:$0xff] }
   0x7   :  { %345 = vmatpush.msra.mxu3 %v88_v5  ;;  %304 = vmatpush.msra.mxu1 %v57_v9  ;;  %v69_v18 = vld [vmem:[%s1502_s1 + $0x150] sm:$0xff]  ;;  %v38_v20 = vld [vmem:[%s1502_s1 + $0x58] sm:$0xff]  ;;  %v68_v22 = vld [vmem:[%s1502_s1 + $0x148] sm:$0xff] }
   0x8   :  { %326 = vmatpush.msra.mxu2 %v71_v10  ;;  %285 = vmatpush.msra.mxu0 %v40_v12  ;;  %v85_v19 = vld [vmem:[%s1502_s1 + $0x1d0] sm:$0xff]  ;;  %v54_v21 = vld [vmem:[%s1502_s1 + $0xd8] sm:$0xff]  ;;  %v84_v23 = vld [vmem:[%s1502_s1 + $0x1c8] sm:$0xff] }
   0x9   :  { %346 = vmatpush.msra.mxu3 %v87_v11  ;;  %305 = vmatpush.msra.mxu1 %v56_v13  ;;  %v37_v24 = vld [vmem:[%s1502_s1 + $0x50] sm:$0xff]  ;;  %v67_v26 = vld [vmem:[%s1502_s1 + $0x140] sm:$0xff]  ;;  %v36_v28 = vld [vmem:[%s1502_s1 + $0x48] sm:$0xff] }
   0xa   :  { %327 = vmatpush.msra.mxu2 %v70_v14  ;;  %286 = vmatpush.msra.mxu0 %v39_v16  ;;  %v53_v25 = vld [vmem:[%s1502_s1 + $0xd0] sm:$0xff]  ;;  %v83_v27 = vld [vmem:[%s1502_s1 + $0x1c0] sm:$0xff]  ;;  %v52_v29 = vld [vmem:[%s1502_s1 + $0xc8] sm:$0xff] }
   0xb   :  { %347 = vmatpush.msra.mxu3 %v86_v15  ;;  %306 = vmatpush.msra.mxu1 %v55_v17  ;;  %v66_v30 = vld [vmem:[%s1502_s1 + $0x138] sm:$0xff]  ;;  %v35_v32 = vld [vmem:[%s1502_s1 + $0x40] sm:$0xff]  ;;  %v65_v34 = vld [vmem:[%s1502_s1 + $0x130] sm:$0xff] }
   0xc   :  { %328 = vmatpush.msra.mxu2 %v69_v18  ;;  %287 = vmatpush.msra.mxu0 %v38_v20  ;;  %v82_v31 = vld [vmem:[%s1502_s1 + $0x1b8] sm:$0xff]  ;;  %v51_v33 = vld [vmem:[%s1502_s1 + $0xc0] sm:$0xff]  ;;  %v81_v35 = vld [vmem:[%s1502_s1 + $0x1b0] sm:$0xff] }
   0xd   :  { %348 = vmatpush.msra.mxu3 %v85_v19  ;;  %307 = vmatpush.msra.mxu1 %v54_v21  ;;  %v34_v36 = vld [vmem:[%s1502_s1 + $0x38] sm:$0xff]  ;;  %v64_v38 = vld [vmem:[%s1502_s1 + $0x128] sm:$0xff]  ;;  %v33_v40 = vld [vmem:[%s1502_s1 + $0x30] sm:$0xff] }
   0xe   :  { %329 = vmatpush.msra.mxu2 %v68_v22  ;;  %288 = vmatpush.msra.mxu0 %v37_v24  ;;  %v50_v37 = vld [vmem:[%s1502_s1 + $0xb8] sm:$0xff]  ;;  %v80_v39 = vld [vmem:[%s1502_s1 + $0x1a8] sm:$0xff]  ;;  %v49_v41 = vld [vmem:[%s1502_s1 + $0xb0] sm:$0xff] }
   0xf   :  { %349 = vmatpush.msra.mxu3 %v84_v23  ;;  %308 = vmatpush.msra.mxu1 %v53_v25  ;;  %v63_v42 = vld [vmem:[%s1502_s1 + $0x120] sm:$0xff]  ;;  %v32_v44 = vld [vmem:[%s1502_s1 + $0x28] sm:$0xff]  ;;  %v62_v46 = vld [vmem:[%s1502_s1 + $0x118] sm:$0xff] }
  0x10   :  { %330 = vmatpush.msra.mxu2 %v67_v26  ;;  %289 = vmatpush.msra.mxu0 %v36_v28  ;;  %v79_v43 = vld [vmem:[%s1502_s1 + $0x1a0] sm:$0xff]  ;;  %v48_v45 = vld [vmem:[%s1502_s1 + $0xa8] sm:$0xff]  ;;  %v78_v47 = vld [vmem:[%s1502_s1 + $0x198] sm:$0xff] }
  0x11   :  { %350 = vmatpush.msra.mxu3 %v83_v27  ;;  %309 = vmatpush.msra.mxu1 %v52_v29  ;;  %v31_v48 = vld [vmem:[%s1502_s1 + $0x20] sm:$0xff]  ;;  %v61_v50 = vld [vmem:[%s1502_s1 + $0x110] sm:$0xff]  ;;  %v30_v52 = vld [vmem:[%s1502_s1 + $0x18] sm:$0xff] }
  0x12   :  { %331 = vmatpush.msra.mxu2 %v66_v30  ;;  %290 = vmatpush.msra.mxu0 %v35_v32  ;;  %v47_v49 = vld [vmem:[%s1502_s1 + $0xa0] sm:$0xff]  ;;  %v77_v51 = vld [vmem:[%s1502_s1 + $0x190] sm:$0xff]  ;;  %v46_v53 = vld [vmem:[%s1502_s1 + $0x98] sm:$0xff] }
  0x13   :  { %351 = vmatpush.msra.mxu3 %v82_v31  ;;  %310 = vmatpush.msra.mxu1 %v51_v33  ;;  %v60_v54 = vld [vmem:[%s1502_s1 + $0x108] sm:$0xff]  ;;  %v29_v56 = vld [vmem:[%s1502_s1 + $0x10] sm:$0xff]  ;;  %v59_v58 = vld [vmem:[%s1502_s1 + $0x100] sm:$0xff] }
  0x14   :  { %332 = vmatpush.msra.mxu2 %v65_v34  ;;  %291 = vmatpush.msra.mxu0 %v34_v36  ;;  %v76_v55 = vld [vmem:[%s1502_s1 + $0x188] sm:$0xff]  ;;  %v45_v57 = vld [vmem:[%s1502_s1 + $0x90] sm:$0xff]  ;;  %v75_v59 = vld [vmem:[%s1502_s1 + $0x180] sm:$0xff] }
  0x15   :  { %352 = vmatpush.msra.mxu3 %v81_v35  ;;  %311 = vmatpush.msra.mxu1 %v50_v37  ;;  %v138_v60 = vld [vmem:[%s1502_s1 + $0x378] sm:$0xff]  ;;  %v28_v62 = vld [vmem:[%s1502_s1 + $0x8] sm:$0xff]  ;;  %v137_v0 = vld [vmem:[%s1502_s1 + $0x370] sm:$0xff] }
  0x16   :  { %333 = vmatpush.msra.mxu2 %v64_v38  ;;  %292 = vmatpush.msra.mxu0 %v33_v40  ;;  %v154_v61 = vld [vmem:[%s1502_s1 + $0x3f8] sm:$0xff]  ;;  %v44_v63 = vld [vmem:[%s1502_s1 + $0x88] sm:$0xff]  ;;  %v153_v1 = vld [vmem:[%s1502_s1 + $0x3f0] sm:$0xff] }
  0x17   :  { %353 = vmatpush.msra.mxu3 %v80_v39  ;;  %312 = vmatpush.msra.mxu1 %v49_v41  ;;  %v27_v2 = vld [vmem:[%s1502_s1] sm:$0xff]  ;;  %v136_v4 = vld [vmem:[%s1502_s1 + $0x368] sm:$0xff]  ;;  %v106_v6 = vld [vmem:[%s1502_s1 + $0x278] sm:$0xff] }
  0x18   :  { %334 = vmatpush.msra.mxu2 %v63_v42  ;;  %293 = vmatpush.msra.mxu0 %v32_v44  ;;  %v43_v3 = vld [vmem:[%s1502_s1 + $0x80] sm:$0xff]  ;;  %v152_v5 = vld [vmem:[%s1502_s1 + $0x3e8] sm:$0xff]  ;;  %v122_v7 = vld [vmem:[%s1502_s1 + $0x2f8] sm:$0xff] }
  0x19   :  { %354 = vmatpush.msra.mxu3 %v79_v43  ;;  %313 = vmatpush.msra.mxu1 %v48_v45  ;;  %v135_v8 = vld [vmem:[%s1502_s1 + $0x360] sm:$0xff]  ;;  %v105_v10 = vld [vmem:[%s1502_s1 + $0x270] sm:$0xff]  ;;  %v134_v12 = vld [vmem:[%s1502_s1 + $0x358] sm:$0xff] }
  0x1a   :  { %335 = vmatpush.msra.mxu2 %v62_v46  ;;  %294 = vmatpush.msra.mxu0 %v31_v48  ;;  %v151_v9 = vld [vmem:[%s1502_s1 + $0x3e0] sm:$0xff]  ;;  %v121_v11 = vld [vmem:[%s1502_s1 + $0x2f0] sm:$0xff]  ;;  %v150_v13 = vld [vmem:[%s1502_s1 + $0x3d8] sm:$0xff] }
  0x1b   :  { %355 = vmatpush.msra.mxu3 %v78_v47  ;;  %314 = vmatpush.msra.mxu1 %v47_v49  ;;  %v104_v14 = vld [vmem:[%s1502_s1 + $0x268] sm:$0xff]  ;;  %v133_v16 = vld [vmem:[%s1502_s1 + $0x350] sm:$0xff]  ;;  %v103_v18 = vld [vmem:[%s1502_s1 + $0x260] sm:$0xff] }
  0x1c   :  { %336 = vmatpush.msra.mxu2 %v61_v50  ;;  %295 = vmatpush.msra.mxu0 %v30_v52  ;;  %v120_v15 = vld [vmem:[%s1502_s1 + $0x2e8] sm:$0xff]  ;;  %v149_v17 = vld [vmem:[%s1502_s1 + $0x3d0] sm:$0xff]  ;;  %v119_v19 = vld [vmem:[%s1502_s1 + $0x2e0] sm:$0xff] }
  0x1d   :  { %356 = vmatpush.msra.mxu3 %v77_v51  ;;  %315 = vmatpush.msra.mxu1 %v46_v53  ;;  %v132_v20 = vld [vmem:[%s1502_s1 + $0x348] sm:$0xff]  ;;  %v102_v22 = vld [vmem:[%s1502_s1 + $0x258] sm:$0xff]  ;;  %v131_v24 = vld [vmem:[%s1502_s1 + $0x340] sm:$0xff] }
  0x1e   :  { %337 = vmatpush.msra.mxu2 %v60_v54  ;;  %296 = vmatpush.msra.mxu0 %v29_v56  ;;  %v148_v21 = vld [vmem:[%s1502_s1 + $0x3c8] sm:$0xff]  ;;  %v118_v23 = vld [vmem:[%s1502_s1 + $0x2d8] sm:$0xff]  ;;  %v147_v25 = vld [vmem:[%s1502_s1 + $0x3c0] sm:$0xff] }
  0x1f   :  { %357 = vmatpush.msra.mxu3 %v76_v55  ;;  %316 = vmatpush.msra.mxu1 %v45_v57  ;;  %v101_v26 = vld [vmem:[%s1502_s1 + $0x250] sm:$0xff]  ;;  %v130_v28 = vld [vmem:[%s1502_s1 + $0x338] sm:$0xff]  ;;  %v100_v30 = vld [vmem:[%s1502_s1 + $0x248] sm:$0xff] }
  0x20   :  { %338 = vmatpush.msra.mxu2 %v59_v58  ;;  %297 = vmatpush.msra.mxu0 %v28_v62  ;;  %v117_v27 = vld [vmem:[%s1502_s1 + $0x2d0] sm:$0xff]  ;;  %v146_v29 = vld [vmem:[%s1502_s1 + $0x3b8] sm:$0xff]  ;;  %v116_v31 = vld [vmem:[%s1502_s1 + $0x2c8] sm:$0xff] }
  0x21   :  { %358 = vmatpush.msra.mxu3 %v75_v59  ;;  %317 = vmatpush.msra.mxu1 %v44_v63  ;;  %v129_v32 = vld [vmem:[%s1502_s1 + $0x330] sm:$0xff]  ;;  %v99_v34 = vld [vmem:[%s1502_s1 + $0x240] sm:$0xff]  ;;  %v128_v36 = vld [vmem:[%s1502_s1 + $0x328] sm:$0xff] }
  0x22   :  { %403 = vmatpush.msrb.mxu2 %v138_v60  ;;  %298 = vmatpush.msra.mxu0 %v27_v2  ;;  %v145_v33 = vld [vmem:[%s1502_s1 + $0x3b0] sm:$0xff]  ;;  %v115_v35 = vld [vmem:[%s1502_s1 + $0x2c0] sm:$0xff]  ;;  %v144_v37 = vld [vmem:[%s1502_s1 + $0x3a8] sm:$0xff] }
  0x23   :  { %423 = vmatpush.msrb.mxu3 %v154_v61  ;;  %318 = vmatpush.msra.mxu1 %v43_v3  ;;  %v98_v38 = vld [vmem:[%s1502_s1 + $0x238] sm:$0xff]  ;;  %v127_v40 = vld [vmem:[%s1502_s1 + $0x320] sm:$0xff]  ;;  %v97_v42 = vld [vmem:[%s1502_s1 + $0x230] sm:$0xff] }
  0x24   :  { %404 = vmatpush.msrb.mxu2 %v137_v0  ;;  %363 = vmatpush.msrb.mxu0 %v106_v6  ;;  %v114_v39 = vld [vmem:[%s1502_s1 + $0x2b8] sm:$0xff]  ;;  %v143_v41 = vld [vmem:[%s1502_s1 + $0x3a0] sm:$0xff]  ;;  %v113_v43 = vld [vmem:[%s1502_s1 + $0x2b0] sm:$0xff] }
  0x25   :  { %424 = vmatpush.msrb.mxu3 %v153_v1  ;;  %383 = vmatpush.msrb.mxu1 %v122_v7  ;;  %v126_v44 = vld [vmem:[%s1502_s1 + $0x318] sm:$0xff]  ;;  %v96_v46 = vld [vmem:[%s1502_s1 + $0x228] sm:$0xff]  ;;  %v125_v48 = vld [vmem:[%s1502_s1 + $0x310] sm:$0xff] }
  0x26   :  { %405 = vmatpush.msrb.mxu2 %v136_v4  ;;  %364 = vmatpush.msrb.mxu0 %v105_v10  ;;  %v142_v45 = vld [vmem:[%s1502_s1 + $0x398] sm:$0xff]  ;;  %v112_v47 = vld [vmem:[%s1502_s1 + $0x2a8] sm:$0xff]  ;;  %v141_v49 = vld [vmem:[%s1502_s1 + $0x390] sm:$0xff] }
  0x27   :  { %425 = vmatpush.msrb.mxu3 %v152_v5  ;;  %384 = vmatpush.msrb.mxu1 %v121_v11  ;;  %v95_v50 = vld [vmem:[%s1502_s1 + $0x220] sm:$0xff]  ;;  %v124_v52 = vld [vmem:[%s1502_s1 + $0x308] sm:$0xff]  ;;  %v94_v54 = vld [vmem:[%s1502_s1 + $0x218] sm:$0xff] }
  0x28   :  { %406 = vmatpush.msrb.mxu2 %v135_v8  ;;  %365 = vmatpush.msrb.mxu0 %v104_v14  ;;  %v111_v51 = vld [vmem:[%s1502_s1 + $0x2a0] sm:$0xff]  ;;  %v140_v53 = vld [vmem:[%s1502_s1 + $0x388] sm:$0xff]  ;;  %v110_v55 = vld [vmem:[%s1502_s1 + $0x298] sm:$0xff] }
  0x29   :  { %426 = vmatpush.msrb.mxu3 %v151_v9  ;;  %385 = vmatpush.msrb.mxu1 %v120_v15  ;;  %v123_v56 = vld [vmem:[%s1502_s1 + $0x300] sm:$0xff]  ;;  %v202_v60 = vld [vmem:[%s1502_s1 + $0x578] sm:$0xff]  ;;  %v93_v62 = vld [vmem:[%s1502_s1 + $0x210] sm:$0xff] }
  0x2a   :  { %407 = vmatpush.msrb.mxu2 %v134_v12  ;;  %366 = vmatpush.msrb.mxu0 %v103_v18  ;;  %v139_v57 = vld [vmem:[%s1502_s1 + $0x380] sm:$0xff]  ;;  %v218_v61 = vld [vmem:[%s1502_s1 + $0x5f8] sm:$0xff]  ;;  %v109_v63 = vld [vmem:[%s1502_s1 + $0x290] sm:$0xff] }
  0x2b   :  { %427 = vmatpush.msrb.mxu3 %v150_v13  ;;  %386 = vmatpush.msrb.mxu1 %v119_v19  ;;  %v13_v58 = vld [vmem:[%s1503_s0 + $0x4] sm:$0x3]  ;;  %v14_v59 = vld [vmem:[%s1503_s0 + $0x6] sm:$0x3]  ;;  %v201_v0 = vld [vmem:[%s1502_s1 + $0x570] sm:$0xff] }
  0x2c   :  { %408 = vmatpush.msrb.mxu2 %v133_v16  ;;  %367 = vmatpush.msrb.mxu0 %v102_v22  ;;  %v217_v1 = vld [vmem:[%s1502_s1 + $0x5f0] sm:$0xff]  ;;  %v92_v2 = vld [vmem:[%s1502_s1 + $0x208] sm:$0xff]  ;;  %v91_v6 = vld [vmem:[%s1502_s1 + $0x200] sm:$0xff] }
  0x2d   :  { %428 = vmatpush.msrb.mxu3 %v149_v17  ;;  %387 = vmatpush.msrb.mxu1 %v118_v23  ;;  %v108_v3 = vld [vmem:[%s1502_s1 + $0x288] sm:$0xff]  ;;  %v107_v7 = vld [vmem:[%s1502_s1 + $0x280] sm:$0xff]  ;;  %v170_v10 = vld [vmem:[%s1502_s1 + $0x478] sm:$0xff] }
  0x2e   :  { %409 = vmatpush.msrb.mxu2 %v132_v20  ;;  %368 = vmatpush.msrb.mxu0 %v101_v26  ;;  %v200_v4 = vld [vmem:[%s1502_s1 + $0x568] sm:$0xff]  ;;  %v11_v8 = vld [vmem:[%s1503_s0] sm:$0x3]  ;;  %v12_v9 = vld [vmem:[%s1503_s0 + $0x2] sm:$0x3] }
  0x2f   :  { %429 = vmatpush.msrb.mxu3 %v148_v21  ;;  %388 = vmatpush.msrb.mxu1 %v117_v27  ;;  %v216_v5 = vld [vmem:[%s1502_s1 + $0x5e8] sm:$0xff]  ;;  %v186_v11 = vld [vmem:[%s1502_s1 + $0x4f8] sm:$0xff]  ;;  %v199_v12 = vld [vmem:[%s1502_s1 + $0x560] sm:$0xff] }
  0x30   :  { %410 = vmatpush.msrb.mxu2 %v131_v24  ;;  %369 = vmatpush.msrb.mxu0 %v100_v30  ;;  %v215_v13 = vld [vmem:[%s1502_s1 + $0x5e0] sm:$0xff]  ;;  %v169_v14 = vld [vmem:[%s1502_s1 + $0x470] sm:$0xff]  ;;  %v198_v16 = vld [vmem:[%s1502_s1 + $0x558] sm:$0xff] }
  0x31   :  { %430 = vmatpush.msrb.mxu3 %v147_v25  ;;  %389 = vmatpush.msrb.mxu1 %v116_v31  ;;  %v185_v15 = vld [vmem:[%s1502_s1 + $0x4f0] sm:$0xff]  ;;  %v214_v17 = vld [vmem:[%s1502_s1 + $0x5d8] sm:$0xff]  ;;  %v168_v18 = vld [vmem:[%s1502_s1 + $0x468] sm:$0xff] }
  0x32   :  { %411 = vmatpush.msrb.mxu2 %v130_v28  ;;  %370 = vmatpush.msrb.mxu0 %v99_v34  ;;  %v184_v19 = vld [vmem:[%s1502_s1 + $0x4e8] sm:$0xff]  ;;  %v197_v20 = vld [vmem:[%s1502_s1 + $0x550] sm:$0xff]  ;;  %v167_v22 = vld [vmem:[%s1502_s1 + $0x460] sm:$0xff] }
  0x33   :  { %431 = vmatpush.msrb.mxu3 %v146_v29  ;;  %390 = vmatpush.msrb.mxu1 %v115_v35  ;;  %v213_v21 = vld [vmem:[%s1502_s1 + $0x5d0] sm:$0xff]  ;;  %v183_v23 = vld [vmem:[%s1502_s1 + $0x4e0] sm:$0xff]  ;;  %v196_v24 = vld [vmem:[%s1502_s1 + $0x548] sm:$0xff] }
  0x34   :  { %412 = vmatpush.msrb.mxu2 %v129_v32  ;;  %371 = vmatpush.msrb.mxu0 %v98_v38  ;;  %v212_v25 = vld [vmem:[%s1502_s1 + $0x5c8] sm:$0xff]  ;;  %v166_v26 = vld [vmem:[%s1502_s1 + $0x458] sm:$0xff]  ;;  %v195_v28 = vld [vmem:[%s1502_s1 + $0x540] sm:$0xff] }
  0x35   :  { %432 = vmatpush.msrb.mxu3 %v145_v33  ;;  %391 = vmatpush.msrb.mxu1 %v114_v39  ;;  %v182_v27 = vld [vmem:[%s1502_s1 + $0x4d8] sm:$0xff]  ;;  %v211_v29 = vld [vmem:[%s1502_s1 + $0x5c0] sm:$0xff]  ;;  %v165_v30 = vld [vmem:[%s1502_s1 + $0x450] sm:$0xff] }
  0x36   :  { %413 = vmatpush.msrb.mxu2 %v128_v36  ;;  %372 = vmatpush.msrb.mxu0 %v97_v42  ;;  %v181_v31 = vld [vmem:[%s1502_s1 + $0x4d0] sm:$0xff]  ;;  %v194_v32 = vld [vmem:[%s1502_s1 + $0x538] sm:$0xff]  ;;  %v164_v34 = vld [vmem:[%s1502_s1 + $0x448] sm:$0xff] }
  0x37   :  { %433 = vmatpush.msrb.mxu3 %v144_v37  ;;  %392 = vmatpush.msrb.mxu1 %v113_v43  ;;  %v210_v33 = vld [vmem:[%s1502_s1 + $0x5b8] sm:$0xff]  ;;  %v180_v35 = vld [vmem:[%s1502_s1 + $0x4c8] sm:$0xff]  ;;  %v193_v36 = vld [vmem:[%s1502_s1 + $0x530] sm:$0xff] }
  0x38   :  { %414 = vmatpush.msrb.mxu2 %v127_v40  ;;  %373 = vmatpush.msrb.mxu0 %v96_v46  ;;  %v209_v37 = vld [vmem:[%s1502_s1 + $0x5b0] sm:$0xff]  ;;  %v163_v38 = vld [vmem:[%s1502_s1 + $0x440] sm:$0xff]  ;;  %v192_v40 = vld [vmem:[%s1502_s1 + $0x528] sm:$0xff] }
  0x39   :  { %434 = vmatpush.msrb.mxu3 %v143_v41  ;;  %393 = vmatpush.msrb.mxu1 %v112_v47  ;;  %v179_v39 = vld [vmem:[%s1502_s1 + $0x4c0] sm:$0xff]  ;;  %v208_v41 = vld [vmem:[%s1502_s1 + $0x5a8] sm:$0xff]  ;;  %v162_v42 = vld [vmem:[%s1502_s1 + $0x438] sm:$0xff] }
  0x3a   :  { %415 = vmatpush.msrb.mxu2 %v126_v44  ;;  %374 = vmatpush.msrb.mxu0 %v95_v50  ;;  %v178_v43 = vld [vmem:[%s1502_s1 + $0x4b8] sm:$0xff]  ;;  %v191_v44 = vld [vmem:[%s1502_s1 + $0x520] sm:$0xff]  ;;  %v161_v46 = vld [vmem:[%s1502_s1 + $0x430] sm:$0xff] }
  0x3b   :  { %435 = vmatpush.msrb.mxu3 %v142_v45  ;;  %394 = vmatpush.msrb.mxu1 %v111_v51  ;;  %v207_v45 = vld [vmem:[%s1502_s1 + $0x5a0] sm:$0xff]  ;;  %v177_v47 = vld [vmem:[%s1502_s1 + $0x4b0] sm:$0xff]  ;;  %v160_v50 = vld [vmem:[%s1502_s1 + $0x428] sm:$0xff] }
  0x3c   :  { %416 = vmatpush.msrb.mxu2 %v125_v48  ;;  %375 = vmatpush.msrb.mxu0 %v94_v54  ;;  %v190_v48 = vld [vmem:[%s1502_s1 + $0x518] sm:$0xff]  ;;  %v176_v51 = vld [vmem:[%s1502_s1 + $0x4a8] sm:$0xff]  ;;  %v159_v54 = vld [vmem:[%s1502_s1 + $0x420] sm:$0xff] }
  0x3d   :  { %436 = vmatpush.msrb.mxu3 %v141_v49  ;;  %395 = vmatpush.msrb.mxu1 %v110_v55  ;;  %v206_v49 = vld [vmem:[%s1502_s1 + $0x598] sm:$0xff]  ;;  %v175_v55 = vld [vmem:[%s1502_s1 + $0x4a0] sm:$0xff] }
  0x3e   :  { %417 = vmatpush.msrb.mxu2 %v124_v52  ;;  %359 = vmatmul.f32.vlgmr.msra.gmra.mxu3 %v14_v59  ;;  %v189_v52 = vld [vmem:[%s1502_s1 + $0x510] sm:$0xff]  ;;  %v174_v59 = vld [vmem:[%s1502_s1 + $0x498] sm:$0xff] }
  0x3f   :  { %437 = vmatpush.msrb.mxu3 %v140_v53  ;;  %339 = vmatmul.f32.vlgmr.msra.gmra.mxu2 %v13_v58  ;;  %v205_v53 = vld [vmem:[%s1502_s1 + $0x590] sm:$0xff]  ;;  %v158_v58 = vld [vmem:[%s1502_s1 + $0x418] sm:$0xff] }
  0x40   :  { %418 = vmatpush.msrb.mxu2 %v123_v56  ;;  %376 = vmatpush.msrb.mxu0 %v93_v62  ;;  %v188_v56 = vld [vmem:[%s1502_s1 + $0x508] sm:$0xff] }
  0x41   :  { %438 = vmatpush.msrb.mxu3 %v139_v57  ;;  %396 = vmatpush.msrb.mxu1 %v109_v63  ;;  %v204_v57 = vld [vmem:[%s1502_s1 + $0x588] sm:$0xff] }
  0x42   :  { %483 = vmatpush.msra.mxu2 %v202_v60  ;;  %377 = vmatpush.msrb.mxu0 %v92_v2  ;;  %v187_v60 = vld [vmem:[%s1502_s1 + $0x500] sm:$0xff]  ;;  %v17_v62 = vld [vmem:[%s1503_s0 + $0xc] sm:$0x3]  ;;  %v18_v63 = vld [vmem:[%s1503_s0 + $0xe] sm:$0x3] }
  0x43   :  { %503 = vmatpush.msra.mxu3 %v218_v61  ;;  %397 = vmatpush.msrb.mxu1 %v108_v3  ;;  %v203_v61 = vld [vmem:[%s1502_s1 + $0x580] sm:$0xff]  ;;  %v157_v2 = vld [vmem:[%s1502_s1 + $0x410] sm:$0xff] }
  0x44   :  { %484 = vmatpush.msra.mxu2 %v201_v0  ;;  %378 = vmatpush.msrb.mxu0 %v91_v6  ;;  %v266_v0 = vld [vmem:[%s1502_s1 + $0x778] sm:$0xff]  ;;  %v173_v3 = vld [vmem:[%s1502_s1 + $0x490] sm:$0xff]  ;;  %v156_v6 = vld [vmem:[%s1502_s1 + $0x408] sm:$0xff] }
  0x45   :  { %504 = vmatpush.msra.mxu3 %v217_v1  ;;  %398 = vmatpush.msrb.mxu1 %v107_v7  ;;  %v282_v1 = vld [vmem:[%s1502_s1 + $0x7f8] sm:$0xff]  ;;  %v172_v7 = vld [vmem:[%s1502_s1 + $0x488] sm:$0xff] }
  0x46   :  { %485 = vmatpush.msra.mxu2 %v200_v4  ;;  %299 = vmatmul.f32.vlgmr.msra.gmra.mxu0 %v11_v8  ;;  %v265_v4 = vld [vmem:[%s1502_s1 + $0x770] sm:$0xff]  ;;  %v264_v8 = vld [vmem:[%s1502_s1 + $0x768] sm:$0xff] }
  0x47   :  { %505 = vmatpush.msra.mxu3 %v216_v5  ;;  %319 = vmatmul.f32.vlgmr.msra.gmra.mxu1 %v12_v9  ;;  %v281_v5 = vld [vmem:[%s1502_s1 + $0x7f0] sm:$0xff]  ;;  %v280_v9 = vld [vmem:[%s1502_s1 + $0x7e8] sm:$0xff] }
  0x48   :  { %443 = vmatpush.msra.mxu0 %v170_v10  ;;  %463 = vmatpush.msra.mxu1 %v186_v11  ;;  %v155_v10 = vld [vmem:[%s1502_s1 + $0x400] sm:$0xff] }
  0x49   :  { %486 = vmatpush.msra.mxu2 %v199_v12  ;;  %506 = vmatpush.msra.mxu3 %v215_v13  ;;  %v171_v11 = vld [vmem:[%s1502_s1 + $0x480] sm:$0xff]  ;;  %v15_v12 = vld [vmem:[%s1503_s0 + $0x8] sm:$0x3]  ;;  %v16_v13 = vld [vmem:[%s1503_s0 + $0xa] sm:$0x3] }
  0x4a   :  { %444 = vmatpush.msra.mxu0 %v169_v14  ;;  %464 = vmatpush.msra.mxu1 %v185_v15  ;;  %v234_v14 = vld [vmem:[%s1502_s1 + $0x678] sm:$0xff] }
  0x4b   :  { %487 = vmatpush.msra.mxu2 %v198_v16  ;;  %507 = vmatpush.msra.mxu3 %v214_v17  ;;  %v250_v15 = vld [vmem:[%s1502_s1 + $0x6f8] sm:$0xff]  ;;  %v263_v16 = vld [vmem:[%s1502_s1 + $0x760] sm:$0xff] }
  0x4c   :  { %445 = vmatpush.msra.mxu0 %v168_v18  ;;  %465 = vmatpush.msra.mxu1 %v184_v19  ;;  %v279_v17 = vld [vmem:[%s1502_s1 + $0x7e0] sm:$0xff]  ;;  %v233_v18 = vld [vmem:[%s1502_s1 + $0x670] sm:$0xff] }
  0x4d   :  { %488 = vmatpush.msra.mxu2 %v197_v20  ;;  %508 = vmatpush.msra.mxu3 %v213_v21  ;;  %v249_v19 = vld [vmem:[%s1502_s1 + $0x6f0] sm:$0xff]  ;;  %v262_v20 = vld [vmem:[%s1502_s1 + $0x758] sm:$0xff] }
  0x4e   :  { %446 = vmatpush.msra.mxu0 %v167_v22  ;;  %466 = vmatpush.msra.mxu1 %v183_v23  ;;  %v278_v21 = vld [vmem:[%s1502_s1 + $0x7d8] sm:$0xff]  ;;  %v232_v22 = vld [vmem:[%s1502_s1 + $0x668] sm:$0xff] }
  0x4f   :  { %489 = vmatpush.msra.mxu2 %v196_v24  ;;  %509 = vmatpush.msra.mxu3 %v212_v25  ;;  %v248_v23 = vld [vmem:[%s1502_s1 + $0x6e8] sm:$0xff]  ;;  %v261_v24 = vld [vmem:[%s1502_s1 + $0x750] sm:$0xff] }
  0x50   :  { %447 = vmatpush.msra.mxu0 %v166_v26  ;;  %467 = vmatpush.msra.mxu1 %v182_v27  ;;  %v277_v25 = vld [vmem:[%s1502_s1 + $0x7d0] sm:$0xff]  ;;  %v231_v26 = vld [vmem:[%s1502_s1 + $0x660] sm:$0xff] }
  0x51   :  { %490 = vmatpush.msra.mxu2 %v195_v28  ;;  %510 = vmatpush.msra.mxu3 %v211_v29  ;;  %v247_v27 = vld [vmem:[%s1502_s1 + $0x6e0] sm:$0xff]  ;;  %v260_v28 = vld [vmem:[%s1502_s1 + $0x748] sm:$0xff] }
  0x52   :  { %448 = vmatpush.msra.mxu0 %v165_v30  ;;  %468 = vmatpush.msra.mxu1 %v181_v31  ;;  %v276_v29 = vld [vmem:[%s1502_s1 + $0x7c8] sm:$0xff]  ;;  %v230_v30 = vld [vmem:[%s1502_s1 + $0x658] sm:$0xff] }
  0x53   :  { %491 = vmatpush.msra.mxu2 %v194_v32  ;;  %511 = vmatpush.msra.mxu3 %v210_v33  ;;  %v246_v31 = vld [vmem:[%s1502_s1 + $0x6d8] sm:$0xff]  ;;  %v259_v32 = vld [vmem:[%s1502_s1 + $0x740] sm:$0xff] }
  0x54   :  { %449 = vmatpush.msra.mxu0 %v164_v34  ;;  %469 = vmatpush.msra.mxu1 %v180_v35  ;;  %v275_v33 = vld [vmem:[%s1502_s1 + $0x7c0] sm:$0xff]  ;;  %v229_v34 = vld [vmem:[%s1502_s1 + $0x650] sm:$0xff] }
  0x55   :  { %492 = vmatpush.msra.mxu2 %v193_v36  ;;  %512 = vmatpush.msra.mxu3 %v209_v37  ;;  %v245_v35 = vld [vmem:[%s1502_s1 + $0x6d0] sm:$0xff]  ;;  %v258_v36 = vld [vmem:[%s1502_s1 + $0x738] sm:$0xff] }
  0x56   :  { %450 = vmatpush.msra.mxu0 %v163_v38  ;;  %470 = vmatpush.msra.mxu1 %v179_v39  ;;  %v274_v37 = vld [vmem:[%s1502_s1 + $0x7b8] sm:$0xff]  ;;  %v228_v38 = vld [vmem:[%s1502_s1 + $0x648] sm:$0xff] }
  0x57   :  { %493 = vmatpush.msra.mxu2 %v192_v40  ;;  %513 = vmatpush.msra.mxu3 %v208_v41  ;;  %v244_v39 = vld [vmem:[%s1502_s1 + $0x6c8] sm:$0xff]  ;;  %v257_v40 = vld [vmem:[%s1502_s1 + $0x730] sm:$0xff] }
  0x58   :  { %451 = vmatpush.msra.mxu0 %v162_v42  ;;  %471 = vmatpush.msra.mxu1 %v178_v43  ;;  %v273_v41 = vld [vmem:[%s1502_s1 + $0x7b0] sm:$0xff]  ;;  %v227_v42 = vld [vmem:[%s1502_s1 + $0x640] sm:$0xff] }
  0x59   :  { %494 = vmatpush.msra.mxu2 %v191_v44  ;;  %514 = vmatpush.msra.mxu3 %v207_v45  ;;  %v243_v43 = vld [vmem:[%s1502_s1 + $0x6c0] sm:$0xff]  ;;  %v256_v44 = vld [vmem:[%s1502_s1 + $0x728] sm:$0xff] }
  0x5a   :  { %452 = vmatpush.msra.mxu0 %v161_v46  ;;  %472 = vmatpush.msra.mxu1 %v177_v47  ;;  %v272_v45 = vld [vmem:[%s1502_s1 + $0x7a8] sm:$0xff]  ;;  %v226_v46 = vld [vmem:[%s1502_s1 + $0x638] sm:$0xff] }
  0x5b   :  { %495 = vmatpush.msra.mxu2 %v190_v48  ;;  %515 = vmatpush.msra.mxu3 %v206_v49  ;;  %v242_v47 = vld [vmem:[%s1502_s1 + $0x6b8] sm:$0xff]  ;;  %v255_v48 = vld [vmem:[%s1502_s1 + $0x720] sm:$0xff] }
  0x5c   :  { %453 = vmatpush.msra.mxu0 %v160_v50  ;;  %473 = vmatpush.msra.mxu1 %v176_v51  ;;  %v271_v49 = vld [vmem:[%s1502_s1 + $0x7a0] sm:$0xff]  ;;  %v21_v50 = vld [vmem:[%s1503_s0 + $0x14] sm:$0x3]  ;;  %v22_v51 = vld [vmem:[%s1503_s0 + $0x16] sm:$0x3] }
  0x5d   :  { %496 = vmatpush.msra.mxu2 %v189_v52  ;;  %516 = vmatpush.msra.mxu3 %v205_v53  ;;  %v225_v52 = vld [vmem:[%s1502_s1 + $0x630] sm:$0xff] }
  0x5e   :  { %454 = vmatpush.msra.mxu0 %v159_v54  ;;  %474 = vmatpush.msra.mxu1 %v175_v55  ;;  %v241_v53 = vld [vmem:[%s1502_s1 + $0x6b0] sm:$0xff]  ;;  %v254_v54 = vld [vmem:[%s1502_s1 + $0x718] sm:$0xff] }
  0x5f   :  { %497 = vmatpush.msra.mxu2 %v188_v56  ;;  %517 = vmatpush.msra.mxu3 %v204_v57  ;;  %v270_v55 = vld [vmem:[%s1502_s1 + $0x798] sm:$0xff]  ;;  %v224_v56 = vld [vmem:[%s1502_s1 + $0x628] sm:$0xff] }
  0x60   :  { %455 = vmatpush.msra.mxu0 %v158_v58  ;;  %475 = vmatpush.msra.mxu1 %v174_v59  ;;  %v240_v57 = vld [vmem:[%s1502_s1 + $0x6a8] sm:$0xff]  ;;  %v253_v58 = vld [vmem:[%s1502_s1 + $0x710] sm:$0xff] }
  0x61   :  { %498 = vmatpush.msra.mxu2 %v187_v60  ;;  %518 = vmatpush.msra.mxu3 %v203_v61  ;;  %v269_v59 = vld [vmem:[%s1502_s1 + $0x790] sm:$0xff]  ;;  %v223_v60 = vld [vmem:[%s1502_s1 + $0x620] sm:$0xff] }
  0x62   :  { %419 = vmatmul.f32.vlgmr.msrb.gmra.mxu2 %v17_v62  ;;  %439 = vmatmul.f32.vlgmr.msrb.gmra.mxu3 %v18_v63  ;;  %v239_v61 = vld [vmem:[%s1502_s1 + $0x6a0] sm:$0xff]  ;;  %v252_v62 = vld [vmem:[%s1502_s1 + $0x708] sm:$0xff] }
  0x63   :  { %563 = vmatpush.msrb.mxu2 %v266_v0  ;;  %583 = vmatpush.msrb.mxu3 %v282_v1  ;;  %v268_v63 = vld [vmem:[%s1502_s1 + $0x788] sm:$0xff]  ;;  %v19_v0 = vld [vmem:[%s1503_s0 + $0x10] sm:$0x3]  ;;  %v20_v1 = vld [vmem:[%s1503_s0 + $0x12] sm:$0x3] }
  0x64   :  { %456 = vmatpush.msra.mxu0 %v157_v2  ;;  %476 = vmatpush.msra.mxu1 %v173_v3  ;;  %v222_v2 = vld [vmem:[%s1502_s1 + $0x618] sm:$0xff] }
  0x65   :  { %564 = vmatpush.msrb.mxu2 %v265_v4  ;;  %584 = vmatpush.msrb.mxu3 %v281_v5  ;;  %v238_v3 = vld [vmem:[%s1502_s1 + $0x698] sm:$0xff]  ;;  %v251_v4 = vld [vmem:[%s1502_s1 + $0x700] sm:$0xff] }
  0x66   :  { %457 = vmatpush.msra.mxu0 %v156_v6  ;;  %477 = vmatpush.msra.mxu1 %v172_v7  ;;  %v267_v5 = vld [vmem:[%s1502_s1 + $0x780] sm:$0xff]  ;;  %v25_v6 = vld [vmem:[%s1503_s0 + $0x1c] sm:$0x3]  ;;  %v26_v7 = vld [vmem:[%s1503_s0 + $0x1e] sm:$0x3] }
  0x67   :  { %565 = vmatpush.msrb.mxu2 %v264_v8  ;;  %585 = vmatpush.msrb.mxu3 %v280_v9  ;;  %v221_v8 = vld [vmem:[%s1502_s1 + $0x610] sm:$0xff] }
  0x68   :  { %458 = vmatpush.msra.mxu0 %v155_v10  ;;  %478 = vmatpush.msra.mxu1 %v171_v11  ;;  %v237_v9 = vld [vmem:[%s1502_s1 + $0x690] sm:$0xff]  ;;  %v220_v10 = vld [vmem:[%s1502_s1 + $0x608] sm:$0xff] }
  0x69   :  { %379 = vmatmul.f32.vlgmr.msrb.gmra.mxu0 %v15_v12  ;;  %399 = vmatmul.f32.vlgmr.msrb.gmra.mxu1 %v16_v13  ;;  %v236_v11 = vld [vmem:[%s1502_s1 + $0x688] sm:$0xff]  ;;  %v219_v12 = vld [vmem:[%s1502_s1 + $0x600] sm:$0xff] }
  0x6a   :  { %523 = vmatpush.msrb.mxu0 %v234_v14  ;;  %543 = vmatpush.msrb.mxu1 %v250_v15  ;;  %v235_v13 = vld [vmem:[%s1502_s1 + $0x680] sm:$0xff]  ;;  %v23_v14 = vld [vmem:[%s1503_s0 + $0x18] sm:$0x3]  ;;  %v24_v15 = vld [vmem:[%s1503_s0 + $0x1a] sm:$0x3] }
  0x6b   :  { %566 = vmatpush.msrb.mxu2 %v263_v16  ;;  %586 = vmatpush.msrb.mxu3 %v279_v17 }
  0x6c   :  { %524 = vmatpush.msrb.mxu0 %v233_v18  ;;  %544 = vmatpush.msrb.mxu1 %v249_v19 }
  0x6d   :  { %567 = vmatpush.msrb.mxu2 %v262_v20  ;;  %587 = vmatpush.msrb.mxu3 %v278_v21 }
  0x6e   :  { %525 = vmatpush.msrb.mxu0 %v232_v22  ;;  %545 = vmatpush.msrb.mxu1 %v248_v23 }
  0x6f   :  { %568 = vmatpush.msrb.mxu2 %v261_v24  ;;  %588 = vmatpush.msrb.mxu3 %v277_v25 }
  0x70   :  { %526 = vmatpush.msrb.mxu0 %v231_v26  ;;  %546 = vmatpush.msrb.mxu1 %v247_v27 }
  0x71   :  { %569 = vmatpush.msrb.mxu2 %v260_v28  ;;  %589 = vmatpush.msrb.mxu3 %v276_v29 }
  0x72   :  { %527 = vmatpush.msrb.mxu0 %v230_v30  ;;  %547 = vmatpush.msrb.mxu1 %v246_v31 }
  0x73   :  { %570 = vmatpush.msrb.mxu2 %v259_v32  ;;  %590 = vmatpush.msrb.mxu3 %v275_v33 }
  0x74   :  { %528 = vmatpush.msrb.mxu0 %v229_v34  ;;  %548 = vmatpush.msrb.mxu1 %v245_v35 }
  0x75   :  { %571 = vmatpush.msrb.mxu2 %v258_v36  ;;  %591 = vmatpush.msrb.mxu3 %v274_v37 }
  0x76   :  { %529 = vmatpush.msrb.mxu0 %v228_v38  ;;  %549 = vmatpush.msrb.mxu1 %v244_v39 }
  0x77   :  { %572 = vmatpush.msrb.mxu2 %v257_v40  ;;  %592 = vmatpush.msrb.mxu3 %v273_v41 }
  0x78   :  { %530 = vmatpush.msrb.mxu0 %v227_v42  ;;  %550 = vmatpush.msrb.mxu1 %v243_v43 }
  0x79   :  { %573 = vmatpush.msrb.mxu2 %v256_v44  ;;  %593 = vmatpush.msrb.mxu3 %v272_v45 }
  0x7a   :  { %531 = vmatpush.msrb.mxu0 %v226_v46  ;;  %551 = vmatpush.msrb.mxu1 %v242_v47 }
  0x7b   :  { %574 = vmatpush.msrb.mxu2 %v255_v48  ;;  %594 = vmatpush.msrb.mxu3 %v271_v49 }
  0x7c   :  { %499 = vmatmul.f32.vlgmr.msra.gmra.mxu2 %v21_v50  ;;  %519 = vmatmul.f32.vlgmr.msra.gmra.mxu3 %v22_v51 }
  0x7d   :  { %532 = vmatpush.msrb.mxu0 %v225_v52  ;;  %552 = vmatpush.msrb.mxu1 %v241_v53 }
  0x7e   :  { %575 = vmatpush.msrb.mxu2 %v254_v54  ;;  %595 = vmatpush.msrb.mxu3 %v270_v55 }
  0x7f   :  { %533 = vmatpush.msrb.mxu0 %v224_v56  ;;  %553 = vmatpush.msrb.mxu1 %v240_v57 }
  0x80   :  { %576 = vmatpush.msrb.mxu2 %v253_v58  ;;  %596 = vmatpush.msrb.mxu3 %v269_v59 }
  0x81   :  { %534 = vmatpush.msrb.mxu0 %v223_v60  ;;  %554 = vmatpush.msrb.mxu1 %v239_v61 }
  0x82   :  { %577 = vmatpush.msrb.mxu2 %v252_v62  ;;  %597 = vmatpush.msrb.mxu3 %v268_v63 }
  0x83   :  { %459 = vmatmul.f32.vlgmr.msra.gmra.mxu0 %v19_v0  ;;  %479 = vmatmul.f32.vlgmr.msra.gmra.mxu1 %v20_v1 }
  0x84   :  { %535 = vmatpush.msrb.mxu0 %v222_v2  ;;  %555 = vmatpush.msrb.mxu1 %v238_v3 }
  0x85   :  { %578 = vmatpush.msrb.mxu2 %v251_v4  ;;  %598 = vmatpush.msrb.mxu3 %v267_v5 }
  0x86   :  { %579 = vmatmul.f32.vlgmr.msrb.gmra.mxu2 %v25_v6  ;;  %599 = vmatmul.f32.vlgmr.msrb.gmra.mxu3 %v26_v7 }
  0x87   :  { %536 = vmatpush.msrb.mxu0 %v221_v8  ;;  %556 = vmatpush.msrb.mxu1 %v237_v9 }
  0x89   :  { %537 = vmatpush.msrb.mxu0 %v220_v10  ;;  %557 = vmatpush.msrb.mxu1 %v236_v11 }
  0x8b   :  { %538 = vmatpush.msrb.mxu0 %v219_v12  ;;  %558 = vmatpush.msrb.mxu1 %v235_v13 }
  0x8c   :  { %539 = vmatmul.f32.vlgmr.msrb.gmra.mxu0 %v23_v14  ;;  %559 = vmatmul.f32.vlgmr.msrb.gmra.mxu1 %v24_v15 }
  0xc1   :  { %v360_v17 = vpop.f32.mrf.mxu3 }
  0xc2   :  { %v340_v16 = vpop.f32.mrf.mxu2  ;;  %606 = vst [vmem:[%s1504_s2 + $0x6] sm:$0x3] %v360_v17 }
  0xc3   :  { %v300_v18 = vpop.f32.mrf.mxu0  ;;  %605 = vst [vmem:[%s1504_s2 + $0x4] sm:$0x3] %v340_v16 }
  0xc4   :  { %v320_v19 = vpop.f32.mrf.mxu1  ;;  %603 = vst [vmem:[%s1504_s2] sm:$0x3] %v300_v18 }
  0xc5   :  { %604 = vst [vmem:[%s1504_s2 + $0x2] sm:$0x3] %v320_v19 }
  0xe5   :  { %v420_v20 = vpop.f32.mrf.mxu2  ;;  %v440_v21 = vpop.f32.mrf.mxu3 }
  0xe6   :  { %v380_v22 = vpop.f32.mrf.mxu0  ;;  %v400_v23 = vpop.f32.mrf.mxu1  ;;  %609 = vst [vmem:[%s1504_s2 + $0xc] sm:$0x3] %v420_v20 }
  0xe7   :  { %607 = vst [vmem:[%s1504_s2 + $0x8] sm:$0x3] %v380_v22 }
  0xe8   :  { %608 = vst [vmem:[%s1504_s2 + $0xa] sm:$0x3] %v400_v23 }
  0xe9   :  { %610 = vst [vmem:[%s1504_s2 + $0xe] sm:$0x3] %v440_v21 }
  0xff   :  { %v500_v24 = vpop.f32.mrf.mxu2  ;;  %v520_v25 = vpop.f32.mrf.mxu3 }
 0x100   :  { %v460_v26 = vpop.f32.mrf.mxu0  ;;  %v480_v27 = vpop.f32.mrf.mxu1  ;;  %613 = vst [vmem:[%s1504_s2 + $0x14] sm:$0x3] %v500_v24 }
 0x101   :  { %611 = vst [vmem:[%s1504_s2 + $0x10] sm:$0x3] %v460_v26 }
 0x102   :  { %612 = vst [vmem:[%s1504_s2 + $0x12] sm:$0x3] %v480_v27 }
 0x103   :  { %614 = vst [vmem:[%s1504_s2 + $0x16] sm:$0x3] %v520_v25 }
 0x109   :  { %v540_v28 = vpop.f32.mrf.mxu0  ;;  %v560_v29 = vpop.f32.mrf.mxu1 }
 0x10a   :  { %615 = vst [vmem:[%s1504_s2 + $0x18] sm:$0x3] %v540_v28  ;;  %v580_v30 = vpop.f32.mrf.mxu2  ;;  %v600_v31 = vpop.f32.mrf.mxu3 }
 0x10b   :  { %616 = vst [vmem:[%s1504_s2 + $0x1a] sm:$0x3] %v560_v29 }
 0x10c   :  { %617 = vst [vmem:[%s1504_s2 + $0x1c] sm:$0x3] %v580_v30 }
 0x10d   :  { %618 = vst [vmem:[%s1504_s2 + $0x1e] sm:$0x3] %v600_v31 }

// kernel: fno2d_forward.33
= control target key start
LH: loop header
LB: loop body
LE: loop exit
PB: predicated region body
PF: predicated region fallthrough
CT: control target
= control target key end

     0   :  { %s647_s12 = smov 0   ;;  %s1068_s0 = inlined_call_operand.vmem [shape: f32[2,16,128], index: 0, kind: input, shape index: {}]   ;;  %s1069_s1 = inlined_call_operand.vmem [shape: f32[32,16], index: 1, kind: input, shape index: {}]   ;;  %s1070_s2 = inlined_call_operand.vmem [shape: f32[256,512], index: 2, kind: input, shape index: {}]   ;;  %s1071_s3 = inlined_call_operand.vmem [shape: bf16[2,16,512], index: 3, kind: output, shape index: {}]  }
   0x1 LB: > { %s594_s13 = sadd.s32 4294967295, %s625_s12   ;;  %p598_p0 = scmp.ge.s32.totalorder %s625_s12, 1  ;;  %s625_s12 = sphi %s647_s12, %s13_s12  }
   0x2   : > { %p137_p1 = scmp.lt.s32.totalorder %s625_s12, 3 }
   0x4   : > { %p138_p2 = pnand %p598_p0, %p137_p1 }
   0x5   : > { %p161_p3 = scmp.lt.s32.totalorder (!%p138_p2), %s594_s13, 1 }
   0x6   : > { %141 = sbr.rel (%p138_p2) target bundleno = 321 (0x141), region = 32 }
   0xb   : > { %s1073_s13 = smov (!%p161_p3, %s594_s13), 1  ;;  %v279_v0 = vld [vmem:[%s1070_s2 + $0x1e0] sm:$0xff]  ;;  %v280_v1 = vld [vmem:[%s1070_s2 + $0x1e8] sm:$0xff]  ;;  %vm177_vm0 = vcmask 130048   ;;  %v175_v41 = vld [vmem:[%s1069_s1 + $0x10] sm:$0xff] }
   0xc   : > { %v275_v2 = vld [vmem:[%s1070_s2 + $0x1c0] sm:$0xff]  ;;  %347 = vmatpush.msra.mxu1 %v279_v0  ;;  %393 = vmatpush.msra.mxu3 %v280_v1  ;;  %v276_v3 = vld [vmem:[%s1070_s2 + $0x1c8] sm:$0xff]  ;;  %s609_s22 = sshll.u32 %s1073_s13, 4  ;;  %v176_v57 = vld [vmem:[%s1069_s1 + $0x18] sm:$0xff]  ;;  %s610_s5 = sshll.u32 %s1073_s13, 5 }
   0xd   : > { %v271_v4 = vld [vmem:[%s1070_s2 + $0x1a0] sm:$0xff]  ;;  %s165_s27 = scalar_lea.vmem %s1068_s0, %s609_s22  ;;  %v272_v5 = vld [vmem:[%s1070_s2 + $0x1a8] sm:$0xff]  ;;  %v281_v59 = vld [vmem:[%s1070_s2 + $0x1f0] sm:$0xff]  ;;  %s170_s8 = scalar_lea.vmem %s1071_s3, %s610_s5 }
   0xe   : > { %348 = vmatpush.msra.mxu1 %v275_v2  ;;  %394 = vmatpush.msra.mxu3 %v276_v3  ;;  %v172_v6 = vld [vmem:[%s165_s27 + $0x8] sm:$0xff]  ;;  %v171_v7 = vld [vmem:[%s165_s27] sm:$0xff]  ;;  %v282_v60 = vld [vmem:[%s1070_s2 + $0x1f8] sm:$0xff] }
   0xf   : > { %v267_v8 = vld [vmem:[%s1070_s2 + $0x180] sm:$0xff]  ;;  %204 = vmatpush.msra.mxu0 %v172_v6  ;;  %v268_v10 = vld [vmem:[%s1070_s2 + $0x188] sm:$0xff]  ;;  %v277_v63 = vld [vmem:[%s1070_s2 + $0x1d0] sm:$0xff] }
  0x10   : > { %v173_v9 = vld [vmem:[%s1069_s1] sm:$0xff]  ;;  %349 = vmatpush.msra.mxu1 %v271_v4  ;;  %395 = vmatpush.msra.mxu3 %v272_v5  ;;  %v264_v13 = vld [vmem:[%s1070_s2 + $0x168] sm:$0xff]  ;;  %v278_v0 = vld [vmem:[%s1070_s2 + $0x1d8] sm:$0xff] }
  0x11   : > { %v263_v11 = vld [vmem:[%s1070_s2 + $0x160] sm:$0xff]  ;;  %205 = vmatpush.msra.mxu0 %v171_v7  ;;  %v344_v14 = vld [vmem:[%s1070_s2 + $0x3e8] sm:$0xff]  ;;  %v273_v3 = vld [vmem:[%s1070_s2 + $0x1b0] sm:$0xff] }
  0x12   : > { %v343_v12 = vld [vmem:[%s1070_s2 + $0x3e0] sm:$0xff]  ;;  %350 = vmatpush.msra.mxu1 %v267_v8  ;;  %603 = vmatmul.msk.f32.vlgmr.msra.gmra.mxu0 %vm177_vm0, %v173_v9  ;;  %v260_v17 = vld [vmem:[%s1070_s2 + $0x148] sm:$0xff]  ;;  %v274_v4 = vld [vmem:[%s1070_s2 + $0x1b8] sm:$0xff] }
  0x13   : > { %396 = vmatpush.msra.mxu3 %v268_v10  ;;  %v259_v15 = vld [vmem:[%s1070_s2 + $0x140] sm:$0xff]  ;;  %370 = vmatpush.msra.mxu2 %v343_v12  ;;  %v340_v18 = vld [vmem:[%s1070_s2 + $0x3c8] sm:$0xff]  ;;  %v269_v7 = vld [vmem:[%s1070_s2 + $0x190] sm:$0xff] }
  0x14   : > { %v339_v16 = vld [vmem:[%s1070_s2 + $0x3c0] sm:$0xff]  ;;  %351 = vmatpush.msra.mxu1 %v263_v11  ;;  %416 = vmatpush.msrb.mxu0 %v344_v14  ;;  %v256_v21 = vld [vmem:[%s1070_s2 + $0x128] sm:$0xff]  ;;  %v270_v8 = vld [vmem:[%s1070_s2 + $0x198] sm:$0xff] }
  0x15   : > { %397 = vmatpush.msra.mxu3 %v264_v13  ;;  %v255_v19 = vld [vmem:[%s1070_s2 + $0x120] sm:$0xff]  ;;  %371 = vmatpush.msra.mxu2 %v339_v16  ;;  %v336_v22 = vld [vmem:[%s1070_s2 + $0x3a8] sm:$0xff]  ;;  %v265_v11 = vld [vmem:[%s1070_s2 + $0x170] sm:$0xff] }
  0x16   : > { %v335_v20 = vld [vmem:[%s1070_s2 + $0x3a0] sm:$0xff]  ;;  %352 = vmatpush.msra.mxu1 %v259_v15  ;;  %417 = vmatpush.msrb.mxu0 %v340_v18  ;;  %v174_v25 = vld [vmem:[%s1069_s1 + $0x8] sm:$0xff]  ;;  %v266_v12 = vld [vmem:[%s1070_s2 + $0x178] sm:$0xff] }
  0x17   : > { %398 = vmatpush.msra.mxu3 %v260_v17  ;;  %v251_v23 = vld [vmem:[%s1070_s2 + $0x100] sm:$0xff]  ;;  %v252_v26 = vld [vmem:[%s1070_s2 + $0x108] sm:$0xff]  ;;  %372 = vmatpush.msra.mxu2 %v335_v20  ;;  %v261_v14 = vld [vmem:[%s1070_s2 + $0x150] sm:$0xff] }
  0x18   : > { %v331_v24 = vld [vmem:[%s1070_s2 + $0x380] sm:$0xff]  ;;  %353 = vmatpush.msra.mxu1 %v255_v19  ;;  %418 = vmatpush.msrb.mxu0 %v336_v22  ;;  %v332_v28 = vld [vmem:[%s1070_s2 + $0x388] sm:$0xff]  ;;  %v262_v15 = vld [vmem:[%s1070_s2 + $0x158] sm:$0xff] }
  0x19   : > { %399 = vmatpush.msra.mxu3 %v256_v21  ;;  %v247_v27 = vld [vmem:[%s1070_s2 + $0xe0] sm:$0xff]  ;;  %v248_v29 = vld [vmem:[%s1070_s2 + $0xe8] sm:$0xff]  ;;  %373 = vmatpush.msra.mxu2 %v331_v24  ;;  %v257_v16 = vld [vmem:[%s1070_s2 + $0x130] sm:$0xff] }
  0x1a   : > { %354 = vmatpush.msra.mxu1 %v251_v23  ;;  %v327_v30 = vld [vmem:[%s1070_s2 + $0x360] sm:$0xff]  ;;  %604 = vmatmul.msk.f32.gmra.mxu0 %vm177_vm0, %v174_v25  ;;  %v328_v32 = vld [vmem:[%s1070_s2 + $0x368] sm:$0xff]  ;;  %v258_v17 = vld [vmem:[%s1070_s2 + $0x138] sm:$0xff] }
  0x1b   : > { %400 = vmatpush.msra.mxu3 %v252_v26  ;;  %v243_v31 = vld [vmem:[%s1070_s2 + $0xc0] sm:$0xff]  ;;  %v244_v33 = vld [vmem:[%s1070_s2 + $0xc8] sm:$0xff]  ;;  %419 = vmatpush.msrb.mxu0 %v332_v28  ;;  %v253_v18 = vld [vmem:[%s1070_s2 + $0x110] sm:$0xff] }
  0x1c   : > { %355 = vmatpush.msra.mxu1 %v247_v27  ;;  %v323_v34 = vld [vmem:[%s1070_s2 + $0x340] sm:$0xff]  ;;  %374 = vmatpush.msra.mxu2 %v327_v30  ;;  %v324_v36 = vld [vmem:[%s1070_s2 + $0x348] sm:$0xff]  ;;  %v254_v19 = vld [vmem:[%s1070_s2 + $0x118] sm:$0xff] }
  0x1d   : > { %401 = vmatpush.msra.mxu3 %v248_v29  ;;  %v239_v35 = vld [vmem:[%s1070_s2 + $0xa0] sm:$0xff]  ;;  %v240_v37 = vld [vmem:[%s1070_s2 + $0xa8] sm:$0xff]  ;;  %420 = vmatpush.msrb.mxu0 %v328_v32  ;;  %v249_v22 = vld [vmem:[%s1070_s2 + $0xf0] sm:$0xff] }
  0x1e   : > { %356 = vmatpush.msra.mxu1 %v243_v31  ;;  %v319_v38 = vld [vmem:[%s1070_s2 + $0x320] sm:$0xff]  ;;  %375 = vmatpush.msra.mxu2 %v323_v34  ;;  %v320_v40 = vld [vmem:[%s1070_s2 + $0x328] sm:$0xff]  ;;  %v345_v23 = vld [vmem:[%s1070_s2 + $0x3f0] sm:$0xff] }
  0x1f   : > { %402 = vmatpush.msra.mxu3 %v244_v33  ;;  %v235_v39 = vld [vmem:[%s1070_s2 + $0x80] sm:$0xff]  ;;  %v236_v42 = vld [vmem:[%s1070_s2 + $0x88] sm:$0xff]  ;;  %421 = vmatpush.msrb.mxu0 %v324_v36  ;;  %v250_v24 = vld [vmem:[%s1070_s2 + $0xf8] sm:$0xff] }
  0x20   : > { %357 = vmatpush.msra.mxu1 %v239_v35  ;;  %v231_v43 = vld [vmem:[%s1070_s2 + $0x60] sm:$0xff]  ;;  %376 = vmatpush.msra.mxu2 %v319_v38  ;;  %v232_v45 = vld [vmem:[%s1070_s2 + $0x68] sm:$0xff]  ;;  %v346_v25 = vld [vmem:[%s1070_s2 + $0x3f8] sm:$0xff] }
  0x21   : > { %403 = vmatpush.msra.mxu3 %v240_v37  ;;  %v315_v44 = vld [vmem:[%s1070_s2 + $0x300] sm:$0xff]  ;;  %422 = vmatpush.msrb.mxu0 %v320_v40  ;;  %v316_v46 = vld [vmem:[%s1070_s2 + $0x308] sm:$0xff]  ;;  %v245_v26 = vld [vmem:[%s1070_s2 + $0xd0] sm:$0xff] }
  0x22   : > { %358 = vmatpush.msra.mxu1 %v235_v39  ;;  %605 = vmatmul.msk.f32.gmra.mxu0 %vm177_vm0, %v175_v41  ;;  %v227_v47 = vld [vmem:[%s1070_s2 + $0x40] sm:$0xff]  ;;  %v228_v49 = vld [vmem:[%s1070_s2 + $0x48] sm:$0xff]  ;;  %v341_v27 = vld [vmem:[%s1070_s2 + $0x3d0] sm:$0xff] }
  0x23   : > { %404 = vmatpush.msra.mxu3 %v236_v42  ;;  %v311_v48 = vld [vmem:[%s1070_s2 + $0x2e0] sm:$0xff]  ;;  %377 = vmatpush.msra.mxu2 %v315_v44  ;;  %v312_v50 = vld [vmem:[%s1070_s2 + $0x2e8] sm:$0xff]  ;;  %v246_v28 = vld [vmem:[%s1070_s2 + $0xd8] sm:$0xff] }
  0x24   : > { %359 = vmatpush.msra.mxu1 %v231_v43  ;;  %v223_v51 = vld [vmem:[%s1070_s2 + $0x20] sm:$0xff]  ;;  %423 = vmatpush.msrb.mxu0 %v316_v46  ;;  %v224_v53 = vld [vmem:[%s1070_s2 + $0x28] sm:$0xff]  ;;  %v342_v29 = vld [vmem:[%s1070_s2 + $0x3d8] sm:$0xff] }
  0x25   : > { %405 = vmatpush.msra.mxu3 %v232_v45  ;;  %v307_v52 = vld [vmem:[%s1070_s2 + $0x2c0] sm:$0xff]  ;;  %378 = vmatpush.msra.mxu2 %v311_v48  ;;  %v308_v54 = vld [vmem:[%s1070_s2 + $0x2c8] sm:$0xff]  ;;  %v241_v30 = vld [vmem:[%s1070_s2 + $0xb0] sm:$0xff] }
  0x26   : > { %360 = vmatpush.msra.mxu1 %v227_v47  ;;  %v219_v55 = vld [vmem:[%s1070_s2] sm:$0xff]  ;;  %424 = vmatpush.msrb.mxu0 %v312_v50  ;;  %v220_v58 = vld [vmem:[%s1070_s2 + $0x8] sm:$0xff]  ;;  %v337_v31 = vld [vmem:[%s1070_s2 + $0x3b0] sm:$0xff] }
  0x27   : > { %406 = vmatpush.msra.mxu3 %v228_v49  ;;  %v303_v56 = vld [vmem:[%s1070_s2 + $0x2a0] sm:$0xff]  ;;  %379 = vmatpush.msra.mxu2 %v307_v52  ;;  %v304_v61 = vld [vmem:[%s1070_s2 + $0x2a8] sm:$0xff]  ;;  %v242_v32 = vld [vmem:[%s1070_s2 + $0xb8] sm:$0xff] }
  0x28   : > { %361 = vmatpush.msra.mxu1 %v223_v51  ;;  %425 = vmatpush.msrb.mxu0 %v308_v54  ;;  %v299_v62 = vld [vmem:[%s1070_s2 + $0x280] sm:$0xff]  ;;  %v300_v1 = vld [vmem:[%s1070_s2 + $0x288] sm:$0xff]  ;;  %v338_v33 = vld [vmem:[%s1070_s2 + $0x3b8] sm:$0xff] }
  0x29   : > { %407 = vmatpush.msra.mxu3 %v224_v53  ;;  %380 = vmatpush.msra.mxu2 %v303_v56  ;;  %v295_v2 = vld [vmem:[%s1070_s2 + $0x260] sm:$0xff]  ;;  %v296_v5 = vld [vmem:[%s1070_s2 + $0x268] sm:$0xff]  ;;  %v237_v34 = vld [vmem:[%s1070_s2 + $0x90] sm:$0xff] }
  0x2a   : > { %362 = vmatpush.msra.mxu1 %v219_v55  ;;  %606 = vmatmul.msk.f32.gmra.mxu0 %vm177_vm0, %v176_v57  ;;  %v291_v6 = vld [vmem:[%s1070_s2 + $0x240] sm:$0xff]  ;;  %v292_v9 = vld [vmem:[%s1070_s2 + $0x248] sm:$0xff]  ;;  %v333_v35 = vld [vmem:[%s1070_s2 + $0x390] sm:$0xff] }
  0x2b   : > { %408 = vmatpush.msra.mxu3 %v220_v58  ;;  %426 = vmatpush.msrb.mxu0 %v304_v61  ;;  %v287_v10 = vld [vmem:[%s1070_s2 + $0x220] sm:$0xff]  ;;  %v288_v13 = vld [vmem:[%s1070_s2 + $0x228] sm:$0xff]  ;;  %v238_v36 = vld [vmem:[%s1070_s2 + $0x98] sm:$0xff] }
  0x2c   : > { %439 = vmatpush.msrb.mxu1 %v281_v59  ;;  %381 = vmatpush.msra.mxu2 %v299_v62  ;;  %v283_v20 = vld [vmem:[%s1070_s2 + $0x200] sm:$0xff]  ;;  %v284_v21 = vld [vmem:[%s1070_s2 + $0x208] sm:$0xff]  ;;  %v334_v37 = vld [vmem:[%s1070_s2 + $0x398] sm:$0xff] }
  0x2d   : > { %485 = vmatpush.msrb.mxu3 %v282_v60  ;;  %427 = vmatpush.msrb.mxu0 %v300_v1  ;;  %v233_v38 = vld [vmem:[%s1070_s2 + $0x70] sm:$0xff]  ;;  %v234_v40 = vld [vmem:[%s1070_s2 + $0x78] sm:$0xff] }
  0x2e   : > { %440 = vmatpush.msrb.mxu1 %v277_v63  ;;  %382 = vmatpush.msra.mxu2 %v295_v2  ;;  %v329_v39 = vld [vmem:[%s1070_s2 + $0x370] sm:$0xff]  ;;  %v330_v41 = vld [vmem:[%s1070_s2 + $0x378] sm:$0xff] }
  0x2f   : > { %486 = vmatpush.msrb.mxu3 %v278_v0  ;;  %428 = vmatpush.msrb.mxu0 %v296_v5  ;;  %v229_v42 = vld [vmem:[%s1070_s2 + $0x50] sm:$0xff]  ;;  %v230_v44 = vld [vmem:[%s1070_s2 + $0x58] sm:$0xff] }
  0x30   : > { %441 = vmatpush.msrb.mxu1 %v273_v3  ;;  %383 = vmatpush.msra.mxu2 %v291_v6  ;;  %v325_v43 = vld [vmem:[%s1070_s2 + $0x350] sm:$0xff]  ;;  %v326_v45 = vld [vmem:[%s1070_s2 + $0x358] sm:$0xff] }
  0x31   : > { %487 = vmatpush.msrb.mxu3 %v274_v4  ;;  %429 = vmatpush.msrb.mxu0 %v292_v9  ;;  %v225_v46 = vld [vmem:[%s1070_s2 + $0x30] sm:$0xff]  ;;  %v226_v48 = vld [vmem:[%s1070_s2 + $0x38] sm:$0xff] }
  0x32   : > { %442 = vmatpush.msrb.mxu1 %v269_v7  ;;  %384 = vmatpush.msra.mxu2 %v287_v10  ;;  %v321_v47 = vld [vmem:[%s1070_s2 + $0x330] sm:$0xff]  ;;  %v322_v49 = vld [vmem:[%s1070_s2 + $0x338] sm:$0xff] }
  0x33   : > { %488 = vmatpush.msrb.mxu3 %v270_v8  ;;  %430 = vmatpush.msrb.mxu0 %v288_v13  ;;  %v221_v50 = vld [vmem:[%s1070_s2 + $0x10] sm:$0xff]  ;;  %v222_v52 = vld [vmem:[%s1070_s2 + $0x18] sm:$0xff] }
  0x34   : > { %443 = vmatpush.msrb.mxu1 %v265_v11  ;;  %385 = vmatpush.msra.mxu2 %v283_v20  ;;  %v317_v51 = vld [vmem:[%s1070_s2 + $0x310] sm:$0xff]  ;;  %v318_v53 = vld [vmem:[%s1070_s2 + $0x318] sm:$0xff] }
  0x35   : > { %489 = vmatpush.msrb.mxu3 %v266_v12  ;;  %431 = vmatpush.msrb.mxu0 %v284_v21  ;;  %v313_v54 = vld [vmem:[%s1070_s2 + $0x2f0] sm:$0xff]  ;;  %v314_v55 = vld [vmem:[%s1070_s2 + $0x2f8] sm:$0xff] }
  0x36   : > { %444 = vmatpush.msrb.mxu1 %v261_v14  ;;  %462 = vmatpush.msrb.mxu2 %v345_v23  ;;  %v309_v56 = vld [vmem:[%s1070_s2 + $0x2d0] sm:$0xff]  ;;  %v310_v57 = vld [vmem:[%s1070_s2 + $0x2d8] sm:$0xff] }
  0x37   : > { %490 = vmatpush.msrb.mxu3 %v262_v15  ;;  %508 = vmatpush.msra.mxu0 %v346_v25  ;;  %v305_v58 = vld [vmem:[%s1070_s2 + $0x2b0] sm:$0xff]  ;;  %v306_v59 = vld [vmem:[%s1070_s2 + $0x2b8] sm:$0xff] }
  0x38   : > { %445 = vmatpush.msrb.mxu1 %v257_v16  ;;  %463 = vmatpush.msrb.mxu2 %v341_v27  ;;  %v301_v60 = vld [vmem:[%s1070_s2 + $0x290] sm:$0xff]  ;;  %v302_v61 = vld [vmem:[%s1070_s2 + $0x298] sm:$0xff] }
  0x39   : > { %491 = vmatpush.msrb.mxu3 %v258_v17  ;;  %509 = vmatpush.msra.mxu0 %v342_v29  ;;  %v297_v62 = vld [vmem:[%s1070_s2 + $0x270] sm:$0xff]  ;;  %v298_v63 = vld [vmem:[%s1070_s2 + $0x278] sm:$0xff] }
  0x3a   : > { %446 = vmatpush.msrb.mxu1 %v253_v18  ;;  %464 = vmatpush.msrb.mxu2 %v337_v31  ;;  %v293_v0 = vld [vmem:[%s1070_s2 + $0x250] sm:$0xff]  ;;  %v294_v1 = vld [vmem:[%s1070_s2 + $0x258] sm:$0xff] }
  0x3b   : > { %492 = vmatpush.msrb.mxu3 %v254_v19  ;;  %510 = vmatpush.msra.mxu0 %v338_v33  ;;  %v289_v2 = vld [vmem:[%s1070_s2 + $0x230] sm:$0xff]  ;;  %v290_v3 = vld [vmem:[%s1070_s2 + $0x238] sm:$0xff] }
  0x3c   : > { %447 = vmatpush.msrb.mxu1 %v249_v22  ;;  %465 = vmatpush.msrb.mxu2 %v333_v35  ;;  %v285_v4 = vld [vmem:[%s1070_s2 + $0x210] sm:$0xff]  ;;  %v286_v5 = vld [vmem:[%s1070_s2 + $0x218] sm:$0xff] }
  0x3d   : > { %493 = vmatpush.msrb.mxu3 %v250_v24  ;;  %511 = vmatpush.msra.mxu0 %v334_v37 }
  0x3e   : > { %448 = vmatpush.msrb.mxu1 %v245_v26  ;;  %466 = vmatpush.msrb.mxu2 %v329_v39 }
  0x3f   : > { %494 = vmatpush.msrb.mxu3 %v246_v28  ;;  %512 = vmatpush.msra.mxu0 %v330_v41 }
  0x40   : > { %449 = vmatpush.msrb.mxu1 %v241_v30  ;;  %467 = vmatpush.msrb.mxu2 %v325_v43 }
  0x41   : > { %495 = vmatpush.msrb.mxu3 %v242_v32  ;;  %513 = vmatpush.msra.mxu0 %v326_v45 }
  0x42   : > { %450 = vmatpush.msrb.mxu1 %v237_v34  ;;  %468 = vmatpush.msrb.mxu2 %v321_v47 }
  0x43   : > { %496 = vmatpush.msrb.mxu3 %v238_v36  ;;  %514 = vmatpush.msra.mxu0 %v322_v49 }
  0x44   : > { %451 = vmatpush.msrb.mxu1 %v233_v38  ;;  %469 = vmatpush.msrb.mxu2 %v317_v51 }
  0x45   : > { %497 = vmatpush.msrb.mxu3 %v234_v40  ;;  %515 = vmatpush.msra.mxu0 %v318_v53 }
  0x46   : > { %452 = vmatpush.msrb.mxu1 %v229_v42  ;;  %470 = vmatpush.msrb.mxu2 %v313_v54 }
  0x47   : > { %498 = vmatpush.msrb.mxu3 %v230_v44  ;;  %516 = vmatpush.msra.mxu0 %v314_v55 }
  0x48   : > { %453 = vmatpush.msrb.mxu1 %v225_v46  ;;  %471 = vmatpush.msrb.mxu2 %v309_v56 }
  0x49   : > { %499 = vmatpush.msrb.mxu3 %v226_v48  ;;  %517 = vmatpush.msra.mxu0 %v310_v57 }
  0x4a   : > { %454 = vmatpush.msrb.mxu1 %v221_v50  ;;  %472 = vmatpush.msrb.mxu2 %v305_v58 }
  0x4b   : > { %500 = vmatpush.msrb.mxu3 %v222_v52  ;;  %518 = vmatpush.msra.mxu0 %v306_v59 }
  0x4c   : > { %473 = vmatpush.msrb.mxu2 %v301_v60 }
  0x4d   : > { %519 = vmatpush.msra.mxu0 %v302_v61 }
  0x4e   : > { %474 = vmatpush.msrb.mxu2 %v297_v62 }
  0x4f   : > { %520 = vmatpush.msra.mxu0 %v298_v63 }
  0x50   : > { %475 = vmatpush.msrb.mxu2 %v293_v0 }
  0x51   : > { %521 = vmatpush.msra.mxu0 %v294_v1 }
  0x52   : > { %476 = vmatpush.msrb.mxu2 %v289_v2 }
  0x53   : > { %522 = vmatpush.msra.mxu0 %v290_v3 }
  0x54   : > { %477 = vmatpush.msrb.mxu2 %v285_v4 }
  0x55   : > { %523 = vmatpush.msra.mxu0 %v286_v5 }
  0x8f   : > { %v207_v6 = vpop.f32.mrf.mxu0 }
  0x90   : > { %363 = vmatmul.f32.vlgmr.msra.gmra.mxu1 %v207_v6  ;;  %409 = vmatmul.f32.vlgmr.msra.gmra.mxu3 %v207_v6 }
  0x97   : > { %v210_v7 = vpop.f32.mrf.mxu0 }
  0x98   : > { %366 = vmatmul.f32.gmra.mxu1 %v210_v7  ;;  %412 = vmatmul.f32.gmra.mxu3 %v210_v7 }
  0x9f   : > { %v213_v8 = vpop.f32.mrf.mxu0 }
  0xa0   : > { %386 = vmatmul.f32.vlgmr.msra.gmra.mxu2 %v213_v8  ;;  %432 = vmatmul.f32.vlgmr.msrb.gmra.mxu0 %v213_v8 }
  0xa1   : > { %455 = vmatmul.f32.vlgmr.msrb.gmra.mxu1 %v207_v6  ;;  %501 = vmatmul.f32.vlgmr.msrb.gmra.mxu3 %v207_v6 }
  0xa7   : > { %v216_v9 = vpop.f32.mrf.mxu0 }
  0xa8   : > { %389 = vmatmul.f32.gmra.mxu2 %v216_v9  ;;  %435 = vmatmul.f32.gmra.mxu0 %v216_v9 }
  0xa9   : > { %458 = vmatmul.f32.gmra.mxu1 %v210_v7  ;;  %504 = vmatmul.f32.gmra.mxu3 %v210_v7 }
  0xb0   : > { %478 = vmatmul.f32.vlgmr.msrb.gmra.mxu2 %v213_v8  ;;  %524 = vmatmul.f32.vlgmr.msra.gmra.mxu0 %v213_v8 }
  0xb8   : > { %481 = vmatmul.f32.gmra.mxu2 %v216_v9  ;;  %527 = vmatmul.f32.gmra.mxu0 %v216_v9 }
 0x10d   : > { %v364_v10 = vpop.f32.mrf.mxu1 }
 0x113   : > { %v410_v11 = vpop.f32.mrf.mxu3 }
 0x115   : > { %v367_v17 = vpop.f32.mrf.mxu1 }
 0x11b   : > { %v413_v19 = vpop.f32.mrf.mxu3 }
 0x11d   : > { %v433_v12 = vpop.f32.mrf.mxu0 }
 0x11e   : > { %v434_v14 = vadd.f32 %v433_v12, %v410_v11  ;;  %v456_v25 = vpop.f32.mrf.mxu1 }
 0x123   : > { %v387_v13 = vpop.f32.mrf.mxu2 }
 0x124   : > { %v388_v15 = vadd.f32 %v387_v13, %v364_v10  ;;  %v502_v26 = vpop.f32.mrf.mxu3 }
 0x125   : > { %v436_v16 = vpop.f32.mrf.mxu0 }
 0x126   : > { %v531_v18 = vpack.c.bf16 %v434_v14, %v388_v15  ;;  %v437_v21 = vadd.f32 %v436_v16, %v413_v19  ;;  %v459_v32 = vpop.f32.mrf.mxu1 }
 0x128   : > { %535 = vst [vmem:[%s170_s8] sm:$0xff] %v531_v18 }
 0x12b   : > { %v390_v20 = vpop.f32.mrf.mxu2 }
 0x12c   : > { %v391_v22 = vadd.f32 %v390_v20, %v367_v17  ;;  %v505_v33 = vpop.f32.mrf.mxu3 }
 0x12d   : > { %v525_v24 = vpop.f32.mrf.mxu0 }
 0x12e   : > { %v533_v23 = vpack.c.bf16 %v437_v21, %v391_v22  ;;  %v526_v28 = vadd.f32 %v525_v24, %v502_v26 }
 0x130   : > { %537 = vst [vmem:[%s170_s8 + $0x10] sm:$0xff] %v533_v23 }
 0x133   : > { %v479_v27 = vpop.f32.mrf.mxu2 }
 0x134   : > { %v480_v29 = vadd.f32 %v479_v27, %v456_v25 }
 0x135   : > { %v528_v31 = vpop.f32.mrf.mxu0 }
 0x136   : > { %v532_v30 = vpack.c.bf16 %v526_v28, %v480_v29  ;;  %v529_v35 = vadd.f32 %v528_v31, %v505_v33 }
 0x138   : > { %536 = vst [vmem:[%s170_s8 + $0x8] sm:$0xff] %v532_v30 }
 0x13b   : > { %v482_v34 = vpop.f32.mrf.mxu2 }
 0x13c   : > { %v483_v36 = vadd.f32 %v482_v34, %v459_v32 }
 0x13e   : > { %v534_v37 = vpack.c.bf16 %v529_v35, %v483_v36 }
 0x140   : > { %538 = vst [vmem:[%s170_s8 + $0x18] sm:$0xff] %v534_v37 }
 0x141 PF: > { %s13_s12 = sadd.s32 1, %s625_s12  }
 0x142   : > { %p10_p4 = scmp.ge.s32.totalorder %s13_s12, 4  }
 0x144   :  { %12 = sbr.rel (!%p10_p4) target bundleno = 1 (0x1), region = 62 }

// kernel: fno2d_forward.34
= control target key start
LH: loop header
LB: loop body
LE: loop exit
PB: predicated region body
PF: predicated region fallthrough
CT: control target
= control target key end

     0   :  { %s975_s1 = inlined_call_operand.vmem [shape: bf16[256,256], index: 1, kind: input, shape index: {}]   ;;  %s976_s0 = inlined_call_operand.vmem [shape: bf16[64,256], index: 0, kind: input, shape index: {}]   ;;  %s977_s2 = inlined_call_operand.vmem [shape: f32[1,256], index: 2, kind: input, shape index: {}]   ;;  %s978_s3 = inlined_call_operand.vmem [shape: bf16[64,256], index: 3, kind: input, shape index: {}]   ;;  %s979_s4 = inlined_call_operand.vmem [shape: bf16[64,256], index: 4, kind: output, shape index: {}]  }
   0x1   :  { %v529_v0 = vld [vmem:[%s975_s1 + $0x70] sm:$0xf]  ;;  %v622_v1 = vld [vmem:[%s975_s1 + $0x74] sm:$0xf0]  ;;  %v621_v5 = vld [vmem:[%s975_s1 + $0x74] sm:$0xf] }
   0x2   :  { %v593_v2 = vld [vmem:[%s975_s1 + $0xf0] sm:$0xf]  ;;  %v530_v3 = vor.u32 %v622_v1, %v529_v0  ;;  %v638_v4 = vld [vmem:[%s975_s1 + $0xf4] sm:$0xf0]  ;;  %v531_v6 = vld [vmem:[%s975_s1 + $0x78] sm:$0xf0] }
   0x3   :  { %v594_v7 = vor.u32 %v638_v4, %v593_v2  ;;  %v534_v8 = vor.u32 %v621_v5, %v531_v6  ;;  %v637_v9 = vld [vmem:[%s975_s1 + $0xf4] sm:$0xf]  ;;  %v595_v10 = vld [vmem:[%s975_s1 + $0xf8] sm:$0xf0]  ;;  %v521_v11 = vld [vmem:[%s975_s1 + $0x60] sm:$0xf] }
   0x4   :  { %263 = vmatpush.bf16.msra.mxu0 %v530_v3  ;;  %v598_v12 = vor.u32 %v637_v9, %v595_v10  ;;  %v620_v13 = vld [vmem:[%s975_s1 + $0x64] sm:$0xf0]  ;;  %v585_v14 = vld [vmem:[%s975_s1 + $0xe0] sm:$0xf]  ;;  %v619_v18 = vld [vmem:[%s975_s1 + $0x64] sm:$0xf] }
   0x5   :  { %v636_v15 = vld [vmem:[%s975_s1 + $0xe4] sm:$0xf0]  ;;  %292 = vmatpush.bf16.msra.mxu1 %v594_v7  ;;  %321 = vmatpush.bf16.msra.mxu2 %v534_v8  ;;  %v522_v16 = vor.u32 %v620_v13, %v521_v11  ;;  %v523_v19 = vld [vmem:[%s975_s1 + $0x68] sm:$0xf0]  ;;  %v635_v20 = vld [vmem:[%s975_s1 + $0xe4] sm:$0xf] }
   0x6   :  { %v586_v17 = vor.u32 %v636_v15, %v585_v14  ;;  %350 = vmatpush.bf16.msra.mxu3 %v598_v12  ;;  %v526_v21 = vor.u32 %v619_v18, %v523_v19  ;;  %v587_v22 = vld [vmem:[%s975_s1 + $0xe8] sm:$0xf0]  ;;  %v513_v23 = vld [vmem:[%s975_s1 + $0x50] sm:$0xf]  ;;  %v618_v24 = vld [vmem:[%s975_s1 + $0x54] sm:$0xf0] }
   0x7   :  { %v590_v25 = vor.u32 %v635_v20, %v587_v22  ;;  %v577_v26 = vld [vmem:[%s975_s1 + $0xd0] sm:$0xf]  ;;  %v634_v27 = vld [vmem:[%s975_s1 + $0xd4] sm:$0xf0]  ;;  %v617_v28 = vld [vmem:[%s975_s1 + $0x54] sm:$0xf]  ;;  %v514_v29 = vor.u32 %v618_v24, %v513_v23 }
   0x8   :  { %264 = vmatpush.bf16.msra.mxu0 %v522_v16  ;;  %v515_v30 = vld [vmem:[%s975_s1 + $0x58] sm:$0xf0]  ;;  %v633_v31 = vld [vmem:[%s975_s1 + $0xd4] sm:$0xf]  ;;  %v578_v33 = vor.u32 %v634_v27, %v577_v26  ;;  %v505_v35 = vld [vmem:[%s975_s1 + $0x40] sm:$0xf] }
   0x9   :  { %v579_v32 = vld [vmem:[%s975_s1 + $0xd8] sm:$0xf0]  ;;  %293 = vmatpush.bf16.msra.mxu1 %v586_v17  ;;  %322 = vmatpush.bf16.msra.mxu2 %v526_v21  ;;  %v518_v34 = vor.u32 %v617_v28, %v515_v30  ;;  %v616_v36 = vld [vmem:[%s975_s1 + $0x44] sm:$0xf0]  ;;  %v569_v37 = vld [vmem:[%s975_s1 + $0xc0] sm:$0xf] }
   0xa   :  { %351 = vmatpush.bf16.msra.mxu3 %v590_v25  ;;  %v582_v38 = vor.u32 %v633_v31, %v579_v32  ;;  %v632_v39 = vld [vmem:[%s975_s1 + $0xc4] sm:$0xf0]  ;;  %v615_v40 = vld [vmem:[%s975_s1 + $0x44] sm:$0xf]  ;;  %v507_v41 = vld [vmem:[%s975_s1 + $0x48] sm:$0xf0]  ;;  %v506_v44 = vor.u32 %v616_v36, %v505_v35 }
   0xb   :  { %v631_v42 = vld [vmem:[%s975_s1 + $0xc4] sm:$0xf]  ;;  %v571_v43 = vld [vmem:[%s975_s1 + $0xc8] sm:$0xf0]  ;;  %v570_v45 = vor.u32 %v632_v39, %v569_v37  ;;  %v510_v46 = vor.u32 %v615_v40, %v507_v41  ;;  %v497_v47 = vld [vmem:[%s975_s1 + $0x30] sm:$0xf] }
   0xc   :  { %265 = vmatpush.bf16.msra.mxu0 %v514_v29  ;;  %v614_v48 = vld [vmem:[%s975_s1 + $0x34] sm:$0xf0]  ;;  %v561_v49 = vld [vmem:[%s975_s1 + $0xb0] sm:$0xf]  ;;  %v574_v50 = vor.u32 %v631_v42, %v571_v43  ;;  %v613_v52 = vld [vmem:[%s975_s1 + $0x34] sm:$0xf] }
   0xd   :  { %294 = vmatpush.bf16.msra.mxu1 %v578_v33  ;;  %323 = vmatpush.bf16.msra.mxu2 %v518_v34  ;;  %v630_v51 = vld [vmem:[%s975_s1 + $0xb4] sm:$0xf0]  ;;  %v499_v53 = vld [vmem:[%s975_s1 + $0x38] sm:$0xf0]  ;;  %v629_v54 = vld [vmem:[%s975_s1 + $0xb4] sm:$0xf]  ;;  %v498_v56 = vor.u32 %v614_v48, %v497_v47 }
   0xe   :  { %352 = vmatpush.bf16.msra.mxu3 %v582_v38  ;;  %v563_v55 = vld [vmem:[%s975_s1 + $0xb8] sm:$0xf0]  ;;  %v562_v57 = vor.u32 %v630_v51, %v561_v49  ;;  %v502_v58 = vor.u32 %v613_v52, %v499_v53  ;;  %v489_v59 = vld [vmem:[%s975_s1 + $0x20] sm:$0xf]  ;;  %v612_v60 = vld [vmem:[%s975_s1 + $0x24] sm:$0xf0] }
   0xf   :  { %v553_v61 = vld [vmem:[%s975_s1 + $0xa0] sm:$0xf]  ;;  %v566_v62 = vor.u32 %v629_v54, %v563_v55  ;;  %v628_v63 = vld [vmem:[%s975_s1 + $0xa4] sm:$0xf0]  ;;  %v611_v0 = vld [vmem:[%s975_s1 + $0x24] sm:$0xf]  ;;  %v490_v4 = vor.u32 %v612_v60, %v489_v59 }
  0x10   :  { %266 = vmatpush.bf16.msra.mxu0 %v506_v44  ;;  %v491_v1 = vld [vmem:[%s975_s1 + $0x28] sm:$0xf0]  ;;  %v627_v2 = vld [vmem:[%s975_s1 + $0xa4] sm:$0xf]  ;;  %v554_v5 = vor.u32 %v628_v63, %v553_v61  ;;  %v481_v7 = vld [vmem:[%s975_s1 + $0x10] sm:$0xf] }
  0x11   :  { %295 = vmatpush.bf16.msra.mxu1 %v570_v45  ;;  %324 = vmatpush.bf16.msra.mxu2 %v510_v46  ;;  %v555_v3 = vld [vmem:[%s975_s1 + $0xa8] sm:$0xf0]  ;;  %v494_v6 = vor.u32 %v611_v0, %v491_v1  ;;  %v610_v8 = vld [vmem:[%s975_s1 + $0x14] sm:$0xf0]  ;;  %v545_v9 = vld [vmem:[%s975_s1 + $0x90] sm:$0xf] }
  0x12   :  { %353 = vmatpush.bf16.msra.mxu3 %v574_v50  ;;  %v558_v10 = vor.u32 %v627_v2, %v555_v3  ;;  %v626_v11 = vld [vmem:[%s975_s1 + $0x94] sm:$0xf0]  ;;  %v609_v12 = vld [vmem:[%s975_s1 + $0x14] sm:$0xf]  ;;  %v483_v13 = vld [vmem:[%s975_s1 + $0x18] sm:$0xf0]  ;;  %v482_v16 = vor.u32 %v610_v8, %v481_v7 }
  0x13   :  { %v625_v14 = vld [vmem:[%s975_s1 + $0x94] sm:$0xf]  ;;  %v547_v15 = vld [vmem:[%s975_s1 + $0x98] sm:$0xf0]  ;;  %v546_v17 = vor.u32 %v626_v11, %v545_v9  ;;  %v486_v18 = vor.u32 %v609_v12, %v483_v13  ;;  %v473_v19 = vld [vmem:[%s975_s1] sm:$0xf] }
  0x14   :  { %267 = vmatpush.bf16.msra.mxu0 %v498_v56  ;;  %v608_v20 = vld [vmem:[%s975_s1 + $0x4] sm:$0xf0]  ;;  %v537_v21 = vld [vmem:[%s975_s1 + $0x80] sm:$0xf]  ;;  %v550_v22 = vor.u32 %v625_v14, %v547_v15  ;;  %v607_v24 = vld [vmem:[%s975_s1 + $0x4] sm:$0xf] }
  0x15   :  { %296 = vmatpush.bf16.msra.mxu1 %v562_v57  ;;  %325 = vmatpush.bf16.msra.mxu2 %v502_v58  ;;  %v624_v23 = vld [vmem:[%s975_s1 + $0x84] sm:$0xf0]  ;;  %v475_v25 = vld [vmem:[%s975_s1 + $0x8] sm:$0xf0]  ;;  %v623_v26 = vld [vmem:[%s975_s1 + $0x84] sm:$0xf]  ;;  %v474_v28 = vor.u32 %v608_v20, %v473_v19 }
  0x16   :  { %354 = vmatpush.bf16.msra.mxu3 %v566_v62  ;;  %v539_v27 = vld [vmem:[%s975_s1 + $0x88] sm:$0xf0]  ;;  %v441_v29 = vld [vmem:[%s976_s0] sm:$0xf]  ;;  %v600_v30 = vld [vmem:[%s976_s0 + $0x4] sm:$0xf0]  ;;  %v538_v31 = vor.u32 %v624_v23, %v537_v21  ;;  %v478_v32 = vor.u32 %v607_v24, %v475_v25 }
  0x17   :  { %v599_v33 = vld [vmem:[%s976_s0 + $0x4] sm:$0xf]  ;;  %v443_v34 = vld [vmem:[%s976_s0 + $0x8] sm:$0xf0]  ;;  %v542_v35 = vor.u32 %v623_v26, %v539_v27  ;;  %v442_v36 = vor.u32 %v600_v30, %v441_v29  ;;  %v449_v38 = vld [vmem:[%s976_s0 + $0x10] sm:$0xf] }
  0x18   :  { %268 = vmatpush.bf16.msra.mxu0 %v490_v4  ;;  %v446_v37 = vor.u32 %v599_v33, %v443_v34  ;;  %v602_v39 = vld [vmem:[%s976_s0 + $0x14] sm:$0xf0]  ;;  %v601_v40 = vld [vmem:[%s976_s0 + $0x14] sm:$0xf]  ;;  %v451_v41 = vld [vmem:[%s976_s0 + $0x18] sm:$0xf0] }
  0x19   :  { %297 = vmatpush.bf16.msra.mxu1 %v554_v5  ;;  %326 = vmatpush.bf16.msra.mxu2 %v494_v6  ;;  %v450_v42 = vor.u32 %v602_v39, %v449_v38  ;;  %v454_v43 = vor.u32 %v601_v40, %v451_v41  ;;  %v457_v44 = vld [vmem:[%s976_s0 + $0x20] sm:$0xf]  ;;  %v604_v45 = vld [vmem:[%s976_s0 + $0x24] sm:$0xf0]  ;;  %v603_v46 = vld [vmem:[%s976_s0 + $0x24] sm:$0xf] }
  0x1a   :  { %355 = vmatpush.bf16.msra.mxu3 %v558_v10  ;;  %v459_v47 = vld [vmem:[%s976_s0 + $0x28] sm:$0xf0]  ;;  %v458_v48 = vor.u32 %v604_v45, %v457_v44  ;;  %v465_v50 = vld [vmem:[%s976_s0 + $0x30] sm:$0xf]  ;;  %v606_v51 = vld [vmem:[%s976_s0 + $0x34] sm:$0xf0] }
  0x1b   :  { %v462_v49 = vor.u32 %v603_v46, %v459_v47  ;;  %v605_v52 = vld [vmem:[%s976_s0 + $0x34] sm:$0xf]  ;;  %v467_v53 = vld [vmem:[%s976_s0 + $0x38] sm:$0xf0]  ;;  %v466_v54 = vor.u32 %v606_v51, %v465_v50  ;;  %v57_v56 = vld [vmem:[%s977_s2] sm:$0x3] }
  0x1c   :  { %269 = vmatpush.bf16.msra.mxu0 %v482_v16  ;;  %v470_v55 = vor.u32 %v605_v52, %v467_v53  ;;  %v907_v57 = vperm.slane %v57_v56, 0  ;;  %v379_v61 = vld [vmem:[%s978_s3] sm:$0xff]  ;;  %v913_v62 = vperm.slane %v57_v56, 1  ;;  %v380_v11 = vld [vmem:[%s978_s3 + $0x8] sm:$0xff]  ;;  %v381_v23 = vld [vmem:[%s978_s3 + $0x10] sm:$0xff] }
  0x1d   :  { %298 = vmatpush.bf16.msra.mxu1 %v546_v17  ;;  %327 = vmatpush.bf16.msra.mxu2 %v486_v18  ;;  %v387_v0 = vunpack.c.l.bf16 %v379_v61  ;;  %v388_v4 = vunpack.c.h.bf16 %v379_v61  ;;  %v389_v15 = vunpack.c.l.bf16 %v380_v11  ;;  %v390_v18 = vunpack.c.h.bf16 %v380_v11  ;;  %v382_v39 = vld [vmem:[%s978_s3 + $0x18] sm:$0xff]  ;;  %v383_v51 = vld [vmem:[%s978_s3 + $0x20] sm:$0xff] }
  0x1e   :  { %356 = vmatpush.bf16.msra.mxu3 %v550_v22  ;;  %v394_v46 = vunpack.c.h.bf16 %v382_v39  ;;  %v395_v56 = vunpack.c.l.bf16 %v383_v51  ;;  %v396_v61 = vunpack.c.h.bf16 %v383_v51 }
  0x20   :  { %270 = vmatpush.bf16.msra.mxu0 %v474_v28  ;;  %v391_v28 = vunpack.c.l.bf16 %v381_v23 }
  0x21   :  { %299 = vmatpush.bf16.msra.mxu1 %v538_v31  ;;  %328 = vmatpush.bf16.msra.mxu2 %v478_v32  ;;  %v392_v32 = vunpack.c.h.bf16 %v381_v23 }
  0x22   :  { %357 = vmatpush.bf16.msra.mxu3 %v542_v35 }
  0x23   :  { %271 = vmatmul.bf16.vlgmr.msra.gmra.mxu0 %v442_v36 }
  0x24   :  { %300 = vmatmul.bf16.vlgmr.msra.gmra.mxu1 %v446_v37  ;;  %329 = vmatmul.bf16.vlgmr.msra.gmra.mxu2 %v442_v36 }
  0x25   :  { %358 = vmatmul.bf16.vlgmr.msra.gmra.mxu3 %v446_v37 }
  0x33   :  { %276 = vmatmul.bf16.gmra.mxu0 %v450_v42 }
  0x34   :  { %305 = vmatmul.bf16.gmra.mxu1 %v454_v43  ;;  %334 = vmatmul.bf16.gmra.mxu2 %v450_v42 }
  0x35   :  { %363 = vmatmul.bf16.gmra.mxu3 %v454_v43  ;;  %v393_v43 = vunpack.c.l.bf16 %v382_v39 }
  0x43   :  { %281 = vmatmul.bf16.gmra.mxu0 %v458_v48 }
  0x44   :  { %310 = vmatmul.bf16.gmra.mxu1 %v462_v49  ;;  %339 = vmatmul.bf16.gmra.mxu2 %v458_v48 }
  0x45   :  { %368 = vmatmul.bf16.gmra.mxu3 %v462_v49 }
  0x53   :  { %286 = vmatmul.bf16.gmra.mxu0 %v466_v54 }
  0x54   :  { %315 = vmatmul.bf16.gmra.mxu1 %v470_v55  ;;  %344 = vmatmul.bf16.gmra.mxu2 %v466_v54 }
  0x55   :  { %373 = vmatmul.bf16.gmra.mxu3 %v470_v55 }
  0xa0   :  { %v272_v58 = vpop.f32.mrf.mxu0 }
  0xa1   :  { %v301_v59 = vpop.f32.mrf.mxu1  ;;  %v273_v60 = vadd.f32 %v272_v58, %v907_v57 }
  0xa3   :  { %v302_v63 = vadd.f32 %v301_v59, %v273_v60 }
  0xa5   :  { %v403_v7 = vadd.f32 %v387_v0, %v302_v63 }
  0xa7   :  { %v330_v1 = vpop.f32.mrf.mxu2 }
  0xa8   :  { %v331_v2 = vadd.f32 %v330_v1, %v913_v62  ;;  %v359_v3 = vpop.f32.mrf.mxu3  ;;  %v274_v5 = vpop.f32.mrf.mxu0 }
  0xa9   :  { %v303_v6 = vpop.f32.mrf.mxu1  ;;  %v275_v10 = vadd.f32 %v274_v5, %v907_v57  ;;  %v384_v5 = vld [vmem:[%s978_s3 + $0x28] sm:$0xff] }
  0xaa   :  { %v360_v8 = vadd.f32 %v359_v3, %v331_v2 }
  0xab   :  { %v304_v14 = vadd.f32 %v303_v6, %v275_v10 }
  0xac   :  { %v404_v9 = vadd.f32 %v388_v4, %v360_v8 }
  0xad   :  { %v405_v24 = vadd.f32 %v389_v15, %v304_v14 }
  0xae   :  { %v419_v12 = vpack.c.bf16 %v404_v9, %v403_v7  ;;  %v397_v9 = vunpack.c.l.bf16 %v384_v5 }
  0xaf   :  { %v332_v13 = vpop.f32.mrf.mxu2 }
  0xb0   :  { %427 = vst [vmem:[%s979_s4] sm:$0xff] %v419_v12  ;;  %v333_v16 = vadd.f32 %v332_v13, %v913_v62  ;;  %v361_v17 = vpop.f32.mrf.mxu3  ;;  %v277_v19 = vpop.f32.mrf.mxu0  ;;  %v398_v12 = vunpack.c.h.bf16 %v384_v5 }
  0xb1   :  { %v306_v20 = vpop.f32.mrf.mxu1  ;;  %v278_v22 = vadd.f32 %v277_v19, %v907_v57 }
  0xb2   :  { %v362_v21 = vadd.f32 %v361_v17, %v333_v16  ;;  %v385_v16 = vld [vmem:[%s978_s3 + $0x30] sm:$0xff] }
  0xb3   :  { %v307_v27 = vadd.f32 %v306_v20, %v278_v22  ;;  %v399_v22 = vunpack.c.l.bf16 %v385_v16 }
  0xb4   :  { %v406_v25 = vadd.f32 %v390_v18, %v362_v21 }
  0xb5   :  { %v407_v35 = vadd.f32 %v391_v28, %v307_v27 }
  0xb6   :  { %v420_v26 = vpack.c.bf16 %v406_v25, %v405_v24 }
  0xb7   :  { %v335_v29 = vpop.f32.mrf.mxu2 }
  0xb8   :  { %428 = vst [vmem:[%s979_s4 + $0x8] sm:$0xff] %v420_v26  ;;  %v336_v30 = vadd.f32 %v335_v29, %v913_v62  ;;  %v364_v31 = vpop.f32.mrf.mxu3  ;;  %v279_v33 = vpop.f32.mrf.mxu0  ;;  %v400_v26 = vunpack.c.h.bf16 %v385_v16 }
  0xb9   :  { %v308_v34 = vpop.f32.mrf.mxu1  ;;  %v280_v38 = vadd.f32 %v279_v33, %v907_v57 }
  0xba   :  { %v365_v36 = vadd.f32 %v364_v31, %v336_v30 }
  0xbb   :  { %v309_v42 = vadd.f32 %v308_v34, %v280_v38 }
  0xbc   :  { %v408_v37 = vadd.f32 %v392_v32, %v365_v36  ;;  %v386_v32 = vld [vmem:[%s978_s3 + $0x38] sm:$0xff] }
  0xbd   :  { %v409_v52 = vadd.f32 %v393_v43, %v309_v42  ;;  %v402_v39 = vunpack.c.h.bf16 %v386_v32 }
  0xbe   :  { %v421_v40 = vpack.c.bf16 %v408_v37, %v407_v35  ;;  %v401_v37 = vunpack.c.l.bf16 %v386_v32 }
  0xbf   :  { %v337_v41 = vpop.f32.mrf.mxu2 }
  0xc0   :  { %429 = vst [vmem:[%s979_s4 + $0x10] sm:$0xff] %v421_v40  ;;  %v338_v44 = vadd.f32 %v337_v41, %v913_v62  ;;  %v366_v45 = vpop.f32.mrf.mxu3  ;;  %v282_v47 = vpop.f32.mrf.mxu0 }
  0xc1   :  { %v311_v48 = vpop.f32.mrf.mxu1  ;;  %v283_v50 = vadd.f32 %v282_v47, %v907_v57 }
  0xc2   :  { %v367_v49 = vadd.f32 %v366_v45, %v338_v44 }
  0xc3   :  { %v312_v55 = vadd.f32 %v311_v48, %v283_v50 }
  0xc4   :  { %v410_v53 = vadd.f32 %v394_v46, %v367_v49 }
  0xc5   :  { %v411_v0 = vadd.f32 %v395_v56, %v312_v55 }
  0xc6   :  { %v422_v54 = vpack.c.bf16 %v410_v53, %v409_v52 }
  0xc7   :  { %v340_v58 = vpop.f32.mrf.mxu2 }
  0xc8   :  { %430 = vst [vmem:[%s979_s4 + $0x18] sm:$0xff] %v422_v54  ;;  %v341_v59 = vadd.f32 %v340_v58, %v913_v62  ;;  %v369_v60 = vpop.f32.mrf.mxu3  ;;  %v284_v63 = vpop.f32.mrf.mxu0 }
  0xc9   :  { %v313_v2 = vpop.f32.mrf.mxu1  ;;  %v285_v4 = vadd.f32 %v284_v63, %v907_v57 }
  0xca   :  { %v370_v1 = vadd.f32 %v369_v60, %v341_v59 }
  0xcb   :  { %v314_v8 = vadd.f32 %v313_v2, %v285_v4 }
  0xcc   :  { %v412_v3 = vadd.f32 %v396_v61, %v370_v1 }
  0xcd   :  { %v413_v17 = vadd.f32 %v397_v9, %v314_v8 }
  0xce   :  { %v423_v6 = vpack.c.bf16 %v412_v3, %v411_v0 }
  0xcf   :  { %v342_v7 = vpop.f32.mrf.mxu2 }
  0xd0   :  { %431 = vst [vmem:[%s979_s4 + $0x20] sm:$0xff] %v423_v6  ;;  %v343_v10 = vadd.f32 %v342_v7, %v913_v62  ;;  %v371_v11 = vpop.f32.mrf.mxu3  ;;  %v287_v13 = vpop.f32.mrf.mxu0 }
  0xd1   :  { %v288_v15 = vadd.f32 %v287_v13, %v907_v57  ;;  %v316_v19 = vpop.f32.mrf.mxu1 }
  0xd2   :  { %v372_v14 = vadd.f32 %v371_v11, %v343_v10 }
  0xd3   :  { %v317_v21 = vadd.f32 %v316_v19, %v288_v15 }
  0xd4   :  { %v414_v18 = vadd.f32 %v398_v12, %v372_v14 }
  0xd5   :  { %v415_v28 = vadd.f32 %v399_v22, %v317_v21 }
  0xd6   :  { %v424_v20 = vpack.c.bf16 %v414_v18, %v413_v17 }
  0xd7   :  { %v345_v23 = vpop.f32.mrf.mxu2 }
  0xd8   :  { %432 = vst [vmem:[%s979_s4 + $0x28] sm:$0xff] %v424_v20  ;;  %v346_v24 = vadd.f32 %v345_v23, %v913_v62  ;;  %v374_v25 = vpop.f32.mrf.mxu3  ;;  %v289_v27 = vpop.f32.mrf.mxu0 }
  0xd9   :  { %v290_v31 = vadd.f32 %v289_v27, %v907_v57  ;;  %v318_v34 = vpop.f32.mrf.mxu1 }
  0xda   :  { %v375_v29 = vadd.f32 %v374_v25, %v346_v24 }
  0xdb   :  { %v319_v36 = vadd.f32 %v318_v34, %v290_v31 }
  0xdc   :  { %v416_v30 = vadd.f32 %v400_v26, %v375_v29 }
  0xdd   :  { %v417_v42 = vadd.f32 %v401_v37, %v319_v36 }
  0xde   :  { %v425_v33 = vpack.c.bf16 %v416_v30, %v415_v28 }
  0xdf   :  { %v347_v35 = vpop.f32.mrf.mxu2 }
  0xe0   :  { %433 = vst [vmem:[%s979_s4 + $0x30] sm:$0xff] %v425_v33  ;;  %v348_v38 = vadd.f32 %v347_v35, %v913_v62  ;;  %v376_v40 = vpop.f32.mrf.mxu3 }
  0xe2   :  { %v377_v41 = vadd.f32 %v376_v40, %v348_v38 }
  0xe4   :  { %v418_v57 = vadd.f32 %v402_v39, %v377_v41 }
  0xe6   :  { %v426_v43 = vpack.c.bf16 %v418_v57, %v417_v42 }
  0xe8   :  { %434 = vst [vmem:[%s979_s4 + $0x38] sm:$0xff] %v426_v43 }

// kernel: fno2d_forward.35
= control target key start
LH: loop header
LB: loop body
LE: loop exit
PB: predicated region body
PF: predicated region fallthrough
CT: control target
= control target key end

     0   :  { %vm265_vm0 = vcmask 261120   ;;  %vm693_vm1 = vcmask 1041408   ;;  %vm695_vm2 = vcmask 1045508   ;;  %vm697_vm3 = vcmask 1043456   ;;  %s1217_s1 = inlined_call_operand.vmem [shape: bf16[32,128], index: 1, kind: input, shape index: {}]   ;;  %s1218_s0 = inlined_call_operand.vmem [shape: bf16[512,32], index: 0, kind: input, shape index: {}]   ;;  %s1219_s2 = inlined_call_operand.vmem [shape: f32[1,128], index: 2, kind: input, shape index: {}]   ;;  %s1220_s3 = inlined_call_operand.vmem [shape: bf16[2,128], index: 3, kind: input, shape index: {}]   ;;  %s1221_s4 = inlined_call_operand.vmem [shape: f32[2,1], index: 4, kind: input, shape index: {}]   ;;  %s1222_s5 = inlined_call_operand.vmem [shape: f32[2,512], index: 5, kind: output, shape index: {}]  }
   0x1   :  { %v906_v0 = vld [vmem:[%s1217_s1 + $0x8] sm:$0xff]  ;;  %v905_v1 = vld [vmem:[%s1217_s1] sm:$0xff]  ;;  %v895_v4 = vld [vmem:[%s1218_s0 + $0xb0] sm:$0xff] }
   0x2   :  { %368 = vmatpush.bf16.msra.mxu0 %v906_v0  ;;  %907 = vmatpush.bf16.msra.mxu2 %v906_v0  ;;  %v873_v2 = vld [vmem:[%s1218_s0] sm:$0xff]  ;;  %v874_v5 = vld [vmem:[%s1218_s0 + $0x8] sm:$0xff]  ;;  %v896_v7 = vld [vmem:[%s1218_s0 + $0xb8] sm:$0xff] }
   0x3   :  { %908 = vmatpush.bf16.msra.mxu3 %v906_v0  ;;  %v885_v3 = vld [vmem:[%s1218_s0 + $0x60] sm:$0xff]  ;;  %v886_v6 = vld [vmem:[%s1218_s0 + $0x68] sm:$0xff]  ;;  %v875_v8 = vld [vmem:[%s1218_s0 + $0x10] sm:$0xff] }
   0x4   :  { %v887_v9 = vld [vmem:[%s1218_s0 + $0x70] sm:$0xff]  ;;  %v897_v10 = vld [vmem:[%s1218_s0 + $0xc0] sm:$0xff]  ;;  %v876_v11 = vld [vmem:[%s1218_s0 + $0x18] sm:$0xff] }
   0x5   :  { %v888_v12 = vld [vmem:[%s1218_s0 + $0x78] sm:$0xff]  ;;  %v898_v13 = vld [vmem:[%s1218_s0 + $0xc8] sm:$0xff]  ;;  %v877_v14 = vld [vmem:[%s1218_s0 + $0x20] sm:$0xff] }
   0x6   :  { %369 = vmatpush.bf16.msra.mxu0 %v905_v1  ;;  %909 = vmatpush.bf16.msra.mxu2 %v905_v1  ;;  %v889_v15 = vld [vmem:[%s1218_s0 + $0x80] sm:$0xff]  ;;  %v899_v16 = vld [vmem:[%s1218_s0 + $0xd0] sm:$0xff]  ;;  %v878_v17 = vld [vmem:[%s1218_s0 + $0x28] sm:$0xff] }
   0x7   :  { %910 = vmatpush.bf16.msra.mxu3 %v905_v1  ;;  %v890_v18 = vld [vmem:[%s1218_s0 + $0x88] sm:$0xff]  ;;  %v900_v19 = vld [vmem:[%s1218_s0 + $0xd8] sm:$0xff]  ;;  %v879_v20 = vld [vmem:[%s1218_s0 + $0x30] sm:$0xff] }
   0x8   :  { %v891_v21 = vld [vmem:[%s1218_s0 + $0x90] sm:$0xff]  ;;  %v901_v22 = vld [vmem:[%s1218_s0 + $0xe0] sm:$0xff]  ;;  %v880_v23 = vld [vmem:[%s1218_s0 + $0x38] sm:$0xff] }
   0x9   :  { %841 = vmatmul.msk.bf16.vlgmr.msra.gmra.mxu0 %vm265_vm0, %v873_v2  ;;  %853 = vmatmul.msk.bf16.vlgmr.msra.gmra.mxu2 %vm265_vm0, %v885_v3  ;;  %v892_v24 = vld [vmem:[%s1218_s0 + $0x98] sm:$0xff]  ;;  %v902_v25 = vld [vmem:[%s1218_s0 + $0xe8] sm:$0xff]  ;;  %v881_v26 = vld [vmem:[%s1218_s0 + $0x40] sm:$0xff] }
   0xa   :  { %863 = vmatmul.msk.bf16.vlgmr.msra.gmra.mxu3 %vm265_vm0, %v895_v4  ;;  %v893_v27 = vld [vmem:[%s1218_s0 + $0xa0] sm:$0xff]  ;;  %v903_v29 = vld [vmem:[%s1218_s0 + $0xf0] sm:$0xff]  ;;  %v882_v43 = vld [vmem:[%s1218_s0 + $0x48] sm:$0xff] }
   0xb   :  { %v1059_v30 = vld [vmem:[%s1219_s2] ss:$0 sm:$0xff]  ;;  %v894_v44 = vld [vmem:[%s1218_s0 + $0xa8] sm:$0xff]  ;;  %v904_v47 = vld [vmem:[%s1218_s0 + $0xf8] sm:$0xff] }
   0xc   :  { %v883_v60 = vld [vmem:[%s1218_s0 + $0x50] sm:$0xff] }
  0x19   :  { %842 = vmatmul.msk.bf16.gmra.mxu0 %vm265_vm0, %v874_v5  ;;  %854 = vmatmul.msk.bf16.gmra.mxu2 %vm265_vm0, %v886_v6 }
  0x1a   :  { %864 = vmatmul.msk.bf16.gmra.mxu3 %vm265_vm0, %v896_v7 }
  0x29   :  { %843 = vmatmul.msk.bf16.gmra.mxu0 %vm265_vm0, %v875_v8  ;;  %855 = vmatmul.msk.bf16.gmra.mxu2 %vm265_vm0, %v887_v9 }
  0x2a   :  { %865 = vmatmul.msk.bf16.gmra.mxu3 %vm265_vm0, %v897_v10 }
  0x39   :  { %844 = vmatmul.msk.bf16.gmra.mxu0 %vm265_vm0, %v876_v11  ;;  %856 = vmatmul.msk.bf16.gmra.mxu2 %vm265_vm0, %v888_v12 }
  0x3a   :  { %866 = vmatmul.msk.bf16.gmra.mxu3 %vm265_vm0, %v898_v13 }
  0x49   :  { %845 = vmatmul.msk.bf16.gmra.mxu0 %vm265_vm0, %v877_v14  ;;  %857 = vmatmul.msk.bf16.gmra.mxu2 %vm265_vm0, %v889_v15 }
  0x4a   :  { %867 = vmatmul.msk.bf16.gmra.mxu3 %vm265_vm0, %v899_v16 }
  0x59   :  { %846 = vmatmul.msk.bf16.gmra.mxu0 %vm265_vm0, %v878_v17  ;;  %858 = vmatmul.msk.bf16.gmra.mxu2 %vm265_vm0, %v890_v18  ;;  %v884_v18 = vld [vmem:[%s1218_s0 + $0x58] sm:$0xff] }
  0x5a   :  { %868 = vmatmul.msk.bf16.gmra.mxu3 %vm265_vm0, %v900_v19 }
  0x69   :  { %847 = vmatmul.msk.bf16.gmra.mxu0 %vm265_vm0, %v879_v20  ;;  %859 = vmatmul.msk.bf16.gmra.mxu2 %vm265_vm0, %v891_v21 }
  0x6a   :  { %869 = vmatmul.msk.bf16.gmra.mxu3 %vm265_vm0, %v901_v22 }
  0x79   :  { %848 = vmatmul.msk.bf16.gmra.mxu0 %vm265_vm0, %v880_v23  ;;  %860 = vmatmul.msk.bf16.gmra.mxu2 %vm265_vm0, %v892_v24 }
  0x7a   :  { %870 = vmatmul.msk.bf16.gmra.mxu3 %vm265_vm0, %v902_v25 }
  0x86   :  { %v371_v28 = vpop.f32.mrf.mxu0 }
  0x87   :  { %v372_v32 = vadd.f32 %v1059_v30, %v371_v28 }
  0x89   :  { %849 = vmatmul.msk.bf16.gmra.mxu0 %vm265_vm0, %v881_v26  ;;  %861 = vmatmul.msk.bf16.gmra.mxu2 %vm265_vm0, %v893_v27  ;;  %v531_v36 = vmax.f32 %v372_v32, 0.0 }
  0x8a   :  { %871 = vmatmul.msk.bf16.gmra.mxu3 %vm265_vm0, %v903_v29 }
  0x8c   :  { %v431_v31 = vpop.f32.mrf.mxu2 }
  0x8d   :  { %v481_v33 = vpop.f32.mrf.mxu3  ;;  %v432_v37 = vadd.f32 %v1059_v30, %v431_v31 }
  0x8e   :  { %v373_v34 = vpop.f32.mrf.mxu0  ;;  %v482_v2 = vadd.f32 %v1059_v30, %v481_v33 }
  0x8f   :  { %v374_v35 = vadd.f32 %v1059_v30, %v373_v34  ;;  %v555_v41 = vmax.f32 %v432_v37, 0.0 }
  0x90   :  { %v575_v8 = vmax.f32 %v482_v2, 0.0 }
  0x91   :  { %v532_v38 = vmax.f32 %v374_v35, 0.0 }
  0x93   :  { %v1067_v39 = vpack.c.bf16 %v532_v38, %v531_v36 }
  0x94   :  { %v433_v40 = vpop.f32.mrf.mxu2 }
  0x95   :  { %v434_v42 = vadd.f32 %v1059_v30, %v433_v40  ;;  %v483_v45 = vpop.f32.mrf.mxu3 }
  0x96   :  { %v376_v46 = vpop.f32.mrf.mxu0  ;;  %v484_v3 = vadd.f32 %v1059_v30, %v483_v45 }
  0x97   :  { %v556_v48 = vmax.f32 %v434_v42, 0.0  ;;  %v377_v51 = vadd.f32 %v1059_v30, %v376_v46 }
  0x98   :  { %v576_v9 = vmax.f32 %v484_v3, 0.0 }
  0x99   :  { %850 = vmatmul.msk.bf16.gmra.mxu0 %vm265_vm0, %v882_v43  ;;  %862 = vmatmul.msk.bf16.gmra.mxu2 %vm265_vm0, %v894_v44  ;;  %v1081_v49 = vpack.c.bf16 %v556_v48, %v555_v41  ;;  %v533_v55 = vmax.f32 %v377_v51, 0.0 }
  0x9a   :  { %872 = vmatmul.msk.bf16.gmra.mxu3 %vm265_vm0, %v904_v47  ;;  %v617_v15 = vpack.c.bf16 %v576_v9, %v575_v8 }
  0x9c   :  { %v1084_v50 = vpop.f32.mrf.mxu2 }
  0x9d   :  { %v486_v52 = vpop.f32.mrf.mxu3 }
  0x9e   :  { %v378_v53 = vpop.f32.mrf.mxu0  ;;  %v487_v57 = vadd.f32 %v1059_v30, %v486_v52 }
  0x9f   :  { %v379_v54 = vadd.f32 %v1059_v30, %v378_v53 }
  0xa0   :  { %v577_v63 = vmax.f32 %v487_v57, 0.0 }
  0xa1   :  { %v534_v56 = vmax.f32 %v379_v54, 0.0 }
  0xa3   :  { %v1089_v58 = vpack.c.bf16 %v534_v56, %v533_v55 }
  0xa4   :  { %v1091_v59 = vpop.f32.mrf.mxu2 }
  0xa5   :  { %v488_v61 = vpop.f32.mrf.mxu3 }
  0xa6   :  { %v381_v62 = vpop.f32.mrf.mxu0  ;;  %v489_v0 = vadd.f32 %v1059_v30, %v488_v61  ;;  %v437_v61 = vadd.f32 %v1059_v30, %v1084_v50 }
  0xa7   :  { %v382_v6 = vadd.f32 %v1059_v30, %v381_v62  ;;  %v439_v62 = vadd.f32 %v1059_v30, %v1091_v59 }
  0xa8   :  { %v578_v1 = vmax.f32 %v489_v0, 0.0 }
  0xa9   :  { %851 = vmatmul.msk.bf16.gmra.mxu0 %vm265_vm0, %v883_v60  ;;  %v535_v12 = vmax.f32 %v382_v6, 0.0  ;;  %v557_v6 = vmax.f32 %v437_v61, 0.0 }
  0xaa   :  { %v618_v4 = vpack.c.bf16 %v578_v1, %v577_v63 }
  0xac   :  { %v441_v5 = vpop.f32.mrf.mxu2  ;;  %660 = vmatpush.bf16.xpose.msrb.mxu3 %v618_v4 }
  0xad   :  { %v491_v7 = vpop.f32.mrf.mxu3  ;;  %v442_v46 = vadd.f32 %v1059_v30, %v441_v5 }
  0xae   :  { %v383_v10 = vpop.f32.mrf.mxu0  ;;  %v492_v14 = vadd.f32 %v1059_v30, %v491_v7  ;;  %v558_v7 = vmax.f32 %v439_v62, 0.0 }
  0xaf   :  { %v384_v11 = vadd.f32 %v1059_v30, %v383_v10  ;;  %v559_v53 = vmax.f32 %v442_v46, 0.0 }
  0xb0   :  { %v579_v21 = vmax.f32 %v492_v14, 0.0  ;;  %v608_v14 = vpack.c.bf16 %v558_v7, %v557_v6 }
  0xb1   :  { %v536_v13 = vmax.f32 %v384_v11, 0.0 }
  0xb3   :  { %v1103_v16 = vpack.c.bf16 %v536_v13, %v535_v12 }
  0xb4   :  { %v443_v17 = vpop.f32.mrf.mxu2  ;;  %661 = vmatpush.bf16.xpose.msrb.mxu3 %v617_v15 }
  0xb5   :  { %v493_v19 = vpop.f32.mrf.mxu3  ;;  %v444_v47 = vadd.f32 %v1059_v30, %v443_v17 }
  0xb6   :  { %v386_v20 = vpop.f32.mrf.mxu0  ;;  %v494_v22 = vadd.f32 %v1059_v30, %v493_v19 }
  0xb7   :  { %v387_v26 = vadd.f32 %v1059_v30, %v386_v20  ;;  %v560_v54 = vmax.f32 %v444_v47, 0.0 }
  0xb8   :  { %v580_v23 = vmax.f32 %v494_v22, 0.0 }
  0xb9   :  { %852 = vmatmul.msk.bf16.gmra.mxu0 %vm265_vm0, %v884_v18  ;;  %v537_v31 = vmax.f32 %v387_v26, 0.0  ;;  %v609_v2 = vpack.c.bf16 %v560_v54, %v559_v53 }
  0xba   :  { %v1110_v24 = vpack.c.bf16 %v580_v23, %v579_v21 }
  0xbc   :  { %v446_v25 = vpop.f32.mrf.mxu2 }
  0xbd   :  { %v496_v27 = vpop.f32.mrf.mxu3  ;;  %v447_v32 = vadd.f32 %v1059_v30, %v446_v25 }
  0xbe   :  { %v388_v28 = vpop.f32.mrf.mxu0  ;;  %v497_v34 = vadd.f32 %v1059_v30, %v496_v27 }
  0xbf   :  { %v389_v29 = vadd.f32 %v1059_v30, %v388_v28  ;;  %v561_v37 = vmax.f32 %v447_v32, 0.0 }
  0xc0   :  { %v581_v42 = vmax.f32 %v497_v34, 0.0 }
  0xc1   :  { %v538_v33 = vmax.f32 %v389_v29, 0.0 }
  0xc3   :  { %v1116_v35 = vpack.c.bf16 %v538_v33, %v537_v31 }
  0xc4   :  { %v448_v36 = vpop.f32.mrf.mxu2 }
  0xc5   :  { %v449_v38 = vadd.f32 %v1059_v30, %v448_v36  ;;  %v498_v40 = vpop.f32.mrf.mxu3 }
  0xc6   :  { %v391_v41 = vpop.f32.mrf.mxu0  ;;  %v499_v43 = vadd.f32 %v1059_v30, %v498_v40 }
  0xc7   :  { %v562_v44 = vmax.f32 %v449_v38, 0.0  ;;  %v392_v55 = vadd.f32 %v1059_v30, %v391_v41 }
  0xc8   :  { %v582_v45 = vmax.f32 %v499_v43, 0.0 }
  0xc9   :  { %v610_v48 = vpack.c.bf16 %v562_v44, %v561_v37  ;;  %v539_v63 = vmax.f32 %v392_v55, 0.0 }
  0xca   :  { %v1122_v51 = vpack.c.bf16 %v582_v45, %v581_v42 }
  0xcb   :  { %647 = vmatpush.bf16.xpose.msrb.mxu2 %v610_v48 }
  0xcc   :  { %v451_v52 = vpop.f32.mrf.mxu2 }
  0xcd   :  { %v501_v56 = vpop.f32.mrf.mxu3  ;;  %v452_v0 = vadd.f32 %v1059_v30, %v451_v52 }
  0xce   :  { %v393_v57 = vpop.f32.mrf.mxu0  ;;  %v502_v3 = vadd.f32 %v1059_v30, %v501_v56 }
  0xcf   :  { %v394_v60 = vadd.f32 %v1059_v30, %v393_v57  ;;  %v563_v8 = vmax.f32 %v452_v0, 0.0 }
  0xd0   :  { %v583_v11 = vmax.f32 %v502_v3, 0.0 }
  0xd1   :  { %v540_v1 = vmax.f32 %v394_v60, 0.0 }
  0xd3   :  { %648 = vmatpush.bf16.xpose.msrb.mxu2 %v609_v2  ;;  %v1132_v4 = vpack.c.bf16 %v540_v1, %v539_v63 }
  0xd4   :  { %v453_v5 = vpop.f32.mrf.mxu2 }
  0xd5   :  { %v454_v9 = vadd.f32 %v1059_v30, %v453_v5  ;;  %v503_v50 = vpop.f32.mrf.mxu3 }
  0xd6   :  { %v396_v10 = vpop.f32.mrf.mxu0  ;;  %v504_v59 = vadd.f32 %v1059_v30, %v503_v50 }
  0xd7   :  { %v564_v12 = vmax.f32 %v454_v9, 0.0 }
  0xd8   :  { %v584_v13 = vmax.f32 %v504_v59, 0.0 }
  0xd9   :  { %v1136_v15 = vpack.c.bf16 %v564_v12, %v563_v8 }
  0xda   :  { %v1138_v17 = vpack.c.bf16 %v584_v13, %v583_v11  ;;  %v397_v13 = vadd.f32 %v1059_v30, %v396_v10 }
  0xdb   :  { %649 = vmatpush.bf16.xpose.msrb.mxu2 %v608_v14 }
  0xdc   :  { %v456_v18 = vpop.f32.mrf.mxu2 }
  0xdd   :  { %v506_v19 = vpop.f32.mrf.mxu3  ;;  %v457_v21 = vadd.f32 %v1059_v30, %v456_v18 }
  0xde   :  { %v398_v20 = vpop.f32.mrf.mxu0  ;;  %v507_v22 = vadd.f32 %v1059_v30, %v506_v19 }
  0xdf   :  { %v565_v25 = vmax.f32 %v457_v21, 0.0  ;;  %v399_v50 = vadd.f32 %v1059_v30, %v398_v20 }
  0xe0   :  { %v585_v29 = vmax.f32 %v507_v22, 0.0  ;;  %v541_v22 = vmax.f32 %v397_v13, 0.0 }
  0xe1   :  { %v542_v18 = vmax.f32 %v399_v50, 0.0 }
  0xe3   :  { %650 = vmatpush.bf16.xpose.msrb.mxu2 %v1081_v49 }
  0xe4   :  { %v458_v23 = vpop.f32.mrf.mxu2 }
  0xe5   :  { %v459_v26 = vadd.f32 %v1059_v30, %v458_v23  ;;  %v508_v27 = vpop.f32.mrf.mxu3 }
  0xe6   :  { %v401_v28 = vpop.f32.mrf.mxu0  ;;  %v509_v31 = vadd.f32 %v1059_v30, %v508_v27 }
  0xe7   :  { %v566_v32 = vmax.f32 %v459_v26, 0.0  ;;  %v402_v5 = vadd.f32 %v1059_v30, %v401_v28 }
  0xe8   :  { %v586_v33 = vmax.f32 %v509_v31, 0.0 }
  0xe9   :  { %v1145_v34 = vpack.c.bf16 %v566_v32, %v565_v25  ;;  %v543_v8 = vmax.f32 %v402_v5, 0.0  ;;  %v600_v25 = vpack.c.bf16 %v542_v18, %v541_v22 }
  0xea   :  { %v1147_v36 = vpack.c.bf16 %v586_v33, %v585_v29 }
  0xec   :  { %v461_v37 = vpop.f32.mrf.mxu2 }
  0xed   :  { %v511_v38 = vpop.f32.mrf.mxu3  ;;  %v462_v49 = vadd.f32 %v1059_v30, %v461_v37 }
  0xee   :  { %v403_v40 = vpop.f32.mrf.mxu0  ;;  %v512_v41 = vadd.f32 %v1059_v30, %v511_v38 }
  0xef   :  { %v567_v43 = vmax.f32 %v462_v49, 0.0  ;;  %v404_v1 = vadd.f32 %v1059_v30, %v403_v40 }
  0xf0   :  { %v587_v47 = vmax.f32 %v512_v41, 0.0 }
  0xf1   :  { %v544_v7 = vmax.f32 %v404_v1, 0.0 }
  0xf3   :  { %v601_v59 = vpack.c.bf16 %v544_v7, %v543_v8 }
  0xf4   :  { %v463_v42 = vpop.f32.mrf.mxu2 }
  0xf5   :  { %v464_v44 = vadd.f32 %v1059_v30, %v463_v42  ;;  %v513_v45 = vpop.f32.mrf.mxu3 }
  0xf6   :  { %v406_v46 = vpop.f32.mrf.mxu0  ;;  %v514_v48 = vadd.f32 %v1059_v30, %v513_v45 }
  0xf7   :  { %v568_v52 = vmax.f32 %v464_v44, 0.0  ;;  %v407_v57 = vadd.f32 %v1059_v30, %v406_v46 }
  0xf8   :  { %v588_v53 = vmax.f32 %v514_v48, 0.0 }
  0xf9   :  { %v1153_v54 = vpack.c.bf16 %v568_v52, %v567_v43  ;;  %v545_v63 = vmax.f32 %v407_v57, 0.0 }
  0xfa   :  { %v1155_v55 = vpack.c.bf16 %v588_v53, %v587_v47 }
  0xfc   :  { %v466_v56 = vpop.f32.mrf.mxu2 }
  0xfd   :  { %v1159_v62 = vpop.f32.mrf.mxu3  ;;  %v467_v47 = vadd.f32 %v1059_v30, %v466_v56 }
  0xfe   :  { %v408_v60 = vpop.f32.mrf.mxu0 }
  0xff   :  { %v409_v61 = vadd.f32 %v1059_v30, %v408_v60  ;;  %v569_v60 = vmax.f32 %v467_v47, 0.0 }
 0x101   :  { %v546_v0 = vmax.f32 %v409_v61, 0.0 }
 0x103   :  { %v602_v2 = vpack.c.bf16 %v546_v0, %v545_v63 }
 0x104   :  { %v468_v3 = vpop.f32.mrf.mxu2 }
 0x105   :  { %634 = vmatpush.bf16.xpose.msra.mxu1 %v602_v2  ;;  %v1163_v9 = vpop.f32.mrf.mxu3  ;;  %v469_v48 = vadd.f32 %v1059_v30, %v468_v3 }
 0x106   :  { %v411_v6 = vpop.f32.mrf.mxu0 }
 0x107   :  { %v412_v11 = vadd.f32 %v1059_v30, %v411_v6  ;;  %v570_v61 = vmax.f32 %v469_v48, 0.0 }
 0x109   :  { %v547_v19 = vmax.f32 %v412_v11, 0.0 }
 0x10c   :  { %v471_v12 = vpop.f32.mrf.mxu2 }
 0x10d   :  { %635 = vmatpush.bf16.xpose.msra.mxu1 %v601_v59  ;;  %v521_v26 = vpop.f32.mrf.mxu3  ;;  %v472_v42 = vadd.f32 %v1059_v30, %v471_v12 }
 0x10e   :  { %v413_v14 = vpop.f32.mrf.mxu0  ;;  %v522_v56 = vadd.f32 %v1059_v30, %v521_v26 }
 0x10f   :  { %v414_v21 = vadd.f32 %v1059_v30, %v413_v14  ;;  %v517_v14 = vadd.f32 %v1059_v30, %v1159_v62 }
 0x111   :  { %v548_v23 = vmax.f32 %v414_v21, 0.0 }
 0x113   :  { %v1169_v27 = vpack.c.bf16 %v548_v23, %v547_v19  ;;  %v627_v19 = vld [vmem:[%s1220_s3] sm:$0x1]  ;;  %v589_v23 = vmax.f32 %v517_v14, 0.0 }
 0x114   :  { %v473_v28 = vpop.f32.mrf.mxu2 }
 0x115   :  { %636 = vmatpush.bf16.xpose.msra.mxu1 %v600_v25  ;;  %v523_v10 = vpop.f32.mrf.mxu3  ;;  %v474_v43 = vadd.f32 %v1059_v30, %v473_v28 }
 0x116   :  { %v1171_v20 = vpop.f32.mrf.mxu0  ;;  %v524_v3 = vadd.f32 %v1059_v30, %v523_v10 }
 0x117   :  { %v572_v45 = vmax.f32 %v474_v43, 0.0 }
 0x118   :  { %v592_v50 = vmax.f32 %v524_v3, 0.0 }
 0x11c   :  { %v476_v29 = vpop.f32.mrf.mxu2 }
 0x11d   :  { %637 = vmatpush.bf16.xpose.msra.mxu1 %v1132_v4  ;;  %v477_v32 = vadd.f32 %v1059_v30, %v476_v29  ;;  %v526_v41 = vpop.f32.mrf.mxu3  ;;  %v571_v4 = vmax.f32 %v472_v42, 0.0 }
 0x11e   :  { %v418_v31 = vpop.f32.mrf.mxu0  ;;  %v527_v53 = vadd.f32 %v1059_v30, %v526_v41 }
 0x11f   :  { %v573_v37 = vmax.f32 %v477_v32, 0.0  ;;  %v615_v52 = vpack.c.bf16 %v572_v45, %v571_v4  ;;  %v419_v62 = vadd.f32 %v1059_v30, %v418_v31  ;;  %v914_v32 = vmov 0  }
 0x120   :  { %v593_v0 = vmax.f32 %v527_v53, 0.0  ;;  %912 = vset.pattern.permute.xlu0 %v914_v32 }
 0x121   :  { %v550_v29 = vmax.f32 %v419_v62, 0.0 }
 0x124   :  { %v478_v33 = vpop.f32.mrf.mxu2 }
 0x125   :  { %v479_v38 = vadd.f32 %v1059_v30, %v478_v33  ;;  %638 = vmatpush.bf16.xpose.msra.mxu1 %v1116_v35  ;;  %v528_v35 = vpop.f32.mrf.mxu3 }
 0x126   :  { %v421_v40 = vpop.f32.mrf.mxu0  ;;  %v529_v57 = vadd.f32 %v1059_v30, %v528_v35 }
 0x127   :  { %v574_v49 = vmax.f32 %v479_v38, 0.0  ;;  %v422_v59 = vadd.f32 %v1059_v30, %v421_v40 }
 0x128   :  { %v594_v1 = vmax.f32 %v529_v57, 0.0 }
 0x129   :  { %v616_v44 = vpack.c.bf16 %v574_v49, %v573_v37  ;;  %v551_v21 = vmax.f32 %v422_v59, 0.0 }
 0x12a   :  { %v626_v5 = vpack.c.bf16 %v594_v1, %v593_v0 }
 0x12b   :  { %662 = vmatpush.bf16.xpose.msrb.mxu3 %v616_v44 }
 0x12d   :  { %639 = vmatpush.bf16.xpose.msra.mxu1 %v1103_v16  ;;  %v614_v16 = vpack.c.bf16 %v570_v61, %v569_v60 }
 0x12e   :  { %v423_v46 = vpop.f32.mrf.mxu0 }
 0x12f   :  { %v424_v12 = vadd.f32 %v1059_v30, %v423_v46 }
 0x131   :  { %v552_v22 = vmax.f32 %v424_v12, 0.0 }
 0x133   :  { %663 = vmatpush.bf16.xpose.msrb.mxu3 %v615_v52 }
 0x135   :  { %640 = vmatpush.bf16.xpose.msra.mxu1 %v1089_v58  ;;  %v591_v58 = vmax.f32 %v522_v56, 0.0 }
 0x136   :  { %v426_v63 = vpop.f32.mrf.mxu0 }
 0x137   :  { %v427_v2 = vadd.f32 %v1059_v30, %v426_v63  ;;  %v625_v18 = vpack.c.bf16 %v592_v50, %v591_v58 }
 0x139   :  { %v553_v7 = vmax.f32 %v427_v2, 0.0 }
 0x13b   :  { %664 = vmatpush.bf16.xpose.msrb.mxu3 %v614_v16 }
 0x13d   :  { %641 = vmatpush.bf16.xpose.msra.mxu1 %v1067_v39  ;;  %v519_v39 = vadd.f32 %v1059_v30, %v1163_v9  ;;  %v605_v9 = vpack.c.bf16 %v552_v22, %v551_v21 }
 0x13e   :  { %v428_v6 = vpop.f32.mrf.mxu0 }
 0x13f   :  { %v429_v8 = vadd.f32 %v1059_v30, %v428_v6  ;;  %v590_v25 = vmax.f32 %v519_v39, 0.0 }
 0x141   :  { %v554_v11 = vmax.f32 %v429_v8, 0.0  ;;  %v624_v26 = vpack.c.bf16 %v590_v25, %v589_v23 }
 0x143   :  { %665 = vmatpush.bf16.xpose.msrb.mxu3 %v1153_v54  ;;  %v606_v13 = vpack.c.bf16 %v554_v11, %v553_v7  ;;  %v417_v54 = vadd.f32 %v1059_v30, %v1171_v20  ;;  %v628_v30 = vld [vmem:[%s1221_s4] sm:$0x3] }
 0x144   :  { %642 = vmatmul.bf16.vlgmr.msra.gmra.mxu1 %v627_v19  ;;  %631 = vperm.xlu0 %912, %v628_v30  }
 0x145   :  { %673 = vmatpush.bf16.xpose.msrb.mxu1 %v626_v5  ;;  %651 = vmatpush.bf16.xpose.msrb.mxu2 %v606_v13  ;;  %v549_v28 = vmax.f32 %v417_v54, 0.0 }
 0x147   :  { %v604_v10 = vpack.c.bf16 %v550_v29, %v549_v28 }
 0x14b   :  { %666 = vmatpush.bf16.xpose.msrb.mxu3 %v1145_v34 }
 0x14d   :  { %674 = vmatpush.bf16.xpose.msrb.mxu1 %v625_v18  ;;  %652 = vmatpush.bf16.xpose.msrb.mxu2 %v605_v9 }
 0x153   :  { %667 = vmatpush.bf16.xpose.msrb.mxu3 %v1136_v15 }
 0x155   :  { %675 = vmatpush.bf16.xpose.msrb.mxu1 %v624_v26  ;;  %653 = vmatpush.bf16.xpose.msrb.mxu2 %v604_v10 }
 0x15a   :  { %668 = vmatmul.bf16.vlgmr.msrb.gmra.mxu3 %v627_v19 }
 0x15d   :  { %676 = vmatpush.bf16.xpose.msrb.mxu1 %v1155_v55  ;;  %654 = vmatpush.bf16.xpose.msrb.mxu2 %v1169_v27 }
 0x164   :  { %655 = vmatmul.bf16.vlgmr.msrb.gmra.mxu2 %v627_v19 }
 0x165   :  { %677 = vmatpush.bf16.xpose.msrb.mxu1 %v1147_v36 }
 0x16d   :  { %678 = vmatpush.bf16.xpose.msrb.mxu1 %v1138_v17 }
 0x175   :  { %679 = vmatpush.bf16.xpose.msrb.mxu1 %v1122_v51 }
 0x17d   :  { %680 = vmatpush.bf16.xpose.msrb.mxu1 %v1110_v24 }
 0x184   :  { %681 = vmatmul.bf16.vlgmr.msrb.gmra.mxu1 %v627_v19 }
 0x1b6   :  { %v632_v37 = vpop.permute.xlu0 %631 }
 0x1c1   :  { %v643_v15 = vpop.f32.mrf.mxu1 }
 0x1c2   :  { %v644_v49 = vadd.f32 %v643_v15, %v632_v37 }
 0x1c9   :  { %v645_v34 = vpop.f32.mrf.mxu1 }
 0x1dd   :  { %v669_v55 = vpop.f32.mrf.mxu3 }
 0x1de   :  { %v670_v40 = vadd.f32 %v669_v55, %v632_v37 }
 0x1e0   :  { %v691_v41 = vrot.slane %v670_v40, 4 }
 0x1e5   :  { %v671_v20 = vpop.f32.mrf.mxu3 }
 0x1e7   :  { %v656_v31 = vpop.f32.mrf.mxu2 }
 0x1e8   :  { %v657_v38 = vadd.f32 %v656_v31, %v632_v37 }
 0x1ea   :  { %v690_v36 = vrot.slane %v657_v38, 6 }
 0x1ec   :  { %v694_v24 = vsel %vm693_vm1, %v644_v49, %v690_v36 }
 0x1ef   :  { %v658_v33 = vpop.f32.mrf.mxu2 }
 0x201   :  { %v682_v27 = vpop.f32.mrf.mxu1 }
 0x202   :  { %v683_v42 = vadd.f32 %v682_v27, %v632_v37 }
 0x204   :  { %v692_v51 = vrot.slane %v683_v42, 2 }
 0x206   :  { %v696_v17 = vsel %vm695_vm2, %v691_v41, %v692_v51 }
 0x207   :  { %v698_v43 = vsel %vm697_vm3, %v694_v24, %v696_v17 }
 0x208   :  { %700 = vst [vmem:[%s1222_s5] sm:$0xff] %v698_v43 }
 0x209   :  { %v684_v44 = vpop.f32.mrf.mxu1 }

</bundles_post_ra>
